<compile_context>
chip_gen: v6e
topology: v6e:2x2x1
jax: 0.10.0
libtpu: 0.0.40
codegen_flags: <defaults>
</compile_context>

<pallas_src>
import functools

import jax
import jax.numpy as jnp
from jax import lax
from jax.experimental import pallas as pl
from jax.experimental.pallas import tpu as pltpu

LANES = 128
_FUSED_VMEM_BUDGET = 24 * 1024 * 1024   # conservative vs 32 MiB default scoped VMEM


def _round_up(x, m):
    return (x + m - 1) // m * m


# ----------------------------------------------------------------------------
# In-kernel helpers (shared by the fused and the 3-kernel paths)
# ----------------------------------------------------------------------------
def _rowwise_stats(acc, row_chunk=64):
    """Per-channel batch sum / sum-of-squares of an (R, C) f32 conv output via
    MXU ones-vector reductions, chunked over rows so acc*acc is never
    materialized whole (keeps vreg pressure / spills down)."""
    rows, cols = acc.shape
    s = jnp.zeros((1, cols), jnp.float32)
    q = jnp.zeros((1, cols), jnp.float32)
    step = min(row_chunk, rows)
    for r0 in range(0, rows, step):
        blk = acc[r0:r0 + step]
        ones = jnp.ones((1, blk.shape[0]), jnp.float32)
        s = s + jnp.dot(ones, blk, preferred_element_type=jnp.float32)
        q = q + jnp.dot(ones, blk * blk, preferred_element_type=jnp.float32)
    return s, q


def _bn_scale_bias(s, q, gamma, beta, cnt, eps):
    """Training-mode BN scale/bias from batch sum / sum-of-squares.
    Padded lanes: gamma/beta are zero-padded -> scale = bias = 0 there, so the
    padded channels stay exactly zero through the whole block."""
    inv = 1.0 / cnt
    mean = s * inv
    var = jnp.maximum(q * inv - mean * mean, 0.0)   # clamp: cancellation safety
    scale = gamma * lax.rsqrt(var + eps)
    bias = beta - mean * scale
    return scale, bias


def _conv3x3_from_padded(pad_ref, w_ref, H, W, cin):
    """3x3 conv as tap-decomposed accumulating MXU matmuls.

    pad_ref: (H+2, Wpad, cin) f32 VMEM scratch, zero halo, image at [1:H+1, 1:W+1].
    w_ref:   (9*cin, cout_pad) bf16, tap-major / cin-minor row order.

    Taps are fused in pairs so each MXU pass has K = 2*cin (256 when cin = 128,
    i.e. full depth on the 256-deep v6e/v7x MXUs).  No (H*W, 9*cin) im2col
    patch is ever materialized.
    """
    HW = H * W
    acc = None
    tap_groups = ((0, 1), (2, 3), (4, 5), (6, 7), (8,))
    for grp in tap_groups:
        parts = []
        for t in grp:
            dy, dx = divmod(t, 3)
            tap = pad_ref[dy:dy + H, dx:dx + W, :]               # (H, W, cin) f32
            parts.append(tap.astype(jnp.bfloat16).reshape(HW, cin))
        lhs = parts[0] if len(parts) == 1 else jnp.concatenate(parts, axis=-1)
        rhs = w_ref[grp[0] * cin:(grp[-1] + 1) * cin, :]         # static, aligned
        part = jnp.dot(lhs, rhs, preferred_element_type=jnp.float32)
        acc = part if acc is None else acc + part
    return acc                                                   # (HW, cout_pad) f32


# ----------------------------------------------------------------------------
# Kernel 1 (3-kernel path): conv1 (pre-packed patch) + BN1 per-batch partials
# ----------------------------------------------------------------------------
def _conv1_stats_kernel(patch_ref, w_ref, y_ref, s_ref, q_ref, *, H, W):
    acc = jnp.dot(patch_ref[0], w_ref[...], preferred_element_type=jnp.float32)
    s, q = _rowwise_stats(acc)
    s_ref[0] = s
    q_ref[0] = q
    y_ref[0] = acc.reshape(H, W, acc.shape[-1]).astype(y_ref.dtype)   # bf16 store


# ----------------------------------------------------------------------------
# Kernel 2 (3-kernel path): BN1 affine + ReLU -> conv2 + BN2 per-batch partials
# ----------------------------------------------------------------------------
def _bnrelu_conv2_stats_kernel(y_ref, s1_ref, q1_ref, g1_ref, b1_ref, w_ref,
                               y2_ref, s2_ref, q2_ref, apad_ref,
                               *, H, W, cnt, eps):
    c1 = y_ref.shape[-1]
    s1 = jnp.sum(s1_ref[...], axis=0)        # sum the per-batch partials (N rows)
    q1 = jnp.sum(q1_ref[...], axis=0)
    scale, bias = _bn_scale_bias(s1, q1, g1_ref[...], b1_ref[...], cnt, eps)
    a = jnp.maximum(y_ref[0].astype(jnp.float32) * scale.reshape(1, 1, c1)
                    + bias.reshape(1, 1, c1), 0.0)
    # Zero-halo scratch (W padded to a sublane multiple); rebuilt every step so
    # the 'parallel' batch grid carries no cross-iteration scratch state.
    apad_ref[...] = jnp.zeros_like(apad_ref)
    apad_ref[1:H + 1, 1:W + 1, :] = a
    acc = _conv3x3_from_padded(apad_ref, w_ref, H, W, c1)
    s2, q2 = _rowwise_stats(acc)
    s2_ref[0] = s2
    q2_ref[0] = q2
    y2_ref[0] = acc.reshape(H, W, acc.shape[-1]).astype(y2_ref.dtype)


# ----------------------------------------------------------------------------
# Kernel 3 (3-kernel path): final BN2 affine + ReLU (lane-dense, parallel)
# ----------------------------------------------------------------------------
def _bnrelu_kernel(y_ref, s_ref, q_ref, g_ref, b_ref, o_ref, *, cnt, eps):
    c = y_ref.shape[-1]
    s = jnp.sum(s_ref[...], axis=0)
    q = jnp.sum(q_ref[...], axis=0)
    scale, bias = _bn_scale_bias(s, q, g_ref[...], b_ref[...], cnt, eps)
    o_ref[0] = jnp.maximum(y_ref[0].astype(jnp.float32) * scale.reshape(1, 1, c)
                           + bias.reshape(1, 1, c), 0.0)


# ----------------------------------------------------------------------------
# Fused single kernel: whole ConvBlock with y1/y2 resident in VMEM scratch
# ----------------------------------------------------------------------------
def _fused_convblock_kernel(patch_ref, w1_ref, g1_ref, b1_ref,
                            w2_ref, g2_ref, b2_ref, out_ref,
                            y1_scr, y2_scr, apad_ref,
                            *, N, H, W, cnt, eps):
    c1p = w1_ref.shape[-1]
    c2p = w2_ref.shape[-1]

    # ---- pass 1: conv1 + BN1 batch stats; y1 stays in VMEM (bf16) ----
    s1 = jnp.zeros((1, c1p), jnp.float32)
    q1 = jnp.zeros((1, c1p), jnp.float32)
    for n in range(N):
        acc = jnp.dot(patch_ref[n], w1_ref[...], preferred_element_type=jnp.float32)
        s, q = _rowwise_stats(acc)
        s1 = s1 + s
        q1 = q1 + q
        y1_scr[n] = acc.astype(y1_scr.dtype)
    scale1, bias1 = _bn_scale_bias(s1, q1, g1_ref[...], b1_ref[...], cnt, eps)

    # ---- pass 2: BN1 affine + ReLU -> conv2 + BN2 stats; y2 stays in VMEM ----
    apad_ref[...] = jnp.zeros_like(apad_ref)      # halo border stays zero
    s2 = jnp.zeros((1, c2p), jnp.float32)
    q2 = jnp.zeros((1, c2p), jnp.float32)
    for n in range(N):
        a = jnp.maximum(y1_scr[n].astype(jnp.float32) * scale1 + bias1, 0.0)
        apad_ref[1:H + 1, 1:W + 1, :] = a.reshape(H, W, c1p)
        acc = _conv3x3_from_padded(apad_ref, w2_ref, H, W, c1p)
        s, q = _rowwise_stats(acc)
        s2 = s2 + s
        q2 = q2 + q
        y2_scr[n] = acc.astype(y2_scr.dtype)
    scale2, bias2 = _bn_scale_bias(s2, q2, g2_ref[...], b2_ref[...], cnt, eps)

    # ---- pass 3: BN2 affine + ReLU, lane-dense f32 store ----
    for n in range(N):
        o = jnp.maximum(y2_scr[n].astype(jnp.float32) * scale2 + bias2, 0.0)
        out_ref[n] = o.reshape(H, W, c2p)


# ----------------------------------------------------------------------------
# pallas_call wrappers
# ----------------------------------------------------------------------------
def _conv1_stats_call(patch, w1p, c1p, H, W):
    N, HW, Kp = patch.shape
    return pl.pallas_call(
        functools.partial(_conv1_stats_kernel, H=H, W=W),
        out_shape=(jax.ShapeDtypeStruct((N, H, W, c1p), jnp.bfloat16),
                   jax.ShapeDtypeStruct((N, 1, c1p), jnp.float32),
                   jax.ShapeDtypeStruct((N, 1, c1p), jnp.float32)),
        grid_spec=pltpu.PrefetchScalarGridSpec(
            num_scalar_prefetch=0,
            grid=(N,),
            in_specs=[
                pl.BlockSpec((1, HW, Kp), lambda n: (n, 0, 0)),
                pl.BlockSpec(w1p.shape, lambda n: (0, 0)),
            ],
            out_specs=(
                pl.BlockSpec((1, H, W, c1p), lambda n: (n, 0, 0, 0)),
                pl.BlockSpec((1, 1, c1p), lambda n: (n, 0, 0)),
                pl.BlockSpec((1, 1, c1p), lambda n: (n, 0, 0)),
            ),
        ),
        compiler_params=pltpu.CompilerParams(dimension_semantics=("parallel",)),
    )(patch, w1p)


def _bnrelu_conv2_stats_call(y1, s1, q1, g1, b1, w2p, c2p, cnt, eps):
    N, H, W, c1p = y1.shape
    wpad = _round_up(W + 2, 8)
    return pl.pallas_call(
        functools.partial(_bnrelu_conv2_stats_kernel, H=H, W=W, cnt=cnt, eps=eps),
        out_shape=(jax.ShapeDtypeStruct((N, H, W, c2p), jnp.bfloat16),
                   jax.ShapeDtypeStruct((N, 1, c2p), jnp.float32),
                   jax.ShapeDtypeStruct((N, 1, c2p), jnp.float32)),
        grid_spec=pltpu.PrefetchScalarGridSpec(
            num_scalar_prefetch=0,
            grid=(N,),
            in_specs=[
                pl.BlockSpec((1, H, W, c1p), lambda n: (n, 0, 0, 0)),
                pl.BlockSpec((N, 1, c1p), lambda n: (0, 0, 0)),
                pl.BlockSpec((N, 1, c1p), lambda n: (0, 0, 0)),
                pl.BlockSpec((1, c1p), lambda n: (0, 0)),
                pl.BlockSpec((1, c1p), lambda n: (0, 0)),
                pl.BlockSpec(w2p.shape, lambda n: (0, 0)),
            ],
            out_specs=(
                pl.BlockSpec((1, H, W, c2p), lambda n: (n, 0, 0, 0)),
                pl.BlockSpec((1, 1, c2p), lambda n: (n, 0, 0)),
                pl.BlockSpec((1, 1, c2p), lambda n: (n, 0, 0)),
            ),
            scratch_shapes=[pltpu.VMEM((H + 2, wpad, c1p), jnp.float32)],
        ),
        compiler_params=pltpu.CompilerParams(dimension_semantics=("parallel",)),
    )(y1, s1, q1, g1, b1, w2p)


def _bnrelu_call(y2, s2, q2, g2, b2, cnt, eps):
    N, H, W, c2p = y2.shape
    return pl.pallas_call(
        functools.partial(_bnrelu_kernel, cnt=cnt, eps=eps),
        out_shape=jax.ShapeDtypeStruct((N, H, W, c2p), jnp.float32),
        grid_spec=pltpu.PrefetchScalarGridSpec(
            num_scalar_prefetch=0,
            grid=(N,),
            in_specs=[
                pl.BlockSpec((1, H, W, c2p), lambda n: (n, 0, 0, 0)),
                pl.BlockSpec((N, 1, c2p), lambda n: (0, 0, 0)),
                pl.BlockSpec((N, 1, c2p), lambda n: (0, 0, 0)),
                pl.BlockSpec((1, c2p), lambda n: (0, 0)),
                pl.BlockSpec((1, c2p), lambda n: (0, 0)),
            ],
            out_specs=pl.BlockSpec((1, H, W, c2p), lambda n: (n, 0, 0, 0)),
        ),
        compiler_params=pltpu.CompilerParams(dimension_semantics=("parallel",)),
    )(y2, s2, q2, g2, b2)


def _fused_convblock_call(patch, w1p, g1, b1, w2p, g2, b2, H, W, c1p, c2p, cnt, eps):
    N, HW, Kp = patch.shape
    wpad = _round_up(W + 2, 8)
    return pl.pallas_call(
        functools.partial(_fused_convblock_kernel, N=N, H=H, W=W, cnt=cnt, eps=eps),
        out_shape=jax.ShapeDtypeStruct((N, H, W, c2p), jnp.float32),
        grid_spec=pltpu.PrefetchScalarGridSpec(
            num_scalar_prefetch=0,
            grid=(1,),
            in_specs=[
                pl.BlockSpec((N, HW, Kp), lambda i: (0, 0, 0)),
                pl.BlockSpec(w1p.shape, lambda i: (0, 0)),
                pl.BlockSpec((1, c1p), lambda i: (0, 0)),
                pl.BlockSpec((1, c1p), lambda i: (0, 0)),
                pl.BlockSpec(w2p.shape, lambda i: (0, 0)),
                pl.BlockSpec((1, c2p), lambda i: (0, 0)),
                pl.BlockSpec((1, c2p), lambda i: (0, 0)),
            ],
            out_specs=pl.BlockSpec((N, H, W, c2p), lambda i: (0, 0, 0, 0)),
            scratch_shapes=[
                pltpu.VMEM((N, HW, c1p), jnp.bfloat16),     # y1 (VMEM resident)
                pltpu.VMEM((N, HW, c2p), jnp.bfloat16),     # y2 (VMEM resident)
                pltpu.VMEM((H + 2, wpad, c1p), jnp.float32)  # conv2 halo scratch
            ],
        ),
        compiler_params=pltpu.CompilerParams(dimension_semantics=("arbitrary",)),
    )(patch, w1p, g1, b1, w2p, g2, b2)


# ----------------------------------------------------------------------------
# Host-side parameter / input packing (done once, outside the kernels)
# ----------------------------------------------------------------------------
def _im2col_3x3(x_nhwc):
    """(N,H,W,C) -> (N, H*W, 9*C) patch; tap order (dy, dx) major, C minor."""
    N, H, W, C = x_nhwc.shape
    xp = jnp.pad(x_nhwc, ((0, 0), (1, 1), (1, 1), (0, 0)))
    taps = [xp[:, dy:dy + H, dx:dx + W, :] for dy in range(3) for dx in range(3)]
    return jnp.concatenate(taps, axis=-1).reshape(N, H * W, 9 * C)


def _pack_conv_weight(w_oihw, cin_pad, k_pad, cout_pad):
    """OIHW -> HWIO -> zero-pad channels -> (k_pad, cout_pad) bf16 matmul weight."""
    cout, cin, kh, kw = w_oihw.shape
    w = jnp.transpose(w_oihw, (2, 3, 1, 0)).astype(jnp.float32)
    w = jnp.pad(w, ((0, 0), (0, 0), (0, cin_pad - cin), (0, cout_pad - cout)))
    w = w.reshape(kh * kw * cin_pad, cout_pad)
    w = jnp.pad(w, ((0, k_pad - w.shape[0]), (0, 0)))
    return w.astype(jnp.bfloat16)


def _pad_vec(v, cpad):
    # Zero padding is load-bearing: padded gamma lanes must be 0 so the padded
    # channels stay exactly 0 through BN+ReLU (see _bn_scale_bias).
    return jnp.pad(v.astype(jnp.float32), (0, cpad - v.shape[0])).reshape(1, cpad)


def conv_block_forward(x_nchw, params, eps=1e-5, force_multi_kernel=False):
    x = jnp.transpose(x_nchw, (0, 2, 3, 1)).astype(jnp.float32)   # NCHW -> NHWC
    N, H, W, cin = x.shape
    c1 = params["w1"].shape[0]
    c2 = params["w2"].shape[0]
    c1p = _round_up(c1, LANES)
    c2p = _round_up(c2, LANES)
    kp1 = _round_up(9 * cin, LANES)
    cnt = float(N * H * W)
    HW = H * W

    # conv1's Cin is tiny -> build its im2col patch once host-side (a few KB)
    # instead of shuffling 4-lane taps inside the kernel.
    patch = _im2col_3x3(x)
    patch = jnp.pad(patch, ((0, 0), (0, 0), (0, kp1 - 9 * cin))).astype(jnp.bfloat16)

    w1p = _pack_conv_weight(params["w1"], cin, kp1, c1p)       # (kp1,   c1p) bf16
    w2p = _pack_conv_weight(params["w2"], c1p, 9 * c1p, c2p)   # (9*c1p, c2p) bf16
    g1, b1 = _pad_vec(params["gamma1"], c1p), _pad_vec(params["beta1"], c1p)
    g2, b2 = _pad_vec(params["gamma2"], c2p), _pad_vec(params["beta2"], c2p)

    # Fused single kernel when everything (incl. VMEM-resident y1/y2) fits the
    # scoped-VMEM budget; otherwise the 3-kernel pipelined path.
    wpad = _round_up(W + 2, 8)
    fused_bytes = (2 * (N * HW * kp1 * 2 + N * HW * c2p * 4)      # in/out (2x buf)
                   + kp1 * c1p * 2 + 9 * c1p * c2p * 2            # weights
                   + N * HW * (c1p + c2p) * 2                     # y1/y2 scratch
                   + (H + 2) * wpad * c1p * 4)                    # halo scratch
    use_fused = (not force_multi_kernel) and fused_bytes <= _FUSED_VMEM_BUDGET

    if use_fused:
        out = _fused_convblock_call(patch, w1p, g1, b1, w2p, g2, b2,
                                    H, W, c1p, c2p, cnt, eps)
    else:
        # TODO(synk): for very large H*W (v7x: 64 MiB VMEM) add a spatial
        # row-tile grid axis with a 1-row halo + explicit vmem_limit_bytes.
        y1, s1, q1 = _conv1_stats_call(patch, w1p, c1p, H, W)
        y2, s2, q2 = _bnrelu_conv2_stats_call(y1, s1, q1, g1, b1, w2p, c2p, cnt, eps)
        out = _bnrelu_call(y2, s2, q2, g2, b2, cnt, eps)

    return jnp.transpose(out[..., :c2], (0, 3, 1, 2))             # NHWC -> NCHW


# ----------------------------------------------------------------------------
# Pure-JAX reference (same semantics) for correctness check
# ----------------------------------------------------------------------------
def _ref_conv_bn_relu(x_nchw, w_oihw, gamma, beta, eps=1e-5):
    y = lax.conv_general_dilated(
        x_nchw, w_oihw, window_strides=(1, 1), padding=((1, 1), (1, 1)),
        dimension_numbers=("NCHW", "OIHW", "NCHW"),
        precision=lax.Precision.HIGHEST)
    mean = jnp.mean(y, axis=(0, 2, 3), keepdims=True)
    var = jnp.mean((y - mean) ** 2, axis=(0, 2, 3), keepdims=True)
    yn = (y - mean) * lax.rsqrt(var + eps)
    yn = yn * gamma.reshape(1, -1, 1, 1) + beta.reshape(1, -1, 1, 1)
    return jnp.maximum(yn, 0.0)


def _ref_conv_block(x_nchw, params):
    h = _ref_conv_bn_relu(x_nchw, params["w1"], params["gamma1"], params["beta1"])
    h = _ref_conv_bn_relu(h, params["w2"], params["gamma2"], params["beta2"])
    return h


# ----------------------------------------------------------------------------
if __name__ == "__main__":
    N, CH_IN, CH_OUT, H, W = 2, 4, 8, 16, 16

    key = jax.random.PRNGKey(0)
    k_x, k_w1, k_w2 = jax.random.split(key, 3)

    x = jax.random.normal(k_x, (N, CH_IN, H, W), dtype=jnp.float32)

    # Deterministic parameter init (shapes from nn.Conv2d / nn.BatchNorm2d).
    params = {
        "w1": jax.random.normal(k_w1, (CH_OUT, CH_IN, 3, 3), jnp.float32) * 0.1,
        "w2": jax.random.normal(k_w2, (CH_OUT, CH_OUT, 3, 3), jnp.float32) * 0.1,
        "gamma1": jnp.ones((CH_OUT,), jnp.float32),   # PyTorch BN default init
        "beta1": jnp.zeros((CH_OUT,), jnp.float32),
        "gamma2": jnp.ones((CH_OUT,), jnp.float32),
        "beta2": jnp.zeros((CH_OUT,), jnp.float32),
    }
    # TODO(synk): BatchNorm running_mean/running_var (momentum) buffer updates
    # are training-time side effects that do not affect this forward output.

    ref = jax.block_until_ready(_ref_conv_block(x, params))

    # Fused single-kernel path (auto-selected at this problem size).
    fwd_fused = jax.jit(functools.partial(conv_block_forward, force_multi_kernel=False))
    out_fused = jax.block_until_ready(fwd_fused(x, params))
    assert out_fused.shape == (N, CH_OUT, H, W), out_fused.shape
    # bf16 MXU operands (f32 accumulation) -> slightly looser tolerance vs the
    # f32 HIGHEST-precision reference.
    assert jnp.allclose(out_fused, ref, rtol=2e-2, atol=2e-2), (
        float(jnp.max(jnp.abs(out_fused - ref))))

    # Large-shape fallback: 3-kernel pipelined path.
    fwd_multi = jax.jit(functools.partial(conv_block_forward, force_multi_kernel=True))
    out_multi = jax.block_until_ready(fwd_multi(x, params))
    assert out_multi.shape == (N, CH_OUT, H, W), out_multi.shape
    assert jnp.allclose(out_multi, ref, rtol=2e-2, atol=2e-2), (
        float(jnp.max(jnp.abs(out_multi - ref))))

    print("KERNEL_OK")
</pallas_src>

<mosaic_0001>
module attributes {stable_mosaic.version = 11 : i64} {
  func.func @_fused_convblock_kernel(%arg0: i32, %arg1: memref<2x256x128xbf16, #tpu.memory_space<vmem>>, %arg2: memref<128x128xbf16, #tpu.memory_space<vmem>>, %arg3: memref<1x128xf32, #tpu.memory_space<vmem>>, %arg4: memref<1x128xf32, #tpu.memory_space<vmem>>, %arg5: memref<1152x128xbf16, #tpu.memory_space<vmem>>, %arg6: memref<1x128xf32, #tpu.memory_space<vmem>>, %arg7: memref<1x128xf32, #tpu.memory_space<vmem>>, %arg8: memref<2x16x16x128xf32, #tpu.memory_space<vmem>>, %arg9: memref<2x256x128xbf16, #tpu.memory_space<vmem>>, %arg10: memref<2x256x128xbf16, #tpu.memory_space<vmem>>, %arg11: memref<18x24x128xf32, #tpu.memory_space<vmem>>) attributes {dimension_semantics = [#tpu.dimension_semantics<arbitrary>], iteration_bounds = array<i64: 1>, scalar_prefetch = 0 : i64, scratch_operands = 3 : i64, tpu.core_type = #tpu.core_type<tc>, window_params = [{pipeline_mode = #tpu.pipeline_mode<synchronous>, transform_indices = @transform_0, window_bounds = array<i64: 2, 256, 128>}, {pipeline_mode = #tpu.pipeline_mode<synchronous>, transform_indices = @transform_1, window_bounds = array<i64: 128, 128>}, {pipeline_mode = #tpu.pipeline_mode<synchronous>, transform_indices = @transform_2, window_bounds = array<i64: 1, 128>}, {pipeline_mode = #tpu.pipeline_mode<synchronous>, transform_indices = @transform_3, window_bounds = array<i64: 1, 128>}, {pipeline_mode = #tpu.pipeline_mode<synchronous>, transform_indices = @transform_4, window_bounds = array<i64: 1152, 128>}, {pipeline_mode = #tpu.pipeline_mode<synchronous>, transform_indices = @transform_5, window_bounds = array<i64: 1, 128>}, {pipeline_mode = #tpu.pipeline_mode<synchronous>, transform_indices = @transform_6, window_bounds = array<i64: 1, 128>}, {pipeline_mode = #tpu.pipeline_mode<synchronous>, transform_indices = @transform_7, window_bounds = array<i64: 2, 16, 16, 128>}]} {
    %cst = arith.constant 0.000000e+00 : f32
    %0 = vector.broadcast %cst : f32 to vector<1x128xf32>
    %cst_0 = arith.constant 0.000000e+00 : f32
    %1 = vector.broadcast %cst_0 : f32 to vector<1x128xf32>
    %c0 = arith.constant 0 : index
    %c0_1 = arith.constant 0 : index
    %c0_2 = arith.constant 0 : index
    %2 = vector.load %arg1[%c0, %c0_1, %c0_2] : memref<2x256x128xbf16, #tpu.memory_space<vmem>>, vector<1x256x128xbf16>
    %3 = vector.shape_cast %2 : vector<1x256x128xbf16> to vector<256x128xbf16>
    %c0_3 = arith.constant 0 : index
    %c0_4 = arith.constant 0 : index
    %4 = vector.load %arg2[%c0_3, %c0_4] : memref<128x128xbf16, #tpu.memory_space<vmem>>, vector<128x128xbf16>
    %cst_5 = arith.constant dense<0.000000e+00> : vector<256x128xf32>
    %5 = tpu.matmul %3, %4, %cst_5 {dimension_numbers = #tpu.dot_dimension_numbers<[1], [0], [0], [1], [0, 0, 1, 1], [], []>} : vector<256x128xbf16>, vector<128x128xbf16>, vector<256x128xf32> -> vector<256x128xf32>
    %cst_6 = arith.constant 0.000000e+00 : f32
    %6 = vector.broadcast %cst_6 : f32 to vector<1x128xf32>
    %cst_7 = arith.constant 0.000000e+00 : f32
    %7 = vector.broadcast %cst_7 : f32 to vector<1x128xf32>
    %8 = vector.extract_strided_slice %5 {offsets = [0, 0], sizes = [64, 128], strides = [1, 1]} : vector<256x128xf32> to vector<64x128xf32>
    %cst_8 = arith.constant 1.000000e+00 : f32
    %9 = vector.broadcast %cst_8 : f32 to vector<1x64xf32>
    %cst_9 = arith.constant dense<0.000000e+00> : vector<1x128xf32>
    %10 = tpu.matmul %9, %8, %cst_9 {dimension_numbers = #tpu.dot_dimension_numbers<[1], [0], [0], [1], [0, 0, 1, 1], [], []>} : vector<1x64xf32>, vector<64x128xf32>, vector<1x128xf32> -> vector<1x128xf32>
    %11 = arith.addf %6, %10 : vector<1x128xf32>
    %12 = arith.mulf %8, %8 : vector<64x128xf32>
    %cst_10 = arith.constant dense<0.000000e+00> : vector<1x128xf32>
    %13 = tpu.matmul %9, %12, %cst_10 {dimension_numbers = #tpu.dot_dimension_numbers<[1], [0], [0], [1], [0, 0, 1, 1], [], []>} : vector<1x64xf32>, vector<64x128xf32>, vector<1x128xf32> -> vector<1x128xf32>
    %14 = arith.addf %7, %13 : vector<1x128xf32>
    %15 = vector.extract_strided_slice %5 {offsets = [64, 0], sizes = [64, 128], strides = [1, 1]} : vector<256x128xf32> to vector<64x128xf32>
    %cst_11 = arith.constant 1.000000e+00 : f32
    %16 = vector.broadcast %cst_11 : f32 to vector<1x64xf32>
    %cst_12 = arith.constant dense<0.000000e+00> : vector<1x128xf32>
    %17 = tpu.matmul %16, %15, %cst_12 {dimension_numbers = #tpu.dot_dimension_numbers<[1], [0], [0], [1], [0, 0, 1, 1], [], []>} : vector<1x64xf32>, vector<64x128xf32>, vector<1x128xf32> -> vector<1x128xf32>
    %18 = arith.addf %11, %17 : vector<1x128xf32>
    %19 = arith.mulf %15, %15 : vector<64x128xf32>
    %cst_13 = arith.constant dense<0.000000e+00> : vector<1x128xf32>
    %20 = tpu.matmul %16, %19, %cst_13 {dimension_numbers = #tpu.dot_dimension_numbers<[1], [0], [0], [1], [0, 0, 1, 1], [], []>} : vector<1x64xf32>, vector<64x128xf32>, vector<1x128xf32> -> vector<1x128xf32>
    %21 = arith.addf %14, %20 : vector<1x128xf32>
    %22 = vector.extract_strided_slice %5 {offsets = [128, 0], sizes = [64, 128], strides = [1, 1]} : vector<256x128xf32> to vector<64x128xf32>
    %cst_14 = arith.constant 1.000000e+00 : f32
    %23 = vector.broadcast %cst_14 : f32 to vector<1x64xf32>
    %cst_15 = arith.constant dense<0.000000e+00> : vector<1x128xf32>
    %24 = tpu.matmul %23, %22, %cst_15 {dimension_numbers = #tpu.dot_dimension_numbers<[1], [0], [0], [1], [0, 0, 1, 1], [], []>} : vector<1x64xf32>, vector<64x128xf32>, vector<1x128xf32> -> vector<1x128xf32>
    %25 = arith.addf %18, %24 : vector<1x128xf32>
    %26 = arith.mulf %22, %22 : vector<64x128xf32>
    %cst_16 = arith.constant dense<0.000000e+00> : vector<1x128xf32>
    %27 = tpu.matmul %23, %26, %cst_16 {dimension_numbers = #tpu.dot_dimension_numbers<[1], [0], [0], [1], [0, 0, 1, 1], [], []>} : vector<1x64xf32>, vector<64x128xf32>, vector<1x128xf32> -> vector<1x128xf32>
    %28 = arith.addf %21, %27 : vector<1x128xf32>
    %29 = vector.extract_strided_slice %5 {offsets = [192, 0], sizes = [64, 128], strides = [1, 1]} : vector<256x128xf32> to vector<64x128xf32>
    %cst_17 = arith.constant 1.000000e+00 : f32
    %30 = vector.broadcast %cst_17 : f32 to vector<1x64xf32>
    %cst_18 = arith.constant dense<0.000000e+00> : vector<1x128xf32>
    %31 = tpu.matmul %30, %29, %cst_18 {dimension_numbers = #tpu.dot_dimension_numbers<[1], [0], [0], [1], [0, 0, 1, 1], [], []>} : vector<1x64xf32>, vector<64x128xf32>, vector<1x128xf32> -> vector<1x128xf32>
    %32 = arith.addf %25, %31 : vector<1x128xf32>
    %33 = arith.mulf %29, %29 : vector<64x128xf32>
    %cst_19 = arith.constant dense<0.000000e+00> : vector<1x128xf32>
    %34 = tpu.matmul %30, %33, %cst_19 {dimension_numbers = #tpu.dot_dimension_numbers<[1], [0], [0], [1], [0, 0, 1, 1], [], []>} : vector<1x64xf32>, vector<64x128xf32>, vector<1x128xf32> -> vector<1x128xf32>
    %35 = arith.addf %28, %34 : vector<1x128xf32>
    %36 = arith.addf %0, %32 : vector<1x128xf32>
    %37 = arith.addf %1, %35 : vector<1x128xf32>
    %38 = arith.truncf %5 : vector<256x128xf32> to vector<256x128xbf16>
    %c0_20 = arith.constant 0 : index
    %c0_21 = arith.constant 0 : index
    %c0_22 = arith.constant 0 : index
    %39 = vector.load %arg9[%c0_20, %c0_21, %c0_22] : memref<2x256x128xbf16, #tpu.memory_space<vmem>>, vector<1x256x128xbf16>
    %40 = vector.shape_cast %39 : vector<1x256x128xbf16> to vector<256x128xbf16>
    %41 = vector.shape_cast %38 : vector<256x128xbf16> to vector<1x256x128xbf16>
    tpu.vector_store %arg9[%c0_20, %c0_21, %c0_22], %41 {strides = array<i32>} : memref<2x256x128xbf16, #tpu.memory_space<vmem>>, vector<1x256x128xbf16>,
    %c1 = arith.constant 1 : index
    %c0_23 = arith.constant 0 : index
    %c0_24 = arith.constant 0 : index
    %42 = vector.load %arg1[%c1, %c0_23, %c0_24] : memref<2x256x128xbf16, #tpu.memory_space<vmem>>, vector<1x256x128xbf16>
    %43 = vector.shape_cast %42 : vector<1x256x128xbf16> to vector<256x128xbf16>
    %c0_25 = arith.constant 0 : index
    %c0_26 = arith.constant 0 : index
    %44 = vector.load %arg2[%c0_25, %c0_26] : memref<128x128xbf16, #tpu.memory_space<vmem>>, vector<128x128xbf16>
    %cst_27 = arith.constant dense<0.000000e+00> : vector<256x128xf32>
    %45 = tpu.matmul %43, %44, %cst_27 {dimension_numbers = #tpu.dot_dimension_numbers<[1], [0], [0], [1], [0, 0, 1, 1], [], []>} : vector<256x128xbf16>, vector<128x128xbf16>, vector<256x128xf32> -> vector<256x128xf32>
    %cst_28 = arith.constant 0.000000e+00 : f32
    %46 = vector.broadcast %cst_28 : f32 to vector<1x128xf32>
    %cst_29 = arith.constant 0.000000e+00 : f32
    %47 = vector.broadcast %cst_29 : f32 to vector<1x128xf32>
    %48 = vector.extract_strided_slice %45 {offsets = [0, 0], sizes = [64, 128], strides = [1, 1]} : vector<256x128xf32> to vector<64x128xf32>
    %cst_30 = arith.constant 1.000000e+00 : f32
    %49 = vector.broadcast %cst_30 : f32 to vector<1x64xf32>
    %cst_31 = arith.constant dense<0.000000e+00> : vector<1x128xf32>
    %50 = tpu.matmul %49, %48, %cst_31 {dimension_numbers = #tpu.dot_dimension_numbers<[1], [0], [0], [1], [0, 0, 1, 1], [], []>} : vector<1x64xf32>, vector<64x128xf32>, vector<1x128xf32> -> vector<1x128xf32>
    %51 = arith.addf %46, %50 : vector<1x128xf32>
    %52 = arith.mulf %48, %48 : vector<64x128xf32>
    %cst_32 = arith.constant dense<0.000000e+00> : vector<1x128xf32>
    %53 = tpu.matmul %49, %52, %cst_32 {dimension_numbers = #tpu.dot_dimension_numbers<[1], [0], [0], [1], [0, 0, 1, 1], [], []>} : vector<1x64xf32>, vector<64x128xf32>, vector<1x128xf32> -> vector<1x128xf32>
    %54 = arith.addf %47, %53 : vector<1x128xf32>
    %55 = vector.extract_strided_slice %45 {offsets = [64, 0], sizes = [64, 128], strides = [1, 1]} : vector<256x128xf32> to vector<64x128xf32>
    %cst_33 = arith.constant 1.000000e+00 : f32
    %56 = vector.broadcast %cst_33 : f32 to vector<1x64xf32>
    %cst_34 = arith.constant dense<0.000000e+00> : vector<1x128xf32>
    %57 = tpu.matmul %56, %55, %cst_34 {dimension_numbers = #tpu.dot_dimension_numbers<[1], [0], [0], [1], [0, 0, 1, 1], [], []>} : vector<1x64xf32>, vector<64x128xf32>, vector<1x128xf32> -> vector<1x128xf32>
    %58 = arith.addf %51, %57 : vector<1x128xf32>
    %59 = arith.mulf %55, %55 : vector<64x128xf32>
    %cst_35 = arith.constant dense<0.000000e+00> : vector<1x128xf32>
    %60 = tpu.matmul %56, %59, %cst_35 {dimension_numbers = #tpu.dot_dimension_numbers<[1], [0], [0], [1], [0, 0, 1, 1], [], []>} : vector<1x64xf32>, vector<64x128xf32>, vector<1x128xf32> -> vector<1x128xf32>
    %61 = arith.addf %54, %60 : vector<1x128xf32>
    %62 = vector.extract_strided_slice %45 {offsets = [128, 0], sizes = [64, 128], strides = [1, 1]} : vector<256x128xf32> to vector<64x128xf32>
    %cst_36 = arith.constant 1.000000e+00 : f32
    %63 = vector.broadcast %cst_36 : f32 to vector<1x64xf32>
    %cst_37 = arith.constant dense<0.000000e+00> : vector<1x128xf32>
    %64 = tpu.matmul %63, %62, %cst_37 {dimension_numbers = #tpu.dot_dimension_numbers<[1], [0], [0], [1], [0, 0, 1, 1], [], []>} : vector<1x64xf32>, vector<64x128xf32>, vector<1x128xf32> -> vector<1x128xf32>
    %65 = arith.addf %58, %64 : vector<1x128xf32>
    %66 = arith.mulf %62, %62 : vector<64x128xf32>
    %cst_38 = arith.constant dense<0.000000e+00> : vector<1x128xf32>
    %67 = tpu.matmul %63, %66, %cst_38 {dimension_numbers = #tpu.dot_dimension_numbers<[1], [0], [0], [1], [0, 0, 1, 1], [], []>} : vector<1x64xf32>, vector<64x128xf32>, vector<1x128xf32> -> vector<1x128xf32>
    %68 = arith.addf %61, %67 : vector<1x128xf32>
    %69 = vector.extract_strided_slice %45 {offsets = [192, 0], sizes = [64, 128], strides = [1, 1]} : vector<256x128xf32> to vector<64x128xf32>
    %cst_39 = arith.constant 1.000000e+00 : f32
    %70 = vector.broadcast %cst_39 : f32 to vector<1x64xf32>
    %cst_40 = arith.constant dense<0.000000e+00> : vector<1x128xf32>
    %71 = tpu.matmul %70, %69, %cst_40 {dimension_numbers = #tpu.dot_dimension_numbers<[1], [0], [0], [1], [0, 0, 1, 1], [], []>} : vector<1x64xf32>, vector<64x128xf32>, vector<1x128xf32> -> vector<1x128xf32>
    %72 = arith.addf %65, %71 : vector<1x128xf32>
    %73 = arith.mulf %69, %69 : vector<64x128xf32>
    %cst_41 = arith.constant dense<0.000000e+00> : vector<1x128xf32>
    %74 = tpu.matmul %70, %73, %cst_41 {dimension_numbers = #tpu.dot_dimension_numbers<[1], [0], [0], [1], [0, 0, 1, 1], [], []>} : vector<1x64xf32>, vector<64x128xf32>, vector<1x128xf32> -> vector<1x128xf32>
    %75 = arith.addf %68, %74 : vector<1x128xf32>
    %76 = arith.addf %36, %72 : vector<1x128xf32>
    %77 = arith.addf %37, %75 : vector<1x128xf32>
    %78 = arith.truncf %45 : vector<256x128xf32> to vector<256x128xbf16>
    %c1_42 = arith.constant 1 : index
    %c0_43 = arith.constant 0 : index
    %c0_44 = arith.constant 0 : index
    %79 = vector.load %arg9[%c1_42, %c0_43, %c0_44] : memref<2x256x128xbf16, #tpu.memory_space<vmem>>, vector<1x256x128xbf16>
    %80 = vector.shape_cast %79 : vector<1x256x128xbf16> to vector<256x128xbf16>
    %81 = vector.shape_cast %78 : vector<256x128xbf16> to vector<1x256x128xbf16>
    tpu.vector_store %arg9[%c1_42, %c0_43, %c0_44], %81 {strides = array<i32>} : memref<2x256x128xbf16, #tpu.memory_space<vmem>>, vector<1x256x128xbf16>,
    %c0_45 = arith.constant 0 : index
    %c0_46 = arith.constant 0 : index
    %82 = vector.load %arg3[%c0_45, %c0_46] : memref<1x128xf32, #tpu.memory_space<vmem>>, vector<1x128xf32>
    %c0_47 = arith.constant 0 : index
    %c0_48 = arith.constant 0 : index
    %83 = vector.load %arg4[%c0_47, %c0_48] : memref<1x128xf32, #tpu.memory_space<vmem>>, vector<1x128xf32>
    %cst_49 = arith.constant 0.001953125 : f32
    %84 = vector.broadcast %cst_49 : f32 to vector<1x128xf32>
    %85 = arith.mulf %76, %84 : vector<1x128xf32>
    %cst_50 = arith.constant 0.001953125 : f32
    %86 = vector.broadcast %cst_50 : f32 to vector<1x128xf32>
    %87 = arith.mulf %77, %86 : vector<1x128xf32>
    %88 = arith.mulf %85, %85 : vector<1x128xf32>
    %89 = arith.subf %87, %88 : vector<1x128xf32>
    %cst_51 = arith.constant 0.000000e+00 : f32
    %90 = vector.broadcast %cst_51 : f32 to vector<1x128xf32>
    %91 = arith.maximumf %89, %90 : vector<1x128xf32>
    %cst_52 = arith.constant 9.99999974E-6 : f32
    %92 = vector.broadcast %cst_52 : f32 to vector<1x128xf32>
    %93 = arith.addf %91, %92 : vector<1x128xf32>
    %94 = math.rsqrt %93 : vector<1x128xf32>
    %95 = arith.mulf %82, %94 : vector<1x128xf32>
    %96 = arith.mulf %85, %95 : vector<1x128xf32>
    %97 = arith.subf %83, %96 : vector<1x128xf32>
    %cst_53 = arith.constant 0.000000e+00 : f32
    %98 = vector.broadcast %cst_53 : f32 to vector<18x24x128xf32>
    %c0_54 = arith.constant 0 : index
    %c0_55 = arith.constant 0 : index
    %c0_56 = arith.constant 0 : index
    %99 = vector.load %arg11[%c0_54, %c0_55, %c0_56] : memref<18x24x128xf32, #tpu.memory_space<vmem>>, vector<18x24x128xf32>
    tpu.vector_store %arg11[%c0_54, %c0_55, %c0_56], %98 {strides = array<i32>} : memref<18x24x128xf32, #tpu.memory_space<vmem>>, vector<18x24x128xf32>,
    %cst_57 = arith.constant 0.000000e+00 : f32
    %100 = vector.broadcast %cst_57 : f32 to vector<1x128xf32>
    %cst_58 = arith.constant 0.000000e+00 : f32
    %101 = vector.broadcast %cst_58 : f32 to vector<1x128xf32>
    %c0_59 = arith.constant 0 : index
    %c0_60 = arith.constant 0 : index
    %c0_61 = arith.constant 0 : index
    %102 = vector.load %arg9[%c0_59, %c0_60, %c0_61] : memref<2x256x128xbf16, #tpu.memory_space<vmem>>, vector<1x256x128xbf16>
    %103 = vector.shape_cast %102 : vector<1x256x128xbf16> to vector<256x128xbf16>
    %104 = arith.extf %103 : vector<256x128xbf16> to vector<256x128xf32>
    %105 = vector.broadcast %95 : vector<1x128xf32> to vector<256x128xf32>
    %106 = arith.mulf %104, %105 : vector<256x128xf32>
    %107 = vector.broadcast %97 : vector<1x128xf32> to vector<256x128xf32>
    %108 = arith.addf %106, %107 : vector<256x128xf32>
    %cst_62 = arith.constant 0.000000e+00 : f32
    %109 = vector.broadcast %cst_62 : f32 to vector<256x128xf32>
    %110 = arith.maximumf %108, %109 : vector<256x128xf32>
    %111 = vector.shape_cast %110 : vector<256x128xf32> to vector<16x16x128xf32>
    %c1_63 = arith.constant 1 : index
    %c1_64 = arith.constant 1 : index
    %c0_65 = arith.constant 0 : index
    %112 = vector.load %arg11[%c1_63, %c1_64, %c0_65] : memref<18x24x128xf32, #tpu.memory_space<vmem>>, vector<16x16x128xf32>
    tpu.vector_store %arg11[%c1_63, %c1_64, %c0_65], %111 {strides = array<i32>} : memref<18x24x128xf32, #tpu.memory_space<vmem>>, vector<16x16x128xf32>,
    %c0_66 = arith.constant 0 : index
    %c0_67 = arith.constant 0 : index
    %c0_68 = arith.constant 0 : index
    %113 = vector.load %arg11[%c0_66, %c0_67, %c0_68] : memref<18x24x128xf32, #tpu.memory_space<vmem>>, vector<16x16x128xf32>
    %114 = arith.truncf %113 : vector<16x16x128xf32> to vector<16x16x128xbf16>
    %115 = vector.shape_cast %114 : vector<16x16x128xbf16> to vector<256x128xbf16>
    %c0_69 = arith.constant 0 : index
    %c1_70 = arith.constant 1 : index
    %c0_71 = arith.constant 0 : index
    %116 = vector.load %arg11[%c0_69, %c1_70, %c0_71] : memref<18x24x128xf32, #tpu.memory_space<vmem>>, vector<16x16x128xf32>
    %117 = arith.truncf %116 : vector<16x16x128xf32> to vector<16x16x128xbf16>
    %118 = vector.shape_cast %117 : vector<16x16x128xbf16> to vector<256x128xbf16>
    %119 = tpu.concatenate %115, %118 in 1 : vector<256x128xbf16>, vector<256x128xbf16> -> vector<256x256xbf16>
    %c0_72 = arith.constant 0 : index
    %c0_73 = arith.constant 0 : index
    %120 = vector.load %arg5[%c0_72, %c0_73] : memref<1152x128xbf16, #tpu.memory_space<vmem>>, vector<256x128xbf16>
    %cst_74 = arith.constant dense<0.000000e+00> : vector<256x128xf32>
    %121 = tpu.matmul %119, %120, %cst_74 {dimension_numbers = #tpu.dot_dimension_numbers<[1], [0], [0], [1], [0, 0, 1, 1], [], []>} : vector<256x256xbf16>, vector<256x128xbf16>, vector<256x128xf32> -> vector<256x128xf32>
    %c0_75 = arith.constant 0 : index
    %c2 = arith.constant 2 : index
    %c0_76 = arith.constant 0 : index
    %122 = vector.load %arg11[%c0_75, %c2, %c0_76] : memref<18x24x128xf32, #tpu.memory_space<vmem>>, vector<16x16x128xf32>
    %123 = arith.truncf %122 : vector<16x16x128xf32> to vector<16x16x128xbf16>
    %124 = vector.shape_cast %123 : vector<16x16x128xbf16> to vector<256x128xbf16>
    %c1_77 = arith.constant 1 : index
    %c0_78 = arith.constant 0 : index
    %c0_79 = arith.constant 0 : index
    %125 = vector.load %arg11[%c1_77, %c0_78, %c0_79] : memref<18x24x128xf32, #tpu.memory_space<vmem>>, vector<16x16x128xf32>
    %126 = arith.truncf %125 : vector<16x16x128xf32> to vector<16x16x128xbf16>
    %127 = vector.shape_cast %126 : vector<16x16x128xbf16> to vector<256x128xbf16>
    %128 = tpu.concatenate %124, %127 in 1 : vector<256x128xbf16>, vector<256x128xbf16> -> vector<256x256xbf16>
    %c256 = arith.constant 256 : index
    %c0_80 = arith.constant 0 : index
    %129 = vector.load %arg5[%c256, %c0_80] : memref<1152x128xbf16, #tpu.memory_space<vmem>>, vector<256x128xbf16>
    %cst_81 = arith.constant dense<0.000000e+00> : vector<256x128xf32>
    %130 = tpu.matmul %128, %129, %cst_81 {dimension_numbers = #tpu.dot_dimension_numbers<[1], [0], [0], [1], [0, 0, 1, 1], [], []>} : vector<256x256xbf16>, vector<256x128xbf16>, vector<256x128xf32> -> vector<256x128xf32>
    %131 = arith.addf %121, %130 : vector<256x128xf32>
    %c1_82 = arith.constant 1 : index
    %c1_83 = arith.constant 1 : index
    %c0_84 = arith.constant 0 : index
    %132 = vector.load %arg11[%c1_82, %c1_83, %c0_84] : memref<18x24x128xf32, #tpu.memory_space<vmem>>, vector<16x16x128xf32>
    %133 = arith.truncf %132 : vector<16x16x128xf32> to vector<16x16x128xbf16>
    %134 = vector.shape_cast %133 : vector<16x16x128xbf16> to vector<256x128xbf16>
    %c1_85 = arith.constant 1 : index
    %c2_86 = arith.constant 2 : index
    %c0_87 = arith.constant 0 : index
    %135 = vector.load %arg11[%c1_85, %c2_86, %c0_87] : memref<18x24x128xf32, #tpu.memory_space<vmem>>, vector<16x16x128xf32>
    %136 = arith.truncf %135 : vector<16x16x128xf32> to vector<16x16x128xbf16>
    %137 = vector.shape_cast %136 : vector<16x16x128xbf16> to vector<256x128xbf16>
    %138 = tpu.concatenate %134, %137 in 1 : vector<256x128xbf16>, vector<256x128xbf16> -> vector<256x256xbf16>
    %c512 = arith.constant 512 : index
    %c0_88 = arith.constant 0 : index
    %139 = vector.load %arg5[%c512, %c0_88] : memref<1152x128xbf16, #tpu.memory_space<vmem>>, vector<256x128xbf16>
    %cst_89 = arith.constant dense<0.000000e+00> : vector<256x128xf32>
    %140 = tpu.matmul %138, %139, %cst_89 {dimension_numbers = #tpu.dot_dimension_numbers<[1], [0], [0], [1], [0, 0, 1, 1], [], []>} : vector<256x256xbf16>, vector<256x128xbf16>, vector<256x128xf32> -> vector<256x128xf32>
    %141 = arith.addf %131, %140 : vector<256x128xf32>
    %c2_90 = arith.constant 2 : index
    %c0_91 = arith.constant 0 : index
    %c0_92 = arith.constant 0 : index
    %142 = vector.load %arg11[%c2_90, %c0_91, %c0_92] : memref<18x24x128xf32, #tpu.memory_space<vmem>>, vector<16x16x128xf32>
    %143 = arith.truncf %142 : vector<16x16x128xf32> to vector<16x16x128xbf16>
    %144 = vector.shape_cast %143 : vector<16x16x128xbf16> to vector<256x128xbf16>
    %c2_93 = arith.constant 2 : index
    %c1_94 = arith.constant 1 : index
    %c0_95 = arith.constant 0 : index
    %145 = vector.load %arg11[%c2_93, %c1_94, %c0_95] : memref<18x24x128xf32, #tpu.memory_space<vmem>>, vector<16x16x128xf32>
    %146 = arith.truncf %145 : vector<16x16x128xf32> to vector<16x16x128xbf16>
    %147 = vector.shape_cast %146 : vector<16x16x128xbf16> to vector<256x128xbf16>
    %148 = tpu.concatenate %144, %147 in 1 : vector<256x128xbf16>, vector<256x128xbf16> -> vector<256x256xbf16>
    %c768 = arith.constant 768 : index
    %c0_96 = arith.constant 0 : index
    %149 = vector.load %arg5[%c768, %c0_96] : memref<1152x128xbf16, #tpu.memory_space<vmem>>, vector<256x128xbf16>
    %cst_97 = arith.constant dense<0.000000e+00> : vector<256x128xf32>
    %150 = tpu.matmul %148, %149, %cst_97 {dimension_numbers = #tpu.dot_dimension_numbers<[1], [0], [0], [1], [0, 0, 1, 1], [], []>} : vector<256x256xbf16>, vector<256x128xbf16>, vector<256x128xf32> -> vector<256x128xf32>
    %151 = arith.addf %141, %150 : vector<256x128xf32>
    %c2_98 = arith.constant 2 : index
    %c2_99 = arith.constant 2 : index
    %c0_100 = arith.constant 0 : index
    %152 = vector.load %arg11[%c2_98, %c2_99, %c0_100] : memref<18x24x128xf32, #tpu.memory_space<vmem>>, vector<16x16x128xf32>
    %153 = arith.truncf %152 : vector<16x16x128xf32> to vector<16x16x128xbf16>
    %154 = vector.shape_cast %153 : vector<16x16x128xbf16> to vector<256x128xbf16>
    %c1024 = arith.constant 1024 : index
    %c0_101 = arith.constant 0 : index
    %155 = vector.load %arg5[%c1024, %c0_101] : memref<1152x128xbf16, #tpu.memory_space<vmem>>, vector<128x128xbf16>
    %cst_102 = arith.constant dense<0.000000e+00> : vector<256x128xf32>
    %156 = tpu.matmul %154, %155, %cst_102 {dimension_numbers = #tpu.dot_dimension_numbers<[1], [0], [0], [1], [0, 0, 1, 1], [], []>} : vector<256x128xbf16>, vector<128x128xbf16>, vector<256x128xf32> -> vector<256x128xf32>
    %157 = arith.addf %151, %156 : vector<256x128xf32>
    %cst_103 = arith.constant 0.000000e+00 : f32
    %158 = vector.broadcast %cst_103 : f32 to vector<1x128xf32>
    %cst_104 = arith.constant 0.000000e+00 : f32
    %159 = vector.broadcast %cst_104 : f32 to vector<1x128xf32>
    %160 = vector.extract_strided_slice %157 {offsets = [0, 0], sizes = [64, 128], strides = [1, 1]} : vector<256x128xf32> to vector<64x128xf32>
    %cst_105 = arith.constant 1.000000e+00 : f32
    %161 = vector.broadcast %cst_105 : f32 to vector<1x64xf32>
    %cst_106 = arith.constant dense<0.000000e+00> : vector<1x128xf32>
    %162 = tpu.matmul %161, %160, %cst_106 {dimension_numbers = #tpu.dot_dimension_numbers<[1], [0], [0], [1], [0, 0, 1, 1], [], []>} : vector<1x64xf32>, vector<64x128xf32>, vector<1x128xf32> -> vector<1x128xf32>
    %163 = arith.addf %158, %162 : vector<1x128xf32>
    %164 = arith.mulf %160, %160 : vector<64x128xf32>
    %cst_107 = arith.constant dense<0.000000e+00> : vector<1x128xf32>
    %165 = tpu.matmul %161, %164, %cst_107 {dimension_numbers = #tpu.dot_dimension_numbers<[1], [0], [0], [1], [0, 0, 1, 1], [], []>} : vector<1x64xf32>, vector<64x128xf32>, vector<1x128xf32> -> vector<1x128xf32>
    %166 = arith.addf %159, %165 : vector<1x128xf32>
    %167 = vector.extract_strided_slice %157 {offsets = [64, 0], sizes = [64, 128], strides = [1, 1]} : vector<256x128xf32> to vector<64x128xf32>
    %cst_108 = arith.constant 1.000000e+00 : f32
    %168 = vector.broadcast %cst_108 : f32 to vector<1x64xf32>
    %cst_109 = arith.constant dense<0.000000e+00> : vector<1x128xf32>
    %169 = tpu.matmul %168, %167, %cst_109 {dimension_numbers = #tpu.dot_dimension_numbers<[1], [0], [0], [1], [0, 0, 1, 1], [], []>} : vector<1x64xf32>, vector<64x128xf32>, vector<1x128xf32> -> vector<1x128xf32>
    %170 = arith.addf %163, %169 : vector<1x128xf32>
    %171 = arith.mulf %167, %167 : vector<64x128xf32>
    %cst_110 = arith.constant dense<0.000000e+00> : vector<1x128xf32>
    %172 = tpu.matmul %168, %171, %cst_110 {dimension_numbers = #tpu.dot_dimension_numbers<[1], [0], [0], [1], [0, 0, 1, 1], [], []>} : vector<1x64xf32>, vector<64x128xf32>, vector<1x128xf32> -> vector<1x128xf32>
    %173 = arith.addf %166, %172 : vector<1x128xf32>
    %174 = vector.extract_strided_slice %157 {offsets = [128, 0], sizes = [64, 128], strides = [1, 1]} : vector<256x128xf32> to vector<64x128xf32>
    %cst_111 = arith.constant 1.000000e+00 : f32
    %175 = vector.broadcast %cst_111 : f32 to vector<1x64xf32>
    %cst_112 = arith.constant dense<0.000000e+00> : vector<1x128xf32>
    %176 = tpu.matmul %175, %174, %cst_112 {dimension_numbers = #tpu.dot_dimension_numbers<[1], [0], [0], [1], [0, 0, 1, 1], [], []>} : vector<1x64xf32>, vector<64x128xf32>, vector<1x128xf32> -> vector<1x128xf32>
    %177 = arith.addf %170, %176 : vector<1x128xf32>
    %178 = arith.mulf %174, %174 : vector<64x128xf32>
    %cst_113 = arith.constant dense<0.000000e+00> : vector<1x128xf32>
    %179 = tpu.matmul %175, %178, %cst_113 {dimension_numbers = #tpu.dot_dimension_numbers<[1], [0], [0], [1], [0, 0, 1, 1], [], []>} : vector<1x64xf32>, vector<64x128xf32>, vector<1x128xf32> -> vector<1x128xf32>
    %180 = arith.addf %173, %179 : vector<1x128xf32>
    %181 = vector.extract_strided_slice %157 {offsets = [192, 0], sizes = [64, 128], strides = [1, 1]} : vector<256x128xf32> to vector<64x128xf32>
    %cst_114 = arith.constant 1.000000e+00 : f32
    %182 = vector.broadcast %cst_114 : f32 to vector<1x64xf32>
    %cst_115 = arith.constant dense<0.000000e+00> : vector<1x128xf32>
    %183 = tpu.matmul %182, %181, %cst_115 {dimension_numbers = #tpu.dot_dimension_numbers<[1], [0], [0], [1], [0, 0, 1, 1], [], []>} : vector<1x64xf32>, vector<64x128xf32>, vector<1x128xf32> -> vector<1x128xf32>
    %184 = arith.addf %177, %183 : vector<1x128xf32>
    %185 = arith.mulf %181, %181 : vector<64x128xf32>
    %cst_116 = arith.constant dense<0.000000e+00> : vector<1x128xf32>
    %186 = tpu.matmul %182, %185, %cst_116 {dimension_numbers = #tpu.dot_dimension_numbers<[1], [0], [0], [1], [0, 0, 1, 1], [], []>} : vector<1x64xf32>, vector<64x128xf32>, vector<1x128xf32> -> vector<1x128xf32>
    %187 = arith.addf %180, %186 : vector<1x128xf32>
    %188 = arith.addf %100, %184 : vector<1x128xf32>
    %189 = arith.addf %101, %187 : vector<1x128xf32>
    %190 = arith.truncf %157 : vector<256x128xf32> to vector<256x128xbf16>
    %c0_117 = arith.constant 0 : index
    %c0_118 = arith.constant 0 : index
    %c0_119 = arith.constant 0 : index
    %191 = vector.load %arg10[%c0_117, %c0_118, %c0_119] : memref<2x256x128xbf16, #tpu.memory_space<vmem>>, vector<1x256x128xbf16>
    %192 = vector.shape_cast %191 : vector<1x256x128xbf16> to vector<256x128xbf16>
    %193 = vector.shape_cast %190 : vector<256x128xbf16> to vector<1x256x128xbf16>
    tpu.vector_store %arg10[%c0_117, %c0_118, %c0_119], %193 {strides = array<i32>} : memref<2x256x128xbf16, #tpu.memory_space<vmem>>, vector<1x256x128xbf16>,
    %c1_120 = arith.constant 1 : index
    %c0_121 = arith.constant 0 : index
    %c0_122 = arith.constant 0 : index
    %194 = vector.load %arg9[%c1_120, %c0_121, %c0_122] : memref<2x256x128xbf16, #tpu.memory_space<vmem>>, vector<1x256x128xbf16>
    %195 = vector.shape_cast %194 : vector<1x256x128xbf16> to vector<256x128xbf16>
    %196 = arith.extf %195 : vector<256x128xbf16> to vector<256x128xf32>
    %197 = vector.broadcast %95 : vector<1x128xf32> to vector<256x128xf32>
    %198 = arith.mulf %196, %197 : vector<256x128xf32>
    %199 = vector.broadcast %97 : vector<1x128xf32> to vector<256x128xf32>
    %200 = arith.addf %198, %199 : vector<256x128xf32>
    %cst_123 = arith.constant 0.000000e+00 : f32
    %201 = vector.broadcast %cst_123 : f32 to vector<256x128xf32>
    %202 = arith.maximumf %200, %201 : vector<256x128xf32>
    %203 = vector.shape_cast %202 : vector<256x128xf32> to vector<16x16x128xf32>
    %c1_124 = arith.constant 1 : index
    %c1_125 = arith.constant 1 : index
    %c0_126 = arith.constant 0 : index
    %204 = vector.load %arg11[%c1_124, %c1_125, %c0_126] : memref<18x24x128xf32, #tpu.memory_space<vmem>>, vector<16x16x128xf32>
    tpu.vector_store %arg11[%c1_124, %c1_125, %c0_126], %203 {strides = array<i32>} : memref<18x24x128xf32, #tpu.memory_space<vmem>>, vector<16x16x128xf32>,
    %c0_127 = arith.constant 0 : index
    %c0_128 = arith.constant 0 : index
    %c0_129 = arith.constant 0 : index
    %205 = vector.load %arg11[%c0_127, %c0_128, %c0_129] : memref<18x24x128xf32, #tpu.memory_space<vmem>>, vector<16x16x128xf32>
    %206 = arith.truncf %205 : vector<16x16x128xf32> to vector<16x16x128xbf16>
    %207 = vector.shape_cast %206 : vector<16x16x128xbf16> to vector<256x128xbf16>
    %c0_130 = arith.constant 0 : index
    %c1_131 = arith.constant 1 : index
    %c0_132 = arith.constant 0 : index
    %208 = vector.load %arg11[%c0_130, %c1_131, %c0_132] : memref<18x24x128xf32, #tpu.memory_space<vmem>>, vector<16x16x128xf32>
    %209 = arith.truncf %208 : vector<16x16x128xf32> to vector<16x16x128xbf16>
    %210 = vector.shape_cast %209 : vector<16x16x128xbf16> to vector<256x128xbf16>
    %211 = tpu.concatenate %207, %210 in 1 : vector<256x128xbf16>, vector<256x128xbf16> -> vector<256x256xbf16>
    %c0_133 = arith.constant 0 : index
    %c0_134 = arith.constant 0 : index
    %212 = vector.load %arg5[%c0_133, %c0_134] : memref<1152x128xbf16, #tpu.memory_space<vmem>>, vector<256x128xbf16>
    %cst_135 = arith.constant dense<0.000000e+00> : vector<256x128xf32>
    %213 = tpu.matmul %211, %212, %cst_135 {dimension_numbers = #tpu.dot_dimension_numbers<[1], [0], [0], [1], [0, 0, 1, 1], [], []>} : vector<256x256xbf16>, vector<256x128xbf16>, vector<256x128xf32> -> vector<256x128xf32>
    %c0_136 = arith.constant 0 : index
    %c2_137 = arith.constant 2 : index
    %c0_138 = arith.constant 0 : index
    %214 = vector.load %arg11[%c0_136, %c2_137, %c0_138] : memref<18x24x128xf32, #tpu.memory_space<vmem>>, vector<16x16x128xf32>
    %215 = arith.truncf %214 : vector<16x16x128xf32> to vector<16x16x128xbf16>
    %216 = vector.shape_cast %215 : vector<16x16x128xbf16> to vector<256x128xbf16>
    %c1_139 = arith.constant 1 : index
    %c0_140 = arith.constant 0 : index
    %c0_141 = arith.constant 0 : index
    %217 = vector.load %arg11[%c1_139, %c0_140, %c0_141] : memref<18x24x128xf32, #tpu.memory_space<vmem>>, vector<16x16x128xf32>
    %218 = arith.truncf %217 : vector<16x16x128xf32> to vector<16x16x128xbf16>
    %219 = vector.shape_cast %218 : vector<16x16x128xbf16> to vector<256x128xbf16>
    %220 = tpu.concatenate %216, %219 in 1 : vector<256x128xbf16>, vector<256x128xbf16> -> vector<256x256xbf16>
    %c256_142 = arith.constant 256 : index
    %c0_143 = arith.constant 0 : index
    %221 = vector.load %arg5[%c256_142, %c0_143] : memref<1152x128xbf16, #tpu.memory_space<vmem>>, vector<256x128xbf16>
    %cst_144 = arith.constant dense<0.000000e+00> : vector<256x128xf32>
    %222 = tpu.matmul %220, %221, %cst_144 {dimension_numbers = #tpu.dot_dimension_numbers<[1], [0], [0], [1], [0, 0, 1, 1], [], []>} : vector<256x256xbf16>, vector<256x128xbf16>, vector<256x128xf32> -> vector<256x128xf32>
    %223 = arith.addf %213, %222 : vector<256x128xf32>
    %c1_145 = arith.constant 1 : index
    %c1_146 = arith.constant 1 : index
    %c0_147 = arith.constant 0 : index
    %224 = vector.load %arg11[%c1_145, %c1_146, %c0_147] : memref<18x24x128xf32, #tpu.memory_space<vmem>>, vector<16x16x128xf32>
    %225 = arith.truncf %224 : vector<16x16x128xf32> to vector<16x16x128xbf16>
    %226 = vector.shape_cast %225 : vector<16x16x128xbf16> to vector<256x128xbf16>
    %c1_148 = arith.constant 1 : index
    %c2_149 = arith.constant 2 : index
    %c0_150 = arith.constant 0 : index
    %227 = vector.load %arg11[%c1_148, %c2_149, %c0_150] : memref<18x24x128xf32, #tpu.memory_space<vmem>>, vector<16x16x128xf32>
    %228 = arith.truncf %227 : vector<16x16x128xf32> to vector<16x16x128xbf16>
    %229 = vector.shape_cast %228 : vector<16x16x128xbf16> to vector<256x128xbf16>
    %230 = tpu.concatenate %226, %229 in 1 : vector<256x128xbf16>, vector<256x128xbf16> -> vector<256x256xbf16>
    %c512_151 = arith.constant 512 : index
    %c0_152 = arith.constant 0 : index
    %231 = vector.load %arg5[%c512_151, %c0_152] : memref<1152x128xbf16, #tpu.memory_space<vmem>>, vector<256x128xbf16>
    %cst_153 = arith.constant dense<0.000000e+00> : vector<256x128xf32>
    %232 = tpu.matmul %230, %231, %cst_153 {dimension_numbers = #tpu.dot_dimension_numbers<[1], [0], [0], [1], [0, 0, 1, 1], [], []>} : vector<256x256xbf16>, vector<256x128xbf16>, vector<256x128xf32> -> vector<256x128xf32>
    %233 = arith.addf %223, %232 : vector<256x128xf32>
    %c2_154 = arith.constant 2 : index
    %c0_155 = arith.constant 0 : index
    %c0_156 = arith.constant 0 : index
    %234 = vector.load %arg11[%c2_154, %c0_155, %c0_156] : memref<18x24x128xf32, #tpu.memory_space<vmem>>, vector<16x16x128xf32>
    %235 = arith.truncf %234 : vector<16x16x128xf32> to vector<16x16x128xbf16>
    %236 = vector.shape_cast %235 : vector<16x16x128xbf16> to vector<256x128xbf16>
    %c2_157 = arith.constant 2 : index
    %c1_158 = arith.constant 1 : index
    %c0_159 = arith.constant 0 : index
    %237 = vector.load %arg11[%c2_157, %c1_158, %c0_159] : memref<18x24x128xf32, #tpu.memory_space<vmem>>, vector<16x16x128xf32>
    %238 = arith.truncf %237 : vector<16x16x128xf32> to vector<16x16x128xbf16>
    %239 = vector.shape_cast %238 : vector<16x16x128xbf16> to vector<256x128xbf16>
    %240 = tpu.concatenate %236, %239 in 1 : vector<256x128xbf16>, vector<256x128xbf16> -> vector<256x256xbf16>
    %c768_160 = arith.constant 768 : index
    %c0_161 = arith.constant 0 : index
    %241 = vector.load %arg5[%c768_160, %c0_161] : memref<1152x128xbf16, #tpu.memory_space<vmem>>, vector<256x128xbf16>
    %cst_162 = arith.constant dense<0.000000e+00> : vector<256x128xf32>
    %242 = tpu.matmul %240, %241, %cst_162 {dimension_numbers = #tpu.dot_dimension_numbers<[1], [0], [0], [1], [0, 0, 1, 1], [], []>} : vector<256x256xbf16>, vector<256x128xbf16>, vector<256x128xf32> -> vector<256x128xf32>
    %243 = arith.addf %233, %242 : vector<256x128xf32>
    %c2_163 = arith.constant 2 : index
    %c2_164 = arith.constant 2 : index
    %c0_165 = arith.constant 0 : index
    %244 = vector.load %arg11[%c2_163, %c2_164, %c0_165] : memref<18x24x128xf32, #tpu.memory_space<vmem>>, vector<16x16x128xf32>
    %245 = arith.truncf %244 : vector<16x16x128xf32> to vector<16x16x128xbf16>
    %246 = vector.shape_cast %245 : vector<16x16x128xbf16> to vector<256x128xbf16>
    %c1024_166 = arith.constant 1024 : index
    %c0_167 = arith.constant 0 : index
    %247 = vector.load %arg5[%c1024_166, %c0_167] : memref<1152x128xbf16, #tpu.memory_space<vmem>>, vector<128x128xbf16>
    %cst_168 = arith.constant dense<0.000000e+00> : vector<256x128xf32>
    %248 = tpu.matmul %246, %247, %cst_168 {dimension_numbers = #tpu.dot_dimension_numbers<[1], [0], [0], [1], [0, 0, 1, 1], [], []>} : vector<256x128xbf16>, vector<128x128xbf16>, vector<256x128xf32> -> vector<256x128xf32>
    %249 = arith.addf %243, %248 : vector<256x128xf32>
    %cst_169 = arith.constant 0.000000e+00 : f32
    %250 = vector.broadcast %cst_169 : f32 to vector<1x128xf32>
    %cst_170 = arith.constant 0.000000e+00 : f32
    %251 = vector.broadcast %cst_170 : f32 to vector<1x128xf32>
    %252 = vector.extract_strided_slice %249 {offsets = [0, 0], sizes = [64, 128], strides = [1, 1]} : vector<256x128xf32> to vector<64x128xf32>
    %cst_171 = arith.constant 1.000000e+00 : f32
    %253 = vector.broadcast %cst_171 : f32 to vector<1x64xf32>
    %cst_172 = arith.constant dense<0.000000e+00> : vector<1x128xf32>
    %254 = tpu.matmul %253, %252, %cst_172 {dimension_numbers = #tpu.dot_dimension_numbers<[1], [0], [0], [1], [0, 0, 1, 1], [], []>} : vector<1x64xf32>, vector<64x128xf32>, vector<1x128xf32> -> vector<1x128xf32>
    %255 = arith.addf %250, %254 : vector<1x128xf32>
    %256 = arith.mulf %252, %252 : vector<64x128xf32>
    %cst_173 = arith.constant dense<0.000000e+00> : vector<1x128xf32>
    %257 = tpu.matmul %253, %256, %cst_173 {dimension_numbers = #tpu.dot_dimension_numbers<[1], [0], [0], [1], [0, 0, 1, 1], [], []>} : vector<1x64xf32>, vector<64x128xf32>, vector<1x128xf32> -> vector<1x128xf32>
    %258 = arith.addf %251, %257 : vector<1x128xf32>
    %259 = vector.extract_strided_slice %249 {offsets = [64, 0], sizes = [64, 128], strides = [1, 1]} : vector<256x128xf32> to vector<64x128xf32>
    %cst_174 = arith.constant 1.000000e+00 : f32
    %260 = vector.broadcast %cst_174 : f32 to vector<1x64xf32>
    %cst_175 = arith.constant dense<0.000000e+00> : vector<1x128xf32>
    %261 = tpu.matmul %260, %259, %cst_175 {dimension_numbers = #tpu.dot_dimension_numbers<[1], [0], [0], [1], [0, 0, 1, 1], [], []>} : vector<1x64xf32>, vector<64x128xf32>, vector<1x128xf32> -> vector<1x128xf32>
    %262 = arith.addf %255, %261 : vector<1x128xf32>
    %263 = arith.mulf %259, %259 : vector<64x128xf32>
    %cst_176 = arith.constant dense<0.000000e+00> : vector<1x128xf32>
    %264 = tpu.matmul %260, %263, %cst_176 {dimension_numbers = #tpu.dot_dimension_numbers<[1], [0], [0], [1], [0, 0, 1, 1], [], []>} : vector<1x64xf32>, vector<64x128xf32>, vector<1x128xf32> -> vector<1x128xf32>
    %265 = arith.addf %258, %264 : vector<1x128xf32>
    %266 = vector.extract_strided_slice %249 {offsets = [128, 0], sizes = [64, 128], strides = [1, 1]} : vector<256x128xf32> to vector<64x128xf32>
    %cst_177 = arith.constant 1.000000e+00 : f32
    %267 = vector.broadcast %cst_177 : f32 to vector<1x64xf32>
    %cst_178 = arith.constant dense<0.000000e+00> : vector<1x128xf32>
    %268 = tpu.matmul %267, %266, %cst_178 {dimension_numbers = #tpu.dot_dimension_numbers<[1], [0], [0], [1], [0, 0, 1, 1], [], []>} : vector<1x64xf32>, vector<64x128xf32>, vector<1x128xf32> -> vector<1x128xf32>
    %269 = arith.addf %262, %268 : vector<1x128xf32>
    %270 = arith.mulf %266, %266 : vector<64x128xf32>
    %cst_179 = arith.constant dense<0.000000e+00> : vector<1x128xf32>
    %271 = tpu.matmul %267, %270, %cst_179 {dimension_numbers = #tpu.dot_dimension_numbers<[1], [0], [0], [1], [0, 0, 1, 1], [], []>} : vector<1x64xf32>, vector<64x128xf32>, vector<1x128xf32> -> vector<1x128xf32>
    %272 = arith.addf %265, %271 : vector<1x128xf32>
    %273 = vector.extract_strided_slice %249 {offsets = [192, 0], sizes = [64, 128], strides = [1, 1]} : vector<256x128xf32> to vector<64x128xf32>
    %cst_180 = arith.constant 1.000000e+00 : f32
    %274 = vector.broadcast %cst_180 : f32 to vector<1x64xf32>
    %cst_181 = arith.constant dense<0.000000e+00> : vector<1x128xf32>
    %275 = tpu.matmul %274, %273, %cst_181 {dimension_numbers = #tpu.dot_dimension_numbers<[1], [0], [0], [1], [0, 0, 1, 1], [], []>} : vector<1x64xf32>, vector<64x128xf32>, vector<1x128xf32> -> vector<1x128xf32>
    %276 = arith.addf %269, %275 : vector<1x128xf32>
    %277 = arith.mulf %273, %273 : vector<64x128xf32>
    %cst_182 = arith.constant dense<0.000000e+00> : vector<1x128xf32>
    %278 = tpu.matmul %274, %277, %cst_182 {dimension_numbers = #tpu.dot_dimension_numbers<[1], [0], [0], [1], [0, 0, 1, 1], [], []>} : vector<1x64xf32>, vector<64x128xf32>, vector<1x128xf32> -> vector<1x128xf32>
    %279 = arith.addf %272, %278 : vector<1x128xf32>
    %280 = arith.addf %188, %276 : vector<1x128xf32>
    %281 = arith.addf %189, %279 : vector<1x128xf32>
    %282 = arith.truncf %249 : vector<256x128xf32> to vector<256x128xbf16>
    %c1_183 = arith.constant 1 : index
    %c0_184 = arith.constant 0 : index
    %c0_185 = arith.constant 0 : index
    %283 = vector.load %arg10[%c1_183, %c0_184, %c0_185] : memref<2x256x128xbf16, #tpu.memory_space<vmem>>, vector<1x256x128xbf16>
    %284 = vector.shape_cast %283 : vector<1x256x128xbf16> to vector<256x128xbf16>
    %285 = vector.shape_cast %282 : vector<256x128xbf16> to vector<1x256x128xbf16>
    tpu.vector_store %arg10[%c1_183, %c0_184, %c0_185], %285 {strides = array<i32>} : memref<2x256x128xbf16, #tpu.memory_space<vmem>>, vector<1x256x128xbf16>,
    %c0_186 = arith.constant 0 : index
    %c0_187 = arith.constant 0 : index
    %286 = vector.load %arg6[%c0_186, %c0_187] : memref<1x128xf32, #tpu.memory_space<vmem>>, vector<1x128xf32>
    %c0_188 = arith.constant 0 : index
    %c0_189 = arith.constant 0 : index
    %287 = vector.load %arg7[%c0_188, %c0_189] : memref<1x128xf32, #tpu.memory_space<vmem>>, vector<1x128xf32>
    %cst_190 = arith.constant 0.001953125 : f32
    %288 = vector.broadcast %cst_190 : f32 to vector<1x128xf32>
    %289 = arith.mulf %280, %288 : vector<1x128xf32>
    %cst_191 = arith.constant 0.001953125 : f32
    %290 = vector.broadcast %cst_191 : f32 to vector<1x128xf32>
    %291 = arith.mulf %281, %290 : vector<1x128xf32>
    %292 = arith.mulf %289, %289 : vector<1x128xf32>
    %293 = arith.subf %291, %292 : vector<1x128xf32>
    %cst_192 = arith.constant 0.000000e+00 : f32
    %294 = vector.broadcast %cst_192 : f32 to vector<1x128xf32>
    %295 = arith.maximumf %293, %294 : vector<1x128xf32>
    %cst_193 = arith.constant 9.99999974E-6 : f32
    %296 = vector.broadcast %cst_193 : f32 to vector<1x128xf32>
    %297 = arith.addf %295, %296 : vector<1x128xf32>
    %298 = math.rsqrt %297 : vector<1x128xf32>
    %299 = arith.mulf %286, %298 : vector<1x128xf32>
    %300 = arith.mulf %289, %299 : vector<1x128xf32>
    %301 = arith.subf %287, %300 : vector<1x128xf32>
    %c0_194 = arith.constant 0 : index
    %c0_195 = arith.constant 0 : index
    %c0_196 = arith.constant 0 : index
    %302 = vector.load %arg10[%c0_194, %c0_195, %c0_196] : memref<2x256x128xbf16, #tpu.memory_space<vmem>>, vector<1x256x128xbf16>
    %303 = vector.shape_cast %302 : vector<1x256x128xbf16> to vector<256x128xbf16>
    %304 = arith.extf %303 : vector<256x128xbf16> to vector<256x128xf32>
    %305 = vector.broadcast %299 : vector<1x128xf32> to vector<256x128xf32>
    %306 = arith.mulf %304, %305 : vector<256x128xf32>
    %307 = vector.broadcast %301 : vector<1x128xf32> to vector<256x128xf32>
    %308 = arith.addf %306, %307 : vector<256x128xf32>
    %cst_197 = arith.constant 0.000000e+00 : f32
    %309 = vector.broadcast %cst_197 : f32 to vector<256x128xf32>
    %310 = arith.maximumf %308, %309 : vector<256x128xf32>
    %311 = vector.shape_cast %310 : vector<256x128xf32> to vector<16x16x128xf32>
    %c0_198 = arith.constant 0 : index
    %c0_199 = arith.constant 0 : index
    %c0_200 = arith.constant 0 : index
    %c0_201 = arith.constant 0 : index
    %312 = vector.load %arg8[%c0_198, %c0_199, %c0_200, %c0_201] : memref<2x16x16x128xf32, #tpu.memory_space<vmem>>, vector<1x16x16x128xf32>
    %313 = vector.shape_cast %312 : vector<1x16x16x128xf32> to vector<16x16x128xf32>
    %314 = vector.shape_cast %311 : vector<16x16x128xf32> to vector<1x16x16x128xf32>
    tpu.vector_store %arg8[%c0_198, %c0_199, %c0_200, %c0_201], %314 {strides = array<i32>} : memref<2x16x16x128xf32, #tpu.memory_space<vmem>>, vector<1x16x16x128xf32>,
    %c1_202 = arith.constant 1 : index
    %c0_203 = arith.constant 0 : index
    %c0_204 = arith.constant 0 : index
    %315 = vector.load %arg10[%c1_202, %c0_203, %c0_204] : memref<2x256x128xbf16, #tpu.memory_space<vmem>>, vector<1x256x128xbf16>
    %316 = vector.shape_cast %315 : vector<1x256x128xbf16> to vector<256x128xbf16>
    %317 = arith.extf %316 : vector<256x128xbf16> to vector<256x128xf32>
    %318 = vector.broadcast %299 : vector<1x128xf32> to vector<256x128xf32>
    %319 = arith.mulf %317, %318 : vector<256x128xf32>
    %320 = vector.broadcast %301 : vector<1x128xf32> to vector<256x128xf32>
    %321 = arith.addf %319, %320 : vector<256x128xf32>
    %cst_205 = arith.constant 0.000000e+00 : f32
    %322 = vector.broadcast %cst_205 : f32 to vector<256x128xf32>
    %323 = arith.maximumf %321, %322 : vector<256x128xf32>
    %324 = vector.shape_cast %323 : vector<256x128xf32> to vector<16x16x128xf32>
    %c1_206 = arith.constant 1 : index
    %c0_207 = arith.constant 0 : index
    %c0_208 = arith.constant 0 : index
    %c0_209 = arith.constant 0 : index
    %325 = vector.load %arg8[%c1_206, %c0_207, %c0_208, %c0_209] : memref<2x16x16x128xf32, #tpu.memory_space<vmem>>, vector<1x16x16x128xf32>
    %326 = vector.shape_cast %325 : vector<1x16x16x128xf32> to vector<16x16x128xf32>
    %327 = vector.shape_cast %324 : vector<16x16x128xf32> to vector<1x16x16x128xf32>
    tpu.vector_store %arg8[%c1_206, %c0_207, %c0_208, %c0_209], %327 {strides = array<i32>} : memref<2x16x16x128xf32, #tpu.memory_space<vmem>>, vector<1x16x16x128xf32>,
    return
  }
  func.func @transform_0(%arg0: i32) -> (i32, i32, i32) {
    %c0_i32 = arith.constant 0 : i32
    %c0_i32_0 = arith.constant 0 : i32
    %c0_i32_1 = arith.constant 0 : i32
    %c0_i32_2 = arith.constant 0 : i32
    return %c0_i32, %c0_i32_0, %c0_i32_1 : i32, i32, i32
  }
  func.func @transform_1(%arg0: i32) -> (i32, i32) {
    %c0_i32 = arith.constant 0 : i32
    %c0_i32_0 = arith.constant 0 : i32
    %c0_i32_1 = arith.constant 0 : i32
    return %c0_i32, %c0_i32_0 : i32, i32
  }
  func.func @transform_2(%arg0: i32) -> (i32, i32) {
    %c0_i32 = arith.constant 0 : i32
    %c0_i32_0 = arith.constant 0 : i32
    %c0_i32_1 = arith.constant 0 : i32
    return %c0_i32, %c0_i32_0 : i32, i32
  }
  func.func @transform_3(%arg0: i32) -> (i32, i32) {
    %c0_i32 = arith.constant 0 : i32
    %c0_i32_0 = arith.constant 0 : i32
    %c0_i32_1 = arith.constant 0 : i32
    return %c0_i32, %c0_i32_0 : i32, i32
  }
  func.func @transform_4(%arg0: i32) -> (i32, i32) {
    %c0_i32 = arith.constant 0 : i32
    %c0_i32_0 = arith.constant 0 : i32
    %c0_i32_1 = arith.constant 0 : i32
    return %c0_i32, %c0_i32_0 : i32, i32
  }
  func.func @transform_5(%arg0: i32) -> (i32, i32) {
    %c0_i32 = arith.constant 0 : i32
    %c0_i32_0 = arith.constant 0 : i32
    %c0_i32_1 = arith.constant 0 : i32
    return %c0_i32, %c0_i32_0 : i32, i32
  }
  func.func @transform_6(%arg0: i32) -> (i32, i32) {
    %c0_i32 = arith.constant 0 : i32
    %c0_i32_0 = arith.constant 0 : i32
    %c0_i32_1 = arith.constant 0 : i32
    return %c0_i32, %c0_i32_0 : i32, i32
  }
  func.func @transform_7(%arg0: i32) -> (i32, i32, i32, i32) {
    %c0_i32 = arith.constant 0 : i32
    %c0_i32_0 = arith.constant 0 : i32
    %c0_i32_1 = arith.constant 0 : i32
    %c0_i32_2 = arith.constant 0 : i32
    %c0_i32_3 = arith.constant 0 : i32
    return %c0_i32, %c0_i32_0, %c0_i32_1, %c0_i32_2 : i32, i32, i32, i32
  }
}

</mosaic_0001>

<bundles_post_ra>
// kernel: conv_block_forward.1
= control target key start
LH: loop header
LB: loop body
LE: loop exit
PB: predicated region body
PF: predicated region fallthrough
CT: control target
= control target key end

     0   :  { %v11992_v24 = vmov 0.0   ;;  %vm11993_vm0 = vmmov 0   ;;  %vm388_vm1 = vcmask 523264   ;;  %v16932_v51 = vmov 1.0   ;;  %s16924_s1 = inlined_call_operand.vmem [shape: bf16[128,128], index: 1, kind: input, shape index: {}]   ;;  %s16925_s0 = inlined_call_operand.vmem [shape: bf16[2,256,128], index: 0, kind: input, shape index: {}]   ;;  %s16926_s4 = inlined_call_operand.vmem [shape: bf16[1152,128], index: 4, kind: input, shape index: {}]   ;;  %s16927_s2 = inlined_call_operand.vmem [shape: f32[1,128], index: 2, kind: input, shape index: {}]   ;;  %s16928_s3 = inlined_call_operand.vmem [shape: f32[1,128], index: 3, kind: input, shape index: {}]   ;;  %s16929_s5 = inlined_call_operand.vmem [shape: f32[1,128], index: 5, kind: input, shape index: {}]   ;;  %s16930_s6 = inlined_call_operand.vmem [shape: f32[1,128], index: 6, kind: input, shape index: {}]   ;;  %s16931_s7 = inlined_call_operand.vmem [shape: f32[2,16,16,128], index: 7, kind: output, shape index: {}]  }
   0x1   :  { %v11790_v0 = vld [vmem:[%s16924_s1 + $0x38] sm:$0xff]   ;;  %v11791_v1 = vld [vmem:[%s16924_s1 + $0x30] sm:$0xff]   ;;  %v11792_v2 = vld [vmem:[%s16924_s1 + $0x28] sm:$0xff]   ;;  %2273 = vst [vmem:[#allocation4 + $0x30] sm:$0xff] %v11992_v24  ;;  %11035 = vmatprep.subr.mxu1 %v11992_v24  ;;  %11051 = vmatprep.mubr.msk.f32.mxu1 %vm11993_vm0, %v11992_v24 }
   0x2   :  { %10987 = vmatprep.subr.bf16.mxu0 %v11790_v0  ;;  %v11793_v3 = vld [vmem:[%s16924_s1 + $0x20] sm:$0xff]   ;;  %v11794_v5 = vld [vmem:[%s16924_s1 + $0x18] sm:$0xff]   ;;  %v11795_v6 = vld [vmem:[%s16924_s1 + $0x10] sm:$0xff]   ;;  %2274 = vst [vmem:[#allocation4 + $0x38] sm:$0xff] %v11992_v24 }
   0x3   :  { %10988 = vmatpush3.bf16.msra.mxu0 %v11790_v0  ;;  %v11798_v4 = vld [vmem:[%s16925_s0] sm:$0xff]   ;;  %v11796_v7 = vld [vmem:[%s16924_s1 + $0x8] sm:$0xff]   ;;  %v11800_v10 = vld [vmem:[%s16925_s0 + $0x10] sm:$0xff]   ;;  %2275 = vst [vmem:[#allocation4 + $0x40] sm:$0xff] %v11992_v24 }
   0x4   :  { %10989 = vmatprep.subr.bf16.mxu0 %v11791_v1  ;;  %11003 = vmatprep.mubr.bf16.mxu0 %v11798_v4  ;;  %v11797_v8 = vld [vmem:[%s16924_s1] sm:$0xff]   ;;  %v11799_v9 = vld [vmem:[%s16925_s0 + $0x8] sm:$0xff]   ;;  %v11801_v11 = vld [vmem:[%s16925_s0 + $0x18] sm:$0xff]   ;;  %2267 = vst [vmem:[#allocation4] sm:$0xff] %v11992_v24 }
   0x5   :  { %v11802_v12 = vld [vmem:[%s16925_s0 + $0x20] sm:$0xff]   ;;  %v11803_v13 = vld [vmem:[%s16925_s0 + $0x28] sm:$0xff]   ;;  %v11804_v14 = vld [vmem:[%s16925_s0 + $0x30] sm:$0xff]   ;;  %2268 = vst [vmem:[#allocation4 + $0x8] sm:$0xff] %v11992_v24 }
   0x6   :  { %v11805_v15 = vld [vmem:[%s16925_s0 + $0x38] sm:$0xff]   ;;  %v11806_v16 = vld [vmem:[%s16925_s0 + $0x40] sm:$0xff]   ;;  %v11807_v17 = vld [vmem:[%s16925_s0 + $0x48] sm:$0xff]   ;;  %2269 = vst [vmem:[#allocation4 + $0x10] sm:$0xff] %v11992_v24 }
   0x7   :  { %10990 = vmatpush3.bf16.msra.mxu0 %v11791_v1  ;;  %v11808_v18 = vld [vmem:[%s16925_s0 + $0x50] sm:$0xff]   ;;  %v11809_v19 = vld [vmem:[%s16925_s0 + $0x58] sm:$0xff]   ;;  %v11810_v20 = vld [vmem:[%s16925_s0 + $0x60] sm:$0xff]   ;;  %2270 = vst [vmem:[#allocation4 + $0x18] sm:$0xff] %v11992_v24 }
   0x8   :  { %10991 = vmatprep.subr.bf16.mxu0 %v11792_v2  ;;  %v11811_v21 = vld [vmem:[%s16925_s0 + $0x68] sm:$0xff]   ;;  %v11812_v22 = vld [vmem:[%s16925_s0 + $0x70] sm:$0xff]   ;;  %v11813_v23 = vld [vmem:[%s16925_s0 + $0x78] sm:$0xff]   ;;  %2271 = vst [vmem:[#allocation4 + $0x20] sm:$0xff] %v11992_v24 }
   0x9   :  { %2272 = vst [vmem:[#allocation4 + $0x28] sm:$0xff] %v11992_v24  ;;  %2276 = vst [vmem:[#allocation4 + $0x48] sm:$0xff] %v11992_v24 }
   0xa   :  { %2277 = vst [vmem:[#allocation4 + $0x50] sm:$0xff] %v11992_v24  ;;  %2278 = vst [vmem:[#allocation4 + $0x58] sm:$0xff] %v11992_v24 }
   0xb   :  { %10992 = vmatpush3.bf16.msra.mxu0 %v11792_v2  ;;  %2279 = vst [vmem:[#allocation4 + $0x60] sm:$0xff] %v11992_v24  ;;  %2280 = vst [vmem:[#allocation4 + $0x68] sm:$0xff] %v11992_v24 }
   0xc   :  { %10993 = vmatprep.subr.bf16.mxu0 %v11793_v3  ;;  %2281 = vst [vmem:[#allocation4 + $0x70] sm:$0xff] %v11992_v24  ;;  %2282 = vst [vmem:[#allocation4 + $0x78] sm:$0xff] %v11992_v24 }
   0xd   :  { %2283 = vst [vmem:[#allocation4 + $0x80] sm:$0xff] %v11992_v24  ;;  %2284 = vst [vmem:[#allocation4 + $0x88] sm:$0xff] %v11992_v24 }
   0xe   :  { %2285 = vst [vmem:[#allocation4 + $0x90] sm:$0xff] %v11992_v24  ;;  %2286 = vst [vmem:[#allocation4 + $0x98] sm:$0xff] %v11992_v24 }
   0xf   :  { %10994 = vmatpush3.bf16.msra.mxu0 %v11793_v3  ;;  %2287 = vst [vmem:[#allocation4 + $0xa0] sm:$0xff] %v11992_v24  ;;  %2288 = vst [vmem:[#allocation4 + $0xa8] sm:$0xff] %v11992_v24 }
  0x10   :  { %10995 = vmatprep.subr.bf16.mxu0 %v11794_v5  ;;  %2289 = vst [vmem:[#allocation4 + $0xb0] sm:$0xff] %v11992_v24  ;;  %2290 = vst [vmem:[#allocation4 + $0xb8] sm:$0xff] %v11992_v24 }
  0x11   :  { %2291 = vst [vmem:[#allocation4 + $0xc0] sm:$0xff] %v11992_v24  ;;  %2292 = vst [vmem:[#allocation4 + $0xc8] sm:$0xff] %v11992_v24 }
  0x12   :  { %2293 = vst [vmem:[#allocation4 + $0xd0] sm:$0xff] %v11992_v24  ;;  %2294 = vst [vmem:[#allocation4 + $0xd8] sm:$0xff] %v11992_v24 }
  0x13   :  { %10996 = vmatpush3.bf16.msra.mxu0 %v11794_v5  ;;  %2295 = vst [vmem:[#allocation4 + $0xe0] sm:$0xff] %v11992_v24  ;;  %2296 = vst [vmem:[#allocation4 + $0xe8] sm:$0xff] %v11992_v24 }
  0x14   :  { %10997 = vmatprep.subr.bf16.mxu0 %v11795_v6  ;;  %2297 = vst [vmem:[#allocation4 + $0xf0] sm:$0xff] %v11992_v24  ;;  %2298 = vst [vmem:[#allocation4 + $0xf8] sm:$0xff] %v11992_v24 }
  0x15   :  { %2299 = vst [vmem:[#allocation4 + $0x100] sm:$0xff] %v11992_v24  ;;  %2300 = vst [vmem:[#allocation4 + $0x108] sm:$0xff] %v11992_v24 }
  0x16   :  { %2301 = vst [vmem:[#allocation4 + $0x110] sm:$0xff] %v11992_v24  ;;  %2302 = vst [vmem:[#allocation4 + $0x118] sm:$0xff] %v11992_v24 }
  0x17   :  { %10998 = vmatpush3.bf16.msra.mxu0 %v11795_v6  ;;  %2303 = vst [vmem:[#allocation4 + $0x120] sm:$0xff] %v11992_v24  ;;  %2304 = vst [vmem:[#allocation4 + $0x128] sm:$0xff] %v11992_v24 }
  0x18   :  { %10999 = vmatprep.subr.bf16.mxu0 %v11796_v7  ;;  %2305 = vst [vmem:[#allocation4 + $0x130] sm:$0xff] %v11992_v24  ;;  %2306 = vst [vmem:[#allocation4 + $0x138] sm:$0xff] %v11992_v24 }
  0x19   :  { %2307 = vst [vmem:[#allocation4 + $0x140] sm:$0xff] %v11992_v24  ;;  %2308 = vst [vmem:[#allocation4 + $0x148] sm:$0xff] %v11992_v24 }
  0x1a   :  { %2309 = vst [vmem:[#allocation4 + $0x150] sm:$0xff] %v11992_v24  ;;  %2310 = vst [vmem:[#allocation4 + $0x158] sm:$0xff] %v11992_v24 }
  0x1b   :  { %11000 = vmatpush3.bf16.msra.mxu0 %v11796_v7  ;;  %2311 = vst [vmem:[#allocation4 + $0x160] sm:$0xff] %v11992_v24  ;;  %2312 = vst [vmem:[#allocation4 + $0x168] sm:$0xff] %v11992_v24 }
  0x1c   :  { %11001 = vmatprep.subr.bf16.mxu0 %v11797_v8  ;;  %2313 = vst [vmem:[#allocation4 + $0x170] sm:$0xff] %v11992_v24  ;;  %2314 = vst [vmem:[#allocation4 + $0x178] sm:$0xff] %v11992_v24 }
  0x1d   :  { %2315 = vst [vmem:[#allocation4 + $0x180] sm:$0xff] %v11992_v24  ;;  %2316 = vst [vmem:[#allocation4 + $0x188] sm:$0xff] %v11992_v24 }
  0x1e   :  { %2317 = vst [vmem:[#allocation4 + $0x190] sm:$0xff] %v11992_v24  ;;  %2318 = vst [vmem:[#allocation4 + $0x198] sm:$0xff] %v11992_v24 }
  0x1f   :  { %11002 = vmatpush3.bf16.msra.mxu0 %v11797_v8  ;;  %2319 = vst [vmem:[#allocation4 + $0x1a0] sm:$0xff] %v11992_v24  ;;  %2320 = vst [vmem:[#allocation4 + $0x1a8] sm:$0xff] %v11992_v24 }
  0x20   :  { %11130 = vmatprep.subr.mxu0 %v11992_v24 }
  0x22   :  { %11004 = vmatmul.mubr.bf16.vlgmr.msra.gmra.mxu0 %v11799_v9 }
  0x23   :  { %11007 = vmatprep.mubr.bf16.mxu0 %v11800_v10 }
  0x2a   :  { %11008 = vmatmul.mubr.bf16.gmra.mxu0 %v11801_v11 }
  0x2b   :  { %11011 = vmatprep.mubr.bf16.mxu0 %v11802_v12 }
  0x32   :  { %11012 = vmatmul.mubr.bf16.gmra.mxu0 %v11803_v13 }
  0x33   :  { %11015 = vmatprep.mubr.bf16.mxu0 %v11804_v14 }
  0x3a   :  { %11016 = vmatmul.mubr.bf16.gmra.mxu0 %v11805_v15 }
  0x3b   :  { %11019 = vmatprep.mubr.bf16.mxu0 %v11806_v16 }
  0x42   :  { %11020 = vmatmul.mubr.bf16.gmra.mxu0 %v11807_v17 }
  0x43   :  { %11023 = vmatprep.mubr.bf16.mxu0 %v11808_v18 }
  0x4a   :  { %11024 = vmatmul.mubr.bf16.gmra.mxu0 %v11809_v19 }
  0x4b   :  { %11027 = vmatprep.mubr.bf16.mxu0 %v11810_v20 }
  0x52   :  { %11028 = vmatmul.mubr.bf16.gmra.mxu0 %v11811_v21 }
  0x53   :  { %11031 = vmatprep.mubr.bf16.mxu0 %v11812_v22 }
  0x5a   :  { %11032 = vmatmul.mubr.bf16.gmra.mxu0 %v11813_v23 }
  0x5b   :  { %11146 = vmatprep.mubr.msk.f32.mxu0 %vm11993_vm0, %v11992_v24 }
  0xe2   :  { %v12167_v25 = vpop.f32.mrf.mxu0 }
  0xe4   :  { %v12169_v26 = vpop.f32.mrf.mxu0 }
  0xe6   :  { %v12171_v27 = vpop.f32.mrf.mxu0 }
  0xe7   :  { %v12175_v28 = vpack.c.bf16 %v12171_v27, %v12167_v25 }
  0xe8   :  { %v12177_v29 = vpop.f32.mrf.mxu0 }
  0xea   :  { %v12179_v30 = vpop.f32.mrf.mxu0 }
  0xec   :  { %v12181_v31 = vpop.f32.mrf.mxu0 }
  0xee   :  { %v12183_v32 = vpop.f32.mrf.mxu0 }
  0xef   :  { %v12187_v33 = vpack.c.bf16 %v12183_v32, %v12179_v30  ;;  %v387_v22 = vmul.f32 %v12183_v32, %v12183_v32 }
  0xf0   :  { %v12189_v34 = vpop.f32.mrf.mxu0 }
  0xf2   :  { %v12191_v35 = vpop.f32.mrf.mxu0 }
  0xf3   :  { %v534_v17 = vmul.f32 %v12191_v35, %v12191_v35 }
  0xf4   :  { %v12193_v36 = vpop.f32.mrf.mxu0 }
  0xf5   :  { %v532_v20 = vmul.f32 %v12193_v36, %v12193_v36 }
  0xf6   :  { %v12195_v37 = vpop.f32.mrf.mxu0 }
  0xf7   :  { %v12199_v38 = vpack.c.bf16 %v12195_v37, %v12191_v35  ;;  %v535_v15 = vmul.f32 %v12195_v37, %v12195_v37 }
  0xf8   :  { %v12201_v39 = vpop.f32.mrf.mxu0 }
  0xf9   :  { %v533_v19 = vmul.f32 %v12201_v39, %v12201_v39 }
  0xfa   :  { %v12203_v40 = vpop.f32.mrf.mxu0 }
  0xfb   :  { %v538_v7 = vmul.f32 %v12203_v40, %v12203_v40 }
  0xfc   :  { %v12205_v41 = vpop.f32.mrf.mxu0 }
  0xfd   :  { %v536_v13 = vmul.f32 %v12205_v41, %v12205_v41 }
  0xfe   :  { %v12207_v42 = vpop.f32.mrf.mxu0 }
  0xff   :  { %v12211_v43 = vpack.c.bf16 %v12207_v42, %v12203_v40  ;;  %11036 = vmatpush3.msra.mxu1 %v12207_v42  ;;  %v539_v4 = vmul.f32 %v12207_v42, %v12207_v42  ;;  %v382_v42 = vmul.f32 %v12167_v25, %v12167_v25 }
 0x100   :  { %v12214_v44 = vpop.f32.mrf.mxu0  ;;  %11037 = vmatprep.subr.mxu1 %v11992_v24 }
 0x101   :  { %11038 = vmatpush3.msra.mxu1 %v12203_v40  ;;  %v537_v10 = vmul.f32 %v12214_v44, %v12214_v44  ;;  %v383_v40 = vmul.f32 %v12171_v27, %v12171_v27 }
 0x102   :  { %11039 = vmatprep.subr.mxu1 %v11992_v24  ;;  %v12219_v45 = vpop.f32.mrf.mxu0 }
 0x103   :  { %11040 = vmatpush3.msra.mxu1 %v12214_v44  ;;  %v753_v63 = vmul.f32 %v12219_v45, %v12219_v45 }
 0x104   :  { %11041 = vmatprep.subr.mxu1 %v11992_v24  ;;  %v12223_v46 = vpop.f32.mrf.mxu0 }
 0x105   :  { %11042 = vmatpush3.msra.mxu1 %v12205_v41  ;;  %v751_v5 = vmul.f32 %v12223_v46, %v12223_v46 }
 0x106   :  { %11043 = vmatprep.subr.mxu1 %v11992_v24  ;;  %v12227_v47 = vpop.f32.mrf.mxu0 }
 0x107   :  { %11044 = vmatpush3.msra.mxu1 %v12195_v37  ;;  %v754_v61 = vmul.f32 %v12227_v47, %v12227_v47  ;;  %v385_v37 = vmul.f32 %v12189_v34, %v12189_v34 }
 0x108   :  { %11045 = vmatprep.subr.mxu1 %v11992_v24  ;;  %v12231_v48 = vpop.f32.mrf.mxu0 }
 0x109   :  { %11046 = vmatpush3.msra.mxu1 %v12191_v35  ;;  %v752_v1 = vmul.f32 %v12231_v48, %v12231_v48  ;;  %v386_v35 = vmul.f32 %v12179_v30, %v12179_v30 }
 0x10a   :  { %11047 = vmatprep.subr.mxu1 %v11992_v24  ;;  %v12235_v49 = vpop.f32.mrf.mxu0 }
 0x10b   :  { %11048 = vmatpush3.msra.mxu1 %v12201_v39  ;;  %v757_v53 = vmul.f32 %v12235_v49, %v12235_v49 }
 0x10c   :  { %11049 = vmatprep.subr.mxu1 %v11992_v24  ;;  %v12239_v50 = vpop.f32.mrf.mxu0 }
 0x10d   :  { %11050 = vmatpush3.msra.mxu1 %v12193_v36  ;;  %v755_v59 = vmul.f32 %v12239_v50, %v12239_v50 }
 0x10e   :  { %11052 = vmatmul.mubr.msk.f32.vlgmr.msra.gmra.mxu1 %vm388_vm1, %v16932_v51  ;;  %11054 = vmatprep.subr.mxu1 %v11992_v24  ;;  %v12245_v52 = vpop.f32.mrf.mxu0 }
 0x10f   :  { %11055 = vmatpush3.msra.mxu1 %v12183_v32  ;;  %11070 = vmatprep.mubr.msk.f32.mxu1 %vm11993_vm0, %v11992_v24  ;;  %v758_v54 = vmul.f32 %v12245_v52, %v12245_v52  ;;  %v12256_v55 = vpack.c.bf16 %v12245_v52, %v12235_v49 }
 0x110   :  { %11056 = vmatprep.subr.mxu1 %v11992_v24  ;;  %v12259_v56 = vpop.f32.mrf.mxu0 }
 0x111   :  { %11057 = vmatpush3.msra.mxu1 %v12179_v30  ;;  %v756_v57 = vmul.f32 %v12259_v56, %v12259_v56  ;;  %11131 = vmatpush3.msra.mxu0 %v758_v54  ;;  %v384_v30 = vmul.f32 %v12181_v31, %v12181_v31  ;;  %v11816_v54 = vld [vmem:[%s16924_s1 + $0x28] sm:$0xff]  }
 0x112   :  { %11058 = vmatprep.subr.mxu1 %v11992_v24  ;;  %v12265_v58 = vpop.f32.mrf.mxu0  ;;  %11132 = vmatprep.subr.mxu0 %v11992_v24 }
 0x113   :  { %11059 = vmatpush3.msra.mxu1 %v12189_v34  ;;  %11133 = vmatpush3.msra.mxu0 %v757_v53  ;;  %v903_v21 = vmul.f32 %v12265_v58, %v12265_v58  ;;  %v380_v53 = vmul.f32 %v12169_v26, %v12169_v26 }
 0x114   :  { %11060 = vmatprep.subr.mxu1 %v11992_v24  ;;  %v12272_v60 = vpop.f32.mrf.mxu0  ;;  %11134 = vmatprep.subr.mxu0 %v11992_v24 }
 0x115   :  { %11061 = vmatpush3.msra.mxu1 %v12181_v31  ;;  %11135 = vmatpush3.msra.mxu0 %v756_v57  ;;  %v901_v32 = vmul.f32 %v12272_v60, %v12272_v60  ;;  %v11817_v57 = vld [vmem:[%s16924_s1 + $0x20] sm:$0xff]  }
 0x116   :  { %11062 = vmatprep.subr.mxu1 %v11992_v24  ;;  %v12279_v62 = vpop.f32.mrf.mxu0  ;;  %11136 = vmatprep.subr.mxu0 %v11992_v24 }
 0x117   :  { %11063 = vmatpush3.msra.mxu1 %v12171_v27  ;;  %11137 = vmatpush3.msra.mxu0 %v755_v59  ;;  %v904_v18 = vmul.f32 %v12279_v62, %v12279_v62  ;;  %v381_v27 = vmul.f32 %v12177_v29, %v12177_v29  ;;  %v11818_v59 = vld [vmem:[%s16924_s1 + $0x18] sm:$0xff]  }
 0x118   :  { %11064 = vmatprep.subr.mxu1 %v11992_v24  ;;  %v12286_v0 = vpop.f32.mrf.mxu0  ;;  %11138 = vmatprep.subr.mxu0 %v11992_v24 }
 0x119   :  { %11065 = vmatpush3.msra.mxu1 %v12167_v25  ;;  %11139 = vmatpush3.msra.mxu0 %v754_v61  ;;  %v902_v23 = vmul.f32 %v12286_v0, %v12286_v0  ;;  %v11814_v25 = vld [vmem:[%s16924_s1 + $0x38] sm:$0xff]   ;;  %v11819_v61 = vld [vmem:[%s16924_s1 + $0x10] sm:$0xff]  }
 0x11a   :  { %11066 = vmatprep.subr.mxu1 %v11992_v24  ;;  %v12293_v2 = vpop.f32.mrf.mxu0  ;;  %11140 = vmatprep.subr.mxu0 %v11992_v24 }
 0x11b   :  { %11067 = vmatpush3.msra.mxu1 %v12177_v29  ;;  %11141 = vmatpush3.msra.mxu0 %v753_v63  ;;  %v907_v12 = vmul.f32 %v12293_v2, %v12293_v2  ;;  %v11820_v63 = vld [vmem:[%s16924_s1 + $0x8] sm:$0xff]  }
 0x11c   :  { %11068 = vmatprep.subr.mxu1 %v11992_v24  ;;  %v12298_v3 = vpop.f32.mrf.mxu0  ;;  %11142 = vmatprep.subr.mxu0 %v11992_v24 }
 0x11d   :  { %11069 = vmatpush3.msra.mxu1 %v12169_v26  ;;  %11143 = vmatpush3.msra.mxu0 %v752_v1  ;;  %v905_v16 = vmul.f32 %v12298_v3, %v12298_v3  ;;  %v11821_v1 = vld [vmem:[%s16924_s1] sm:$0xff]  }
 0x11e   :  { %11071 = vmatmul.mubr.msk.f32.vlgmr.msra.gmra.mxu1 %vm388_vm1, %v16932_v51  ;;  %11073 = vmatprep.subr.mxu1 %v11992_v24  ;;  %v12309_v6 = vpop.f32.mrf.mxu0 }
 0x11f   :  { %11074 = vmatpush3.msra.mxu1 %v539_v4  ;;  %11089 = vmatprep.mubr.msk.f32.mxu1 %vm11993_vm0, %v11992_v24  ;;  %v12317_v8 = vpack.c.bf16 %v12309_v6, %v12293_v2  ;;  %v908_v9 = vmul.f32 %v12309_v6, %v12309_v6  ;;  %v11824_v4 = vld [vmem:[%s16925_s0 + $0x90] sm:$0xff]  }
 0x120   :  { %11075 = vmatprep.subr.mxu1 %v11992_v24  ;;  %11144 = vmatprep.subr.mxu0 %v11992_v24  ;;  %v12325_v11 = vpop.f32.mrf.mxu0 }
 0x121   :  { %17037 = vst [vmem:[#allocation5_spill] sm:$0xff] %v12317_v8  ;;  %11076 = vmatpush3.msra.mxu1 %v538_v7  ;;  %11145 = vmatpush3.msra.mxu0 %v751_v5  ;;  %17038 = vst [vmem:[#allocation6_spill] sm:$0xff] %v12325_v11  ;;  %v906_v14 = vmul.f32 %v12325_v11, %v12325_v11  ;;  %v11825_v5 = vld [vmem:[%s16925_s0 + $0x98] sm:$0xff]   ;;  %v11827_v7 = vld [vmem:[%s16925_s0 + $0xa8] sm:$0xff]  }
 0x122   :  { %11077 = vmatprep.subr.mxu1 %v11992_v24  ;;  %11168 = vmatprep.subr.mxu0 %v11992_v24 }
 0x123   :  { %11078 = vmatpush3.msra.mxu1 %v537_v10  ;;  %11147 = vmatmul.mubr.msk.f32.vlgmr.msra.gmra.mxu0 %vm388_vm1, %v16932_v51  ;;  %v11829_v10 = vld [vmem:[%s16925_s0 + $0xb8] sm:$0xff]  }
 0x124   :  { %11079 = vmatprep.subr.mxu1 %v11992_v24  ;;  %11169 = vmatpush3.msra.mxu0 %v908_v9  ;;  %v11828_v9 = vld [vmem:[%s16925_s0 + $0xb0] sm:$0xff]  }
 0x125   :  { %11080 = vmatpush3.msra.mxu1 %v536_v13  ;;  %11170 = vmatprep.subr.mxu0 %v11992_v24  ;;  %v11831_v13 = vld [vmem:[%s16925_s0 + $0xc8] sm:$0xff]  }
 0x126   :  { %11081 = vmatprep.subr.mxu1 %v11992_v24  ;;  %11171 = vmatpush3.msra.mxu0 %v907_v12  ;;  %v11830_v12 = vld [vmem:[%s16925_s0 + $0xc0] sm:$0xff]  }
 0x127   :  { %11082 = vmatpush3.msra.mxu1 %v535_v15  ;;  %11172 = vmatprep.subr.mxu0 %v11992_v24  ;;  %v11833_v15 = vld [vmem:[%s16925_s0 + $0xd8] sm:$0xff]  }
 0x128   :  { %11083 = vmatprep.subr.mxu1 %v11992_v24  ;;  %11173 = vmatpush3.msra.mxu0 %v906_v14  ;;  %v11832_v14 = vld [vmem:[%s16925_s0 + $0xd0] sm:$0xff]  }
 0x129   :  { %11084 = vmatpush3.msra.mxu1 %v534_v17  ;;  %11174 = vmatprep.subr.mxu0 %v11992_v24  ;;  %v11835_v17 = vld [vmem:[%s16925_s0 + $0xe8] sm:$0xff]  }
 0x12a   :  { %11085 = vmatprep.subr.mxu1 %v11992_v24  ;;  %11175 = vmatpush3.msra.mxu0 %v905_v16  ;;  %v11834_v16 = vld [vmem:[%s16925_s0 + $0xe0] sm:$0xff]  }
 0x12b   :  { %11086 = vmatpush3.msra.mxu1 %v533_v19  ;;  %11176 = vmatprep.subr.mxu0 %v11992_v24  ;;  %v11837_v19 = vld [vmem:[%s16925_s0 + $0xf8] sm:$0xff]  }
 0x12c   :  { %11087 = vmatprep.subr.mxu1 %v11992_v24  ;;  %11177 = vmatpush3.msra.mxu0 %v904_v18  ;;  %v11836_v18 = vld [vmem:[%s16925_s0 + $0xf0] sm:$0xff]  }
 0x12d   :  { %11088 = vmatpush3.msra.mxu1 %v532_v20  ;;  %11178 = vmatprep.subr.mxu0 %v11992_v24 }
 0x12e   :  { %11090 = vmatmul.mubr.msk.f32.vlgmr.msra.gmra.mxu1 %vm388_vm1, %v16932_v51  ;;  %11092 = vmatprep.subr.mxu1 %v11992_v24 }
 0x12f   :  { %11093 = vmatpush3.msra.mxu1 %v387_v22  ;;  %11108 = vmatprep.mubr.msk.f32.mxu1 %vm11993_vm0, %v11992_v24 }
 0x130   :  { %11094 = vmatprep.subr.mxu1 %v11992_v24  ;;  %11179 = vmatpush3.msra.mxu0 %v903_v21 }
 0x131   :  { %11095 = vmatpush3.msra.mxu1 %v386_v35  ;;  %11180 = vmatprep.subr.mxu0 %v11992_v24 }
 0x132   :  { %11096 = vmatprep.subr.mxu1 %v11992_v24  ;;  %11181 = vmatpush3.msra.mxu0 %v902_v23 }
 0x133   :  { %11097 = vmatpush3.msra.mxu1 %v385_v37  ;;  %11182 = vmatprep.subr.mxu0 %v11992_v24 }
 0x134   :  { %11098 = vmatprep.subr.mxu1 %v11992_v24  ;;  %11183 = vmatpush3.msra.mxu0 %v901_v32 }
 0x135   :  { %11099 = vmatpush3.msra.mxu1 %v384_v30  ;;  %11184 = vmatprep.mubr.msk.f32.mxu0 %vm11993_vm0, %v11992_v24 }
 0x136   :  { %11100 = vmatprep.subr.mxu1 %v11992_v24  ;;  %11185 = vmatmul.mubr.msk.f32.vlgmr.msra.gmra.mxu0 %vm388_vm1, %v16932_v51 }
 0x137   :  { %11101 = vmatpush3.msra.mxu1 %v383_v40  ;;  %11235 = vmatprep.subr.mxu0 %v11992_v24 }
 0x138   :  { %11102 = vmatprep.subr.mxu1 %v11992_v24  ;;  %11251 = vmatprep.mubr.msk.f32.mxu0 %vm11993_vm0, %v11992_v24 }
 0x139   :  { %11103 = vmatpush3.msra.mxu1 %v382_v42 }
 0x13a   :  { %11104 = vmatprep.subr.mxu1 %v11992_v24 }
 0x13b   :  { %11105 = vmatpush3.msra.mxu1 %v381_v27 }
 0x13c   :  { %11106 = vmatprep.subr.mxu1 %v11992_v24 }
 0x13d   :  { %11107 = vmatpush3.msra.mxu1 %v380_v53 }
 0x13e   :  { %11109 = vmatmul.mubr.msk.f32.vlgmr.msra.gmra.mxu1 %vm388_vm1, %v16932_v51  ;;  %11111 = vmatprep.subr.mxu1 %v11992_v24 }
 0x13f   :  { %11112 = vmatpush3.msra.mxu1 %v12245_v52  ;;  %11127 = vmatprep.mubr.msk.f32.mxu1 %vm11993_vm0, %v11992_v24  ;;  %v11815_v52 = vld [vmem:[%s16924_s1 + $0x30] sm:$0xff]  }
 0x140   :  { %11113 = vmatprep.subr.mxu1 %v11992_v24 }
 0x141   :  { %11114 = vmatpush3.msra.mxu1 %v12235_v49  ;;  %v11822_v49 = vld [vmem:[%s16925_s0 + $0x80] sm:$0xff]  }
 0x142   :  { %11115 = vmatprep.subr.mxu1 %v11992_v24 }
 0x143   :  { %11116 = vmatpush3.msra.mxu1 %v12259_v56 }
 0x144   :  { %11117 = vmatprep.subr.mxu1 %v11992_v24 }
 0x145   :  { %11118 = vmatpush3.msra.mxu1 %v12239_v50 }
 0x146   :  { %11119 = vmatprep.subr.mxu1 %v11992_v24 }
 0x147   :  { %11120 = vmatpush3.msra.mxu1 %v12227_v47 }
 0x148   :  { %11121 = vmatprep.subr.mxu1 %v11992_v24 }
 0x149   :  { %11122 = vmatpush3.msra.mxu1 %v12219_v45 }
 0x14a   :  { %11123 = vmatprep.subr.mxu1 %v11992_v24 }
 0x14b   :  { %11124 = vmatpush3.msra.mxu1 %v12231_v48 }
 0x14c   :  { %11125 = vmatprep.subr.mxu1 %v11992_v24 }
 0x14d   :  { %11126 = vmatpush3.msra.mxu1 %v12223_v46 }
 0x14e   :  { %11128 = vmatmul.mubr.msk.f32.vlgmr.msra.gmra.mxu1 %vm388_vm1, %v16932_v51  ;;  %11149 = vmatprep.subr.mxu1 %v11992_v24 }
 0x14f   :  { %11150 = vmatpush3.msra.mxu1 %v12309_v6  ;;  %11165 = vmatprep.mubr.msk.f32.mxu1 %vm11993_vm0, %v11992_v24  ;;  %v11826_v6 = vld [vmem:[%s16925_s0 + $0xa0] sm:$0xff]  }
 0x150   :  { %11151 = vmatprep.subr.mxu1 %v11992_v24 }
 0x151   :  { %11152 = vmatpush3.msra.mxu1 %v12293_v2  ;;  %v11823_v2 = vld [vmem:[%s16925_s0 + $0x88] sm:$0xff]  }
 0x152   :  { %11153 = vmatprep.subr.mxu1 %v11992_v24 }
 0x153   :  { %11154 = vmatpush3.msra.mxu1 %v12325_v11 }
 0x154   :  { %11155 = vmatprep.subr.mxu1 %v11992_v24 }
 0x155   :  { %11156 = vmatpush3.msra.mxu1 %v12298_v3 }
 0x156   :  { %11157 = vmatprep.subr.mxu1 %v11992_v24 }
 0x157   :  { %11158 = vmatpush3.msra.mxu1 %v12279_v62 }
 0x158   :  { %11159 = vmatprep.subr.mxu1 %v11992_v24 }
 0x159   :  { %11160 = vmatpush3.msra.mxu1 %v12265_v58 }
 0x15a   :  { %11161 = vmatprep.subr.mxu1 %v11992_v24 }
 0x15b   :  { %11162 = vmatpush3.msra.mxu1 %v12286_v0 }
 0x15c   :  { %11163 = vmatprep.subr.mxu1 %v11992_v24 }
 0x15d   :  { %11164 = vmatpush3.msra.mxu1 %v12272_v60 }
 0x15e   :  { %11166 = vmatmul.mubr.msk.f32.vlgmr.msra.gmra.mxu1 %vm388_vm1, %v16932_v51  ;;  %11187 = vmatprep.subr.bf16.mxu1 %v11814_v25 }
 0x15f   :  { %11188 = vmatpush3.bf16.msra.mxu1 %v11814_v25  ;;  %11203 = vmatprep.mubr.bf16.mxu1 %v11822_v49 }
 0x160   :  { %11189 = vmatprep.subr.bf16.mxu1 %v11815_v52 }
 0x163   :  { %11190 = vmatpush3.bf16.msra.mxu1 %v11815_v52 }
 0x164   :  { %11191 = vmatprep.subr.bf16.mxu1 %v11816_v54 }
 0x167   :  { %11192 = vmatpush3.bf16.msra.mxu1 %v11816_v54 }
 0x168   :  { %11193 = vmatprep.subr.bf16.mxu1 %v11817_v57 }
 0x16b   :  { %11194 = vmatpush3.bf16.msra.mxu1 %v11817_v57 }
 0x16c   :  { %11195 = vmatprep.subr.bf16.mxu1 %v11818_v59 }
 0x16f   :  { %11196 = vmatpush3.bf16.msra.mxu1 %v11818_v59 }
 0x170   :  { %11197 = vmatprep.subr.bf16.mxu1 %v11819_v61 }
 0x173   :  { %11198 = vmatpush3.bf16.msra.mxu1 %v11819_v61 }
 0x174   :  { %11199 = vmatprep.subr.bf16.mxu1 %v11820_v63 }
 0x177   :  { %11200 = vmatpush3.bf16.msra.mxu1 %v11820_v63 }
 0x178   :  { %11201 = vmatprep.subr.bf16.mxu1 %v11821_v1 }
 0x17b   :  { %11202 = vmatpush3.bf16.msra.mxu1 %v11821_v1 }
 0x17c   :  { %11330 = vmatprep.subr.mxu1 %v11992_v24 }
 0x17e   :  { %11204 = vmatmul.mubr.bf16.vlgmr.msra.gmra.mxu1 %v11823_v2 }
 0x17f   :  { %11207 = vmatprep.mubr.bf16.mxu1 %v11824_v4 }
 0x186   :  { %11208 = vmatmul.mubr.bf16.gmra.mxu1 %v11825_v5 }
 0x187   :  { %11211 = vmatprep.mubr.bf16.mxu1 %v11826_v6 }
 0x18e   :  { %11212 = vmatmul.mubr.bf16.gmra.mxu1 %v11827_v7 }
 0x18f   :  { %11215 = vmatprep.mubr.bf16.mxu1 %v11828_v9 }
 0x196   :  { %11216 = vmatmul.mubr.bf16.gmra.mxu1 %v11829_v10 }
 0x197   :  { %11219 = vmatprep.mubr.bf16.mxu1 %v11830_v12 }
 0x19e   :  { %11220 = vmatmul.mubr.bf16.gmra.mxu1 %v11831_v13 }
 0x19f   :  { %11223 = vmatprep.mubr.bf16.mxu1 %v11832_v14 }
 0x1a6   :  { %11224 = vmatmul.mubr.bf16.gmra.mxu1 %v11833_v15 }
 0x1a7   :  { %11227 = vmatprep.mubr.bf16.mxu1 %v11834_v16 }
 0x1ae   :  { %11228 = vmatmul.mubr.bf16.gmra.mxu1 %v11835_v17 }
 0x1af   :  { %11231 = vmatprep.mubr.bf16.mxu1 %v11836_v18 }
 0x1b6   :  { %11232 = vmatmul.mubr.bf16.gmra.mxu1 %v11837_v19 }
 0x1b7   :  { %11346 = vmatprep.mubr.msk.f32.mxu1 %vm11993_vm0, %v11992_v24 }
 0x1ce   :  { %v458_v20 = vpop.f32.mrf.mxu1 }
 0x1d0   :  { %v11053_v21 = vpop.f32.mrf.mxu1 }
 0x1de   :  { %v528_v22 = vpop.f32.mrf.mxu1 }
 0x1df   :  { %v529_v23 = vadd.f32 %v528_v22, %v458_v20 }
 0x1e0   :  { %v11072_v35 = vpop.f32.mrf.mxu1 }
 0x1e3   :  { %v825_v32 = vpop.f32.mrf.mxu0 }
 0x1e5   :  { %v11148_v37 = vpop.f32.mrf.mxu0 }
 0x1ee   :  { %v606_v30 = vpop.f32.mrf.mxu1 }
 0x1f0   :  { %v11091_v40 = vpop.f32.mrf.mxu1 }
 0x1f6   :  { %v975_v42 = vpop.f32.mrf.mxu0 }
 0x1f8   :  { %v11186_v27 = vpop.f32.mrf.mxu0 }
 0x1fe   :  { %v676_v53 = vpop.f32.mrf.mxu1 }
 0x1ff   :  { %v677_v25 = vadd.f32 %v676_v53, %v606_v30 }
 0x200   :  { %v11110_v49 = vpop.f32.mrf.mxu1 }
 0x201   :  { %v829_v52 = vadd.f32 %v825_v32, %v677_v25 }
 0x203   :  { %v12519_v54 = vadd.f32 %v975_v42, %v829_v52 }
 0x20e   :  { %v746_v57 = vpop.f32.mrf.mxu1 }
 0x20f   :  { %v750_v59 = vadd.f32 %v746_v57, %v529_v23 }
 0x210   :  { %v11129_v61 = vpop.f32.mrf.mxu1 }
 0x21e   :  { %v896_v63 = vpop.f32.mrf.mxu1 }
 0x21f   :  { %v12521_v1 = vadd.f32 %v896_v63, %v750_v59 }
 0x220   :  { %v11167_v2 = vpop.f32.mrf.mxu1 }
 0x23e   :  { %v12523_v4 = vpop.f32.mrf.mxu1 }
 0x240   :  { %v12525_v5 = vpop.f32.mrf.mxu1 }
 0x242   :  { %v12527_v6 = vpop.f32.mrf.mxu1 }
 0x243   :  { %v12531_v7 = vpack.c.bf16 %v12527_v6, %v12523_v4 }
 0x244   :  { %v12533_v9 = vpop.f32.mrf.mxu1 }
 0x245   :  { %17039 = vst [vmem:[#allocation7_spill] sm:$0xff] %v12531_v7  ;;  %v17046_v7 = vmov 1.0  }
 0x246   :  { %v12535_v10 = vpop.f32.mrf.mxu1 }
 0x248   :  { %v12537_v12 = vpop.f32.mrf.mxu1 }
 0x24a   :  { %v12539_v13 = vpop.f32.mrf.mxu1 }
 0x24b   :  { %v12543_v14 = vpack.c.bf16 %v12539_v13, %v12535_v10 }
 0x24c   :  { %v12545_v15 = vpop.f32.mrf.mxu1 }
 0x24d   :  { %17040 = vst [vmem:[#allocation8_spill] sm:$0xff] %v12543_v14 }
 0x24e   :  { %v12547_v16 = vpop.f32.mrf.mxu1 }
 0x250   :  { %v12549_v17 = vpop.f32.mrf.mxu1 }
 0x252   :  { %v12551_v18 = vpop.f32.mrf.mxu1 }
 0x253   :  { %v12555_v19 = vpack.c.bf16 %v12551_v18, %v12547_v16 }
 0x254   :  { %v12557_v20 = vpop.f32.mrf.mxu1 }
 0x255   :  { %17041 = vst [vmem:[#allocation9_spill] sm:$0xff] %v12555_v19 }
 0x256   :  { %v12559_v21 = vpop.f32.mrf.mxu1 }
 0x257   :  { %v1650_v8 = vmul.f32 %v12559_v21, %v12559_v21 }
 0x258   :  { %v12561_v22 = vpop.f32.mrf.mxu1 }
 0x25a   :  { %v12563_v23 = vpop.f32.mrf.mxu1 }
 0x25b   :  { %v12567_v35 = vpack.c.bf16 %v12563_v23, %v12559_v21  ;;  %11236 = vmatpush3.msra.mxu0 %v12563_v23  ;;  %v1651_v14 = vmul.f32 %v12563_v23, %v12563_v23 }
 0x25c   :  { %v12570_v32 = vpop.f32.mrf.mxu1  ;;  %11237 = vmatprep.subr.mxu0 %v11992_v24 }
 0x25d   :  { %17042 = vst [vmem:[#allocation10_spill] sm:$0xff] %v12567_v35  ;;  %17043 = vst [vmem:[#allocation11_spill] sm:$0xff] %v12570_v32  ;;  %11238 = vmatpush3.msra.mxu0 %v12559_v21  ;;  %v1649_v11 = vmul.f32 %v12570_v32, %v12570_v32 }
 0x25e   :  { %11239 = vmatprep.subr.mxu0 %v11992_v24  ;;  %v12575_v37 = vpop.f32.mrf.mxu1 }
 0x25f   :  { %11240 = vmatpush3.msra.mxu0 %v12570_v32  ;;  %v1646_v32 = vmul.f32 %v12547_v16, %v12547_v16 }
 0x260   :  { %11241 = vmatprep.subr.mxu0 %v11992_v24  ;;  %v12579_v30 = vpop.f32.mrf.mxu1 }
 0x261   :  { %11242 = vmatpush3.msra.mxu0 %v12561_v22 }
 0x262   :  { %11243 = vmatprep.subr.mxu0 %v11992_v24  ;;  %v12583_v40 = vpop.f32.mrf.mxu1 }
 0x263   :  { %11244 = vmatpush3.msra.mxu0 %v12551_v18 }
 0x264   :  { %11245 = vmatprep.subr.mxu0 %v11992_v24  ;;  %v12587_v42 = vpop.f32.mrf.mxu1 }
 0x265   :  { %11246 = vmatpush3.msra.mxu0 %v12547_v16  ;;  %v1644_v16 = vmul.f32 %v12549_v17, %v12549_v17 }
 0x266   :  { %11247 = vmatprep.subr.mxu0 %v11992_v24  ;;  %v12591_v27 = vpop.f32.mrf.mxu1 }
 0x267   :  { %11248 = vmatpush3.msra.mxu0 %v12557_v20  ;;  %v1869_v49 = vmul.f32 %v12591_v27, %v12591_v27 }
 0x268   :  { %11249 = vmatprep.subr.mxu0 %v11992_v24  ;;  %v12595_v53 = vpop.f32.mrf.mxu1 }
 0x269   :  { %11250 = vmatpush3.msra.mxu0 %v12549_v17  ;;  %v1867_v2 = vmul.f32 %v12595_v53, %v12595_v53 }
 0x26a   :  { %11252 = vmatmul.mubr.msk.f32.vlgmr.msra.gmra.mxu0 %vm388_vm1, %v16932_v51  ;;  %11254 = vmatprep.subr.mxu0 %v11992_v24  ;;  %v12601_v25 = vpop.f32.mrf.mxu1 }
 0x26b   :  { %11255 = vmatpush3.msra.mxu0 %v12539_v13  ;;  %11270 = vmatprep.mubr.msk.f32.mxu0 %vm11993_vm0, %v11992_v24  ;;  %v1870_v52 = vmul.f32 %v12601_v25, %v12601_v25  ;;  %v12612_v57 = vpack.c.bf16 %v12601_v25, %v12591_v27 }
 0x26c   :  { %11256 = vmatprep.subr.mxu0 %v11992_v24  ;;  %v12615_v59 = vpop.f32.mrf.mxu1 }
 0x26d   :  { %17044 = vst [vmem:[#allocation12_spill] sm:$0xff] %v12612_v57  ;;  %11257 = vmatpush3.msra.mxu0 %v12535_v10  ;;  %v1868_v61 = vmul.f32 %v12615_v59, %v12615_v59  ;;  %11331 = vmatpush3.msra.mxu1 %v1870_v52  ;;  %v1866_v52 = vmul.f32 %v12583_v40, %v12583_v40 }
 0x26e   :  { %11258 = vmatprep.subr.mxu0 %v11992_v24  ;;  %v12621_v63 = vpop.f32.mrf.mxu1  ;;  %11332 = vmatprep.subr.mxu1 %v11992_v24 }
 0x26f   :  { %11259 = vmatpush3.msra.mxu0 %v12545_v15  ;;  %11333 = vmatpush3.msra.mxu1 %v1869_v49  ;;  %v1865_v49 = vmul.f32 %v12575_v37, %v12575_v37 }
 0x270   :  { %11260 = vmatprep.subr.mxu0 %v11992_v24  ;;  %v12628_v51 = vpop.f32.mrf.mxu1  ;;  %11334 = vmatprep.subr.mxu1 %v11992_v24 }
 0x271   :  { %11261 = vmatpush3.msra.mxu0 %v12537_v12  ;;  %11335 = vmatpush3.msra.mxu1 %v1868_v61  ;;  %v1864_v61 = vmul.f32 %v12587_v42, %v12587_v42 }
 0x272   :  { %11262 = vmatprep.subr.mxu0 %v11992_v24  ;;  %v12635_v57 = vpop.f32.mrf.mxu1  ;;  %11336 = vmatprep.subr.mxu1 %v11992_v24 }
 0x273   :  { %11263 = vmatpush3.msra.mxu0 %v12527_v6  ;;  %11337 = vmatpush3.msra.mxu1 %v1867_v2 }
 0x274   :  { %11264 = vmatprep.subr.mxu0 %v11992_v24  ;;  %v12642_v35 = vpop.f32.mrf.mxu1  ;;  %11338 = vmatprep.subr.mxu1 %v11992_v24 }
 0x275   :  { %11265 = vmatpush3.msra.mxu0 %v12523_v4  ;;  %11339 = vmatpush3.msra.mxu1 %v1866_v52  ;;  %v1863_v52 = vmul.f32 %v12579_v30, %v12579_v30 }
 0x276   :  { %11266 = vmatprep.subr.mxu0 %v11992_v24  ;;  %v12649_v19 = vpop.f32.mrf.mxu1  ;;  %11340 = vmatprep.subr.mxu1 %v11992_v24 }
 0x277   :  { %11267 = vmatpush3.msra.mxu0 %v12533_v9  ;;  %11341 = vmatpush3.msra.mxu1 %v1865_v49  ;;  %v2019_v21 = vmul.f32 %v12649_v19, %v12649_v19 }
 0x278   :  { %11268 = vmatprep.subr.mxu0 %v11992_v24  ;;  %v12654_v2 = vpop.f32.mrf.mxu1  ;;  %11342 = vmatprep.subr.mxu1 %v11992_v24 }
 0x279   :  { %17045 = vst [vmem:[#allocation13_spill] sm:$0xff] %v12654_v2  ;;  %11269 = vmatpush3.msra.mxu0 %v12525_v5  ;;  %11343 = vmatpush3.msra.mxu1 %v1864_v61 }
 0x27a   :  { %11271 = vmatmul.mubr.msk.f32.vlgmr.msra.gmra.mxu0 %vm388_vm1, %v17046_v7  ;;  %11273 = vmatprep.subr.mxu0 %v11992_v24  ;;  %v12665_v49 = vpop.f32.mrf.mxu1 }
 0x27b   :  { %11274 = vmatpush3.msra.mxu0 %v1651_v14  ;;  %11289 = vmatprep.mubr.msk.f32.mxu0 %vm11993_vm0, %v11992_v24  ;;  %v12673_v23 = vpack.c.bf16 %v12665_v49, %v12649_v19  ;;  %v2020_v61 = vmul.f32 %v12665_v49, %v12665_v49 }
 0x27c   :  { %11275 = vmatprep.subr.mxu0 %v11992_v24  ;;  %11344 = vmatprep.subr.mxu1 %v11992_v24  ;;  %v12681_v14 = vpop.f32.mrf.mxu1 }
 0x27d   :  { %17047 = vst [vmem:[#allocation14_spill] sm:$0xff] %v12673_v23  ;;  %11276 = vmatpush3.msra.mxu0 %v1650_v8  ;;  %11345 = vmatpush3.msra.mxu1 %v1863_v52  ;;  %17048 = vst [vmem:[#allocation15_spill] sm:$0xff] %v12681_v14  ;;  %v1648_v23 = vmul.f32 %v12561_v22, %v12561_v22  ;;  %v2018_v8 = vmul.f32 %v12681_v14, %v12681_v14 }
 0x27e   :  { %11277 = vmatprep.subr.mxu0 %v11992_v24  ;;  %11368 = vmatprep.subr.mxu1 %v11992_v24  ;;  %v1647_v52 = vmul.f32 %v12551_v18, %v12551_v18  ;;  %v1645_v18 = vmul.f32 %v12557_v20, %v12557_v20 }
 0x27f   :  { %11278 = vmatpush3.msra.mxu0 %v1649_v11  ;;  %11347 = vmatmul.mubr.msk.f32.vlgmr.msra.gmra.mxu1 %vm388_vm1, %v17046_v7  ;;  %v2017_v11 = vmul.f32 %v12654_v2, %v12654_v2 }
 0x280   :  { %11279 = vmatprep.subr.mxu0 %v11992_v24  ;;  %11369 = vmatpush3.msra.mxu1 %v2020_v61  ;;  %v2016_v61 = vmul.f32 %v12635_v57, %v12635_v57 }
 0x281   :  { %11280 = vmatpush3.msra.mxu0 %v1648_v23  ;;  %11370 = vmatprep.subr.mxu1 %v11992_v24  ;;  %v2015_v23 = vmul.f32 %v12621_v63, %v12621_v63 }
 0x282   :  { %11281 = vmatprep.subr.mxu0 %v11992_v24  ;;  %11371 = vmatpush3.msra.mxu1 %v2019_v21  ;;  %v2014_v21 = vmul.f32 %v12642_v35, %v12642_v35 }
 0x283   :  { %11282 = vmatpush3.msra.mxu0 %v1647_v52  ;;  %11372 = vmatprep.subr.mxu1 %v11992_v24  ;;  %v1501_v52 = vmul.f32 %v12545_v15, %v12545_v15 }
 0x284   :  { %11283 = vmatprep.subr.mxu0 %v11992_v24  ;;  %11373 = vmatpush3.msra.mxu1 %v2018_v8  ;;  %v1502_v8 = vmul.f32 %v12535_v10, %v12535_v10  ;;  %v1500_v10 = vmul.f32 %v12537_v12, %v12537_v12 }
 0x285   :  { %11284 = vmatpush3.msra.mxu0 %v1646_v32  ;;  %11374 = vmatprep.subr.mxu1 %v11992_v24  ;;  %v1503_v32 = vmul.f32 %v12539_v13, %v12539_v13  ;;  %v2013_v13 = vmul.f32 %v12628_v51, %v12628_v51 }
 0x286   :  { %11285 = vmatprep.subr.mxu0 %v11992_v24  ;;  %11375 = vmatpush3.msra.mxu1 %v2017_v11  ;;  %v1499_v11 = vmul.f32 %v12527_v6, %v12527_v6  ;;  %v1496_v6 = vmul.f32 %v12525_v5, %v12525_v5 }
 0x287   :  { %11286 = vmatpush3.msra.mxu0 %v1645_v18  ;;  %11376 = vmatprep.subr.mxu1 %v11992_v24  ;;  %v1498_v18 = vmul.f32 %v12523_v4, %v12523_v4 }
 0x288   :  { %11287 = vmatprep.subr.mxu0 %v11992_v24  ;;  %11377 = vmatpush3.msra.mxu1 %v2016_v61  ;;  %v12741_v61 = vld [vmem:[#allocation4 + $0x30] sm:$0xff] }
 0x289   :  { %11288 = vmatpush3.msra.mxu0 %v1644_v16  ;;  %11378 = vmatprep.subr.mxu1 %v11992_v24  ;;  %v11841_v16 = vld [vmem:[%s16926_s4 + $0x30] sm:$0xff]  }
 0x28a   :  { %11290 = vmatmul.mubr.msk.f32.vlgmr.msra.gmra.mxu0 %vm388_vm1, %v17046_v7  ;;  %11292 = vmatprep.subr.mxu0 %v11992_v24 }
 0x28b   :  { %11293 = vmatpush3.msra.mxu0 %v1503_v32  ;;  %11308 = vmatprep.mubr.msk.f32.mxu0 %vm11993_vm0, %v11992_v24  ;;  %v11845_v32 = vld [vmem:[%s16926_s4 + $0x28] sm:$0xff]  }
 0x28c   :  { %11294 = vmatprep.subr.mxu0 %v11992_v24  ;;  %11379 = vmatpush3.msra.mxu1 %v2015_v23  ;;  %v11843_v23 = vld [vmem:[%s16926_s4 + $0x68] sm:$0xff]  }
 0x28d   :  { %11295 = vmatpush3.msra.mxu0 %v1502_v8  ;;  %11380 = vmatprep.subr.mxu1 %v11992_v24  ;;  %v11844_v8 = vld [vmem:[%s16926_s4 + $0xb8] sm:$0xff]  }
 0x28e   :  { %11296 = vmatprep.subr.mxu0 %v11992_v24  ;;  %11381 = vmatpush3.msra.mxu1 %v2014_v21  ;;  %v11842_v21 = vld [vmem:[%s16926_s4 + $0xf8] sm:$0xff]  }
 0x28f   :  { %11297 = vmatpush3.msra.mxu0 %v1501_v52  ;;  %11382 = vmatprep.subr.mxu1 %v11992_v24  ;;  %v11849_v52 = vld [vmem:[%s16926_s4 + $0x20] sm:$0xff]  }
 0x290   :  { %11298 = vmatprep.subr.mxu0 %v11992_v24  ;;  %11383 = vmatpush3.msra.mxu1 %v2013_v13  ;;  %v1497_v24 = vmul.f32 %v12533_v9, %v12533_v9  ;;  %v11847_v13 = vld [vmem:[%s16926_s4 + $0x60] sm:$0xff]  }
 0x291   :  { %11299 = vmatpush3.msra.mxu0 %v1500_v10  ;;  %11384 = vmatprep.mubr.msk.f32.mxu1 %vm11993_vm0, %v12741_v61 }
 0x292   :  { %11300 = vmatprep.subr.mxu0 %v12741_v61  ;;  %11385 = vmatmul.mubr.msk.f32.vlgmr.msra.gmra.mxu1 %vm388_vm1, %v17046_v7 }
 0x293   :  { %11301 = vmatpush3.msra.mxu0 %v1499_v11  ;;  %v11846_v11 = vld [vmem:[%s16926_s4 + $0xf0] sm:$0xff]  }
 0x294   :  { %11302 = vmatprep.subr.mxu0 %v12741_v61 }
 0x295   :  { %11303 = vmatpush3.msra.mxu0 %v1498_v18 }
 0x296   :  { %11304 = vmatprep.subr.mxu0 %v12741_v61 }
 0x297   :  { %11305 = vmatpush3.msra.mxu0 %v1497_v24  ;;  %v11848_v24 = vld [vmem:[%s16926_s4 + $0xb0] sm:$0xff]  }
 0x298   :  { %11306 = vmatprep.subr.mxu0 %v12741_v61 }
 0x299   :  { %11307 = vmatpush3.msra.mxu0 %v1496_v6 }
 0x29a   :  { %11309 = vmatmul.mubr.msk.f32.vlgmr.msra.gmra.mxu0 %vm388_vm1, %v17046_v7  ;;  %11311 = vmatprep.subr.mxu0 %v12741_v61 }
 0x29b   :  { %11312 = vmatpush3.msra.mxu0 %v12601_v25  ;;  %11327 = vmatprep.mubr.msk.f32.mxu0 %vm11993_vm0, %v12741_v61  ;;  %v11839_v25 = vld [vmem:[%s16926_s4 + $0x38] sm:$0xff]  }
 0x29c   :  { %11313 = vmatprep.subr.mxu0 %v12741_v61 }
 0x29d   :  { %11314 = vmatpush3.msra.mxu0 %v12591_v27  ;;  %v11838_v27 = vld [vmem:[%s16926_s4 + $0x78] sm:$0xff]  }
 0x29e   :  { %11315 = vmatprep.subr.mxu0 %v12741_v61  ;;  %10011 = vmatprep.subr.bf16.mxu1 %v11838_v27  ;;  %v11853_v27 = vld [vmem:[%s16926_s4 + $0x18] sm:$0xff]  }
 0x29f   :  { %11316 = vmatpush3.msra.mxu0 %v12615_v59  ;;  %10012 = vmatpush3.bf16.msra.mxu1 %v11839_v25 }
 0x2a0   :  { %11317 = vmatprep.subr.mxu0 %v12741_v61 }
 0x2a1   :  { %11318 = vmatpush3.msra.mxu0 %v12595_v53 }
 0x2a2   :  { %11319 = vmatprep.subr.mxu0 %v12741_v61 }
 0x2a3   :  { %11320 = vmatpush3.msra.mxu0 %v12583_v40 }
 0x2a4   :  { %11321 = vmatprep.subr.mxu0 %v12741_v61 }
 0x2a5   :  { %11322 = vmatpush3.msra.mxu0 %v12575_v37 }
 0x2a6   :  { %11323 = vmatprep.subr.mxu0 %v12741_v61 }
 0x2a7   :  { %11324 = vmatpush3.msra.mxu0 %v12587_v42 }
 0x2a8   :  { %11325 = vmatprep.subr.mxu0 %v12741_v61 }
 0x2a9   :  { %11326 = vmatpush3.msra.mxu0 %v12579_v30 }
 0x2aa   :  { %11328 = vmatmul.mubr.msk.f32.vlgmr.msra.gmra.mxu0 %vm388_vm1, %v17046_v7  ;;  %11349 = vmatprep.subr.mxu0 %v12741_v61 }
 0x2ab   :  { %11350 = vmatpush3.msra.mxu0 %v12665_v49  ;;  %11365 = vmatprep.mubr.msk.f32.mxu0 %vm11993_vm0, %v12741_v61  ;;  %v11840_v49 = vld [vmem:[%s16926_s4 + $0x70] sm:$0xff]  }
 0x2ac   :  { %11351 = vmatprep.subr.mxu0 %v12741_v61  ;;  %10013 = vmatprep.subr.bf16.mxu1 %v11840_v49  ;;  %v11852_v49 = vld [vmem:[%s16926_s4 + $0xa8] sm:$0xff]  }
 0x2ad   :  { %11352 = vmatpush3.msra.mxu0 %v12649_v19  ;;  %10014 = vmatpush3.bf16.msra.mxu1 %v11841_v16  ;;  %v11855_v16 = vld [vmem:[%s16926_s4 + $0x50] sm:$0xff]  }
 0x2ae   :  { %11353 = vmatprep.subr.mxu0 %v12741_v61  ;;  %10015 = vmatprep.subr.bf16.mxu1 %v11843_v23 }
 0x2af   :  { %11354 = vmatpush3.msra.mxu0 %v12681_v14 }
 0x2b0   :  { %11355 = vmatprep.subr.mxu0 %v12741_v61 }
 0x2b1   :  { %11356 = vmatpush3.msra.mxu0 %v12654_v2  ;;  %10016 = vmatpush3.bf16.msra.mxu1 %v11845_v32  ;;  %v11857_v32 = vld [vmem:[%s16926_s4 + $0x10] sm:$0xff]  }
 0x2b2   :  { %11357 = vmatprep.subr.mxu0 %v12741_v61  ;;  %10017 = vmatprep.subr.bf16.mxu1 %v11847_v13  ;;  %v11859_v13 = vld [vmem:[%s16926_s4 + $0x48] sm:$0xff]  }
 0x2b3   :  { %11358 = vmatpush3.msra.mxu0 %v12635_v57 }
 0x2b4   :  { %11359 = vmatprep.subr.mxu0 %v12741_v61 }
 0x2b5   :  { %11360 = vmatpush3.msra.mxu0 %v12621_v63  ;;  %10018 = vmatpush3.bf16.msra.mxu1 %v11849_v52  ;;  %v11861_v52 = vld [vmem:[%s16926_s4 + $0x8] sm:$0xff]  }
 0x2b6   :  { %11361 = vmatprep.subr.mxu0 %v12741_v61 }
 0x2b7   :  { %11362 = vmatpush3.msra.mxu0 %v12642_v35 }
 0x2b8   :  { %11363 = vmatprep.subr.mxu0 %v12741_v61 }
 0x2b9   :  { %11364 = vmatpush3.msra.mxu0 %v12628_v51 }
 0x2ba   :  { %11366 = vmatmul.mubr.msk.f32.vlgmr.msra.gmra.mxu0 %vm388_vm1, %v17046_v7  ;;  %9899 = vmatprep.subr.bf16.mxu0 %v11842_v21  ;;  %v11854_v21 = vld [vmem:[%s16926_s4 + $0xe0] sm:$0xff]  }
 0x2bb   :  { %9900 = vmatpush3.bf16.msra.mxu0 %v11844_v8  ;;  %v11856_v8 = vld [vmem:[%s16926_s4 + $0xa0] sm:$0xff]  }
 0x2bc   :  { %9901 = vmatprep.subr.bf16.mxu0 %v11846_v11  ;;  %v11860_v11 = vld [vmem:[%s16926_s4 + $0x98] sm:$0xff]  }
 0x2bf   :  { %9902 = vmatpush3.bf16.msra.mxu0 %v11848_v24  ;;  %v11863_v24 = vld [vmem:[%s16926_s4 + $0x40] sm:$0xff]  }
 0x32a   :  { %v1570_v4 = vpop.f32.mrf.mxu0 }
 0x32c   :  { %v11253_v19 = vpop.f32.mrf.mxu0 }
 0x32d   :  { %v11851_v19 = vld [vmem:[%s16926_s4 + $0x58] sm:$0xff]  }
 0x32e   :  { %10019 = vmatprep.subr.bf16.mxu1 %v11851_v19 }
 0x32f   :  { %10020 = vmatpush3.bf16.msra.mxu1 %v11853_v27  ;;  %v11862_v27 = vld [vmem:[%s16926_s4 + $0xd0] sm:$0xff]  }
 0x330   :  { %10021 = vmatprep.subr.bf16.mxu1 %v11855_v16  ;;  %v11864_v16 = vld [vmem:[%s16926_s4 + $0x90] sm:$0xff]  }
 0x333   :  { %10022 = vmatpush3.bf16.msra.mxu1 %v11857_v32  ;;  %v11866_v32 = vld [vmem:[%s16926_s4 + $0xc8] sm:$0xff]  }
 0x334   :  { %10023 = vmatprep.subr.bf16.mxu1 %v11859_v13  ;;  %v11867_v13 = vld [vmem:[%s16926_s4 + $0x88] sm:$0xff]  }
 0x337   :  { %10024 = vmatpush3.bf16.msra.mxu1 %v11861_v52  ;;  %v11868_v52 = vld [vmem:[%s16926_s4 + $0xc0] sm:$0xff]  }
 0x338   :  { %10025 = vmatprep.subr.bf16.mxu1 %v11863_v24 }
 0x33a   :  { %v1640_v10 = vpop.f32.mrf.mxu0 }
 0x33b   :  { %v12832_v18 = vadd.f32 %v1640_v10, %v1570_v4  ;;  %v11850_v4 = vld [vmem:[%s16926_s4 + $0xe8] sm:$0xff]   ;;  %v11858_v10 = vld [vmem:[%s16926_s4 + $0xd8] sm:$0xff]  }
 0x33c   :  { %v11272_v6 = vpop.f32.mrf.mxu0  ;;  %9903 = vmatprep.subr.bf16.mxu0 %v11850_v4  ;;  %v2574_v4 = vld [vmem:[#allocation4 + $0x1] sm:$0xff] }
 0x33d   :  { %9904 = vmatpush3.bf16.msra.mxu0 %v11852_v49  ;;  %v11865_v6 = vld [vmem:[%s16926_s4] sm:$0xff]   ;;  %v2575_v49 = vld [vmem:[#allocation4 + $0x9] sm:$0xff] }
 0x33e   :  { %9905 = vmatprep.subr.bf16.mxu0 %v11854_v21  ;;  %10026 = vmatpush3.bf16.msra.mxu1 %v11865_v6  ;;  %v2558_v21 = vpack.c.bf16 %v12741_v61, %v12741_v61 }
 0x33f   :  { %v1937_v25 = vpop.f32.mrf.mxu1 }
 0x341   :  { %v11348_v23 = vpop.f32.mrf.mxu1  ;;  %9906 = vmatpush3.bf16.msra.mxu0 %v11856_v8 }
 0x342   :  { %9907 = vmatprep.subr.bf16.mxu0 %v11858_v10  ;;  %v2606_v23 = vpack.c.bf16 %v2575_v49, %v2574_v4  ;;  %v11869_v10 = vld [vmem:[%s16926_s4 + $0x80] sm:$0xff]  }
 0x344   :  { %3167 = vmatprep.mubr.bf16.mxu1 %v2606_v23 }
 0x345   :  { %9908 = vmatpush3.bf16.msra.mxu0 %v11860_v11  ;;  %3168 = vmatmul.mubr.bf16.vlgmr.msra.gmra.mxu1 %v2558_v21 }
 0x346   :  { %9909 = vmatprep.subr.bf16.mxu0 %v11862_v27 }
 0x349   :  { %9910 = vmatpush3.bf16.msra.mxu0 %v11864_v16  ;;  %v2386_v16 = vlaneseq }
 0x34a   :  { %v1718_v19 = vpop.f32.mrf.mxu0  ;;  %9911 = vmatprep.subr.bf16.mxu0 %v11866_v32 }
 0x34c   :  { %v11291_v8 = vpop.f32.mrf.mxu0 }
 0x34d   :  { %9912 = vmatpush3.bf16.msra.mxu0 %v11867_v13  ;;  %v2387_v8 = vshrl.u32 %v2386_v16, 7  ;;  %v12940_v16 = vpack.c.bf16 %v12231_v48, %v12223_v46  ;;  %v12956_v46 = vpack.c.bf16 %v12286_v0, %v12272_v60  ;;  %v17051_v60 = vld [vmem:[#allocation5_spill] sm:$0xff]  ;;  %v13009_v0 = vpack.c.bf16 %v12587_v42, %v12579_v30 }
 0x34e   :  { %9913 = vmatprep.subr.bf16.mxu0 %v11868_v52  ;;  %v13022_v30 = vpack.c.bf16 %v12615_v59, %v12595_v53  ;;  %v13026_v42 = vpack.c.bf16 %v12635_v57, %v12621_v63  ;;  %v17058_v57 = vld [vmem:[#allocation15_spill] sm:$0xff] }
 0x351   :  { %9914 = vmatpush3.bf16.msra.mxu0 %v11869_v10 }
 0x352   :  { %v2087_v61 = vpop.f32.mrf.mxu1 }
 0x354   :  { %v11386_v11 = vpop.f32.mrf.mxu1 }
 0x35a   :  { %v1788_v24 = vpop.f32.mrf.mxu0 }
 0x35b   :  { %v1789_v6 = vadd.f32 %v1788_v24, %v1718_v19  ;;  %v12908_v19 = vpack.c.bf16 %v12177_v29, %v12169_v26  ;;  %v9185_v29 = vunpack.c.l.bf16 %v12187_v33 }
 0x35c   :  { %v11310_v27 = vpop.f32.mrf.mxu0 }
 0x35d   :  { %v1941_v4 = vadd.f32 %v1937_v25, %v1789_v6  ;;  %v9173_v24 = vunpack.c.l.bf16 %v12908_v19  ;;  %v9174_v26 = vunpack.c.h.bf16 %v12908_v19  ;;  %v12929_v6 = vpack.c.bf16 %v12214_v44, %v12205_v41 }
 0x35e   :  { %v12946_v44 = vpack.c.bf16 %v12259_v56, %v12239_v50 }
 0x35f   :  { %v2091_v49 = vadd.f32 %v2087_v61, %v1941_v4  ;;  %v12920_v61 = vsub.s32 0, %v2387_v8  ;;  %v9193_v4 = vunpack.c.l.bf16 %v12199_v38  ;;  %v12952_v8 = vpack.c.bf16 %v12279_v62, %v12265_v58  ;;  %v17050_v58 = vld [vmem:[#allocation6_spill] sm:$0xff] }
 0x360   :  { %v9197_v48 = vunpack.c.l.bf16 %v12929_v6  ;;  %v12967_v62 = vpack.c.bf16 %v17050_v58, %v12298_v3  ;;  %v12981_v3 = vpack.c.bf16 %v12545_v15, %v12537_v12  ;;  %v17053_v58 = vld [vmem:[#allocation8_spill] sm:$0xff]  ;;  %v17057_v12 = vld [vmem:[#allocation13_spill] sm:$0xff] }
 0x361   :  { %v2093_v23 = vadd.f32 %v2091_v49, %v12519_v54  ;;  %v12912_v54 = vpack.c.bf16 %v12189_v34, %v12181_v31  ;;  %17049 = vst [vmem:[#allocation16_spill] sm:$0xff] %v12920_v61  ;;  %v9186_v31 = vunpack.c.h.bf16 %v12187_v33  ;;  %v9194_v49 = vunpack.c.h.bf16 %v12199_v38 }
 0x362   :  { %v13040_v63 = vpack.c.bf16 %v17058_v57, %v17057_v12  ;;  %v17080_v53 = vunpack.c.l.bf16 %v12981_v3 }
 0x363   :  { %v2258_v11 = vmul.f32 0.001953125, %v2093_v23  ;;  %v9181_v34 = vunpack.c.l.bf16 %v12912_v54  ;;  %v9182_v27 = vunpack.c.h.bf16 %v12912_v54 }
 0x36a   :  { %v1858_v32 = vpop.f32.mrf.mxu0 }
 0x36b   :  { %v1862_v7 = vadd.f32 %v1858_v32, %v12832_v18  ;;  %v9198_v32 = vunpack.c.h.bf16 %v12929_v6  ;;  %v17061_v6 = vunpack.c.h.bf16 %v12940_v16 }
 0x36c   :  { %v11329_v21 = vpop.f32.mrf.mxu0 }
 0x36d   :  { %v9205_v21 = vunpack.c.l.bf16 %v12940_v16  ;;  %v17065_v16 = vunpack.c.h.bf16 %v12946_v44 }
 0x37a   :  { %v2008_v14 = vpop.f32.mrf.mxu0 }
 0x37b   :  { %v2012_v2 = vadd.f32 %v2008_v14, %v1862_v7  ;;  %v9177_v7 = vunpack.c.l.bf16 %v12175_v28  ;;  %v9178_v14 = vunpack.c.h.bf16 %v12175_v28 }
 0x37c   :  { %v11367_v13 = vpop.f32.mrf.mxu0 }
 0x37d   :  { %v2092_v52 = vadd.f32 %v2012_v2, %v12521_v1  ;;  %v12918_v1 = vpack.c.bf16 %v12201_v39, %v12193_v36  ;;  %v12933_v36 = vpack.c.bf16 %v12227_v47, %v12219_v45  ;;  %v9201_v45 = vunpack.c.l.bf16 %v12211_v43 }
 0x37e   :  { %v9202_v47 = vunpack.c.h.bf16 %v12211_v43 }
 0x37f   :  { %v12902_v10 = vmul.f32 0.001953125, %v2092_v52  ;;  %v9189_v23 = vunpack.c.l.bf16 %v12918_v1  ;;  %v9190_v41 = vunpack.c.h.bf16 %v12918_v1  ;;  %v2255_v52 = vld [vmem:[%s16927_s2] sm:$0x1]  ;;  %v17063_v43 = vunpack.c.h.bf16 %v12933_v36 }
 0x381   :  { %v2259_v25 = vmul.f32 %v12902_v10, %v12902_v10 }
 0x383   :  { %v2260_v18 = vsub.f32 %v2258_v11, %v2259_v25  ;;  %v12974_v25 = vpack.c.bf16 %v12533_v9, %v12525_v5  ;;  %v12988_v5 = vpack.c.bf16 %v12557_v20, %v12549_v17  ;;  %v17054_v11 = vld [vmem:[#allocation11_spill] sm:$0xff]  ;;  %v13033_v20 = vpack.c.bf16 %v12642_v35, %v12628_v51  ;;  %v17060_v51 = vld [vmem:[#allocation14_spill] sm:$0xff] }
 0x384   :  { %v12999_v56 = vpack.c.bf16 %v17054_v11, %v12561_v22  ;;  %v17055_v22 = vld [vmem:[#allocation9_spill] sm:$0xff]  ;;  %v17059_v11 = vld [vmem:[#allocation12_spill] sm:$0xff] }
 0x385   :  { %v2261_v2 = vmax.f32 %v2260_v18, 0.0  ;;  %v17052_v18 = vld [vmem:[#allocation7_spill] sm:$0xff]  ;;  %v17084_v50 = vunpack.c.l.bf16 %v12988_v5  ;;  %v17086_v57 = vunpack.c.l.bf16 %v17055_v22 }
 0x386   :  { %v17078_v35 = vunpack.c.l.bf16 %v17052_v18 }
 0x387   :  { %v2262_v39 = vadd.f32 1e-05, %v2261_v2  ;;  %v13005_v2 = vpack.c.bf16 %v12583_v40, %v12575_v37  ;;  %v17056_v37 = vld [vmem:[#allocation10_spill] sm:$0xff]  ;;  %v17089_v40 = vunpack.c.l.bf16 %v12999_v56 }
 0x389   :  { %11982 = vrsqrt.f32 %v2262_v39  ;;  %v2256_v39 = vld [vmem:[%s16928_s3] sm:$0x1] }
 0x396   :  { %v11983_v15 = vpop.eup %11982 }
 0x397   :  { %v2264_v9 = vmul.f32 %v11983_v15, %v2255_v52  ;;  %v17082_v15 = vunpack.c.l.bf16 %v17053_v58 }
 0x399   :  { %v2265_v13 = vmul.f32 %v2264_v9, %v12902_v10  ;;  %v13056_v17 = vrot.slane %v2264_v9, %v12920_v61 }
 0x39b   :  { %v2266_v59 = vsub.f32 %v2256_v39, %v2265_v13  ;;  %v13065_v12 = vmul.f32 %v9173_v24, %v13056_v17  ;;  %v13070_v10 = vmul.f32 %v9174_v26, %v13056_v17  ;;  %v13075_v9 = vmul.f32 %v9177_v7, %v13056_v17 }
 0x39c   :  { %v13080_v52 = vmul.f32 %v9178_v14, %v13056_v17  ;;  %v13085_v24 = vmul.f32 %v9181_v34, %v13056_v17  ;;  %v13090_v19 = vmul.f32 %v9182_v27, %v13056_v17  ;;  %v13095_v7 = vmul.f32 %v9185_v29, %v13056_v17 }
 0x39d   :  { %v13098_v26 = vrot.slane %v2266_v59, %v12920_v61  ;;  %v13103_v28 = vmul.f32 %v9186_v31, %v13056_v17  ;;  %v13108_v14 = vmul.f32 %v9189_v23, %v13056_v17  ;;  %v13113_v54 = vmul.f32 %v9190_v41, %v13056_v17 }
 0x39e   :  { %v13118_v29 = vmul.f32 %v9193_v4, %v13056_v17  ;;  %v13123_v33 = vmul.f32 %v9194_v49, %v13056_v17  ;;  %v13128_v31 = vmul.f32 %v9197_v48, %v13056_v17  ;;  %v13133_v1 = vmul.f32 %v9198_v32, %v13056_v17 }
 0x39f   :  { %v13138_v34 = vmul.f32 %v9201_v45, %v13056_v17  ;;  %v13143_v38 = vmul.f32 %v9202_v47, %v13056_v17  ;;  %v13148_v27 = vmul.f32 %v9205_v21, %v13056_v17  ;;  %v13153_v4 = vmul.f32 %v17061_v6, %v13056_v17 }
 0x3a0   :  { %v17062_v49 = vunpack.c.l.bf16 %v12933_v36  ;;  %v13163_v41 = vmul.f32 %v17063_v43, %v13056_v17  ;;  %v17064_v45 = vunpack.c.l.bf16 %v12946_v44  ;;  %v13173_v48 = vmul.f32 %v17065_v16, %v13056_v17 }
 0x3a1   :  { %v17066_v32 = vunpack.c.l.bf16 %v12256_v55  ;;  %v17067_v36 = vunpack.c.h.bf16 %v12256_v55  ;;  %v17068_v39 = vunpack.c.l.bf16 %v12956_v46  ;;  %v17069_v44 = vunpack.c.h.bf16 %v12956_v46 }
 0x3a2   :  { %v13158_v23 = vmul.f32 %v17062_v49, %v13056_v17  ;;  %v13168_v47 = vmul.f32 %v17064_v45, %v13056_v17  ;;  %v17070_v49 = vunpack.c.l.bf16 %v12952_v8  ;;  %v17071_v55 = vunpack.c.h.bf16 %v12952_v8 }
 0x3a3   :  { %v13178_v21 = vmul.f32 %v17066_v32, %v13056_v17  ;;  %v13183_v13 = vmul.f32 %v17067_v36, %v13056_v17  ;;  %v13188_v59 = vmul.f32 %v17068_v39, %v13056_v17  ;;  %v13193_v6 = vmul.f32 %v17069_v44, %v13056_v17 }
 0x3a4   :  { %v13198_v43 = vmul.f32 %v17070_v49, %v13056_v17  ;;  %v13203_v45 = vmul.f32 %v17071_v55, %v13056_v17  ;;  %v17072_v16 = vunpack.c.l.bf16 %v12967_v62  ;;  %v17073_v46 = vunpack.c.h.bf16 %v12967_v62 }
 0x3a5   :  { %v17074_v39 = vunpack.c.l.bf16 %v17051_v60  ;;  %v17075_v8 = vunpack.c.h.bf16 %v17051_v60  ;;  %v17076_v55 = vunpack.c.l.bf16 %v12974_v25  ;;  %v17077_v62 = vunpack.c.h.bf16 %v12974_v25 }
 0x3a6   :  { %v13208_v32 = vmul.f32 %v17072_v16, %v13056_v17  ;;  %v13213_v36 = vmul.f32 %v17073_v46, %v13056_v17  ;;  %v17079_v60 = vunpack.c.h.bf16 %v17052_v18  ;;  %v17081_v25 = vunpack.c.h.bf16 %v12981_v3 }
 0x3a7   :  { %v13218_v44 = vmul.f32 %v17074_v39, %v13056_v17  ;;  %v13223_v49 = vmul.f32 %v17075_v8, %v13056_v17  ;;  %v13228_v16 = vmul.f32 %v17076_v55, %v13056_v17  ;;  %v13233_v46 = vmul.f32 %v17077_v62, %v13056_v17 }
 0x3a8   :  { %v13238_v39 = vmul.f32 %v17078_v35, %v13056_v17  ;;  %v13243_v8 = vmul.f32 %v17079_v60, %v13056_v17  ;;  %v13248_v55 = vmul.f32 %v17080_v53, %v13056_v17  ;;  %v13253_v62 = vmul.f32 %v17081_v25, %v13056_v17 }
 0x3a9   :  { %v13258_v35 = vmul.f32 %v17082_v15, %v13056_v17  ;;  %v17083_v18 = vunpack.c.h.bf16 %v17053_v58  ;;  %v13268_v53 = vmul.f32 %v17084_v50, %v13056_v17  ;;  %v17085_v3 = vunpack.c.h.bf16 %v12988_v5 }
 0x3aa   :  { %v13278_v15 = vmul.f32 %v17086_v57, %v13056_v17  ;;  %v17087_v58 = vunpack.c.h.bf16 %v17055_v22  ;;  %v13288_v50 = vmul.f32 %v17089_v40, %v13056_v17  ;;  %v17090_v5 = vunpack.c.h.bf16 %v12999_v56  ;;  %v11870_v57 = vld [vmem:[%s16926_s4 + $0x1f8] sm:$0xff]  }
 0x3ab   :  { %v13263_v60 = vmul.f32 %v17083_v18, %v13056_v17  ;;  %v13273_v25 = vmul.f32 %v17085_v3, %v13056_v17  ;;  %v17092_v61 = vunpack.c.l.bf16 %v17056_v37  ;;  %v17096_v40 = vunpack.c.l.bf16 %v13009_v0  ;;  %10235 = vmatprep.subr.bf16.mxu1 %v11870_v57  ;;  %v11873_v57 = vld [vmem:[%s16926_s4 + $0x1b0] sm:$0xff]  }
 0x3ac   :  { %v13283_v18 = vmul.f32 %v17087_v58, %v13056_v17  ;;  %v13293_v3 = vmul.f32 %v17090_v5, %v13056_v17  ;;  %v17094_v58 = vunpack.c.h.bf16 %v17056_v37  ;;  %v17098_v5 = vunpack.c.h.bf16 %v13009_v0  ;;  %v11872_v37 = vld [vmem:[%s16926_s4 + $0x1f0] sm:$0xff]  }
 0x3ad   :  { %v13301_v22 = vmul.f32 %v17092_v61, %v13056_v17  ;;  %v13311_v56 = vmul.f32 %v17096_v40, %v13056_v17  ;;  %v11871_v61 = vld [vmem:[%s16926_s4 + $0x1b8] sm:$0xff]   ;;  %v17102_v40 = vunpack.c.h.bf16 %v13005_v2  ;;  %v17103_v0 = vunpack.c.l.bf16 %v13022_v30 }
 0x3ae   :  { %17088 = vst [vmem:[#allocation6_spill] sm:$0xff] %v13283_v18  ;;  %17091 = vst [vmem:[#allocation5_spill] sm:$0xff] %v13293_v3  ;;  %v13306_v18 = vmul.f32 %v17094_v58, %v13056_v17  ;;  %v13316_v3 = vmul.f32 %v17098_v5, %v13056_v17  ;;  %v17100_v58 = vunpack.c.l.bf16 %v13005_v2  ;;  %v17107_v2 = vunpack.c.h.bf16 %v17059_v11  ;;  %10236 = vmatpush3.bf16.msra.mxu1 %v11871_v61 }
 0x3af   :  { %17093 = vst [vmem:[#allocation7_spill] sm:$0xff] %v13301_v22  ;;  %17097 = vst [vmem:[#allocation11_spill] sm:$0xff] %v13311_v56  ;;  %v13332_v56 = vmul.f32 %v17102_v40, %v13056_v17  ;;  %v13337_v5 = vmul.f32 %v17103_v0, %v13056_v17  ;;  %v17108_v0 = vunpack.c.l.bf16 %v13033_v20  ;;  %v17115_v61 = vunpack.c.h.bf16 %v13040_v63  ;;  %10237 = vmatprep.subr.bf16.mxu1 %v11872_v37 }
 0x3b0   :  { %17095 = vst [vmem:[#allocation8_spill] sm:$0xff] %v13306_v18  ;;  %17099 = vst [vmem:[#allocation9_spill] sm:$0xff] %v13316_v3  ;;  %v13327_v18 = vmul.f32 %v17100_v58, %v13056_v17  ;;  %v17105_v3 = vunpack.c.h.bf16 %v13022_v30  ;;  %v17106_v58 = vunpack.c.l.bf16 %v17059_v11  ;;  %v13352_v40 = vmul.f32 %v17107_v2, %v13056_v17 }
 0x3b1   :  { %17104 = vst [vmem:[#allocation13_spill] sm:$0xff] %v13337_v5  ;;  %v13357_v5 = vmul.f32 %v17108_v0, %v13056_v17  ;;  %v17109_v30 = vunpack.c.h.bf16 %v13033_v20  ;;  %v17111_v11 = vunpack.c.l.bf16 %v13026_v42  ;;  %v17113_v2 = vunpack.c.h.bf16 %v13026_v42 }
 0x3b2   :  { %17101 = vst [vmem:[#allocation10_spill] sm:$0xff] %v13327_v18  ;;  %v13342_v22 = vmul.f32 %v17105_v3, %v13056_v17  ;;  %v13347_v18 = vmul.f32 %v17106_v58, %v13056_v17  ;;  %v17114_v20 = vunpack.c.l.bf16 %v13040_v63  ;;  %v17117_v42 = vunpack.c.h.bf16 %v17060_v51  ;;  %10238 = vmatpush3.bf16.msra.mxu1 %v11873_v57  ;;  %v11877_v57 = vld [vmem:[%s16926_s4 + $0x1a8] sm:$0xff]  }
 0x3b3   :  { %v13362_v3 = vmul.f32 %v17109_v30, %v13056_v17  ;;  %v13370_v58 = vmul.f32 %v17111_v11, %v13056_v17  ;;  %v13375_v0 = vmul.f32 %v17113_v2, %v13056_v17  ;;  %v17116_v11 = vunpack.c.l.bf16 %v17060_v51 }
 0x3b4   :  { %v13380_v30 = vmul.f32 %v17114_v20, %v13056_v17  ;;  %v13395_v2 = vmul.f32 %v17117_v42, %v13056_v17  ;;  %v13399_v20 = vadd.f32 %v13098_v26, %v13065_v12  ;;  %v13403_v63 = vadd.f32 %v13098_v26, %v13070_v10 }
 0x3b5   :  { %17110 = vst [vmem:[#allocation15_spill] sm:$0xff] %v13362_v3  ;;  %17112 = vst [vmem:[#allocation12_spill] sm:$0xff] %v13370_v58  ;;  %v13385_v3 = vmul.f32 %v17115_v61, %v13056_v17  ;;  %v13390_v58 = vmul.f32 %v17116_v11, %v13056_v17  ;;  %v13407_v37 = vadd.f32 %v13098_v26, %v13075_v9  ;;  %v11879_v11 = vld [vmem:[%s16926_s4 + $0x1e0] sm:$0xff]  }
 0x3b6   :  { %v13411_v61 = vadd.f32 %v13098_v26, %v13080_v52  ;;  %v13415_v17 = vadd.f32 %v13098_v26, %v13085_v24  ;;  %v13419_v51 = vadd.f32 %v13098_v26, %v13090_v19  ;;  %v13423_v12 = vadd.f32 %v13098_v26, %v13095_v7 }
 0x3b7   :  { %v13427_v10 = vadd.f32 %v13098_v26, %v13103_v28  ;;  %v13431_v52 = vadd.f32 %v13098_v26, %v13108_v14  ;;  %v13435_v9 = vadd.f32 %v13098_v26, %v13113_v54  ;;  %v13439_v24 = vadd.f32 %v13098_v26, %v13118_v29  ;;  %v11874_v14 = vld [vmem:[%s16926_s4 + $0x178] sm:$0xff]   ;;  %v11875_v54 = vld [vmem:[%s16926_s4 + $0x1e8] sm:$0xff]  }
 0x3b8   :  { %v13443_v19 = vadd.f32 %v13098_v26, %v13123_v33  ;;  %v13447_v7 = vadd.f32 %v13098_v26, %v13128_v31  ;;  %v13451_v28 = vadd.f32 %v13098_v26, %v13133_v1  ;;  %v13461_v29 = vadd.f32 %v13098_v26, %v13138_v34  ;;  %10123 = vmatprep.subr.bf16.mxu0 %v11874_v14 }
 0x3b9   :  { %v13465_v33 = vadd.f32 %v13098_v26, %v13143_v38  ;;  %v13469_v31 = vadd.f32 %v13098_v26, %v13148_v27  ;;  %v13473_v1 = vadd.f32 %v13098_v26, %v13153_v4  ;;  %v13480_v34 = vadd.f32 %v13098_v26, %v13158_v23  ;;  %10239 = vmatprep.subr.bf16.mxu1 %v11875_v54  ;;  %v17119_v54 = vld [vmem:[#allocation6_spill] sm:$0xff] }
 0x3ba   :  { %v13484_v38 = vadd.f32 %v13098_v26, %v13163_v41  ;;  %v13488_v27 = vadd.f32 %v13098_v26, %v13168_v47  ;;  %v13492_v4 = vadd.f32 %v13098_v26, %v13173_v48  ;;  %v13499_v23 = vadd.f32 %v13098_v26, %v13178_v21  ;;  %10240 = vmatpush3.bf16.msra.mxu1 %v11877_v57  ;;  %v17122_v57 = vld [vmem:[#allocation5_spill] sm:$0xff] }
 0x3bb   :  { %v13503_v41 = vadd.f32 %v13098_v26, %v13183_v13  ;;  %v13507_v47 = vadd.f32 %v13098_v26, %v13188_v59  ;;  %v13511_v48 = vadd.f32 %v13098_v26, %v13193_v6  ;;  %v13515_v42 = vadd.f32 %v13098_v26, %v13198_v43  ;;  %v11881_v6 = vld [vmem:[%s16926_s4 + $0x1a0] sm:$0xff]   ;;  %10241 = vmatprep.subr.bf16.mxu1 %v11879_v11 }
 0x3bc   :  { %v13519_v21 = vadd.f32 %v13098_v26, %v13203_v45  ;;  %v13523_v13 = vadd.f32 %v13098_v26, %v13208_v32  ;;  %v13527_v59 = vadd.f32 %v13098_v26, %v13213_v36  ;;  %v13534_v43 = vadd.f32 %v13098_v26, %v13218_v44 }
 0x3bd   :  { %v13538_v45 = vadd.f32 %v13098_v26, %v13223_v49  ;;  %v13542_v32 = vadd.f32 %v13228_v16, %v13098_v26  ;;  %v13546_v36 = vadd.f32 %v13233_v46, %v13098_v26  ;;  %v13550_v14 = vadd.f32 %v13238_v39, %v13098_v26 }
 0x3be   :  { %v13554_v44 = vadd.f32 %v13243_v8, %v13098_v26  ;;  %v13558_v49 = vadd.f32 %v13248_v55, %v13098_v26  ;;  %v13562_v16 = vadd.f32 %v13253_v62, %v13098_v26  ;;  %v13566_v46 = vadd.f32 %v13258_v35, %v13098_v26  ;;  %10242 = vmatpush3.bf16.msra.mxu1 %v11881_v6  ;;  %v11885_v6 = vld [vmem:[%s16926_s4 + $0x198] sm:$0xff]  }
 0x3bf   :  { %v13570_v39 = vadd.f32 %v13263_v60, %v13098_v26  ;;  %v13574_v8 = vadd.f32 %v13268_v53, %v13098_v26  ;;  %v13578_v55 = vadd.f32 %v13273_v25, %v13098_v26  ;;  %v13582_v62 = vadd.f32 %v13278_v15, %v13098_v26  ;;  %v11883_v25 = vld [vmem:[%s16926_s4 + $0x1d8] sm:$0xff]   ;;  %v17124_v15 = vld [vmem:[#allocation7_spill] sm:$0xff] }
 0x3c0   :  { %v13586_v35 = vadd.f32 %v17119_v54, %v13098_v26  ;;  %v13590_v60 = vadd.f32 %v13288_v50, %v13098_v26  ;;  %v13594_v53 = vadd.f32 %v17122_v57, %v13098_v26  ;;  %v13601_v11 = vadd.f32 %v17124_v15, %v13098_v26  ;;  %v17125_v54 = vld [vmem:[#allocation8_spill] sm:$0xff]  ;;  %v17127_v50 = vld [vmem:[#allocation11_spill] sm:$0xff]  ;;  %v17128_v57 = vld [vmem:[#allocation9_spill] sm:$0xff]  ;;  %10243 = vmatprep.subr.bf16.mxu1 %v11883_v25 }
 0x3c1   :  { %17118 = vst [vmem:[#allocation14_spill] sm:$0xff] %v13582_v62  ;;  %v17130_v62 = vld [vmem:[#allocation10_spill] sm:$0xff]  ;;  %v17136_v25 = vld [vmem:[#allocation12_spill] sm:$0xff] }
 0x3c2   :  { %17120 = vst [vmem:[#allocation6_spill] sm:$0xff] %v13586_v35  ;;  %17121 = vst [vmem:[#allocation17_spill] sm:$0xff] %v13590_v60  ;;  %v13605_v35 = vadd.f32 %v17125_v54, %v13098_v26  ;;  %v13609_v60 = vadd.f32 %v17127_v50, %v13098_v26  ;;  %v13620_v15 = vadd.f32 %v17130_v62, %v13098_v26  ;;  %10244 = vmatpush3.bf16.msra.mxu1 %v11885_v6 }
 0x3c3   :  { %17123 = vst [vmem:[#allocation5_spill] sm:$0xff] %v13594_v53  ;;  %v13613_v53 = vadd.f32 %v17128_v57, %v13098_v26  ;;  %v13624_v54 = vadd.f32 %v13332_v56, %v13098_v26  ;;  %v13632_v57 = vadd.f32 %v13342_v22, %v13098_v26  ;;  %v13639_v62 = vadd.f32 %v13347_v18, %v13098_v26  ;;  %v17134_v22 = vld [vmem:[#allocation15_spill] sm:$0xff] }
 0x3c4   :  { %17126 = vst [vmem:[#allocation7_spill] sm:$0xff] %v13605_v35  ;;  %v17131_v35 = vld [vmem:[#allocation13_spill] sm:$0xff]  ;;  %v13643_v56 = vadd.f32 %v13352_v40, %v13098_v26  ;;  %v13659_v18 = vadd.f32 %v13375_v0, %v13098_v26  ;;  %v13663_v40 = vadd.f32 %v13380_v30, %v13098_v26  ;;  %v13678_v0 = vadd.f32 %v13395_v2, %v13098_v26 }
 0x3c5   :  { %17129 = vst [vmem:[#allocation8_spill] sm:$0xff] %v13613_v53  ;;  %v13628_v50 = vadd.f32 %v17131_v35, %v13098_v26  ;;  %17133 = vst [vmem:[#allocation9_spill] sm:$0xff] %v13632_v57  ;;  %v11887_v53 = vld [vmem:[%s16926_s4 + $0x1d0] sm:$0xff]   ;;  %v13647_v35 = vadd.f32 %v13357_v5, %v13098_v26  ;;  %v13651_v57 = vadd.f32 %v17134_v22, %v13098_v26  ;;  %v16952_v30 = vmax.f32 %v13399_v20, 0.0 }
 0x3c6   :  { %17138 = vst [vmem:[#allocation15_spill] sm:$0xff] %v13659_v18  ;;  %17139 = vst [vmem:[#allocation12_spill] sm:$0xff] %v13663_v40  ;;  %v13667_v5 = vadd.f32 %v13385_v3, %v13098_v26  ;;  %v11889_v22 = vld [vmem:[%s16926_s4 + $0x190] sm:$0xff]   ;;  %v16953_v40 = vmax.f32 %v13403_v63, 0.0  ;;  %10245 = vmatprep.subr.bf16.mxu1 %v11887_v53  ;;  %v16954_v3 = vmax.f32 %v13407_v37, 0.0  ;;  %v16955_v6 = vmax.f32 %v13411_v61, 0.0 }
 0x3c7   :  { %17132 = vst [vmem:[#allocation11_spill] sm:$0xff] %v13628_v50  ;;  %17135 = vst [vmem:[#allocation10_spill] sm:$0xff] %v13651_v57  ;;  %v13655_v50 = vadd.f32 %v17136_v25, %v13098_v26  ;;  %v13674_v25 = vadd.f32 %v13390_v58, %v13098_v26  ;;  %v16956_v26 = vmax.f32 %v13431_v52, 0.0  ;;  %v16958_v53 = vmax.f32 %v13439_v24, 0.0  ;;  %10246 = vmatpush3.bf16.msra.mxu1 %v11889_v22 }
 0x3c8   :  { %17140 = vst [vmem:[#allocation18_spill] sm:$0xff] %v13667_v5  ;;  %2494 = vst [vmem:[#allocation4 + $0x19] sm:$0xff] %v16952_v30  ;;  %v17141_v2 = vmax.f32 %v13415_v17, 0.0  ;;  %v17142_v30 = vmax.f32 %v13419_v51, 0.0  ;;  %v16959_v18 = vmax.f32 %v13461_v29, 0.0  ;;  %v16960_v58 = vmax.f32 %v13465_v33, 0.0 }
 0x3c9   :  { %17137 = vst [vmem:[#allocation13_spill] sm:$0xff] %v13655_v50  ;;  %v16957_v50 = vmax.f32 %v13427_v10, 0.0  ;;  %2495 = vst [vmem:[#allocation4 + $0x21] sm:$0xff] %v16953_v40  ;;  %v11891_v40 = vld [vmem:[%s16926_s4 + $0x1c8] sm:$0xff]   ;;  %v17144_v22 = vmax.f32 %v13435_v9, 0.0  ;;  %v11895_v5 = vld [vmem:[%s16926_s4 + $0x1c0] sm:$0xff]  }
 0x3ca   :  { %2496 = vst [vmem:[#allocation4 + $0x31] sm:$0xff] %v16954_v3  ;;  %2497 = vst [vmem:[#allocation4 + $0x39] sm:$0xff] %v16955_v6  ;;  %v17143_v6 = vmax.f32 %v13423_v12, 0.0  ;;  %10247 = vmatprep.subr.bf16.mxu1 %v11891_v40  ;;  %v16963_v3 = vmax.f32 %v13499_v23, 0.0  ;;  %v17149_v40 = vmax.f32 %v13473_v1, 0.0  ;;  %v17161_v57 = vmax.f32 %v13403_v63, 0.0 }
 0x3cb   :  { %2498 = vst [vmem:[#allocation4 + $0x49] sm:$0xff] %v17141_v2  ;;  %2499 = vst [vmem:[#allocation4 + $0x51] sm:$0xff] %v17142_v30  ;;  %v11893_v30 = vld [vmem:[%s16926_s4 + $0x188] sm:$0xff]   ;;  %v2492_v2 = vmax.f32 %v13538_v45, 0.0  ;;  %v17158_v45 = vmax.f32 %v13527_v59, 0.0 }
 0x3cc   :  { %2500 = vst [vmem:[#allocation4 + $0x61] sm:$0xff] %v17143_v6  ;;  %2501 = vst [vmem:[#allocation4 + $0x69] sm:$0xff] %v16957_v50  ;;  %v17147_v50 = vmax.f32 %v13451_v28, 0.0  ;;  %v17150_v6 = vmax.f32 %v13480_v34, 0.0  ;;  %10248 = vmatpush3.bf16.msra.mxu1 %v11893_v30  ;;  %v2654_v30 = vld [vmem:[#allocation4 + $0x2] sm:$0xff] }
 0x3cd   :  { %2502 = vst [vmem:[#allocation4 + $0x79] sm:$0xff] %v16956_v26  ;;  %2503 = vst [vmem:[#allocation4 + $0x81] sm:$0xff] %v17144_v22  ;;  %v17145_v26 = vmax.f32 %v13443_v19, 0.0  ;;  %v17146_v22 = vmax.f32 %v13447_v7, 0.0  ;;  %10249 = vmatprep.subr.bf16.mxu1 %v11895_v5 }
 0x3ce   :  { %2504 = vst [vmem:[#allocation4 + $0x91] sm:$0xff] %v16958_v53  ;;  %2507 = vst [vmem:[#allocation4 + $0xb1] sm:$0xff] %v17147_v50  ;;  %v17148_v50 = vmax.f32 %v13469_v31, 0.0  ;;  %v2491_v53 = vmax.f32 %v13534_v43, 0.0  ;;  %v17157_v43 = vmax.f32 %v13523_v13, 0.0 }
 0x3cf   :  { %2505 = vst [vmem:[#allocation4 + $0x99] sm:$0xff] %v17145_v26  ;;  %2506 = vst [vmem:[#allocation4 + $0xa9] sm:$0xff] %v17146_v22  ;;  %v16961_v26 = vmax.f32 %v13515_v42, 0.0  ;;  %v16962_v22 = vmax.f32 %v13519_v21, 0.0  ;;  %v2702_v5 = vld [vmem:[#allocation4 + $0x18] sm:$0xff] }
 0x3d0   :  { %2508 = vst [vmem:[#allocation4 + $0xc1] sm:$0xff] %v16959_v18  ;;  %2509 = vst [vmem:[#allocation4 + $0xc9] sm:$0xff] %v16960_v58  ;;  %v17151_v18 = vmax.f32 %v13484_v38, 0.0  ;;  %v17152_v58 = vmax.f32 %v13488_v27, 0.0 }
 0x3d1   :  { %2510 = vst [vmem:[#allocation4 + $0xd9] sm:$0xff] %v17148_v50  ;;  %2511 = vst [vmem:[#allocation4 + $0xe1] sm:$0xff] %v17149_v40  ;;  %v17153_v50 = vmax.f32 %v13492_v4, 0.0  ;;  %v11897_v40 = vld [vmem:[%s16926_s4 + $0x180] sm:$0xff]  }
 0x3d2   :  { %2512 = vst [vmem:[#allocation4 + $0xf1] sm:$0xff] %v17150_v6  ;;  %2513 = vst [vmem:[#allocation4 + $0xf9] sm:$0xff] %v17151_v18  ;;  %v17154_v18 = vmax.f32 %v13503_v41, 0.0  ;;  %v17156_v6 = vmax.f32 %v13511_v48, 0.0  ;;  %10250 = vmatpush3.bf16.msra.mxu1 %v11897_v40 }
 0x3d3   :  { %2514 = vst [vmem:[#allocation4 + $0x109] sm:$0xff] %v17152_v58  ;;  %2515 = vst [vmem:[#allocation4 + $0x111] sm:$0xff] %v17153_v50  ;;  %v17155_v58 = vmax.f32 %v13507_v47, 0.0  ;;  %v2655_v50 = vld [vmem:[#allocation4 + $0xa] sm:$0xff] }
 0x3d4   :  { %2516 = vst [vmem:[#allocation4 + $0x121] sm:$0xff] %v16963_v3  ;;  %2517 = vst [vmem:[#allocation4 + $0x129] sm:$0xff] %v17154_v18  ;;  %v13784_v18 = vld [vmem:[#allocation4] sm:$0xff] }
 0x3d5   :  { %2518 = vst [vmem:[#allocation4 + $0x139] sm:$0xff] %v17155_v58  ;;  %2519 = vst [vmem:[#allocation4 + $0x141] sm:$0xff] %v17156_v6  ;;  %11435 = vmatprep.subr.mxu1 %v13784_v18  ;;  %v2703_v58 = vld [vmem:[#allocation4 + $0x20] sm:$0xff]  ;;  %v2686_v6 = vpack.c.bf16 %v2655_v50, %v2654_v30  ;;  %v17166_v50 = vmax.f32 %v13415_v17, 0.0  ;;  %v17170_v17 = vmax.f32 %v13431_v52, 0.0  ;;  %v11880_v52 = vld [vmem:[%s16926_s4 + $0x130] sm:$0xff]  }
 0x3d6   :  { %2520 = vst [vmem:[#allocation4 + $0x151] sm:$0xff] %v16961_v26  ;;  %2521 = vst [vmem:[#allocation4 + $0x159] sm:$0xff] %v16962_v22  ;;  %v2704_v26 = vld [vmem:[#allocation4 + $0x30] sm:$0xff]  ;;  %v2705_v22 = vld [vmem:[#allocation4 + $0x38] sm:$0xff]  ;;  %v2734_v3 = vpack.c.bf16 %v2703_v58, %v2702_v5 }
 0x3d7   :  { %2522 = vst [vmem:[#allocation4 + $0x169] sm:$0xff] %v17157_v43  ;;  %2523 = vst [vmem:[#allocation4 + $0x171] sm:$0xff] %v17158_v45  ;;  %v17160_v43 = vmax.f32 %v13399_v20, 0.0  ;;  %v13800_v30 = vpack.c.bf16 %v2705_v22, %v2704_v26  ;;  %v17167_v20 = vmax.f32 %v13419_v51, 0.0  ;;  %v17171_v51 = vmax.f32 %v13435_v9, 0.0  ;;  %v2656_v9 = vld [vmem:[#allocation4 + $0x1a] sm:$0xff] }
 0x3d8   :  { %2524 = vst [vmem:[#allocation4 + $0x181] sm:$0xff] %v2491_v53  ;;  %2525 = vst [vmem:[#allocation4 + $0x189] sm:$0xff] %v2492_v2  ;;  %v17162_v53 = vmax.f32 %v13407_v37, 0.0  ;;  %v17163_v2 = vmax.f32 %v13411_v61, 0.0  ;;  %2910 = vmatprep.mubr.bf16.mxu0 %v2734_v3  ;;  %v11878_v37 = vld [vmem:[%s16926_s4 + $0x170] sm:$0xff]   ;;  %v17168_v61 = vmax.f32 %v13423_v12, 0.0 }
 0x3d9   :  { %17159 = vst [vmem:[#allocation19_spill] sm:$0xff] %v13784_v18  ;;  %v2607_v45 = vpack.c.bf16 %v17161_v57, %v17160_v43  ;;  %v11876_v18 = vld [vmem:[%s16926_s4 + $0x138] sm:$0xff]   ;;  %17165 = vst [vmem:[#allocation21_spill] sm:$0xff] %v13800_v30  ;;  %v2609_v63 = vpack.c.bf16 %v17167_v20, %v17166_v50  ;;  %2911 = vmatmul.mubr.bf16.vlgmr.msra.gmra.mxu0 %v2686_v6  ;;  %v17169_v57 = vmax.f32 %v13427_v10, 0.0  ;;  %v17172_v22 = vmax.f32 %v13439_v24, 0.0  ;;  %v2657_v43 = vld [vmem:[#allocation4 + $0x22] sm:$0xff] }
 0x3da   :  { %v13795_v40 = vpack.c.bf16 %v17163_v2, %v17162_v53  ;;  %2918 = vmatprep.mubr.bf16.mxu0 %v13800_v30  ;;  %v13821_v26 = vpack.c.bf16 %v17171_v51, %v17170_v17  ;;  %v17174_v12 = vmax.f32 %v13447_v7, 0.0  ;;  %v17175_v10 = vmax.f32 %v13451_v28, 0.0  ;;  %10124 = vmatpush3.bf16.msra.mxu0 %v11876_v18  ;;  %v11882_v7 = vld [vmem:[%s16926_s4 + $0x168] sm:$0xff]   ;;  %v2707_v53 = vld [vmem:[#allocation4 + $0x50] sm:$0xff] }
 0x3db   :  { %3175 = vmatprep.mubr.bf16.mxu1 %v2607_v45  ;;  %v13813_v5 = vpack.c.bf16 %v17169_v57, %v17168_v61  ;;  %v17176_v45 = vmax.f32 %v13461_v29, 0.0  ;;  %v17177_v24 = vmax.f32 %v13465_v33, 0.0  ;;  %10125 = vmatprep.subr.bf16.mxu0 %v11878_v37  ;;  %v2706_v28 = vld [vmem:[#allocation4 + $0x48] sm:$0xff]  ;;  %v17178_v18 = vmax.f32 %v13469_v31, 0.0 }
 0x3dc   :  { %17164 = vst [vmem:[#allocation20_spill] sm:$0xff] %v13795_v40  ;;  %3176 = vmatmul.mubr.bf16.gmra.mxu1 %v2734_v3  ;;  %v17173_v3 = vmax.f32 %v13443_v19, 0.0  ;;  %v13833_v6 = vpack.c.bf16 %v17175_v10, %v17174_v12  ;;  %v17179_v2 = vmax.f32 %v13473_v1, 0.0  ;;  %v17180_v20 = vmax.f32 %v13480_v34, 0.0  ;;  %v2680_v10 = vld [vmem:[#allocation4 + $0x13a] sm:$0xff] }
 0x3dd   :  { %3183 = vmatprep.mubr.bf16.mxu1 %v13795_v40  ;;  %v13842_v19 = vpack.c.bf16 %v17177_v24, %v17176_v45  ;;  %v17181_v29 = vmax.f32 %v13484_v38, 0.0  ;;  %v17182_v37 = vmax.f32 %v13488_v27, 0.0  ;;  %v17183_v61 = vmax.f32 %v13492_v4, 0.0  ;;  %v2681_v45 = vld [vmem:[#allocation4 + $0x142] sm:$0xff]  ;;  %v17228_v40 = vld [vmem:[#allocation5_spill] sm:$0xff] }
 0x3de   :  { %v13827_v58 = vpack.c.bf16 %v17173_v3, %v17172_v22  ;;  %v13851_v50 = vpack.c.bf16 %v17179_v2, %v17178_v18  ;;  %v17184_v17 = vmax.f32 %v13499_v23, 0.0  ;;  %v17185_v31 = vmax.f32 %v13503_v41, 0.0  ;;  %10126 = vmatpush3.bf16.msra.mxu0 %v11880_v52  ;;  %v11890_v52 = vld [vmem:[%s16926_s4 + $0x158] sm:$0xff]   ;;  %v2730_v24 = vld [vmem:[#allocation4 + $0x168] sm:$0xff] }
 0x3df   :  { %v13857_v33 = vpack.c.bf16 %v17181_v29, %v17180_v20  ;;  %v13863_v57 = vpack.c.bf16 %v17183_v61, %v17182_v37  ;;  %v13871_v1 = vpack.c.bf16 %v2657_v43, %v2656_v9  ;;  %v17188_v34 = vmax.f32 %v13507_v47, 0.0  ;;  %v11884_v47 = vld [vmem:[%s16926_s4 + $0x128] sm:$0xff]   ;;  %10127 = vmatprep.subr.bf16.mxu0 %v11882_v7  ;;  %v2708_v9 = vld [vmem:[#allocation4 + $0x60] sm:$0xff]  ;;  %v2731_v7 = vld [vmem:[#allocation4 + $0x170] sm:$0xff] }
 0x3e0   :  { %v13869_v51 = vpack.c.bf16 %v17185_v31, %v17184_v17  ;;  %v17189_v38 = vmax.f32 %v13511_v48, 0.0  ;;  %v17191_v27 = vmax.f32 %v13515_v42, 0.0  ;;  %v17192_v4 = vmax.f32 %v13519_v21, 0.0  ;;  %v11886_v42 = vld [vmem:[%s16926_s4 + $0x160] sm:$0xff]   ;;  %v2709_v43 = vld [vmem:[#allocation4 + $0x68] sm:$0xff]  ;;  %v2682_v18 = vld [vmem:[#allocation4 + $0x152] sm:$0xff] }
 0x3e1   :  { %17187 = vst [vmem:[#allocation23_spill] sm:$0xff] %v13871_v1  ;;  %v17194_v23 = vmax.f32 %v13523_v13, 0.0  ;;  %v17195_v41 = vmax.f32 %v13527_v59, 0.0  ;;  %v13894_v48 = vpack.c.bf16 %v2707_v53, %v2706_v28  ;;  %2919 = vmatmul.mubr.bf16.gmra.mxu0 %v13871_v1  ;;  %v11888_v21 = vld [vmem:[%s16926_s4 + $0x120] sm:$0xff]   ;;  %v2658_v13 = vld [vmem:[#allocation4 + $0x32] sm:$0xff]  ;;  %v13908_v28 = vpack.c.bf16 %v2681_v45, %v2680_v10  ;;  %v2733_v29 = vld [vmem:[#allocation4 + $0x188] sm:$0xff] }
 0x3e2   :  { %17186 = vst [vmem:[#allocation22_spill] sm:$0xff] %v13869_v51  ;;  %v13877_v22 = vpack.c.bf16 %v17189_v38, %v17188_v34  ;;  %v13883_v3 = vpack.c.bf16 %v17192_v4, %v17191_v27  ;;  %v2659_v59 = vld [vmem:[#allocation4 + $0x3a] sm:$0xff]  ;;  %10128 = vmatpush3.bf16.msra.mxu0 %v11884_v47  ;;  %v13910_v53 = vpack.c.bf16 %v2731_v7, %v2730_v24  ;;  %v2684_v37 = vld [vmem:[#allocation4 + $0x16a] sm:$0xff]  ;;  %v2685_v61 = vld [vmem:[#allocation4 + $0x172] sm:$0xff]  ;;  %v5322_v38 = vmax.f32 %v13542_v32, 0.0 }
 0x3e3   :  { %v13889_v12 = vpack.c.bf16 %v17195_v41, %v17194_v23  ;;  %17197 = vst [vmem:[#allocation27_spill] sm:$0xff] %v13894_v48  ;;  %2926 = vmatprep.mubr.bf16.mxu0 %v13894_v48  ;;  %17198 = vst [vmem:[#allocation28_spill] sm:$0xff] %v13908_v28  ;;  %10129 = vmatprep.subr.bf16.mxu0 %v11886_v42  ;;  %v2732_v2 = vld [vmem:[#allocation4 + $0x180] sm:$0xff]  ;;  %v13916_v31 = vpack.c.bf16 %v2685_v61, %v2684_v37  ;;  %v3764_v34 = vld [vmem:[#allocation4 + $0x49] sm:$0xff]  ;;  %v5323_v27 = vmax.f32 %v13546_v36, 0.0 }
 0x3e4   :  { %17190 = vst [vmem:[#allocation24_spill] sm:$0xff] %v13877_v22  ;;  %17193 = vst [vmem:[#allocation25_spill] sm:$0xff] %v13883_v3  ;;  %3184 = vmatmul.mubr.bf16.gmra.mxu1 %v13800_v30  ;;  %v13914_v17 = vpack.c.bf16 %v2733_v29, %v2732_v2  ;;  %v13920_v4 = vpack.c.bf16 %v2659_v59, %v2658_v13  ;;  %v11892_v23 = vld [vmem:[%s16926_s4 + $0x118] sm:$0xff]   ;;  %v11894_v41 = vld [vmem:[%s16926_s4 + $0x150] sm:$0xff]   ;;  %v13928_v42 = vpack.c.bf16 %v2709_v43, %v2708_v9 }
 0x3e5   :  { %17196 = vst [vmem:[#allocation26_spill] sm:$0xff] %v13889_v12  ;;  %3191 = vmatprep.mubr.bf16.mxu1 %v2609_v63  ;;  %17199 = vst [vmem:[#allocation29_spill] sm:$0xff] %v13910_v53  ;;  %v2683_v63 = vld [vmem:[#allocation4 + $0x15a] sm:$0xff]  ;;  %v3765_v47 = vld [vmem:[#allocation4 + $0x51] sm:$0xff]  ;;  %v5338_v3 = vmax.f32 %v13609_v60, 0.0  ;;  %v17238_v60 = vmax.f32 %v13554_v44, 0.0 }
 0x3e6   :  { %v13912_v20 = vpack.c.bf16 %v2683_v63, %v2682_v18  ;;  %17201 = vst [vmem:[#allocation31_spill] sm:$0xff] %v13914_v17  ;;  %17202 = vst [vmem:[#allocation32_spill] sm:$0xff] %v13916_v31  ;;  %10130 = vmatpush3.bf16.msra.mxu0 %v11888_v21  ;;  %v13930_v10 = vpack.c.bf16 %v3765_v47, %v3764_v34  ;;  %v13932_v32 = vld [vmem:[#allocation4 + $0x19] sm:$0xff]  ;;  %v13934_v36 = vld [vmem:[#allocation4 + $0x21] sm:$0xff]  ;;  %v17231_v17 = vmax.f32 %v13550_v14, 0.0  ;;  %v17240_v51 = vmax.f32 %v13562_v16, 0.0 }
 0x3e7   :  { %17203 = vst [vmem:[#allocation33_spill] sm:$0xff] %v13920_v4  ;;  %17204 = vst [vmem:[#allocation34_spill] sm:$0xff] %v13928_v42  ;;  %10131 = vmatprep.subr.bf16.mxu0 %v11890_v52  ;;  %v3766_v13 = vld [vmem:[#allocation4 + $0x61] sm:$0xff]  ;;  %v11896_v21 = vld [vmem:[%s16926_s4 + $0x110] sm:$0xff]   ;;  %v5340_v44 = vmax.f32 %v13620_v15, 0.0  ;;  %v17249_v15 = vmax.f32 %v13570_v39, 0.0 }
 0x3e8   :  { %17200 = vst [vmem:[#allocation30_spill] sm:$0xff] %v13912_v20  ;;  %17205 = vst [vmem:[#allocation35_spill] sm:$0xff] %v13930_v10  ;;  %v3767_v52 = vld [vmem:[#allocation4 + $0x69] sm:$0xff]  ;;  %v13943_v9 = vld [vmem:[#allocation4 + $0x31] sm:$0xff] }
 0x3e9   :  { %17206 = vst [vmem:[#allocation36_spill] sm:$0xff] %v13932_v32  ;;  %17207 = vst [vmem:[#allocation37_spill] sm:$0xff] %v13934_v36  ;;  %2927 = vmatmul.mubr.bf16.gmra.mxu0 %v13920_v4  ;;  %v13945_v43 = vld [vmem:[#allocation4 + $0x39] sm:$0xff]  ;;  %v2660_v45 = vld [vmem:[#allocation4 + $0x4a] sm:$0xff]  ;;  %v13952_v18 = vpack.c.bf16 %v3767_v52, %v3766_v13 }
 0x3ea   :  { %5354 = vst [vmem:[#allocation4 + $0x19] sm:$0xff] %v5322_v38  ;;  %5355 = vst [vmem:[#allocation4 + $0x21] sm:$0xff] %v5323_v27  ;;  %2934 = vmatprep.mubr.bf16.mxu0 %v13928_v42  ;;  %v2661_v24 = vld [vmem:[#allocation4 + $0x52] sm:$0xff]  ;;  %v11898_v7 = vld [vmem:[%s16926_s4 + $0x148] sm:$0xff]   ;;  %10132 = vmatpush3.bf16.msra.mxu0 %v11892_v23 }
 0x3eb   :  { %17208 = vst [vmem:[#allocation38_spill] sm:$0xff] %v13943_v9  ;;  %17209 = vst [vmem:[#allocation39_spill] sm:$0xff] %v13945_v43  ;;  %v3768_v2 = vld [vmem:[#allocation4 + $0x79] sm:$0xff]  ;;  %v3769_v29 = vld [vmem:[#allocation4 + $0x81] sm:$0xff]  ;;  %10133 = vmatprep.subr.bf16.mxu0 %v11894_v41 }
 0x3ec   :  { %3192 = vmatmul.mubr.bf16.gmra.mxu1 %v13894_v48  ;;  %17210 = vst [vmem:[#allocation40_spill] sm:$0xff] %v13952_v18  ;;  %v3770_v37 = vld [vmem:[#allocation4 + $0x91] sm:$0xff]  ;;  %v2711_v34 = vld [vmem:[#allocation4 + $0x80] sm:$0xff]  ;;  %v13956_v38 = vpack.c.bf16 %v3769_v29, %v3768_v2  ;;  %v3772_v27 = vld [vmem:[#allocation4 + $0xa9] sm:$0xff] }
 0x3ed   :  { %3199 = vmatprep.mubr.bf16.mxu1 %v13813_v5  ;;  %v2710_v61 = vld [vmem:[#allocation4 + $0x78] sm:$0xff]  ;;  %v3774_v13 = vld [vmem:[#allocation4 + $0xc1] sm:$0xff]  ;;  %v3775_v52 = vld [vmem:[#allocation4 + $0xc9] sm:$0xff] }
 0x3ee   :  { %17211 = vst [vmem:[#allocation41_spill] sm:$0xff] %v13956_v38  ;;  %v3771_v5 = vld [vmem:[#allocation4 + $0x99] sm:$0xff]  ;;  %v3773_v47 = vld [vmem:[#allocation4 + $0xb1] sm:$0xff]  ;;  %v13967_v23 = vld [vmem:[%s16926_s4 + $0x108] sm:$0xff]   ;;  %v13969_v2 = vpack.c.bf16 %v3775_v52, %v3774_v13  ;;  %v13984_v38 = vpack.c.bf16 %v2661_v24, %v2660_v45  ;;  %10134 = vmatpush3.bf16.msra.mxu0 %v11896_v21 }
 0x3ef   :  { %v13958_v59 = vpack.c.bf16 %v3771_v5, %v3770_v37  ;;  %v13960_v4 = vpack.c.bf16 %v3773_v47, %v3772_v27  ;;  %v3776_v18 = vld [vmem:[#allocation4 + $0xd9] sm:$0xff]  ;;  %v3777_v29 = vld [vmem:[#allocation4 + $0xe1] sm:$0xff]  ;;  %v3778_v41 = vld [vmem:[#allocation4 + $0xf1] sm:$0xff]  ;;  %10135 = vmatprep.subr.bf16.mxu0 %v11898_v7 }
 0x3f0   :  { %17214 = vst [vmem:[#allocation44_spill] sm:$0xff] %v13969_v2  ;;  %v3779_v37 = vld [vmem:[#allocation4 + $0xf9] sm:$0xff]  ;;  %v13978_v9 = vpack.c.bf16 %v3777_v29, %v3776_v18  ;;  %v3782_v13 = vld [vmem:[#allocation4 + $0x121] sm:$0xff]  ;;  %17217 = vst [vmem:[#allocation47_spill] sm:$0xff] %v13984_v38  ;;  %v13989_v29 = vpack.c.bf16 %v2711_v34, %v2710_v61  ;;  %v5352_v18 = vmax.f32 %v13674_v25, 0.0  ;;  %v5353_v61 = vmax.f32 %v13678_v0, 0.0 }
 0x3f1   :  { %17212 = vst [vmem:[#allocation42_spill] sm:$0xff] %v13958_v59  ;;  %17213 = vst [vmem:[#allocation43_spill] sm:$0xff] %v13960_v4  ;;  %v13976_v47 = vld [vmem:[%s16926_s4 + $0x140] sm:$0xff]   ;;  %v13980_v63 = vpack.c.bf16 %v3779_v37, %v3778_v41  ;;  %v3780_v4 = vld [vmem:[#allocation4 + $0x109] sm:$0xff]  ;;  %2935 = vmatmul.mubr.bf16.gmra.mxu0 %v13984_v38 }
 0x3f2   :  { %17215 = vst [vmem:[#allocation45_spill] sm:$0xff] %v13978_v9  ;;  %v3781_v59 = vld [vmem:[#allocation4 + $0x111] sm:$0xff]  ;;  %v3783_v5 = vld [vmem:[#allocation4 + $0x129] sm:$0xff]  ;;  %v3784_v43 = vld [vmem:[#allocation4 + $0x139] sm:$0xff]  ;;  %2942 = vmatprep.mubr.bf16.mxu0 %v13989_v29  ;;  %10136 = vmatpush3.bf16.msra.mxu0 %v13967_v23 }
 0x3f3   :  { %17216 = vst [vmem:[#allocation46_spill] sm:$0xff] %v13980_v63  ;;  %v13986_v27 = vpack.c.bf16 %v3781_v59, %v3780_v4  ;;  %v3785_v48 = vld [vmem:[#allocation4 + $0x141] sm:$0xff]  ;;  %v13993_v37 = vld [vmem:[#allocation4 + $0x6a] sm:$0xff]  ;;  %v13997_v2 = vpack.c.bf16 %v3783_v5, %v3782_v13  ;;  %v3787_v21 = vld [vmem:[#allocation4 + $0x159] sm:$0xff]  ;;  %10137 = vmatprep.subr.bf16.mxu0 %v13976_v47 }
 0x3f4   :  { %v13991_v41 = vld [vmem:[#allocation4 + $0x62] sm:$0xff]  ;;  %v13995_v63 = vld [vmem:[#allocation4 + $0x7a] sm:$0xff]  ;;  %v13999_v45 = vpack.c.bf16 %v3785_v48, %v3784_v43  ;;  %v3786_v4 = vld [vmem:[#allocation4 + $0x151] sm:$0xff]  ;;  %3200 = vmatmul.mubr.bf16.gmra.mxu1 %v13928_v42 }
 0x3f5   :  { %17218 = vst [vmem:[#allocation48_spill] sm:$0xff] %v13986_v27  ;;  %17219 = vst [vmem:[#allocation49_spill] sm:$0xff] %v13997_v2  ;;  %v3788_v59 = vld [vmem:[#allocation4 + $0x169] sm:$0xff]  ;;  %v14008_v7 = vld [vmem:[#allocation4 + $0x98] sm:$0xff]  ;;  %v14021_v0 = vpack.c.bf16 %v3787_v21, %v3786_v4  ;;  %3207 = vmatprep.mubr.bf16.mxu1 %v13821_v26 }
 0x3f6   :  { %17220 = vst [vmem:[#allocation50_spill] sm:$0xff] %v13999_v45  ;;  %v14006_v34 = vld [vmem:[#allocation4 + $0x90] sm:$0xff]  ;;  %v14010_v5 = vld [vmem:[#allocation4 + $0x82] sm:$0xff]  ;;  %v14014_v43 = vld [vmem:[#allocation4 + $0x9a] sm:$0xff] }
 0x3f7   :  { %v14012_v48 = vld [vmem:[#allocation4 + $0x92] sm:$0xff]  ;;  %v14019_v25 = vld [vmem:[%s16926_s4 + $0x100] sm:$0xff]   ;;  %17221 = vst [vmem:[#allocation51_spill] sm:$0xff] %v14021_v0  ;;  %v3791_v52 = vld [vmem:[#allocation4 + $0x189] sm:$0xff] }
 0x3f8   :  { %v3789_v13 = vld [vmem:[#allocation4 + $0x171] sm:$0xff]  ;;  %v3790_v24 = vld [vmem:[#allocation4 + $0x181] sm:$0xff]  ;;  %10138 = vmatpush3.bf16.msra.mxu0 %v14019_v25  ;;  %v14181_v25 = vpack.c.bf16 %v14008_v7, %v14006_v34 }
 0x3f9   :  { %v17222_v45 = vld [vmem:[#allocation14_spill] sm:$0xff]  ;;  %v14027_v38 = vld [vmem:[#allocation4 + $0xa8] sm:$0xff]  ;;  %v14029_v42 = vld [vmem:[#allocation4 + $0xb0] sm:$0xff]  ;;  %v14041_v2 = vpack.c.bf16 %v3789_v13, %v3788_v59  ;;  %v14043_v9 = vpack.c.bf16 %v3791_v52, %v3790_v24 }
 0x3fa   :  { %v17223_v27 = vld [vmem:[#allocation6_spill] sm:$0xff]  ;;  %v14031_v32 = vld [vmem:[#allocation4 + $0xc0] sm:$0xff]  ;;  %v14033_v36 = vld [vmem:[#allocation4 + $0xc8] sm:$0xff] }
 0x3fb   :  { %v14035_v4 = vld [vmem:[#allocation4 + $0xaa] sm:$0xff]  ;;  %v14037_v21 = vld [vmem:[#allocation4 + $0xb2] sm:$0xff]  ;;  %v14039_v0 = vld [vmem:[#allocation4 + $0xc2] sm:$0xff]  ;;  %17224 = vst [vmem:[#allocation14_spill] sm:$0xff] %v14041_v2 }
 0x3fc   :  { %17225 = vst [vmem:[#allocation6_spill] sm:$0xff] %v14043_v9  ;;  %v3374_v10 = vld [vmem:[#allocation4 + $0x182] sm:$0xff]  ;;  %v3375_v26 = vld [vmem:[#allocation4 + $0x18a] sm:$0xff]  ;;  %v14045_v1 = vld [vmem:[#allocation4 + $0x32] sm:$0xff]  ;;  %3208 = vmatmul.mubr.bf16.gmra.mxu1 %v13989_v29 }
 0x3fd   :  { %17226 = vst [vmem:[#allocation52_spill] sm:$0xff] %v14045_v1  ;;  %v17227_v30 = vld [vmem:[#allocation17_spill] sm:$0xff]  ;;  %v14050_v12 = vld [vmem:[#allocation4 + $0xd8] sm:$0xff]  ;;  %v14052_v53 = vld [vmem:[#allocation4 + $0xe0] sm:$0xff]  ;;  %v14061_v24 = vpack.c.bf16 %v3375_v26, %v3374_v10  ;;  %3215 = vmatprep.mubr.bf16.mxu1 %v13827_v58 }
 0x3fe   :  { %v14054_v28 = vld [vmem:[#allocation4 + $0xca] sm:$0xff]  ;;  %v14056_v59 = vld [vmem:[#allocation4 + $0xda] sm:$0xff]  ;;  %v14058_v52 = vld [vmem:[#allocation4 + $0xe2] sm:$0xff]  ;;  %5356 = vst [vmem:[#allocation4 + $0x31] sm:$0xff] %v17231_v17 }
 0x3ff   :  { %17229 = vst [vmem:[#allocation17_spill] sm:$0xff] %v14061_v24  ;;  %v14063_v13 = vld [vmem:[#allocation4 + $0x3a] sm:$0xff]  ;;  %v14067_v20 = vld [vmem:[#allocation4 + $0x4a] sm:$0xff]  ;;  %v14069_v31 = vld [vmem:[#allocation4 + $0x52] sm:$0xff] }
 0x400   :  { %17230 = vst [vmem:[#allocation5_spill] sm:$0xff] %v14063_v13  ;;  %17232 = vst [vmem:[#allocation53_spill] sm:$0xff] %v14067_v20  ;;  %v17234_v9 = vld [vmem:[#allocation7_spill] sm:$0xff]  ;;  %v14073_v22 = vld [vmem:[#allocation4 + $0xf0] sm:$0xff]  ;;  %v17248_v20 = vmax.f32 %v13566_v46, 0.0 }
 0x401   :  { %17233 = vst [vmem:[#allocation54_spill] sm:$0xff] %v14069_v31  ;;  %5384 = vst [vmem:[#allocation4 + $0x181] sm:$0xff] %v5352_v18  ;;  %v5337_v2 = vmax.f32 %v17234_v9, 0.0  ;;  %v14075_v23 = vld [vmem:[#allocation4 + $0xf8] sm:$0xff]  ;;  %v14077_v10 = vld [vmem:[#allocation4 + $0x108] sm:$0xff] }
 0x402   :  { %5385 = vst [vmem:[#allocation4 + $0x189] sm:$0xff] %v5353_v61  ;;  %v14079_v26 = vld [vmem:[#allocation4 + $0x110] sm:$0xff]  ;;  %v14083_v17 = vld [vmem:[#allocation4 + $0xfa] sm:$0xff]  ;;  %5357 = vst [vmem:[#allocation4 + $0x39] sm:$0xff] %v17238_v60  ;;  %v17239_v61 = vmax.f32 %v13558_v49, 0.0  ;;  %v5341_v60 = vmax.f32 %v13624_v54, 0.0 }
 0x403   :  { %v14081_v14 = vld [vmem:[#allocation4 + $0xf2] sm:$0xff]  ;;  %17236 = vst [vmem:[#allocation55_spill] sm:$0xff] %v14083_v17  ;;  %v14085_v24 = vld [vmem:[#allocation4 + $0x10a] sm:$0xff]  ;;  %5359 = vst [vmem:[#allocation4 + $0x51] sm:$0xff] %v17240_v51 }
 0x404   :  { %17235 = vst [vmem:[#allocation7_spill] sm:$0xff] %v14081_v14  ;;  %17237 = vst [vmem:[#allocation56_spill] sm:$0xff] %v14085_v24  ;;  %v14098_v17 = vld [vmem:[#allocation4 + $0x62] sm:$0xff]  ;;  %v14100_v24 = vld [vmem:[#allocation4 + $0x6a] sm:$0xff]  ;;  %3216 = vmatmul.mubr.bf16.gmra.mxu1 %v14181_v25 }
 0x405   :  { %5358 = vst [vmem:[#allocation4 + $0x49] sm:$0xff] %v17239_v61  ;;  %17241 = vst [vmem:[#allocation57_spill] sm:$0xff] %v14098_v17  ;;  %v14102_v47 = vld [vmem:[#allocation4 + $0x7a] sm:$0xff]  ;;  %v17243_v14 = vld [vmem:[#allocation8_spill] sm:$0xff]  ;;  %3223 = vmatprep.mubr.bf16.mxu1 %v13833_v6  ;;  %v14262_v6 = vpack.c.bf16 %v14052_v53, %v14050_v12  ;;  %v10027_v12 = vpop.f32.mrf.mxu1 }
 0x406   :  { %17242 = vst [vmem:[#allocation58_spill] sm:$0xff] %v14100_v24  ;;  %v5339_v9 = vmax.f32 %v17243_v14, 0.0  ;;  %v14107_v1 = vld [vmem:[#allocation4 + $0x120] sm:$0xff]  ;;  %v14109_v18 = vld [vmem:[#allocation4 + $0x128] sm:$0xff]  ;;  %v14111_v49 = vld [vmem:[#allocation4 + $0x112] sm:$0xff]  ;;  %v17250_v14 = vmax.f32 %v13574_v8, 0.0 }
 0x407   :  { %17244 = vst [vmem:[#allocation8_spill] sm:$0xff] %v14109_v18  ;;  %17245 = vst [vmem:[#allocation59_spill] sm:$0xff] %v14111_v49  ;;  %v14113_v16 = vld [vmem:[#allocation4 + $0x122] sm:$0xff]  ;;  %v14115_v51 = vld [vmem:[#allocation4 + $0x12a] sm:$0xff]  ;;  %v5344_v8 = vmax.f32 %v13639_v62, 0.0  ;;  %v17259_v62 = vmax.f32 %v13601_v11, 0.0  ;;  %v10028_v53 = vpop.f32.mrf.mxu1 }
 0x408   :  { %17246 = vst [vmem:[#allocation60_spill] sm:$0xff] %v14113_v16  ;;  %17247 = vst [vmem:[#allocation61_spill] sm:$0xff] %v14115_v51  ;;  %v14123_v54 = vld [vmem:[#allocation4 + $0x82] sm:$0xff]  ;;  %v14127_v31 = vld [vmem:[#allocation4 + $0x92] sm:$0xff] }
 0x409   :  { %5360 = vst [vmem:[#allocation4 + $0x61] sm:$0xff] %v17248_v20  ;;  %5361 = vst [vmem:[#allocation4 + $0x69] sm:$0xff] %v17249_v15  ;;  %v14129_v13 = vld [vmem:[#allocation4 + $0x9a] sm:$0xff]  ;;  %v17252_v49 = vld [vmem:[#allocation9_spill] sm:$0xff]  ;;  %v17254_v15 = vmax.f32 %v13578_v55, 0.0  ;;  %v5345_v55 = vmax.f32 %v13643_v56, 0.0 }
 0x40a   :  { %5362 = vst [vmem:[#allocation4 + $0x79] sm:$0xff] %v17250_v14  ;;  %v17251_v16 = vld [vmem:[#allocation11_spill] sm:$0xff]  ;;  %v5343_v18 = vmax.f32 %v17252_v49, 0.0  ;;  %v14133_v61 = vld [vmem:[#allocation4 + $0x138] sm:$0xff]  ;;  %v14137_v20 = vld [vmem:[#allocation4 + $0x150] sm:$0xff]  ;;  %v17256_v49 = vmax.f32 %v17223_v27, 0.0 }
 0x40b   :  { %v5342_v51 = vmax.f32 %v17251_v16, 0.0  ;;  %v14135_v46 = vld [vmem:[#allocation4 + $0x140] sm:$0xff]  ;;  %v14139_v39 = vld [vmem:[#allocation4 + $0x158] sm:$0xff]  ;;  %5363 = vst [vmem:[#allocation4 + $0x81] sm:$0xff] %v17254_v15  ;;  %v17255_v16 = vmax.f32 %v17222_v45, 0.0  ;;  %v14151_v17 = vld [vmem:[#allocation4 + $0xaa] sm:$0xff]  ;;  %v14161_v15 = vpack.c.bf16 %v13993_v37, %v13991_v41 }
 0x40c   :  { %17253 = vst [vmem:[#allocation11_spill] sm:$0xff] %v14139_v39  ;;  %5365 = vst [vmem:[#allocation4 + $0x99] sm:$0xff] %v17256_v49  ;;  %v14153_v24 = vld [vmem:[#allocation4 + $0xb2] sm:$0xff]  ;;  %v14155_v39 = vld [vmem:[#allocation4 + $0xc2] sm:$0xff]  ;;  %v17257_v45 = vmax.f32 %v17227_v30, 0.0  ;;  %v5346_v37 = vmax.f32 %v13647_v35, 0.0 }
 0x40d   :  { %5364 = vst [vmem:[#allocation4 + $0x91] sm:$0xff] %v17255_v16  ;;  %v17258_v16 = vmax.f32 %v17228_v40, 0.0  ;;  %v14170_v49 = vld [vmem:[#allocation4 + $0xca] sm:$0xff]  ;;  %5368 = vst [vmem:[#allocation4 + $0xc1] sm:$0xff] %v17259_v62  ;;  %v14174_v56 = vld [vmem:[#allocation4 + $0xda] sm:$0xff]  ;;  %2943 = vmatmul.mubr.bf16.gmra.mxu0 %v14161_v15 }
 0x40e   :  { %5366 = vst [vmem:[#allocation4 + $0xa9] sm:$0xff] %v17257_v45  ;;  %v14176_v41 = vld [vmem:[#allocation4 + $0xe2] sm:$0xff]  ;;  %5369 = vst [vmem:[#allocation4 + $0xc9] sm:$0xff] %v5337_v2  ;;  %v14187_v11 = vld [vmem:[#allocation4 + $0xf2] sm:$0xff]  ;;  %2950 = vmatprep.mubr.bf16.mxu0 %v14181_v25 }
 0x40f   :  { %5367 = vst [vmem:[#allocation4 + $0xb1] sm:$0xff] %v17258_v16  ;;  %5370 = vst [vmem:[#allocation4 + $0xd9] sm:$0xff] %v5338_v3  ;;  %v14189_v45 = vld [vmem:[#allocation4 + $0xfa] sm:$0xff]  ;;  %v14191_v16 = vld [vmem:[#allocation4 + $0x10a] sm:$0xff] }
 0x410   :  { %5371 = vst [vmem:[#allocation4 + $0xe1] sm:$0xff] %v5339_v9  ;;  %v17260_v35 = vld [vmem:[#allocation10_spill] sm:$0xff]  ;;  %v17261_v27 = vld [vmem:[#allocation13_spill] sm:$0xff]  ;;  %v17262_v7 = vld [vmem:[#allocation15_spill] sm:$0xff] }
 0x411   :  { %v5347_v62 = vmax.f32 %v17260_v35, 0.0  ;;  %v5348_v34 = vmax.f32 %v17261_v27, 0.0  ;;  %v5349_v14 = vmax.f32 %v17262_v7, 0.0  ;;  %5372 = vst [vmem:[#allocation4 + $0xf1] sm:$0xff] %v5340_v44  ;;  %5373 = vst [vmem:[#allocation4 + $0xf9] sm:$0xff] %v5341_v60  ;;  %v14200_v2 = vld [vmem:[#allocation4 + $0x112] sm:$0xff] }
 0x412   :  { %5374 = vst [vmem:[#allocation4 + $0x109] sm:$0xff] %v5342_v51  ;;  %v14202_v9 = vld [vmem:[#allocation4 + $0x122] sm:$0xff]  ;;  %v14204_v40 = vld [vmem:[#allocation4 + $0x12a] sm:$0xff]  ;;  %v17264_v30 = vld [vmem:[#allocation18_spill] sm:$0xff] }
 0x413   :  { %v17263_v35 = vld [vmem:[#allocation12_spill] sm:$0xff]  ;;  %v5351_v7 = vmax.f32 %v17264_v30, 0.0  ;;  %5375 = vst [vmem:[#allocation4 + $0x111] sm:$0xff] %v5343_v18  ;;  %5376 = vst [vmem:[#allocation4 + $0x121] sm:$0xff] %v5344_v8  ;;  %v14214_v60 = vld [vmem:[#allocation4 + $0x13a] sm:$0xff] }
 0x414   :  { %v5350_v27 = vmax.f32 %v17263_v35, 0.0  ;;  %5377 = vst [vmem:[#allocation4 + $0x129] sm:$0xff] %v5345_v55  ;;  %v14216_v51 = vld [vmem:[#allocation4 + $0x142] sm:$0xff]  ;;  %v14218_v35 = vld [vmem:[#allocation4 + $0x152] sm:$0xff]  ;;  %5378 = vst [vmem:[#allocation4 + $0x139] sm:$0xff] %v5346_v37  ;;  %v14234_v37 = vpack.c.bf16 %v14010_v5, %v13995_v63  ;;  %v14250_v63 = vpack.c.bf16 %v14033_v36, %v14031_v32  ;;  %v14270_v32 = vpack.c.bf16 %v14054_v28, %v14039_v0 }
 0x415   :  { %5379 = vst [vmem:[#allocation4 + $0x141] sm:$0xff] %v5347_v62  ;;  %v14222_v58 = vld [vmem:[#allocation4 + $0x15a] sm:$0xff]  ;;  %5380 = vst [vmem:[#allocation4 + $0x151] sm:$0xff] %v5348_v34  ;;  %v14224_v18 = vld [vmem:[#allocation4 + $0x16a] sm:$0xff]  ;;  %v14238_v62 = vpack.c.bf16 %v14029_v42, %v14027_v38  ;;  %v14258_v42 = vpack.c.bf16 %v14037_v21, %v14035_v4  ;;  %v14280_v36 = vadd.f32 %v10028_v53, %v10027_v12 }
 0x416   :  { %v14226_v3 = vld [vmem:[#allocation4 + $0x172] sm:$0xff]  ;;  %5381 = vst [vmem:[#allocation4 + $0x159] sm:$0xff] %v5349_v14  ;;  %5382 = vst [vmem:[#allocation4 + $0x169] sm:$0xff] %v5350_v27  ;;  %2951 = vmatmul.mubr.bf16.gmra.mxu0 %v14234_v37  ;;  %v14246_v14 = vpack.c.bf16 %v14014_v43, %v14012_v48  ;;  %v17266_v28 = vld [vmem:[#allocation55_spill] sm:$0xff] }
 0x417   :  { %5383 = vst [vmem:[#allocation4 + $0x171] sm:$0xff] %v5351_v7  ;;  %2958 = vmatprep.mubr.bf16.mxu0 %v14238_v62  ;;  %3224 = vmatmul.mubr.bf16.gmra.mxu1 %v14238_v62  ;;  %v17267_v5 = vld [vmem:[#allocation8_spill] sm:$0xff]  ;;  %v17268_v43 = vld [vmem:[#allocation22_spill] sm:$0xff]  ;;  %v17270_v4 = vld [vmem:[#allocation59_spill] sm:$0xff] }
 0x418   :  { %3231 = vmatprep.mubr.bf16.mxu1 %v13842_v19  ;;  %v14274_v19 = vpack.c.bf16 %v14075_v23, %v14073_v22  ;;  %v14288_v22 = vpack.c.bf16 %v14079_v26, %v14077_v10  ;;  %v14300_v48 = vpack.c.bf16 %v17267_v5, %v14107_v1  ;;  %v17269_v0 = vld [vmem:[#allocation56_spill] sm:$0xff]  ;;  %v17274_v10 = vld [vmem:[#allocation11_spill] sm:$0xff]  ;;  %v17277_v27 = vld [vmem:[#allocation29_spill] sm:$0xff] }
 0x419   :  { %v14308_v21 = vpack.c.bf16 %v17270_v4, %v17269_v0  ;;  %v17271_v1 = vld [vmem:[#allocation24_spill] sm:$0xff]  ;;  %v14324_v26 = vpack.c.bf16 %v17274_v10, %v14137_v20  ;;  %v17278_v20 = vld [vmem:[#allocation26_spill] sm:$0xff]  ;;  %v17280_v12 = vld [vmem:[#allocation31_spill] sm:$0xff] }
 0x41a   :  { %v17276_v34 = vld [vmem:[#allocation28_spill] sm:$0xff]  ;;  %v17279_v7 = vld [vmem:[#allocation30_spill] sm:$0xff]  ;;  %v17284_v5 = vld [vmem:[#allocation23_spill] sm:$0xff] }
 0x41b   :  { %v17281_v53 = vld [vmem:[#allocation20_spill] sm:$0xff]  ;;  %v11903_v0 = vld [vmem:[%s16926_s4 + $0x230] sm:$0xff]  }
 0x41c   :  { %v17286_v4 = vld [vmem:[#allocation37_spill] sm:$0xff] }
 0x41d   :  { %v17290_v10 = vld [vmem:[#allocation33_spill] sm:$0xff] }
 0x41e   :  { %2959 = vmatmul.mubr.bf16.gmra.mxu0 %v14246_v14 }
 0x41f   :  { %2966 = vmatprep.mubr.bf16.mxu0 %v14250_v63  ;;  %3232 = vmatmul.mubr.bf16.gmra.mxu1 %v14250_v63 }
 0x420   :  { %3239 = vmatprep.mubr.bf16.mxu1 %v13851_v50  ;;  %v14284_v50 = vpack.c.bf16 %v14058_v52, %v14056_v59  ;;  %v17272_v59 = vld [vmem:[#allocation60_spill] sm:$0xff]  ;;  %v17273_v52 = vld [vmem:[#allocation61_spill] sm:$0xff] }
 0x421   :  { %v14320_v23 = vpack.c.bf16 %v17273_v52, %v17272_v59  ;;  %v17289_v52 = vld [vmem:[#allocation27_spill] sm:$0xff] }
 0x426   :  { %2967 = vmatmul.mubr.bf16.gmra.mxu0 %v14258_v42 }
 0x427   :  { %2974 = vmatprep.mubr.bf16.mxu0 %v14262_v6  ;;  %3240 = vmatmul.mubr.bf16.gmra.mxu1 %v14262_v6 }
 0x428   :  { %3247 = vmatprep.mubr.bf16.mxu1 %v13857_v33  ;;  %v17265_v33 = vld [vmem:[#allocation7_spill] sm:$0xff] }
 0x429   :  { %v14296_v38 = vpack.c.bf16 %v17266_v28, %v17265_v33  ;;  %v17282_v33 = vld [vmem:[#allocation32_spill] sm:$0xff]  ;;  %v17283_v28 = vld [vmem:[#allocation21_spill] sm:$0xff] }
 0x42e   :  { %2975 = vmatmul.mubr.bf16.gmra.mxu0 %v14270_v32 }
 0x42f   :  { %2982 = vmatprep.mubr.bf16.mxu0 %v14274_v19  ;;  %3248 = vmatmul.mubr.bf16.gmra.mxu1 %v14274_v19 }
 0x430   :  { %3255 = vmatprep.mubr.bf16.mxu1 %v13863_v57  ;;  %v14312_v57 = vpack.c.bf16 %v14135_v46, %v14133_v61  ;;  %v17275_v61 = vld [vmem:[#allocation25_spill] sm:$0xff]  ;;  %v11902_v46 = vld [vmem:[%s16926_s4 + $0x238] sm:$0xff]  }
 0x431   :  { %11387 = vmatprep.subr.bf16.mxu0 %v11902_v46 }
 0x436   :  { %2983 = vmatmul.mubr.bf16.gmra.mxu0 %v14284_v50 }
 0x437   :  { %2990 = vmatprep.mubr.bf16.mxu0 %v14288_v22  ;;  %3256 = vmatmul.mubr.bf16.gmra.mxu1 %v14288_v22 }
 0x438   :  { %3263 = vmatprep.mubr.bf16.mxu1 %v17268_v43  ;;  %v17285_v43 = vld [vmem:[#allocation35_spill] sm:$0xff] }
 0x43e   :  { %2991 = vmatmul.mubr.bf16.gmra.mxu0 %v14296_v38 }
 0x43f   :  { %2998 = vmatprep.mubr.bf16.mxu0 %v14300_v48  ;;  %3264 = vmatmul.mubr.bf16.gmra.mxu1 %v14300_v48 }
 0x440   :  { %3271 = vmatprep.mubr.bf16.mxu1 %v17271_v1  ;;  %v17287_v1 = vld [vmem:[#allocation36_spill] sm:$0xff] }
 0x441   :  { %v17288_v59 = vpack.c.bf16 %v17286_v4, %v17287_v1  ;;  %v17295_v1 = vld [vmem:[#allocation34_spill] sm:$0xff] }
 0x446   :  { %2999 = vmatmul.mubr.bf16.gmra.mxu0 %v14308_v21 }
 0x447   :  { %3006 = vmatprep.mubr.bf16.mxu0 %v14312_v57  ;;  %3272 = vmatmul.mubr.bf16.gmra.mxu1 %v14312_v57 }
 0x448   :  { %3279 = vmatprep.mubr.bf16.mxu1 %v17275_v61  ;;  %v17291_v61 = vld [vmem:[#allocation40_spill] sm:$0xff] }
 0x44e   :  { %3007 = vmatmul.mubr.bf16.gmra.mxu0 %v14320_v23 }
 0x44f   :  { %3014 = vmatprep.mubr.bf16.mxu0 %v14324_v26  ;;  %3280 = vmatmul.mubr.bf16.gmra.mxu1 %v14324_v26 }
 0x450   :  { %3287 = vmatprep.mubr.bf16.mxu1 %v17278_v20  ;;  %v11904_v20 = vld [vmem:[%s16926_s4 + $0x228] sm:$0xff]  }
 0x456   :  { %3015 = vmatmul.mubr.bf16.gmra.mxu0 %v17276_v34 }
 0x457   :  { %3022 = vmatprep.mubr.bf16.mxu0 %v17277_v27  ;;  %3288 = vmatmul.mubr.bf16.gmra.mxu1 %v17277_v27 }
 0x458   :  { %3970 = vmatprep.mubr.bf16.mxu1 %v17281_v53  ;;  %v11905_v53 = vld [vmem:[%s16926_s4 + $0x220] sm:$0xff]  }
 0x45e   :  { %3023 = vmatmul.mubr.bf16.gmra.mxu0 %v17279_v7 }
 0x45f   :  { %3030 = vmatprep.mubr.bf16.mxu0 %v17280_v12  ;;  %3971 = vmatmul.mubr.bf16.vlgmr.msra.gmra.mxu1 %v17283_v28  ;;  %v17292_v28 = vld [vmem:[#allocation39_spill] sm:$0xff] }
 0x460   :  { %3978 = vmatprep.mubr.bf16.mxu1 %v17285_v43 }
 0x466   :  { %3031 = vmatmul.mubr.bf16.gmra.mxu0 %v17282_v33 }
 0x467   :  { %3552 = vmatprep.mubr.bf16.mxu0 %v17284_v5  ;;  %3979 = vmatmul.mubr.bf16.gmra.mxu1 %v17289_v52  ;;  %v17293_v5 = vld [vmem:[#allocation38_spill] sm:$0xff]  ;;  %v11907_v52 = vld [vmem:[%s16926_s4 + $0x210] sm:$0xff]  }
 0x468   :  { %3986 = vmatprep.mubr.bf16.mxu1 %v17291_v61  ;;  %v17294_v4 = vpack.c.bf16 %v17292_v28, %v17293_v5 }
 0x46e   :  { %3553 = vmatmul.mubr.bf16.vlgmr.msra.gmra.mxu0 %v17288_v59  ;;  %v17296_v59 = vld [vmem:[#allocation47_spill] sm:$0xff] }
 0x46f   :  { %3560 = vmatprep.mubr.bf16.mxu0 %v17290_v10  ;;  %11388 = vmatpush3.bf16.msra.mxu0 %v11902_v46  ;;  %v17297_v46 = vld [vmem:[#allocation41_spill] sm:$0xff]  ;;  %v17298_v10 = vld [vmem:[#allocation42_spill] sm:$0xff] }
 0x470   :  { %11389 = vmatprep.subr.bf16.mxu0 %v11903_v0  ;;  %3987 = vmatmul.mubr.bf16.gmra.mxu1 %v17295_v1 }
 0x471   :  { %3994 = vmatprep.mubr.bf16.mxu1 %v17297_v46 }
 0x473   :  { %11390 = vmatpush3.bf16.msra.mxu0 %v11903_v0  ;;  %v11906_v0 = vld [vmem:[%s16926_s4 + $0x218] sm:$0xff]  }
 0x474   :  { %11391 = vmatprep.subr.bf16.mxu0 %v11904_v20 }
 0x476   :  { %3561 = vmatmul.mubr.bf16.gmra.mxu0 %v17294_v4 }
 0x477   :  { %3568 = vmatprep.mubr.bf16.mxu0 %v17296_v59  ;;  %11392 = vmatpush3.bf16.msra.mxu0 %v11904_v20  ;;  %v11908_v20 = vld [vmem:[%s16926_s4 + $0x208] sm:$0xff]  }
 0x478   :  { %11393 = vmatprep.subr.bf16.mxu0 %v11905_v53  ;;  %3995 = vmatmul.mubr.bf16.gmra.mxu1 %v13989_v29  ;;  %v17299_v29 = vld [vmem:[#allocation43_spill] sm:$0xff] }
 0x479   :  { %4002 = vmatprep.mubr.bf16.mxu1 %v17298_v10 }
 0x47b   :  { %11394 = vmatpush3.bf16.msra.mxu0 %v11905_v53  ;;  %v11909_v53 = vld [vmem:[%s16926_s4 + $0x200] sm:$0xff]  }
 0x47c   :  { %11395 = vmatprep.subr.bf16.mxu0 %v11906_v0 }
 0x47e   :  { %3569 = vmatmul.mubr.bf16.gmra.mxu0 %v17285_v43  ;;  %v17301_v43 = vld [vmem:[#allocation44_spill] sm:$0xff] }
 0x47f   :  { %3576 = vmatprep.mubr.bf16.mxu0 %v14161_v15  ;;  %11396 = vmatpush3.bf16.msra.mxu0 %v11906_v0  ;;  %v17300_v15 = vld [vmem:[#allocation19_spill] sm:$0xff] }
 0x480   :  { %11397 = vmatprep.subr.bf16.mxu0 %v11907_v52  ;;  %4003 = vmatmul.mubr.bf16.gmra.mxu1 %v14181_v25  ;;  %v17302_v25 = vld [vmem:[#allocation45_spill] sm:$0xff] }
 0x481   :  { %4010 = vmatprep.mubr.bf16.mxu1 %v17299_v29 }
 0x483   :  { %11398 = vmatpush3.bf16.msra.mxu0 %v11907_v52 }
 0x484   :  { %11399 = vmatprep.subr.bf16.mxu0 %v11908_v20 }
 0x486   :  { %3577 = vmatmul.mubr.bf16.gmra.mxu0 %v17291_v61 }
 0x487   :  { %3584 = vmatprep.mubr.bf16.mxu0 %v14234_v37  ;;  %11400 = vmatpush3.bf16.msra.mxu0 %v11908_v20  ;;  %v17303_v37 = vld [vmem:[#allocation46_spill] sm:$0xff] }
 0x488   :  { %11401 = vmatprep.subr.bf16.mxu0 %v11909_v53  ;;  %4011 = vmatmul.mubr.bf16.gmra.mxu1 %v14238_v62  ;;  %v10030_v62 = vpop.f32.mrf.mxu1 }
 0x489   :  { %4018 = vmatprep.mubr.bf16.mxu1 %v17301_v43 }
 0x48b   :  { %11402 = vmatpush3.bf16.msra.mxu0 %v11909_v53  ;;  %v17306_v53 = vld [vmem:[#allocation50_spill] sm:$0xff] }
 0x48c   :  { %11511 = vmatprep.subr.mxu0 %v17300_v15 }
 0x48e   :  { %3585 = vmatmul.mubr.bf16.gmra.mxu0 %v17297_v46 }
 0x48f   :  { %3592 = vmatprep.mubr.bf16.mxu0 %v14246_v14  ;;  %v17304_v14 = vld [vmem:[#allocation48_spill] sm:$0xff] }
 0x490   :  { %4019 = vmatmul.mubr.bf16.gmra.mxu1 %v14250_v63  ;;  %v10031_v63 = vpop.f32.mrf.mxu1 }
 0x491   :  { %4026 = vmatprep.mubr.bf16.mxu1 %v17302_v25 }
 0x496   :  { %3593 = vmatmul.mubr.bf16.gmra.mxu0 %v17298_v10 }
 0x497   :  { %3600 = vmatprep.mubr.bf16.mxu0 %v14258_v42 }
 0x498   :  { %4027 = vmatmul.mubr.bf16.gmra.mxu1 %v14262_v6  ;;  %v17305_v6 = vld [vmem:[#allocation49_spill] sm:$0xff] }
 0x499   :  { %4034 = vmatprep.mubr.bf16.mxu1 %v17303_v37  ;;  %v9915_v42 = vpop.f32.mrf.mxu0 }
 0x49c   :  { %v10033_v61 = vpop.f32.mrf.mxu1 }
 0x49e   :  { %3601 = vmatmul.mubr.bf16.gmra.mxu0 %v17299_v29  ;;  %v10034_v28 = vpop.f32.mrf.mxu1 }
 0x49f   :  { %3608 = vmatprep.mubr.bf16.mxu0 %v14270_v32  ;;  %v9916_v32 = vpop.f32.mrf.mxu0 }
 0x4a0   :  { %4035 = vmatmul.mubr.bf16.gmra.mxu1 %v14274_v19  ;;  %v9917_v5 = vadd.f32 %v9916_v32, %v9915_v42  ;;  %v10035_v19 = vadd.f32 %v10034_v28, %v10033_v61  ;;  %v10036_v1 = vpop.f32.mrf.mxu1 }
 0x4a1   :  { %4042 = vmatprep.mubr.bf16.mxu1 %v17304_v14  ;;  %v9918_v4 = vpop.f32.mrf.mxu0 }
 0x4a2   :  { %v14408_v59 = vadd.f32 %v14280_v36, %v9917_v5  ;;  %v10037_v0 = vpop.f32.mrf.mxu1  ;;  %v17307_v5 = vld [vmem:[#allocation51_spill] sm:$0xff] }
 0x4a3   :  { %v9919_v46 = vpop.f32.mrf.mxu0  ;;  %v10038_v10 = vadd.f32 %v10037_v0, %v10036_v1 }
 0x4a4   :  { %v9920_v52 = vadd.f32 %v9919_v46, %v9918_v4 }
 0x4a5   :  { %v9921_v20 = vpop.f32.mrf.mxu0 }
 0x4a6   :  { %3609 = vmatmul.mubr.bf16.gmra.mxu0 %v17301_v43 }
 0x4a7   :  { %3616 = vmatprep.mubr.bf16.mxu0 %v14284_v50  ;;  %v10032_v50 = vadd.f32 %v10031_v63, %v10030_v62  ;;  %v9922_v29 = vpop.f32.mrf.mxu0 }
 0x4a8   :  { %4043 = vmatmul.mubr.bf16.gmra.mxu1 %v14288_v22  ;;  %v10039_v22 = vpop.f32.mrf.mxu1  ;;  %v9923_v36 = vadd.f32 %v9922_v29, %v9921_v20 }
 0x4a9   :  { %4050 = vmatprep.mubr.bf16.mxu1 %v17305_v6 }
 0x4aa   :  { %v10040_v15 = vpop.f32.mrf.mxu1  ;;  %v14416_v63 = vadd.f32 %v10035_v19, %v9923_v36 }
 0x4ab   :  { %v10041_v43 = vadd.f32 %v10040_v15, %v10039_v22 }
 0x4ac   :  { %v10042_v62 = vpop.f32.mrf.mxu1 }
 0x4ae   :  { %3617 = vmatmul.mubr.bf16.gmra.mxu0 %v17302_v25  ;;  %v9924_v25 = vpop.f32.mrf.mxu0  ;;  %v10043_v61 = vpop.f32.mrf.mxu1 }
 0x4af   :  { %3624 = vmatprep.mubr.bf16.mxu0 %v14296_v38  ;;  %v14412_v38 = vadd.f32 %v10032_v50, %v9920_v52 }
 0x4b0   :  { %4051 = vmatmul.mubr.bf16.gmra.mxu1 %v14300_v48  ;;  %v9925_v42 = vpop.f32.mrf.mxu0  ;;  %v10045_v48 = vpop.f32.mrf.mxu1 }
 0x4b1   :  { %4058 = vmatprep.mubr.bf16.mxu1 %v17306_v53  ;;  %v9926_v32 = vadd.f32 %v9925_v42, %v9924_v25 }
 0x4b2   :  { %v9927_v28 = vpop.f32.mrf.mxu0  ;;  %v10046_v1 = vpop.f32.mrf.mxu1 }
 0x4b3   :  { %v10047_v50 = vadd.f32 %v10046_v1, %v10045_v48 }
 0x4b4   :  { %v9928_v4 = vpop.f32.mrf.mxu0  ;;  %v10048_v0 = vpop.f32.mrf.mxu1 }
 0x4b5   :  { %v9929_v19 = vadd.f32 %v9928_v4, %v9927_v28 }
 0x4b6   :  { %3625 = vmatmul.mubr.bf16.gmra.mxu0 %v17303_v37  ;;  %v10044_v37 = vadd.f32 %v10043_v61, %v10042_v62  ;;  %v9930_v46 = vpop.f32.mrf.mxu0  ;;  %v10049_v22 = vpop.f32.mrf.mxu1 }
 0x4b7   :  { %3632 = vmatprep.mubr.bf16.mxu0 %v14308_v21  ;;  %v14420_v21 = vadd.f32 %v10038_v10, %v9926_v32  ;;  %v14424_v52 = vadd.f32 %v10041_v43, %v9929_v19  ;;  %v17308_v10 = vld [vmem:[#allocation14_spill] sm:$0xff] }
 0x4b8   :  { %4059 = vmatmul.mubr.bf16.gmra.mxu1 %v14312_v57  ;;  %v9931_v20 = vpop.f32.mrf.mxu0  ;;  %v10051_v57 = vpop.f32.mrf.mxu1  ;;  %v3792_v19 = vld [vmem:[#allocation4 + $0x199] sm:$0xff] }
 0x4b9   :  { %4066 = vmatprep.mubr.bf16.mxu1 %v17307_v5  ;;  %v9932_v29 = vadd.f32 %v9931_v20, %v9930_v46 }
 0x4ba   :  { %v9933_v15 = vpop.f32.mrf.mxu0  ;;  %v10052_v25 = vpop.f32.mrf.mxu1 }
 0x4bb   :  { %v10053_v46 = vadd.f32 %v10052_v25, %v10051_v57 }
 0x4bc   :  { %v9934_v36 = vpop.f32.mrf.mxu0  ;;  %v10054_v42 = vpop.f32.mrf.mxu1 }
 0x4bd   :  { %v9935_v43 = vadd.f32 %v9934_v36, %v9933_v15 }
 0x4be   :  { %3633 = vmatmul.mubr.bf16.gmra.mxu0 %v17304_v14  ;;  %v10050_v14 = vadd.f32 %v10049_v22, %v10048_v0  ;;  %v9936_v62 = vpop.f32.mrf.mxu0  ;;  %v10055_v28 = vpop.f32.mrf.mxu1 }
 0x4bf   :  { %3640 = vmatprep.mubr.bf16.mxu0 %v14320_v23  ;;  %v14428_v23 = vadd.f32 %v10044_v37, %v9932_v29  ;;  %v14432_v61 = vadd.f32 %v10047_v50, %v9935_v43  ;;  %v3793_v50 = vld [vmem:[#allocation4 + $0x1a1] sm:$0xff] }
 0x4c0   :  { %4067 = vmatmul.mubr.bf16.gmra.mxu1 %v14324_v26  ;;  %v9937_v32 = vpop.f32.mrf.mxu0  ;;  %v3809_v15 = vpack.c.bf16 %v3793_v50, %v3792_v19  ;;  %v14447_v19 = vld [vmem:[#allocation4] sm:$0xff] }
 0x4c1   :  { %4074 = vmatprep.mubr.bf16.mxu1 %v17308_v10  ;;  %v9938_v48 = vadd.f32 %v9937_v32, %v9936_v62 }
 0x4c3   :  { %v14436_v26 = vadd.f32 %v10050_v14, %v9938_v48 }
 0x4c6   :  { %3641 = vmatmul.mubr.bf16.gmra.mxu0 %v17305_v6  ;;  %v10057_v6 = vpop.f32.mrf.mxu1 }
 0x4c7   :  { %3648 = vmatprep.mubr.bf16.mxu0 %v17276_v34  ;;  %v17309_v34 = vld [vmem:[#allocation6_spill] sm:$0xff] }
 0x4c8   :  { %4075 = vmatmul.mubr.bf16.gmra.mxu1 %v17277_v27  ;;  %v10058_v1 = vpop.f32.mrf.mxu1  ;;  %v10056_v27 = vadd.f32 %v10055_v28, %v10054_v42  ;;  %v3761_v42 = vpack.c.bf16 %v14447_v19, %v14447_v19 }
 0x4c9   :  { %4082 = vmatprep.mubr.bf16.mxu1 %v17309_v34  ;;  %v10059_v32 = vadd.f32 %v10058_v1, %v10057_v6  ;;  %v17310_v1 = vld [vmem:[#allocation17_spill] sm:$0xff] }
 0x4ca   :  { %v10060_v22 = vpop.f32.mrf.mxu1 }
 0x4cc   :  { %v10061_v36 = vpop.f32.mrf.mxu1 }
 0x4cd   :  { %v9939_v4 = vpop.f32.mrf.mxu0  ;;  %v10062_v50 = vadd.f32 %v10061_v36, %v10060_v22 }
 0x4ce   :  { %3649 = vmatmul.mubr.bf16.gmra.mxu0 %v17306_v53  ;;  %v10063_v62 = vpop.f32.mrf.mxu1 }
 0x4cf   :  { %3656 = vmatprep.mubr.bf16.mxu0 %v17279_v7  ;;  %v9940_v37 = vpop.f32.mrf.mxu0 }
 0x4d0   :  { %v9941_v0 = vadd.f32 %v9940_v37, %v9939_v4  ;;  %4083 = vmatmul.mubr.bf16.gmra.mxu1 %v17280_v12  ;;  %v10064_v25 = vpop.f32.mrf.mxu1 }
 0x4d1   :  { %v9942_v20 = vpop.f32.mrf.mxu0  ;;  %4090 = vmatprep.mubr.bf16.mxu1 %v3809_v15 }
 0x4d2   :  { %v14440_v29 = vadd.f32 %v10053_v46, %v9941_v0  ;;  %v10066_v37 = vpop.f32.mrf.mxu1 }
 0x4d3   :  { %v9943_v53 = vpop.f32.mrf.mxu0 }
 0x4d4   :  { %v9944_v14 = vadd.f32 %v9943_v53, %v9942_v20  ;;  %v10067_v12 = vpop.f32.mrf.mxu1  ;;  %v10065_v53 = vadd.f32 %v10064_v25, %v10063_v62 }
 0x4d6   :  { %v9945_v43 = vpop.f32.mrf.mxu0  ;;  %3657 = vmatmul.mubr.bf16.gmra.mxu0 %v17307_v5  ;;  %v14444_v7 = vadd.f32 %v10056_v27, %v9944_v14 }
 0x4d7   :  { %3664 = vmatprep.mubr.bf16.mxu0 %v17282_v33  ;;  %v10069_v33 = vpop.f32.mrf.mxu1 }
 0x4d8   :  { %v9946_v57 = vpop.f32.mrf.mxu0  ;;  %4091 = vmatmul.mubr.bf16.gmra.mxu1 %v3761_v42 }
 0x4d9   :  { %v9947_v48 = vadd.f32 %v9946_v57, %v9945_v43  ;;  %11451 = vmatprep.mubr.msk.f32.mxu1 %vm11993_vm0, %v14447_v19  ;;  %v10070_v15 = vpop.f32.mrf.mxu1 }
 0x4da   :  { %v9948_v4 = vpop.f32.mrf.mxu0  ;;  %v10071_v14 = vadd.f32 %v10070_v15, %v10069_v33 }
 0x4db   :  { %v14451_v28 = vadd.f32 %v10059_v32, %v9947_v48  ;;  %v10072_v22 = vpop.f32.mrf.mxu1 }
 0x4dc   :  { %v9949_v5 = vpop.f32.mrf.mxu0 }
 0x4dd   :  { %v9950_v46 = vadd.f32 %v9949_v5, %v9948_v4  ;;  %v10073_v32 = vpop.f32.mrf.mxu1 }
 0x4de   :  { %v9951_v0 = vpop.f32.mrf.mxu0  ;;  %3665 = vmatmul.mubr.bf16.gmra.mxu0 %v17308_v10  ;;  %v10068_v10 = vadd.f32 %v10067_v12, %v10066_v37 }
 0x4df   :  { %v14454_v6 = vadd.f32 %v10062_v50, %v9950_v46  ;;  %3672 = vmatprep.mubr.bf16.mxu0 %v17310_v1  ;;  %v10075_v42 = vpop.f32.mrf.mxu1  ;;  %v17311_v50 = vld [vmem:[#allocation5_spill] sm:$0xff]  ;;  %v17312_v46 = vld [vmem:[#allocation52_spill] sm:$0xff] }
 0x4e0   :  { %v9952_v20 = vpop.f32.mrf.mxu0  ;;  %v17313_v55 = vpack.c.bf16 %v17311_v50, %v17312_v46  ;;  %v17318_v46 = vld [vmem:[#allocation57_spill] sm:$0xff] }
 0x4e1   :  { %v9953_v27 = vadd.f32 %v9952_v20, %v9951_v0  ;;  %v10076_v25 = vpop.f32.mrf.mxu1 }
 0x4e2   :  { %v9954_v43 = vpop.f32.mrf.mxu0  ;;  %v10077_v33 = vadd.f32 %v10076_v25, %v10075_v42 }
 0x4e3   :  { %v14459_v36 = vadd.f32 %v10065_v53, %v9953_v27  ;;  %v10078_v15 = vpop.f32.mrf.mxu1  ;;  %v10074_v27 = vadd.f32 %v10073_v32, %v10072_v22 }
 0x4e4   :  { %v9955_v57 = vpop.f32.mrf.mxu0 }
 0x4e5   :  { %v9956_v48 = vadd.f32 %v9955_v57, %v9954_v43  ;;  %v10079_v12 = vpop.f32.mrf.mxu1 }
 0x4e6   :  { %v9957_v4 = vpop.f32.mrf.mxu0  ;;  %3673 = vmatmul.mubr.bf16.gmra.mxu0 %v17309_v34 }
 0x4e7   :  { %v14462_v5 = vadd.f32 %v10068_v10, %v9956_v48  ;;  %11403 = vmatprep.mubr.bf16.mxu0 %v17313_v55  ;;  %v10081_v34 = vpop.f32.mrf.mxu1  ;;  %v17314_v10 = vld [vmem:[#allocation54_spill] sm:$0xff]  ;;  %v17315_v48 = vld [vmem:[#allocation53_spill] sm:$0xff] }
 0x4e8   :  { %v9958_v62 = vpop.f32.mrf.mxu0  ;;  %v17316_v8 = vpack.c.bf16 %v17314_v10, %v17315_v48  ;;  %v17317_v55 = vld [vmem:[#allocation58_spill] sm:$0xff] }
 0x4e9   :  { %v9959_v0 = vadd.f32 %v9958_v62, %v9957_v4  ;;  %v17319_v4 = vpack.c.bf16 %v17317_v55, %v17318_v46  ;;  %v10082_v62 = vpop.f32.mrf.mxu1 }
 0x4ea   :  { %v9960_v20 = vpop.f32.mrf.mxu0  ;;  %v10083_v25 = vadd.f32 %v10082_v62, %v10081_v34 }
 0x4eb   :  { %v14467_v53 = vadd.f32 %v10071_v14, %v9959_v0  ;;  %v10084_v30 = vpop.f32.mrf.mxu1 }
 0x4ec   :  { %v9961_v37 = vpop.f32.mrf.mxu0 }
 0x4ed   :  { %v9962_v43 = vadd.f32 %v9961_v37, %v9960_v20  ;;  %v10085_v20 = vpop.f32.mrf.mxu1  ;;  %v10080_v37 = vadd.f32 %v10079_v12, %v10078_v15 }
 0x4ee   :  { %v9963_v57 = vpop.f32.mrf.mxu0  ;;  %11404 = vmatmul.mubr.bf16.vlgmr.msra.gmra.mxu0 %v17316_v8  ;;  %v10086_v62 = vadd.f32 %v10085_v20, %v10084_v30 }
 0x4ef   :  { %v14472_v50 = vadd.f32 %v10074_v27, %v9962_v43  ;;  %11407 = vmatprep.mubr.bf16.mxu0 %v17319_v4  ;;  %v10087_v8 = vpop.f32.mrf.mxu1  ;;  %v17320_v27 = vpack.c.bf16 %v14123_v54, %v14102_v47 }
 0x4f0   :  { %v9964_v42 = vpop.f32.mrf.mxu0 }
 0x4f1   :  { %v9965_v14 = vadd.f32 %v9964_v42, %v9963_v57  ;;  %v17321_v57 = vpack.c.bf16 %v14129_v13, %v14127_v31  ;;  %v10088_v48 = vpop.f32.mrf.mxu1  ;;  %v17323_v13 = vpack.c.bf16 %v14170_v49, %v14155_v39  ;;  %v17325_v49 = vpack.c.bf16 %v14189_v45, %v14187_v11 }
 0x4f2   :  { %v9966_v0 = vpop.f32.mrf.mxu0  ;;  %v10089_v55 = vadd.f32 %v10088_v48, %v10087_v8  ;;  %v17324_v48 = vpack.c.bf16 %v14176_v41, %v14174_v56  ;;  %v17327_v45 = vpack.c.bf16 %v14204_v40, %v14202_v9  ;;  %v17329_v9 = vpack.c.bf16 %v14222_v58, %v14218_v35  ;;  %v4161_v58 = vld [vmem:[#allocation4 + $0x19a] sm:$0xff] }
 0x4f3   :  { %v14477_v22 = vadd.f32 %v10077_v33, %v9965_v14  ;;  %v10090_v4 = vpop.f32.mrf.mxu1 }
 0x4f4   :  { %v9967_v32 = vpop.f32.mrf.mxu0 }
 0x4f5   :  { %v9968_v44 = vadd.f32 %v9967_v32, %v9966_v0  ;;  %v10091_v42 = vpop.f32.mrf.mxu1 }
 0x4f6   :  { %v9969_v10 = vpop.f32.mrf.mxu0  ;;  %11408 = vmatmul.mubr.bf16.gmra.mxu0 %v17320_v27 }
 0x4f7   :  { %v14482_v43 = vadd.f32 %v10080_v37, %v9968_v44  ;;  %11411 = vmatprep.mubr.bf16.mxu0 %v17321_v57  ;;  %v10093_v54 = vpop.f32.mrf.mxu1  ;;  %v17322_v44 = vpack.c.bf16 %v14153_v24, %v14151_v17  ;;  %v10092_v57 = vadd.f32 %v10091_v42, %v10090_v4 }
 0x4f8   :  { %v9970_v34 = vpop.f32.mrf.mxu0 }
 0x4f9   :  { %v9971_v33 = vadd.f32 %v9970_v34, %v9969_v10  ;;  %v10094_v32 = vpop.f32.mrf.mxu1 }
 0x4fa   :  { %v9972_v46 = vpop.f32.mrf.mxu0  ;;  %v10095_v37 = vadd.f32 %v10094_v32, %v10093_v54 }
 0x4fb   :  { %v14487_v15 = vadd.f32 %v10083_v25, %v9971_v33  ;;  %v10096_v8 = vpop.f32.mrf.mxu1 }
 0x4fc   :  { %v9973_v12 = vpop.f32.mrf.mxu0 }
 0x4fd   :  { %v9974_v14 = vadd.f32 %v9973_v12, %v9972_v46  ;;  %v10097_v27 = vpop.f32.mrf.mxu1 }
 0x4fe   :  { %v9975_v47 = vpop.f32.mrf.mxu0  ;;  %11412 = vmatmul.mubr.bf16.gmra.mxu0 %v17322_v44  ;;  %v10098_v54 = vadd.f32 %v10097_v27, %v10096_v8 }
 0x4ff   :  { %v14492_v31 = vadd.f32 %v10086_v62, %v9974_v14  ;;  %11415 = vmatprep.mubr.bf16.mxu0 %v17323_v13  ;;  %v10099_v17 = vpop.f32.mrf.mxu1  ;;  %v17326_v13 = vpack.c.bf16 %v14200_v2, %v14191_v16 }
 0x500   :  { %v9976_v0 = vpop.f32.mrf.mxu0 }
 0x501   :  { %v9977_v25 = vadd.f32 %v9976_v0, %v9975_v47  ;;  %v10100_v46 = vpop.f32.mrf.mxu1 }
 0x502   :  { %v9978_v10 = vpop.f32.mrf.mxu0  ;;  %v10101_v12 = vadd.f32 %v10100_v46, %v10099_v17  ;;  %v17328_v17 = vpack.c.bf16 %v14216_v51, %v14214_v60 }
 0x503   :  { %v14497_v30 = vadd.f32 %v10089_v55, %v9977_v25  ;;  %v10102_v14 = vpop.f32.mrf.mxu1 }
 0x504   :  { %v9979_v20 = vpop.f32.mrf.mxu0 }
 0x505   :  { %v9980_v34 = vadd.f32 %v9979_v20, %v9978_v10  ;;  %v10103_v47 = vpop.f32.mrf.mxu1 }
 0x506   :  { %v9981_v24 = vpop.f32.mrf.mxu0  ;;  %11416 = vmatmul.mubr.bf16.gmra.mxu0 %v17324_v48 }
 0x507   :  { %v14502_v39 = vadd.f32 %v10092_v57, %v9980_v34  ;;  %11419 = vmatprep.mubr.bf16.mxu0 %v17325_v49  ;;  %v10105_v41 = vpop.f32.mrf.mxu1  ;;  %v10104_v34 = vadd.f32 %v10103_v47, %v10102_v14 }
 0x508   :  { %v9982_v33 = vpop.f32.mrf.mxu0 }
 0x509   :  { %v9983_v55 = vadd.f32 %v9982_v33, %v9981_v24  ;;  %v10106_v32 = vpop.f32.mrf.mxu1 }
 0x50a   :  { %v9984_v62 = vpop.f32.mrf.mxu0 }
 0x50b   :  { %v14507_v4 = vadd.f32 %v10095_v37, %v9983_v55  ;;  %v10107_v37 = vadd.f32 %v10106_v32, %v10105_v41  ;;  %v10108_v20 = vpop.f32.mrf.mxu1 }
 0x50c   :  { %v9985_v42 = vpop.f32.mrf.mxu0 }
 0x50d   :  { %v9986_v44 = vadd.f32 %v9985_v42, %v9984_v62  ;;  %v10109_v57 = vpop.f32.mrf.mxu1 }
 0x50e   :  { %v9987_v56 = vpop.f32.mrf.mxu0  ;;  %11420 = vmatmul.mubr.bf16.gmra.mxu0 %v17326_v13  ;;  %v10110_v47 = vadd.f32 %v10109_v57, %v10108_v20 }
 0x50f   :  { %v14512_v11 = vadd.f32 %v10098_v54, %v9986_v44  ;;  %11423 = vmatprep.mubr.bf16.mxu0 %v17327_v45  ;;  %v10111_v2 = vpop.f32.mrf.mxu1  ;;  %v17330_v44 = vpack.c.bf16 %v14226_v3, %v14224_v18 }
 0x510   :  { %v9988_v0 = vpop.f32.mrf.mxu0 }
 0x511   :  { %v9989_v25 = vadd.f32 %v9988_v0, %v9987_v56  ;;  %v10112_v49 = vpop.f32.mrf.mxu1  ;;  %v4162_v56 = vld [vmem:[#allocation4 + $0x1a2] sm:$0xff] }
 0x512   :  { %v9990_v10 = vpop.f32.mrf.mxu0  ;;  %v10113_v46 = vadd.f32 %v10112_v49, %v10111_v2 }
 0x513   :  { %v14517_v8 = vadd.f32 %v10101_v12, %v9989_v25  ;;  %v10114_v12 = vpop.f32.mrf.mxu1 }
 0x514   :  { %v9991_v27 = vpop.f32.mrf.mxu0 }
 0x515   :  { %v9992_v24 = vadd.f32 %v9991_v27, %v9990_v10  ;;  %v10115_v42 = vpop.f32.mrf.mxu1 }
 0x516   :  { %v9993_v16 = vpop.f32.mrf.mxu0  ;;  %11424 = vmatmul.mubr.bf16.gmra.mxu0 %v17328_v17  ;;  %v10116_v57 = vadd.f32 %v10115_v42, %v10114_v12 }
 0x517   :  { %v14522_v40 = vadd.f32 %v10104_v34, %v9992_v24  ;;  %11427 = vmatprep.mubr.bf16.mxu0 %v17329_v9  ;;  %v10117_v51 = vpop.f32.mrf.mxu1 }
 0x518   :  { %v9994_v48 = vpop.f32.mrf.mxu0 }
 0x519   :  { %v9995_v33 = vadd.f32 %v9994_v48, %v9993_v16  ;;  %v10118_v13 = vpop.f32.mrf.mxu1 }
 0x51a   :  { %v9996_v55 = vpop.f32.mrf.mxu0  ;;  %v10119_v0 = vadd.f32 %v10118_v13, %v10117_v51 }
 0x51b   :  { %v14527_v62 = vadd.f32 %v10107_v37, %v9995_v33  ;;  %v10120_v25 = vpop.f32.mrf.mxu1  ;;  %v4178_v37 = vpack.c.bf16 %v4162_v56, %v4161_v58 }
 0x51c   :  { %v9997_v14 = vpop.f32.mrf.mxu0 }
 0x51d   :  { %v9998_v54 = vadd.f32 %v9997_v14, %v9996_v55  ;;  %v10121_v27 = vpop.f32.mrf.mxu1 }
 0x51e   :  { %v9999_v60 = vpop.f32.mrf.mxu0  ;;  %11428 = vmatmul.mubr.bf16.gmra.mxu0 %v17330_v44  ;;  %v10122_v55 = vadd.f32 %v10121_v27, %v10120_v25 }
 0x51f   :  { %v14532_v35 = vadd.f32 %v10110_v47, %v9998_v54  ;;  %11431 = vmatprep.mubr.bf16.mxu0 %v17310_v1  ;;  %v10251_v34 = vpop.f32.mrf.mxu1 }
 0x520   :  { %v10000_v41 = vpop.f32.mrf.mxu0 }
 0x521   :  { %v10001_v45 = vadd.f32 %v10000_v41, %v9999_v60  ;;  %v10252_v16 = vpop.f32.mrf.mxu1 }
 0x522   :  { %v10002_v32 = vpop.f32.mrf.mxu0  ;;  %v10253_v17 = vadd.f32 %v10252_v16, %v10251_v34 }
 0x523   :  { %v14535_v10 = vadd.f32 %v10113_v46, %v10001_v45  ;;  %v10254_v48 = vpop.f32.mrf.mxu1 }
 0x524   :  { %v10003_v20 = vpop.f32.mrf.mxu0 }
 0x525   :  { %v10004_v3 = vadd.f32 %v10003_v20, %v10002_v32  ;;  %v10255_v46 = vpop.f32.mrf.mxu1 }
 0x526   :  { %v10005_v18 = vpop.f32.mrf.mxu0  ;;  %11432 = vmatmul.mubr.bf16.gmra.mxu0 %v4178_v37  ;;  %v10256_v20 = vadd.f32 %v10255_v46, %v10254_v48 }
 0x527   :  { %v14537_v24 = vadd.f32 %v10116_v57, %v10004_v3  ;;  %11527 = vmatprep.mubr.msk.f32.mxu0 %vm11993_vm0, %v14447_v19  ;;  %v10257_v42 = vpop.f32.mrf.mxu1 }
 0x528   :  { %v10006_v1 = vpop.f32.mrf.mxu0 }
 0x529   :  { %v10007_v2 = vadd.f32 %v10006_v1, %v10005_v18  ;;  %v10258_v60 = vpop.f32.mrf.mxu1 }
 0x52a   :  { %v10008_v9 = vpop.f32.mrf.mxu0  ;;  %v10259_v44 = vadd.f32 %v10258_v60, %v10257_v42 }
 0x52b   :  { %v14541_v49 = vadd.f32 %v10119_v0, %v10007_v2  ;;  %v10260_v56 = vpop.f32.mrf.mxu1 }
 0x52c   :  { %v10009_v33 = vpop.f32.mrf.mxu0 }
 0x52d   :  { %v10010_v12 = vadd.f32 %v10009_v33, %v10008_v9  ;;  %v10261_v45 = vpop.f32.mrf.mxu1 }
 0x52e   :  { %v10139_v14 = vpop.f32.mrf.mxu0  ;;  %v10262_v48 = vadd.f32 %v10261_v45, %v10260_v56 }
 0x52f   :  { %v14543_v47 = vadd.f32 %v10122_v55, %v10010_v12 }
 0x530   :  { %v10140_v54 = vpop.f32.mrf.mxu0  ;;  %v10263_v25 = vpop.f32.mrf.mxu1 }
 0x531   :  { %17331 = vst [vmem:[#allocation9_spill] sm:$0xff] %v14543_v47  ;;  %v10141_v51 = vadd.f32 %v10140_v54, %v10139_v14 }
 0x532   :  { %v10142_v58 = vpop.f32.mrf.mxu0  ;;  %v10264_v3 = vpop.f32.mrf.mxu1 }
 0x533   :  { %v3681_v41 = vadd.f32 %v10141_v51, %v14408_v59  ;;  %v10265_v34 = vadd.f32 %v10264_v3, %v10263_v25 }
 0x534   :  { %v10143_v13 = vpop.f32.mrf.mxu0  ;;  %v10266_v2 = vpop.f32.mrf.mxu1 }
 0x535   :  { %v10144_v0 = vadd.f32 %v10143_v13, %v10142_v58  ;;  %v14546_v32 = vadd.f32 %v10253_v17, %v3681_v41 }
 0x536   :  { %v10145_v37 = vpop.f32.mrf.mxu0  ;;  %v10267_v33 = vpop.f32.mrf.mxu1 }
 0x537   :  { %v3682_v27 = vadd.f32 %v10144_v0, %v14412_v38  ;;  %v10268_v56 = vadd.f32 %v10267_v33, %v10266_v2 }
 0x538   :  { %v10146_v57 = vpop.f32.mrf.mxu0  ;;  %v10269_v14 = vpop.f32.mrf.mxu1 }
 0x539   :  { %v10147_v18 = vadd.f32 %v10146_v57, %v10145_v37  ;;  %v14549_v1 = vadd.f32 %v10256_v20, %v3682_v27 }
 0x53a   :  { %v10148_v16 = vpop.f32.mrf.mxu0  ;;  %v10270_v42 = vpop.f32.mrf.mxu1 }
 0x53b   :  { %v3683_v59 = vadd.f32 %v10147_v18, %v14416_v63  ;;  %v10271_v60 = vadd.f32 %v10270_v42, %v10269_v14 }
 0x53c   :  { %v10149_v9 = vpop.f32.mrf.mxu0  ;;  %v10272_v41 = vpop.f32.mrf.mxu1 }
 0x53d   :  { %v10150_v55 = vadd.f32 %v10149_v9, %v10148_v16  ;;  %v14552_v17 = vadd.f32 %v10259_v44, %v3683_v59 }
 0x53e   :  { %v10151_v12 = vpop.f32.mrf.mxu0  ;;  %v10273_v0 = vpop.f32.mrf.mxu1 }
 0x53f   :  { %v3684_v38 = vadd.f32 %v10150_v55, %v14420_v21  ;;  %v10274_v2 = vadd.f32 %v10273_v0, %v10272_v41 }
 0x540   :  { %v10152_v46 = vpop.f32.mrf.mxu0  ;;  %v10275_v20 = vpop.f32.mrf.mxu1 }
 0x541   :  { %v10153_v54 = vadd.f32 %v10152_v46, %v10151_v12  ;;  %v14555_v51 = vadd.f32 %v10262_v48, %v3684_v38 }
 0x542   :  { %v10154_v58 = vpop.f32.mrf.mxu0  ;;  %v10276_v27 = vpop.f32.mrf.mxu1 }
 0x543   :  { %v3685_v63 = vadd.f32 %v10153_v54, %v14424_v52  ;;  %v10277_v3 = vadd.f32 %v10276_v27, %v10275_v20 }
 0x544   :  { %v10155_v13 = vpop.f32.mrf.mxu0  ;;  %v10278_v59 = vpop.f32.mrf.mxu1 }
 0x545   :  { %v10156_v37 = vadd.f32 %v10155_v13, %v10154_v58  ;;  %v14558_v44 = vadd.f32 %v10265_v34, %v3685_v63 }
 0x546   :  { %v10157_v25 = vpop.f32.mrf.mxu0  ;;  %v10279_v55 = vpop.f32.mrf.mxu1 }
 0x547   :  { %v3686_v21 = vadd.f32 %v10156_v37, %v14428_v23 }
 0x548   :  { %v10158_v45 = vpop.f32.mrf.mxu0  ;;  %v14566_v48 = vpop.f32.mrf.mxu1 }
 0x549   :  { %v10159_v57 = vadd.f32 %v10158_v45, %v10157_v25  ;;  %v14561_v18 = vadd.f32 %v10268_v56, %v3686_v21 }
 0x54a   :  { %v10160_v16 = vpop.f32.mrf.mxu0  ;;  %v14569_v38 = vpop.f32.mrf.mxu1 }
 0x54b   :  { %v3687_v52 = vadd.f32 %v10159_v57, %v14432_v61 }
 0x54c   :  { %v10161_v9 = vpop.f32.mrf.mxu0  ;;  %v14573_v58 = vpop.f32.mrf.mxu1 }
 0x54d   :  { %v10162_v12 = vadd.f32 %v10161_v9, %v10160_v16  ;;  %v14564_v34 = vadd.f32 %v10271_v60, %v3687_v52 }
 0x54e   :  { %v10163_v14 = vpop.f32.mrf.mxu0  ;;  %v14576_v60 = vpop.f32.mrf.mxu1 }
 0x54f   :  { %v3688_v23 = vadd.f32 %v10162_v12, %v14436_v26  ;;  %v10280_v26 = vadd.f32 %v10279_v55, %v10278_v59 }
 0x550   :  { %v10164_v33 = vpop.f32.mrf.mxu0  ;;  %v14580_v0 = vpop.f32.mrf.mxu1 }
 0x551   :  { %v10165_v46 = vadd.f32 %v10164_v33, %v10163_v14  ;;  %v14571_v42 = vadd.f32 %v10274_v2, %v3688_v23 }
 0x552   :  { %v10166_v54 = vpop.f32.mrf.mxu0  ;;  %v14583_v56 = vpop.f32.mrf.mxu1 }
 0x553   :  { %v3689_v61 = vadd.f32 %v10165_v46, %v14440_v29 }
 0x554   :  { %v10167_v63 = vpop.f32.mrf.mxu0  ;;  %v14587_v29 = vpop.f32.mrf.mxu1 }
 0x555   :  { %v10168_v13 = vadd.f32 %v10167_v63, %v10166_v54  ;;  %v14578_v37 = vadd.f32 %v10277_v3, %v3689_v61 }
 0x556   :  { %v10169_v41 = vpop.f32.mrf.mxu0  ;;  %v14592_v16 = vpop.f32.mrf.mxu1 }
 0x557   :  { %v3690_v25 = vadd.f32 %v10168_v13, %v14444_v7 }
 0x558   :  { %v10170_v20 = vpop.f32.mrf.mxu0  ;;  %v14594_v59 = vpop.f32.mrf.mxu1 }
 0x559   :  { %v10171_v21 = vadd.f32 %v10170_v20, %v10169_v41  ;;  %v14585_v45 = vadd.f32 %v10280_v26, %v3690_v25 }
 0x55a   :  { %v10172_v27 = vpop.f32.mrf.mxu0  ;;  %v14599_v12 = vpop.f32.mrf.mxu1 }
 0x55b   :  { %v14590_v57 = vadd.f32 %v10171_v21, %v14451_v28 }
 0x55c   :  { %v10173_v3 = vpop.f32.mrf.mxu0  ;;  %v14601_v23 = vpop.f32.mrf.mxu1 }
 0x55d   :  { %v10174_v52 = vadd.f32 %v10173_v3, %v10172_v27 }
 0x55e   :  { %v10175_v9 = vpop.f32.mrf.mxu0  ;;  %v14606_v46 = vpop.f32.mrf.mxu1 }
 0x55f   :  { %v14597_v7 = vadd.f32 %v10174_v52, %v14454_v6 }
 0x560   :  { %v10176_v55 = vpop.f32.mrf.mxu0  ;;  %v14611_v6 = vpop.f32.mrf.mxu1 }
 0x561   :  { %v10177_v14 = vadd.f32 %v10176_v55, %v10175_v9 }
 0x562   :  { %v10178_v2 = vpop.f32.mrf.mxu0  ;;  %v14616_v20 = vpop.f32.mrf.mxu1 }
 0x563   :  { %v14604_v28 = vadd.f32 %v10177_v14, %v14459_v36 }
 0x564   :  { %v10179_v33 = vpop.f32.mrf.mxu0  ;;  %v14618_v3 = vpop.f32.mrf.mxu1 }
 0x565   :  { %v10180_v54 = vadd.f32 %v10179_v33, %v10178_v2 }
 0x566   :  { %v10181_v61 = vpop.f32.mrf.mxu0  ;;  %v14623_v14 = vpop.f32.mrf.mxu1 }
 0x567   :  { %v14609_v63 = vadd.f32 %v10180_v54, %v14462_v5 }
 0x568   :  { %v10182_v13 = vpop.f32.mrf.mxu0 }
 0x569   :  { %v10183_v41 = vadd.f32 %v10182_v13, %v10181_v61  ;;  %v14628_v61 = vpop.f32.mrf.mxu1 }
 0x56a   :  { %v10184_v26 = vpop.f32.mrf.mxu0 }
 0x56b   :  { %v14614_v25 = vadd.f32 %v10183_v41, %v14467_v53 }
 0x56c   :  { %v10185_v36 = vpop.f32.mrf.mxu0 }
 0x56d   :  { %v10186_v21 = vadd.f32 %v10185_v36, %v10184_v26  ;;  %v14633_v36 = vpop.f32.mrf.mxu1 }
 0x56e   :  { %v10187_v27 = vpop.f32.mrf.mxu0 }
 0x56f   :  { %v14621_v52 = vadd.f32 %v10186_v21, %v14472_v50 }
 0x570   :  { %v10188_v5 = vpop.f32.mrf.mxu0 }
 0x571   :  { %v10189_v9 = vadd.f32 %v10188_v5, %v10187_v27 }
 0x572   :  { %v10190_v55 = vpop.f32.mrf.mxu0 }
 0x573   :  { %v14626_v2 = vadd.f32 %v10189_v9, %v14477_v22  ;;  %v14638_v9 = vpop.f32.mrf.mxu1 }
 0x574   :  { %v10191_v53 = vpop.f32.mrf.mxu0 }
 0x575   :  { %17332 = vst [vmem:[#allocation10_spill] sm:$0xff] %v14626_v2  ;;  %v10192_v33 = vadd.f32 %v10191_v53, %v10190_v55 }
 0x576   :  { %v10193_v54 = vpop.f32.mrf.mxu0 }
 0x577   :  { %v14631_v13 = vadd.f32 %v10192_v33, %v14482_v43  ;;  %v14643_v33 = vpop.f32.mrf.mxu1 }
 0x578   :  { %v10194_v41 = vpop.f32.mrf.mxu0 }
 0x579   :  { %17333 = vst [vmem:[#allocation13_spill] sm:$0xff] %v14631_v13  ;;  %v10195_v26 = vadd.f32 %v10194_v41, %v10193_v54 }
 0x57a   :  { %v10196_v50 = vpop.f32.mrf.mxu0 }
 0x57b   :  { %v14636_v21 = vadd.f32 %v10195_v26, %v14487_v15  ;;  %v14648_v26 = vpop.f32.mrf.mxu1 }
 0x57c   :  { %v10197_v27 = vpop.f32.mrf.mxu0 }
 0x57d   :  { %v10198_v5 = vadd.f32 %v10197_v27, %v10196_v50 }
 0x57e   :  { %v10199_v22 = vpop.f32.mrf.mxu0 }
 0x57f   :  { %v14641_v55 = vadd.f32 %v10198_v5, %v14492_v31  ;;  %v14653_v5 = vpop.f32.mrf.mxu1 }
 0x580   :  { %v10200_v53 = vpop.f32.mrf.mxu0 }
 0x581   :  { %17334 = vst [vmem:[#allocation15_spill] sm:$0xff] %v14641_v55  ;;  %v10201_v47 = vadd.f32 %v10200_v53, %v10199_v22 }
 0x582   :  { %v10202_v43 = vpop.f32.mrf.mxu0 }
 0x583   :  { %v14646_v54 = vadd.f32 %v10201_v47, %v14497_v30  ;;  %v14658_v47 = vpop.f32.mrf.mxu1 }
 0x584   :  { %v10203_v41 = vpop.f32.mrf.mxu0 }
 0x585   :  { %17335 = vst [vmem:[#allocation12_spill] sm:$0xff] %v14646_v54  ;;  %v10204_v13 = vadd.f32 %v10203_v41, %v10202_v43 }
 0x586   :  { %v10205_v15 = vpop.f32.mrf.mxu0 }
 0x587   :  { %v14651_v50 = vadd.f32 %v10204_v13, %v14502_v39  ;;  %v14663_v13 = vpop.f32.mrf.mxu1 }
 0x588   :  { %v10206_v27 = vpop.f32.mrf.mxu0 }
 0x589   :  { %17336 = vst [vmem:[#allocation18_spill] sm:$0xff] %v14651_v50  ;;  %v10207_v2 = vadd.f32 %v10206_v27, %v10205_v15 }
 0x58a   :  { %v10208_v31 = vpop.f32.mrf.mxu0 }
 0x58b   :  { %v14656_v22 = vadd.f32 %v10207_v2, %v14507_v4  ;;  %v14668_v2 = vpop.f32.mrf.mxu1 }
 0x58c   :  { %v10209_v53 = vpop.f32.mrf.mxu0 }
 0x58d   :  { %17337 = vst [vmem:[#allocation7_spill] sm:$0xff] %v14656_v22  ;;  %v10210_v55 = vadd.f32 %v10209_v53, %v10208_v31 }
 0x58e   :  { %v10211_v30 = vpop.f32.mrf.mxu0 }
 0x58f   :  { %v14661_v43 = vadd.f32 %v10210_v55, %v14512_v11  ;;  %v14673_v55 = vpop.f32.mrf.mxu1 }
 0x590   :  { %v10212_v41 = vpop.f32.mrf.mxu0 }
 0x591   :  { %17338 = vst [vmem:[#allocation55_spill] sm:$0xff] %v14661_v43  ;;  %v10213_v54 = vadd.f32 %v10212_v41, %v10211_v30 }
 0x592   :  { %v10214_v39 = vpop.f32.mrf.mxu0 }
 0x593   :  { %v14666_v15 = vadd.f32 %v10213_v54, %v14517_v8  ;;  %v14678_v54 = vpop.f32.mrf.mxu1 }
 0x594   :  { %v10215_v27 = vpop.f32.mrf.mxu0 }
 0x595   :  { %17339 = vst [vmem:[#allocation8_spill] sm:$0xff] %v14666_v15  ;;  %v10216_v50 = vadd.f32 %v10215_v27, %v10214_v39 }
 0x596   :  { %v10217_v4 = vpop.f32.mrf.mxu0 }
 0x597   :  { %v14671_v31 = vadd.f32 %v10216_v50, %v14522_v40  ;;  %v14683_v50 = vpop.f32.mrf.mxu1 }
 0x598   :  { %v10218_v53 = vpop.f32.mrf.mxu0 }
 0x599   :  { %17340 = vst [vmem:[#allocation22_spill] sm:$0xff] %v14671_v31  ;;  %v10219_v22 = vadd.f32 %v10218_v53, %v10217_v4 }
 0x59a   :  { %v10220_v11 = vpop.f32.mrf.mxu0 }
 0x59b   :  { %v14676_v30 = vadd.f32 %v10219_v22, %v14527_v62  ;;  %v14688_v22 = vpop.f32.mrf.mxu1 }
 0x59c   :  { %v10221_v41 = vpop.f32.mrf.mxu0 }
 0x59d   :  { %17341 = vst [vmem:[#allocation56_spill] sm:$0xff] %v14676_v30  ;;  %v10222_v43 = vadd.f32 %v10221_v41, %v10220_v11 }
 0x59e   :  { %v10223_v8 = vpop.f32.mrf.mxu0 }
 0x59f   :  { %v14681_v39 = vadd.f32 %v10222_v43, %v14532_v35  ;;  %v14695_v43 = vpop.f32.mrf.mxu1 }
 0x5a0   :  { %v10224_v27 = vpop.f32.mrf.mxu0 }
 0x5a1   :  { %v10225_v15 = vadd.f32 %v10224_v27, %v10223_v8 }
 0x5a2   :  { %v10226_v40 = vpop.f32.mrf.mxu0 }
 0x5a3   :  { %v14686_v4 = vadd.f32 %v10225_v15, %v14535_v10  ;;  %v14702_v15 = vpop.f32.mrf.mxu1 }
 0x5a4   :  { %v10227_v53 = vpop.f32.mrf.mxu0 }
 0x5a5   :  { %17342 = vst [vmem:[#allocation59_spill] sm:$0xff] %v14686_v4  ;;  %v10228_v31 = vadd.f32 %v10227_v53, %v10226_v40  ;;  %v14704_v4 = vpop.f32.mrf.mxu1 }
 0x5a6   :  { %v10229_v62 = vpop.f32.mrf.mxu0 }
 0x5a7   :  { %v14691_v11 = vadd.f32 %v10228_v31, %v14537_v24 }
 0x5a8   :  { %v10230_v41 = vpop.f32.mrf.mxu0 }
 0x5a9   :  { %17343 = vst [vmem:[#allocation24_spill] sm:$0xff] %v14691_v11  ;;  %v10231_v30 = vadd.f32 %v10230_v41, %v10229_v62 }
 0x5aa   :  { %v14693_v35 = vpop.f32.mrf.mxu0 }
 0x5ab   :  { %v14698_v8 = vadd.f32 %v10231_v30, %v14541_v49 }
 0x5ac   :  { %v14700_v27 = vpop.f32.mrf.mxu0 }
 0x5ad   :  { %17344 = vst [vmem:[#allocation60_spill] sm:$0xff] %v14698_v8  ;;  %v14722_v8 = vpop.f32.mrf.mxu1 }
 0x5ae   :  { %v11405_v10 = vpop.f32.mrf.mxu0 }
 0x5af   :  { %v14707_v24 = vadd.f32 %v11405_v10, %v14552_v17 }
 0x5b0   :  { %v4277_v40 = vpop.f32.mrf.mxu0 }
 0x5b1   :  { %v14713_v41 = vadd.f32 %v4277_v40, %v14546_v32 }
 0x5b2   :  { %v11406_v53 = vpop.f32.mrf.mxu0 }
 0x5b3   :  { %v14710_v31 = vadd.f32 %v11406_v53, %v14555_v51  ;;  %17345 = vst [vmem:[#allocation61_spill] sm:$0xff] %v14713_v41  ;;  %v14728_v53 = vpop.f32.mrf.mxu1 }
 0x5b4   :  { %v4280_v62 = vpop.f32.mrf.mxu0 }
 0x5b5   :  { %v14717_v49 = vpack.c.bf16 %v14710_v31, %v14707_v24  ;;  %v14720_v30 = vadd.f32 %v4280_v62, %v14549_v1 }
 0x5b6   :  { %v11409_v11 = vpop.f32.mrf.mxu0 }
 0x5b7   :  { %17346 = vst [vmem:[#allocation11_spill] sm:$0xff] %v14717_v49  ;;  %17347 = vst [vmem:[#allocation25_spill] sm:$0xff] %v14720_v30  ;;  %v14726_v17 = vpack.c.bf16 %v14720_v30, %v14713_v41  ;;  %v14731_v32 = vadd.f32 %v11409_v11, %v14564_v34  ;;  %v10283_v30 = vadd.f32 %v14569_v38, %v14566_v48 }
 0x5b8   :  { %v4293_v51 = vpop.f32.mrf.mxu0  ;;  %v10286_v34 = vadd.f32 %v14576_v60, %v14573_v58 }
 0x5b9   :  { %17348 = vst [vmem:[#allocation28_spill] sm:$0xff] %v14726_v17  ;;  %v14737_v1 = vadd.f32 %v4293_v51, %v14558_v44  ;;  %v4109_v51 = vadd.f32 %v10283_v30, %v14590_v57 }
 0x5ba   :  { %v11410_v10 = vpop.f32.mrf.mxu0 }
 0x5bb   :  { %v14734_v40 = vadd.f32 %v11410_v10, %v14571_v42  ;;  %v14750_v42 = vpop.f32.mrf.mxu1  ;;  %v4110_v10 = vadd.f32 %v10286_v34, %v14597_v7  ;;  %v10295_v7 = vadd.f32 %v14599_v12, %v14594_v59 }
 0x5bc   :  { %v4296_v49 = vpop.f32.mrf.mxu0 }
 0x5bd   :  { %v14741_v62 = vpack.c.bf16 %v14734_v40, %v14731_v32  ;;  %v14744_v17 = vadd.f32 %v4296_v49, %v14561_v18  ;;  %v14758_v49 = vpop.f32.mrf.mxu1 }
 0x5be   :  { %v11413_v41 = vpop.f32.mrf.mxu0 }
 0x5bf   :  { %17349 = vst [vmem:[#allocation29_spill] sm:$0xff] %v14741_v62  ;;  %v14754_v44 = vpack.c.bf16 %v14744_v17, %v14737_v1  ;;  %v14760_v62 = vadd.f32 %v11413_v41, %v4109_v51  ;;  %v10298_v41 = vadd.f32 %v14606_v46, %v14601_v23  ;;  %v14778_v30 = vpop.f32.mrf.mxu1  ;;  %v4113_v51 = vadd.f32 %v10295_v7, %v14614_v25 }
 0x5c0   :  { %v4309_v11 = vpop.f32.mrf.mxu0  ;;  %v10301_v7 = vadd.f32 %v14616_v20, %v14611_v6  ;;  %v17357_v6 = vld [vmem:[#allocation13_spill] sm:$0xff] }
 0x5c1   :  { %17350 = vst [vmem:[#allocation26_spill] sm:$0xff] %v14754_v44  ;;  %v14765_v58 = vadd.f32 %v4309_v11, %v14578_v37  ;;  %v10289_v11 = vadd.f32 %v14583_v56, %v14580_v0  ;;  %v4114_v59 = vadd.f32 %v10298_v41, %v14621_v52 }
 0x5c2   :  { %v11414_v18 = vpop.f32.mrf.mxu0 }
 0x5c3   :  { %v14762_v48 = vadd.f32 %v11414_v18, %v4110_v10  ;;  %v14790_v10 = vpop.f32.mrf.mxu1  ;;  %v4111_v46 = vadd.f32 %v10289_v11, %v14604_v28  ;;  %v10307_v28 = vadd.f32 %v14633_v36, %v14628_v61  ;;  %v10304_v61 = vadd.f32 %v14623_v14, %v14618_v3  ;;  %v17356_v11 = vld [vmem:[#allocation10_spill] sm:$0xff] }
 0x5c4   :  { %v4312_v38 = vpop.f32.mrf.mxu0 }
 0x5c5   :  { %v14769_v60 = vpack.c.bf16 %v14762_v48, %v14760_v62  ;;  %v14772_v44 = vadd.f32 %v4312_v38, %v14585_v45  ;;  %v10292_v45 = vadd.f32 %v14592_v16, %v14587_v29  ;;  %v14812_v25 = vpop.f32.mrf.mxu1  ;;  %v4117_v36 = vadd.f32 %v10307_v28, %v14636_v21 }
 0x5c6   :  { %v11417_v57 = vpop.f32.mrf.mxu0  ;;  %v4116_v20 = vadd.f32 %v10304_v61, %v17357_v6 }
 0x5c7   :  { %17351 = vst [vmem:[#allocation30_spill] sm:$0xff] %v14769_v60  ;;  %v14782_v37 = vpack.c.bf16 %v14772_v44, %v14765_v58  ;;  %v14792_v23 = vadd.f32 %v11417_v57, %v4113_v51  ;;  %v4112_v38 = vadd.f32 %v10292_v45, %v14609_v63  ;;  %v10310_v63 = vadd.f32 %v14643_v33, %v14638_v9  ;;  %v17355_v9 = vld [vmem:[#allocation15_spill] sm:$0xff] }
 0x5c8   :  { %v4325_v34 = vpop.f32.mrf.mxu0  ;;  %v4115_v45 = vadd.f32 %v10301_v7, %v17356_v11  ;;  %v10316_v7 = vadd.f32 %v14663_v13, %v14658_v47  ;;  %v17364_v13 = vmov 1.0  }
 0x5c9   :  { %17352 = vst [vmem:[#allocation31_spill] sm:$0xff] %v14782_v37  ;;  %v14798_v0 = vadd.f32 %v4325_v34, %v4111_v46  ;;  %v4118_v33 = vadd.f32 %v10310_v63, %v17355_v9 }
 0x5ca   :  { %v11418_v12 = vpop.f32.mrf.mxu0 }
 0x5cb   :  { %v14795_v18 = vadd.f32 %v11418_v12, %v4114_v59 }
 0x5cc   :  { %v4328_v37 = vpop.f32.mrf.mxu0 }
 0x5cd   :  { %v14802_v56 = vpack.c.bf16 %v14795_v18, %v14792_v23  ;;  %v14804_v29 = vadd.f32 %v4328_v37, %v4112_v38  ;;  %11436 = vmatpush3.msra.mxu1 %v14795_v18  ;;  %v14828_v37 = vpop.f32.mrf.mxu1  ;;  %v10319_v38 = vadd.f32 %v14673_v55, %v14668_v2  ;;  %v17360_v2 = vld [vmem:[#allocation7_spill] sm:$0xff] }
 0x5ce   :  { %v11421_v16 = vpop.f32.mrf.mxu0  ;;  %11437 = vmatprep.subr.mxu1 %v14447_v19 }
 0x5cf   :  { %17353 = vst [vmem:[#allocation20_spill] sm:$0xff] %v14802_v56  ;;  %v14816_v52 = vpack.c.bf16 %v14804_v29, %v14798_v0  ;;  %11438 = vmatpush3.msra.mxu1 %v14792_v23  ;;  %v14830_v34 = vadd.f32 %v11421_v16, %v4117_v36  ;;  %v14838_v14 = vpop.f32.mrf.mxu1  ;;  %v10322_v16 = vadd.f32 %v14683_v50, %v14678_v54  ;;  %v17361_v54 = vld [vmem:[#allocation55_spill] sm:$0xff] }
 0x5d0   :  { %v4341_v57 = vpop.f32.mrf.mxu0  ;;  %11439 = vmatprep.subr.mxu1 %v14447_v19  ;;  %v4121_v55 = vadd.f32 %v10319_v38, %v17360_v2  ;;  %v10331_v38 = vadd.f32 %v14728_v53, %v14722_v8  ;;  %v10328_v8 = vadd.f32 %v14704_v4, %v14702_v15  ;;  %v17369_v4 = vld [vmem:[#allocation22_spill] sm:$0xff] }
 0x5d1   :  { %17354 = vst [vmem:[#allocation32_spill] sm:$0xff] %v14816_v52  ;;  %11440 = vmatpush3.msra.mxu1 %v14804_v29  ;;  %v14840_v21 = vadd.f32 %v4341_v57, %v4115_v45  ;;  %v10313_v57 = vadd.f32 %v14653_v5, %v14648_v26  ;;  %v10342_v61 = vpop.f32.mrf.mxu1  ;;  %v4122_v50 = vadd.f32 %v10322_v16, %v17361_v54  ;;  %v17363_v26 = vld [vmem:[#allocation18_spill] sm:$0xff] }
 0x5d2   :  { %v11422_v41 = vpop.f32.mrf.mxu0  ;;  %11441 = vmatprep.subr.mxu1 %v14447_v19  ;;  %v4120_v5 = vadd.f32 %v10316_v7, %v17363_v26  ;;  %v10334_v16 = vadd.f32 %v14758_v49, %v14750_v42  ;;  %v10234_v7 = vadd.f32 %v14700_v27, %v14693_v35  ;;  %v17367_v42 = vld [vmem:[#allocation56_spill] sm:$0xff]  ;;  %v4124_v15 = vadd.f32 %v10328_v8, %v17369_v4  ;;  %v14924_v26 = vld [vmem:[#allocation4] sm:$0xff] }
 0x5d3   :  { %v14833_v51 = vadd.f32 %v11422_v41, %v4118_v33  ;;  %11442 = vmatpush3.msra.mxu1 %v14798_v0  ;;  %v17362_v33 = vld [vmem:[#allocation12_spill] sm:$0xff]  ;;  %v10344_v45 = vpop.f32.mrf.mxu1  ;;  %v4125_v49 = vadd.f32 %v10331_v38, %v17367_v42  ;;  %v10340_v38 = vadd.f32 %v14828_v37, %v14812_v25  ;;  %v17375_v8 = vld [vmem:[#allocation59_spill] sm:$0xff] }
 0x5d4   :  { %v4344_v3 = vpop.f32.mrf.mxu0  ;;  %11443 = vmatprep.subr.mxu1 %v14447_v19  ;;  %v4119_v41 = vadd.f32 %v10313_v57, %v17362_v33  ;;  %v10325_v57 = vadd.f32 %v14695_v43, %v14688_v22  ;;  %v4126_v22 = vadd.f32 %v10334_v16, %v14681_v39  ;;  %v17368_v43 = vld [vmem:[#allocation8_spill] sm:$0xff]  ;;  %v17370_v39 = vld [vmem:[#allocation9_spill] sm:$0xff] }
 0x5d5   :  { %v14844_v59 = vpack.c.bf16 %v14833_v51, %v14830_v34  ;;  %v14846_v12 = vadd.f32 %v4344_v3, %v4116_v20  ;;  %11444 = vmatpush3.msra.mxu1 %v14762_v48  ;;  %v10345_v53 = vpop.f32.mrf.mxu1  ;;  %v17373_v16 = vld [vmem:[#allocation60_spill] sm:$0xff] }
 0x5d6   :  { %v11425_v46 = vpop.f32.mrf.mxu0  ;;  %11445 = vmatprep.subr.mxu1 %v14447_v19  ;;  %v10346_v33 = vadd.f32 %v10345_v53, %v10344_v45  ;;  %v10337_v45 = vadd.f32 %v14790_v10, %v14778_v30  ;;  %v17377_v25 = vld [vmem:[#allocation24_spill] sm:$0xff] }
 0x5d7   :  { %17358 = vst [vmem:[#allocation21_spill] sm:$0xff] %v14844_v59  ;;  %v14856_v28 = vpack.c.bf16 %v14846_v12, %v14840_v21  ;;  %11446 = vmatpush3.msra.mxu1 %v14760_v62  ;;  %v14868_v9 = vadd.f32 %v11425_v46, %v4121_v55  ;;  %v4123_v55 = vadd.f32 %v10325_v57, %v17368_v43 }
 0x5d8   :  { %v4357_v63 = vpop.f32.mrf.mxu0  ;;  %11447 = vmatprep.subr.mxu1 %v14447_v19  ;;  %v4127_v53 = vadd.f32 %v10337_v45, %v17375_v8  ;;  %v4128_v37 = vadd.f32 %v10340_v38, %v17377_v25  ;;  %v11913_v45 = vld [vmem:[%s16926_s4 + $0xb0] sm:$0xff]   ;;  %v4441_v38 = vmul.f32 %v14744_v17, %v14744_v17  ;;  %v11918_v8 = vld [vmem:[%s16926_s4 + $0xd8] sm:$0xff]  }
 0x5d9   :  { %17359 = vst [vmem:[#allocation23_spill] sm:$0xff] %v14856_v28  ;;  %11448 = vmatpush3.msra.mxu1 %v14772_v44  ;;  %v14878_v6 = vadd.f32 %v4357_v63, %v4119_v41  ;;  %v11921_v25 = vld [vmem:[%s16926_s4 + $0x90] sm:$0xff]  }
 0x5da   :  { %v11426_v36 = vpop.f32.mrf.mxu0  ;;  %11449 = vmatprep.subr.mxu1 %v14447_v19 }
 0x5db   :  { %v14871_v11 = vadd.f32 %v11426_v36, %v4122_v50  ;;  %11450 = vmatpush3.msra.mxu1 %v14765_v58  ;;  %v10343_v50 = vadd.f32 %v10342_v61, %v14838_v14  ;;  %v3712_v36 = vadd.f32 %v10234_v7, %v17370_v39  ;;  %v17374_v7 = vld [vmem:[#allocation25_spill] sm:$0xff]  ;;  %v11911_v39 = vld [vmem:[%s16926_s4 + $0xb8] sm:$0xff]  }
 0x5dc   :  { %v4360_v47 = vpop.f32.mrf.mxu0  ;;  %11454 = vmatprep.subr.mxu1 %v14447_v19  ;;  %11452 = vmatmul.mubr.msk.f32.vlgmr.msra.gmra.mxu1 %vm388_vm1, %v17364_v13 }
 0x5dd   :  { %v14882_v20 = vpack.c.bf16 %v14871_v11, %v14868_v9  ;;  %v14884_v3 = vadd.f32 %v4360_v47, %v4120_v5  ;;  %11455 = vmatpush3.msra.mxu1 %v14734_v40  ;;  %11512 = vmatpush3.msra.mxu0 %v14871_v11  ;;  %v4129_v57 = vadd.f32 %v10343_v50, %v17373_v16 }
 0x5de   :  { %v11429_v46 = vpop.f32.mrf.mxu0  ;;  %11456 = vmatprep.subr.mxu1 %v14447_v19  ;;  %11513 = vmatprep.subr.mxu0 %v14447_v19  ;;  %v4589_v50 = vmul.f32 %v14804_v29, %v14804_v29  ;;  %v4587_v29 = vmul.f32 %v14762_v48, %v14762_v48  ;;  %v4585_v48 = vmul.f32 %v14772_v44, %v14772_v44  ;;  %v11910_v44 = vld [vmem:[%s16926_s4 + $0xf8] sm:$0xff]  }
 0x5df   :  { %17365 = vst [vmem:[#allocation35_spill] sm:$0xff] %v14882_v20  ;;  %v14896_v63 = vpack.c.bf16 %v14884_v3, %v14878_v6  ;;  %11457 = vmatpush3.msra.mxu1 %v14731_v32  ;;  %11514 = vmatpush3.msra.mxu0 %v14868_v9  ;;  %v14915_v27 = vadd.f32 %v11429_v46, %v4125_v49  ;;  %v17376_v49 = vld [vmem:[#allocation61_spill] sm:$0xff] }
 0x5e0   :  { %v4373_v2 = vpop.f32.mrf.mxu0  ;;  %11458 = vmatprep.subr.mxu1 %v14447_v19  ;;  %11515 = vmatprep.subr.mxu0 %v14447_v19  ;;  %v4440_v16 = vmul.f32 %v14737_v1, %v14737_v1 }
 0x5e1   :  { %17366 = vst [vmem:[#allocation37_spill] sm:$0xff] %v14896_v63  ;;  %11459 = vmatpush3.msra.mxu1 %v14744_v17  ;;  %11516 = vmatpush3.msra.mxu0 %v14884_v3  ;;  %v11916_v17 = vld [vmem:[%s16926_s4 + $0xe0] sm:$0xff]  }
 0x5e2   :  { %v11430_v35 = vpop.f32.mrf.mxu0  ;;  %11460 = vmatprep.subr.mxu1 %v14447_v19  ;;  %11517 = vmatprep.subr.mxu0 %v14447_v19  ;;  %v14928_v19 = vadd.f32 %v4373_v2, %v4123_v55  ;;  %v4130_v2 = vadd.f32 %v10346_v33, %v3712_v36  ;;  %v5562_v36 = vld [vmem:[#allocation4 + $0x18] sm:$0xff]  ;;  %v11912_v33 = vld [vmem:[%s16926_s4 + $0xf0] sm:$0xff]  }
 0x5e3   :  { %v14917_v54 = vadd.f32 %v11430_v35, %v4126_v22  ;;  %11461 = vmatpush3.msra.mxu1 %v14737_v1  ;;  %11518 = vmatpush3.msra.mxu0 %v14878_v6  ;;  %v4591_v22 = vmul.f32 %v14795_v18, %v14795_v18  ;;  %v4590_v18 = vmul.f32 %v14792_v23, %v14792_v23 }
 0x5e4   :  { %v4376_v41 = vpop.f32.mrf.mxu0  ;;  %11462 = vmatprep.subr.mxu1 %v14924_v26  ;;  %11519 = vmatprep.subr.mxu0 %v14924_v26  ;;  %v4588_v23 = vmul.f32 %v14798_v0, %v14798_v0  ;;  %v4586_v0 = vmul.f32 %v14760_v62, %v14760_v62  ;;  %v4584_v62 = vmul.f32 %v14765_v58, %v14765_v58  ;;  %v5563_v58 = vld [vmem:[#allocation4 + $0x20] sm:$0xff] }
 0x5e5   :  { %v14932_v5 = vpack.c.bf16 %v14917_v54, %v14915_v27  ;;  %v14934_v47 = vadd.f32 %v4376_v41, %v4124_v15  ;;  %11463 = vmatpush3.msra.mxu1 %v14710_v31  ;;  %11520 = vmatpush3.msra.mxu0 %v14833_v51  ;;  %v4443_v41 = vmul.f32 %v14734_v40, %v14734_v40  ;;  %v11914_v40 = vld [vmem:[%s16926_s4 + $0xe8] sm:$0xff]  }
 0x5e6   :  { %v11433_v14 = vpop.f32.mrf.mxu0  ;;  %11464 = vmatprep.subr.mxu1 %v14924_v26  ;;  %11521 = vmatprep.subr.mxu0 %v14924_v26  ;;  %v4438_v1 = vmul.f32 %v14707_v24, %v14707_v24 }
 0x5e7   :  { %17371 = vst [vmem:[#allocation36_spill] sm:$0xff] %v14932_v5  ;;  %v14942_v61 = vpack.c.bf16 %v14934_v47, %v14928_v19  ;;  %11465 = vmatpush3.msra.mxu1 %v14707_v24  ;;  %11522 = vmatpush3.msra.mxu0 %v14830_v34  ;;  %v14958_v30 = vadd.f32 %v11433_v14, %v4129_v57  ;;  %v11919_v24 = vld [vmem:[%s16926_s4 + $0x98] sm:$0xff]  }
 0x5e8   :  { %v4389_v46 = vpop.f32.mrf.mxu0  ;;  %11466 = vmatprep.subr.mxu1 %v14924_v26  ;;  %11523 = vmatprep.subr.mxu0 %v14924_v26  ;;  %v15041_v14 = vpack.c.bf16 %v5563_v58, %v5562_v36  ;;  %v4439_v57 = vmul.f32 %v14710_v31, %v14710_v31  ;;  %v4437_v31 = vmul.f32 %v17374_v7, %v17374_v7  ;;  %v5517_v58 = vld [vmem:[#allocation4 + $0x22] sm:$0xff] }
 0x5e9   :  { %17372 = vst [vmem:[#allocation27_spill] sm:$0xff] %v14942_v61  ;;  %11467 = vmatpush3.msra.mxu1 %v17374_v7  ;;  %11524 = vmatpush3.msra.mxu0 %v14846_v12  ;;  %v14971_v55 = vadd.f32 %v4389_v46, %v4127_v53  ;;  %v4442_v46 = vmul.f32 %v14731_v32, %v14731_v32  ;;  %v11915_v32 = vld [vmem:[%s16926_s4 + $0xa8] sm:$0xff]  }
 0x5ea   :  { %v11434_v42 = vpop.f32.mrf.mxu0  ;;  %11468 = vmatprep.subr.mxu1 %v14924_v26  ;;  %11525 = vmatprep.subr.mxu0 %v14924_v26  ;;  %v4436_v53 = vmul.f32 %v17376_v49, %v17376_v49  ;;  %v4810_v7 = vmul.f32 %v14871_v11, %v14871_v11  ;;  %v11922_v11 = vld [vmem:[%s16926_s4 + $0xc8] sm:$0xff]   ;;  %v4959_v36 = vmul.f32 %v14958_v30, %v14958_v30 }
 0x5eb   :  { %v14960_v10 = vadd.f32 %v11434_v42, %v4130_v2  ;;  %11469 = vmatpush3.msra.mxu1 %v17376_v49  ;;  %11470 = vmatprep.mubr.msk.f32.mxu1 %vm11993_vm0, %v14924_v26  ;;  %v11917_v2 = vld [vmem:[%s16926_s4 + $0xa0] sm:$0xff]   ;;  %v11920_v42 = vld [vmem:[%s16926_s4 + $0xd0] sm:$0xff]   ;;  %v4809_v49 = vmul.f32 %v14868_v9, %v14868_v9  ;;  %v4807_v9 = vmul.f32 %v14878_v6, %v14878_v6 }
 0x5ec   :  { %11526 = vmatpush3.msra.mxu0 %v14840_v21  ;;  %v4392_v43 = vpop.f32.mrf.mxu0  ;;  %11471 = vmatmul.mubr.msk.f32.vlgmr.msra.gmra.mxu1 %vm388_vm1, %v17364_v13  ;;  %v4805_v6 = vmul.f32 %v14830_v34, %v14830_v34 }
 0x5ed   :  { %v14975_v35 = vpack.c.bf16 %v14960_v10, %v14958_v30  ;;  %v14977_v4 = vadd.f32 %v4392_v43, %v4128_v37  ;;  %11473 = vmatprep.subr.mxu1 %v14924_v26  ;;  %11528 = vmatmul.mubr.msk.f32.vlgmr.msra.gmra.mxu0 %vm388_vm1, %v17364_v13  ;;  %v4808_v37 = vmul.f32 %v14884_v3, %v14884_v3  ;;  %v11924_v3 = vld [vmem:[%s16926_s4 + $0xc0] sm:$0xff]  }
 0x5ee   :  { %11549 = vmatprep.subr.mxu0 %v14924_v26  ;;  %11474 = vmatpush3.msra.mxu1 %v4591_v22  ;;  %v11923_v22 = vld [vmem:[%s16926_s4 + $0x88] sm:$0xff]   ;;  %v4806_v43 = vmul.f32 %v14833_v51, %v14833_v51  ;;  %v11942_v51 = vld [vmem:[%s16926_s4 + $0x178] sm:$0xff]  }
 0x5ef   :  { %17378 = vst [vmem:[#allocation33_spill] sm:$0xff] %v14975_v35  ;;  %v14987_v15 = vpack.c.bf16 %v14977_v4, %v14971_v55  ;;  %11550 = vmatpush3.msra.mxu0 %v14960_v10  ;;  %11475 = vmatprep.subr.mxu1 %v14924_v26 }
 0x5f0   :  { %11551 = vmatprep.subr.mxu0 %v14924_v26  ;;  %11476 = vmatpush3.msra.mxu1 %v4590_v18  ;;  %v11925_v18 = vld [vmem:[%s16926_s4 + $0x80] sm:$0xff]  }
 0x5f1   :  { %17379 = vst [vmem:[#allocation40_spill] sm:$0xff] %v14987_v15  ;;  %11552 = vmatpush3.msra.mxu0 %v14958_v30  ;;  %11477 = vmatprep.subr.mxu1 %v14924_v26  ;;  %v4957_v30 = vmul.f32 %v14971_v55, %v14971_v55 }
 0x5f2   :  { %11553 = vmatprep.subr.mxu0 %v14924_v26  ;;  %11478 = vmatpush3.msra.mxu1 %v4589_v50  ;;  %v5514_v50 = vld [vmem:[#allocation4 + $0x2] sm:$0xff] }
 0x5f3   :  { %11554 = vmatpush3.msra.mxu0 %v14977_v4  ;;  %11479 = vmatprep.subr.mxu1 %v14924_v26 }
 0x5f4   :  { %11555 = vmatprep.subr.mxu0 %v14924_v26  ;;  %11480 = vmatpush3.msra.mxu1 %v4588_v23  ;;  %v5515_v23 = vld [vmem:[#allocation4 + $0xa] sm:$0xff] }
 0x5f5   :  { %11556 = vmatpush3.msra.mxu0 %v14971_v55  ;;  %11481 = vmatprep.subr.mxu1 %v14924_v26  ;;  %v5546_v34 = vpack.c.bf16 %v5515_v23, %v5514_v50  ;;  %v11948_v55 = vld [vmem:[%s16926_s4 + $0x160] sm:$0xff]   ;;  %v11953_v23 = vld [vmem:[%s16926_s4 + $0x110] sm:$0xff]  }
 0x5f6   :  { %11557 = vmatprep.subr.mxu0 %v14924_v26  ;;  %11482 = vmatpush3.msra.mxu1 %v4587_v29  ;;  %v4804_v29 = vmul.f32 %v14846_v12, %v14846_v12  ;;  %v11943_v12 = vld [vmem:[%s16926_s4 + $0x138] sm:$0xff]   ;;  %v5571_v50 = vld [vmem:[#allocation4 + $0x80] sm:$0xff] }
 0x5f7   :  { %11558 = vmatpush3.msra.mxu0 %v14917_v54  ;;  %11483 = vmatprep.subr.mxu1 %v14924_v26 }
 0x5f8   :  { %11559 = vmatprep.subr.mxu0 %v14924_v26  ;;  %11484 = vmatpush3.msra.mxu1 %v4586_v0  ;;  %v5564_v0 = vld [vmem:[#allocation4 + $0x30] sm:$0xff] }
 0x5f9   :  { %11560 = vmatpush3.msra.mxu0 %v14915_v27  ;;  %11485 = vmatprep.subr.mxu1 %v14924_v26 }
 0x5fa   :  { %11561 = vmatprep.subr.mxu0 %v14924_v26  ;;  %11486 = vmatpush3.msra.mxu1 %v4585_v48  ;;  %v5565_v48 = vld [vmem:[#allocation4 + $0x38] sm:$0xff] }
 0x5fb   :  { %11562 = vmatpush3.msra.mxu0 %v14934_v47  ;;  %11487 = vmatprep.subr.mxu1 %v14924_v26 }
 0x5fc   :  { %11563 = vmatprep.subr.mxu0 %v14924_v26  ;;  %11488 = vmatpush3.msra.mxu1 %v4584_v62  ;;  %v4803_v62 = vmul.f32 %v14840_v21, %v14840_v21  ;;  %v11944_v21 = vld [vmem:[%s16926_s4 + $0x170] sm:$0xff]  }
 0x5fd   :  { %11564 = vmatpush3.msra.mxu0 %v14928_v19  ;;  %11565 = vmatprep.mubr.msk.f32.mxu0 %vm11993_vm0, %v14924_v26 }
 0x5fe   :  { %11489 = vmatprep.mubr.msk.f32.mxu1 %vm11993_vm0, %v14924_v26  ;;  %11492 = vmatprep.subr.mxu1 %v14924_v26 }
 0x5ff   :  { %11566 = vmatmul.mubr.msk.f32.vlgmr.msra.gmra.mxu0 %vm388_vm1, %v17364_v13  ;;  %10443 = vmatprep.subr.bf16.mxu0 %v11910_v44  ;;  %v15139_v44 = vpack.c.bf16 %v5565_v48, %v5564_v0  ;;  %v11932_v48 = vld [vmem:[%s16926_s4 + $0x60] sm:$0xff]  }
 0x600   :  { %11490 = vmatmul.mubr.msk.f32.vlgmr.msra.gmra.mxu1 %vm388_vm1, %v17364_v13  ;;  %10444 = vmatpush3.bf16.msra.mxu0 %v11911_v39  ;;  %v4960_v39 = vmul.f32 %v14960_v10, %v14960_v10  ;;  %v5516_v10 = vld [vmem:[#allocation4 + $0x1a] sm:$0xff] }
 0x601   :  { %11493 = vmatpush3.msra.mxu1 %v4443_v41  ;;  %5770 = vmatprep.mubr.bf16.mxu0 %v15041_v14  ;;  %v4958_v41 = vmul.f32 %v14977_v4, %v14977_v4  ;;  %v11947_v4 = vld [vmem:[%s16926_s4 + $0x128] sm:$0xff]  }
 0x602   :  { %11494 = vmatprep.subr.mxu1 %v14924_v26  ;;  %10445 = vmatprep.subr.bf16.mxu0 %v11912_v33  ;;  %v11945_v33 = vld [vmem:[%s16926_s4 + $0x130] sm:$0xff]  }
 0x603   :  { %11495 = vmatpush3.msra.mxu1 %v4442_v46  ;;  %11508 = vmatprep.mubr.msk.f32.mxu1 %vm11993_vm0, %v14924_v26  ;;  %v5567_v46 = vld [vmem:[#allocation4 + $0x50] sm:$0xff] }
 0x604   :  { %11496 = vmatprep.subr.mxu1 %v14924_v26  ;;  %10446 = vmatpush3.bf16.msra.mxu0 %v11913_v45  ;;  %v5566_v45 = vld [vmem:[#allocation4 + $0x48] sm:$0xff] }
 0x605   :  { %11497 = vmatpush3.msra.mxu1 %v4441_v38  ;;  %10447 = vmatprep.subr.bf16.mxu0 %v11914_v40  ;;  %v15166_v40 = vpack.c.bf16 %v5517_v58, %v5516_v10  ;;  %v11946_v38 = vld [vmem:[%s16926_s4 + $0x168] sm:$0xff]   ;;  %v11934_v10 = vld [vmem:[%s16926_s4 + $0x58] sm:$0xff]   ;;  %v5572_v58 = vld [vmem:[#allocation4 + $0x90] sm:$0xff] }
 0x606   :  { %11498 = vmatprep.subr.mxu1 %v14924_v26 }
 0x607   :  { %11499 = vmatpush3.msra.mxu1 %v4440_v16  ;;  %v4956_v16 = vmul.f32 %v14917_v54, %v14917_v54  ;;  %v5519_v54 = vld [vmem:[#allocation4 + $0x3a] sm:$0xff] }
 0x608   :  { %11500 = vmatprep.subr.mxu1 %v14924_v26  ;;  %10448 = vmatpush3.bf16.msra.mxu0 %v11915_v32  ;;  %v15172_v32 = vpack.c.bf16 %v5567_v46, %v5566_v45  ;;  %v11935_v46 = vld [vmem:[%s16926_s4 + $0x18] sm:$0xff]  }
 0x609   :  { %11501 = vmatpush3.msra.mxu1 %v4439_v57  ;;  %10449 = vmatprep.subr.bf16.mxu0 %v11916_v17  ;;  %v4955_v17 = vmul.f32 %v14915_v27, %v14915_v27  ;;  %v5518_v57 = vld [vmem:[#allocation4 + $0x32] sm:$0xff] }
 0x60a   :  { %11502 = vmatprep.subr.mxu1 %v14924_v26  ;;  %v11926_v27 = vld [vmem:[%s16926_s4 + $0x78] sm:$0xff]  }
 0x60b   :  { %11503 = vmatpush3.msra.mxu1 %v4438_v1  ;;  %v4954_v1 = vmul.f32 %v14934_v47, %v14934_v47  ;;  %v11927_v47 = vld [vmem:[%s16926_s4 + $0x38] sm:$0xff]  }
 0x60c   :  { %11504 = vmatprep.subr.mxu1 %v14924_v26  ;;  %10450 = vmatpush3.bf16.msra.mxu0 %v11917_v2  ;;  %v11949_v2 = vld [vmem:[%s16926_s4 + $0x120] sm:$0xff]  }
 0x60d   :  { %11505 = vmatpush3.msra.mxu1 %v4437_v31  ;;  %10451 = vmatprep.subr.bf16.mxu0 %v11918_v8  ;;  %v5434_v8 = vld [vmem:[#allocation4 + $0x1] sm:$0xff]  ;;  %v5435_v31 = vld [vmem:[#allocation4 + $0x9] sm:$0xff] }
 0x60e   :  { %11506 = vmatprep.subr.mxu1 %v14924_v26 }
 0x60f   :  { %11507 = vmatpush3.msra.mxu1 %v4436_v53  ;;  %v5568_v53 = vld [vmem:[#allocation4 + $0x60] sm:$0xff] }
 0x610   :  { %11530 = vmatprep.subr.mxu1 %v14924_v26  ;;  %11509 = vmatmul.mubr.msk.f32.vlgmr.msra.gmra.mxu1 %vm388_vm1, %v17364_v13 }
 0x611   :  { %11531 = vmatpush3.msra.mxu1 %v4810_v7  ;;  %10452 = vmatpush3.bf16.msra.mxu0 %v11919_v24  ;;  %v5569_v24 = vld [vmem:[#allocation4 + $0x68] sm:$0xff]  ;;  %v15199_v7 = vpack.c.bf16 %v5519_v54, %v5518_v57  ;;  %v5575_v54 = vld [vmem:[#allocation4 + $0xb0] sm:$0xff] }
 0x612   :  { %11532 = vmatprep.subr.mxu1 %v14924_v26  ;;  %10453 = vmatprep.subr.bf16.mxu0 %v11920_v42  ;;  %v4953_v42 = vmul.f32 %v14928_v19, %v14928_v19  ;;  %v11950_v19 = vld [vmem:[%s16926_s4 + $0x158] sm:$0xff]   ;;  %v5574_v57 = vld [vmem:[#allocation4 + $0xa8] sm:$0xff] }
 0x613   :  { %11533 = vmatpush3.msra.mxu1 %v4809_v49  ;;  %11546 = vmatprep.mubr.msk.f32.mxu1 %vm11993_vm0, %v14924_v26  ;;  %v11928_v49 = vld [vmem:[%s16926_s4 + $0x70] sm:$0xff]  }
 0x614   :  { %11534 = vmatprep.subr.mxu1 %v14924_v26 }
 0x615   :  { %11535 = vmatpush3.msra.mxu1 %v4808_v37  ;;  %10454 = vmatpush3.bf16.msra.mxu0 %v11921_v25  ;;  %v5466_v25 = vpack.c.bf16 %v5435_v31, %v5434_v8  ;;  %v11951_v37 = vld [vmem:[%s16926_s4 + $0x118] sm:$0xff]   ;;  %v15285_v8 = vpack.c.bf16 %v5575_v54, %v5574_v57  ;;  %v11940_v31 = vld [vmem:[%s16926_s4 + $0x40] sm:$0xff]  }
 0x616   :  { %11536 = vmatprep.subr.mxu1 %v14924_v26  ;;  %10455 = vmatprep.subr.bf16.mxu0 %v11922_v11  ;;  %v15209_v11 = vpack.c.bf16 %v5569_v24, %v5568_v53  ;;  %v5526_v53 = vld [vmem:[#allocation4 + $0x92] sm:$0xff]  ;;  %v5527_v24 = vld [vmem:[#allocation4 + $0x9a] sm:$0xff] }
 0x617   :  { %11537 = vmatpush3.msra.mxu1 %v4807_v9  ;;  %v11929_v9 = vld [vmem:[%s16926_s4 + $0x30] sm:$0xff]   ;;  %v11967_v57 = vld [vmem:[%s16926_s4 + $0x198] sm:$0xff]  }
 0x618   :  { %11538 = vmatprep.subr.mxu1 %v14924_v26 }
 0x619   :  { %11539 = vmatpush3.msra.mxu1 %v4806_v43  ;;  %10456 = vmatpush3.bf16.msra.mxu0 %v11923_v22  ;;  %v11952_v22 = vld [vmem:[%s16926_s4 + $0x150] sm:$0xff]  }
 0x61a   :  { %11540 = vmatprep.subr.mxu1 %v14924_v26  ;;  %10457 = vmatprep.subr.bf16.mxu0 %v11924_v3  ;;  %v5520_v3 = vld [vmem:[#allocation4 + $0x4a] sm:$0xff]  ;;  %v5521_v43 = vld [vmem:[#allocation4 + $0x52] sm:$0xff] }
 0x61b   :  { %11541 = vmatpush3.msra.mxu1 %v4805_v6  ;;  %v11930_v6 = vld [vmem:[%s16926_s4 + $0x68] sm:$0xff]  }
 0x61c   :  { %11542 = vmatprep.subr.mxu1 %v14924_v26 }
 0x61d   :  { %11543 = vmatpush3.msra.mxu1 %v4804_v29  ;;  %10458 = vmatpush3.bf16.msra.mxu0 %v11925_v18  ;;  %v5570_v18 = vld [vmem:[#allocation4 + $0x78] sm:$0xff]  ;;  %v11931_v29 = vld [vmem:[%s16926_s4 + $0x28] sm:$0xff]  }
 0x61e   :  { %11544 = vmatprep.subr.mxu1 %v14924_v26  ;;  %10667 = vmatprep.subr.bf16.mxu0 %v11942_v51  ;;  %v15232_v51 = vpack.c.bf16 %v5521_v43, %v5520_v3  ;;  %v15240_v0 = vpack.c.bf16 %v5571_v50, %v5570_v18  ;;  %v11960_v43 = vld [vmem:[%s16926_s4 + $0x1f0] sm:$0xff]  }
 0x61f   :  { %11545 = vmatpush3.msra.mxu1 %v4803_v62  ;;  %v11955_v62 = vld [vmem:[%s16926_s4 + $0x108] sm:$0xff]   ;;  %v11961_v18 = vld [vmem:[%s16926_s4 + $0x1b0] sm:$0xff]  }
 0x620   :  { %11568 = vmatprep.subr.mxu1 %v14924_v26  ;;  %5771 = vmatmul.mubr.bf16.vlgmr.msra.gmra.mxu0 %v5546_v34  ;;  %v11954_v34 = vld [vmem:[%s16926_s4 + $0x148] sm:$0xff]  }
 0x621   :  { %11547 = vmatmul.mubr.msk.f32.vlgmr.msra.gmra.mxu1 %vm388_vm1, %v17364_v13  ;;  %5778 = vmatprep.mubr.bf16.mxu0 %v15139_v44  ;;  %v5528_v50 = vld [vmem:[#allocation4 + $0xaa] sm:$0xff] }
 0x622   :  { %11569 = vmatpush3.msra.mxu1 %v4960_v39  ;;  %11584 = vmatprep.mubr.msk.f32.mxu1 %vm11993_vm0, %v14924_v26  ;;  %v11956_v39 = vld [vmem:[%s16926_s4 + $0x140] sm:$0xff]  }
 0x623   :  { %11570 = vmatprep.subr.mxu1 %v14924_v26  ;;  %10668 = vmatpush3.bf16.msra.mxu0 %v11943_v12  ;;  %v11933_v12 = vld [vmem:[%s16926_s4 + $0x20] sm:$0xff]  }
 0x624   :  { %11571 = vmatpush3.msra.mxu1 %v4959_v36  ;;  %10669 = vmatprep.subr.bf16.mxu0 %v11944_v21  ;;  %v5522_v21 = vld [vmem:[#allocation4 + $0x62] sm:$0xff]  ;;  %v5523_v36 = vld [vmem:[#allocation4 + $0x6a] sm:$0xff] }
 0x625   :  { %11572 = vmatprep.subr.mxu1 %v14924_v26  ;;  %v15262_v45 = vpack.c.bf16 %v5523_v36, %v5522_v21  ;;  %v11963_v21 = vld [vmem:[%s16926_s4 + $0x1a8] sm:$0xff]  }
 0x626   :  { %11573 = vmatpush3.msra.mxu1 %v4958_v41  ;;  %v11957_v41 = vld [vmem:[%s16926_s4 + $0x100] sm:$0xff]  }
 0x627   :  { %11574 = vmatprep.subr.mxu1 %v14924_v26  ;;  %10670 = vmatpush3.bf16.msra.mxu0 %v11945_v33  ;;  %v5573_v33 = vld [vmem:[#allocation4 + $0x98] sm:$0xff] }
 0x628   :  { %11575 = vmatpush3.msra.mxu1 %v4957_v30  ;;  %5779 = vmatmul.mubr.bf16.gmra.mxu0 %v15166_v40  ;;  %v15267_v30 = vpack.c.bf16 %v5573_v33, %v5572_v58  ;;  %v11965_v33 = vld [vmem:[%s16926_s4 + $0x1a0] sm:$0xff]  }
 0x629   :  { %11576 = vmatprep.subr.mxu1 %v14924_v26  ;;  %5786 = vmatprep.mubr.bf16.mxu0 %v15172_v32 }
 0x62a   :  { %11577 = vmatpush3.msra.mxu1 %v4956_v16  ;;  %10671 = vmatprep.subr.bf16.mxu0 %v11946_v38  ;;  %v11936_v38 = vld [vmem:[%s16926_s4 + $0x50] sm:$0xff]   ;;  %v5524_v16 = vld [vmem:[#allocation4 + $0x7a] sm:$0xff] }
 0x62b   :  { %11578 = vmatprep.subr.mxu1 %v14924_v26  ;;  %10672 = vmatpush3.bf16.msra.mxu0 %v11947_v4  ;;  %v11937_v4 = vld [vmem:[%s16926_s4 + $0x10] sm:$0xff]  }
 0x62c   :  { %11579 = vmatpush3.msra.mxu1 %v4955_v17  ;;  %10673 = vmatprep.subr.bf16.mxu0 %v11948_v55  ;;  %v5525_v55 = vld [vmem:[#allocation4 + $0x82] sm:$0xff] }
 0x62d   :  { %11580 = vmatprep.subr.mxu1 %v14924_v26  ;;  %v11938_v17 = vld [vmem:[%s16926_s4 + $0x48] sm:$0xff]  }
 0x62e   :  { %11581 = vmatpush3.msra.mxu1 %v4954_v1  ;;  %v11939_v1 = vld [vmem:[%s16926_s4 + $0x8] sm:$0xff]  }
 0x62f   :  { %11582 = vmatprep.subr.mxu1 %v14924_v26  ;;  %10674 = vmatpush3.bf16.msra.mxu0 %v11949_v2  ;;  %v15280_v2 = vpack.c.bf16 %v5525_v55, %v5524_v16  ;;  %v5581_v16 = vld [vmem:[#allocation4 + $0xf8] sm:$0xff]  ;;  %v5440_v55 = vld [vmem:[#allocation4 + $0x49] sm:$0xff] }
 0x630   :  { %11583 = vmatpush3.msra.mxu1 %v4953_v42  ;;  %5787 = vmatmul.mubr.bf16.gmra.mxu0 %v15199_v7  ;;  %v11958_v42 = vld [vmem:[%s16926_s4 + $0x1f8] sm:$0xff]  }
 0x631   :  { %11585 = vmatmul.mubr.msk.f32.vlgmr.msra.gmra.mxu1 %vm388_vm1, %v17364_v13  ;;  %10555 = vmatprep.subr.bf16.mxu1 %v11926_v27  ;;  %v11941_v27 = vld [vmem:[%s16926_s4] sm:$0xff]  }
 0x632   :  { %5794 = vmatprep.mubr.bf16.mxu0 %v15209_v11  ;;  %10556 = vmatpush3.bf16.msra.mxu1 %v11927_v47  ;;  %v5576_v47 = vld [vmem:[#allocation4 + $0xc0] sm:$0xff] }
 0x633   :  { %10557 = vmatprep.subr.bf16.mxu1 %v11928_v49  ;;  %6027 = vmatprep.mubr.bf16.mxu1 %v5466_v25  ;;  %v5577_v49 = vld [vmem:[#allocation4 + $0xc8] sm:$0xff]  ;;  %v5418_v25 = vpack.c.bf16 %v14924_v26, %v14924_v26 }
 0x634   :  { %10675 = vmatprep.subr.bf16.mxu0 %v11950_v19  ;;  %v5436_v19 = vld [vmem:[#allocation4 + $0x19] sm:$0xff]  ;;  %v15305_v3 = vpack.c.bf16 %v5577_v49, %v5576_v47  ;;  %v5582_v47 = vld [vmem:[#allocation4 + $0x108] sm:$0xff]  ;;  %v5583_v49 = vld [vmem:[#allocation4 + $0x110] sm:$0xff] }
 0x635   :  { %10676 = vmatpush3.bf16.msra.mxu0 %v11951_v37  ;;  %v5437_v37 = vld [vmem:[#allocation4 + $0x21] sm:$0xff] }
 0x636   :  { %10558 = vmatpush3.bf16.msra.mxu1 %v11929_v9  ;;  %10677 = vmatprep.subr.bf16.mxu0 %v11952_v22  ;;  %v15300_v9 = vpack.c.bf16 %v5527_v24, %v5526_v53  ;;  %v11959_v22 = vld [vmem:[%s16926_s4 + $0x1b8] sm:$0xff]   ;;  %v5533_v24 = vld [vmem:[#allocation4 + $0xe2] sm:$0xff] }
 0x637   :  { %10559 = vmatprep.subr.bf16.mxu1 %v11930_v6  ;;  %v15311_v6 = vpack.c.bf16 %v5437_v37, %v5436_v19  ;;  %v5532_v53 = vld [vmem:[#allocation4 + $0xda] sm:$0xff]  ;;  %v11971_v37 = vld [vmem:[%s16926_s4 + $0x188] sm:$0xff]  }
 0x638   :  { %5795 = vmatmul.mubr.bf16.gmra.mxu0 %v15232_v51  ;;  %v15365_v19 = vpack.c.bf16 %v5533_v24, %v5532_v53  ;;  %v5448_v53 = vld [vmem:[#allocation4 + $0xa9] sm:$0xff]  ;;  %v5449_v24 = vld [vmem:[#allocation4 + $0xb1] sm:$0xff] }
 0x639   :  { %5802 = vmatprep.mubr.bf16.mxu0 %v15240_v0  ;;  %10678 = vmatpush3.bf16.msra.mxu0 %v11953_v23  ;;  %v5529_v23 = vld [vmem:[#allocation4 + $0xb2] sm:$0xff] }
 0x63a   :  { %10560 = vmatpush3.bf16.msra.mxu1 %v11931_v29  ;;  %10679 = vmatprep.subr.bf16.mxu0 %v11954_v34  ;;  %v11962_v29 = vld [vmem:[%s16926_s4 + $0x1e8] sm:$0xff]   ;;  %v5578_v34 = vld [vmem:[#allocation4 + $0xd8] sm:$0xff] }
 0x63b   :  { %10561 = vmatprep.subr.bf16.mxu1 %v11932_v48  ;;  %v5579_v48 = vld [vmem:[#allocation4 + $0xe0] sm:$0xff] }
 0x63c   :  { %v15326_v36 = vpack.c.bf16 %v5579_v48, %v5578_v34  ;;  %v5584_v34 = vld [vmem:[#allocation4 + $0x120] sm:$0xff]  ;;  %v5585_v48 = vld [vmem:[#allocation4 + $0x128] sm:$0xff] }
 0x63d   :  { %10680 = vmatpush3.bf16.msra.mxu0 %v11955_v62  ;;  %v5438_v62 = vld [vmem:[#allocation4 + $0x31] sm:$0xff] }
 0x63e   :  { %10562 = vmatpush3.bf16.msra.mxu1 %v11933_v12  ;;  %10681 = vmatprep.subr.bf16.mxu0 %v11956_v39  ;;  %v5439_v12 = vld [vmem:[#allocation4 + $0x39] sm:$0xff]  ;;  %v15321_v39 = vpack.c.bf16 %v5529_v23, %v5528_v50 }
 0x63f   :  { %10563 = vmatprep.subr.bf16.mxu1 %v11934_v10  ;;  %v11964_v10 = vld [vmem:[%s16926_s4 + $0x1e0] sm:$0xff]   ;;  %v15332_v58 = vpack.c.bf16 %v5439_v12, %v5438_v62  ;;  %v5534_v23 = vld [vmem:[#allocation4 + $0xf2] sm:$0xff] }
 0x640   :  { %5803 = vmatmul.mubr.bf16.gmra.mxu0 %v15262_v45  ;;  %v11973_v50 = vld [vmem:[%s16926_s4 + $0x180] sm:$0xff]  }
 0x641   :  { %5810 = vmatprep.mubr.bf16.mxu0 %v15267_v30  ;;  %10682 = vmatpush3.bf16.msra.mxu0 %v11957_v41  ;;  %v5530_v41 = vld [vmem:[#allocation4 + $0xc2] sm:$0xff]  ;;  %v5444_v62 = vld [vmem:[#allocation4 + $0x79] sm:$0xff] }
 0x642   :  { %10564 = vmatpush3.bf16.msra.mxu1 %v11935_v46  ;;  %v5531_v46 = vld [vmem:[#allocation4 + $0xca] sm:$0xff]  ;;  %v5445_v12 = vld [vmem:[#allocation4 + $0x81] sm:$0xff] }
 0x643   :  { %10565 = vmatprep.subr.bf16.mxu1 %v11936_v38  ;;  %v11966_v38 = vld [vmem:[%s16926_s4 + $0x1d8] sm:$0xff]  }
 0x646   :  { %10566 = vmatpush3.bf16.msra.mxu1 %v11937_v4  ;;  %v5580_v4 = vld [vmem:[#allocation4 + $0xf0] sm:$0xff] }
 0x647   :  { %10567 = vmatprep.subr.bf16.mxu1 %v11938_v17  ;;  %v15343_v17 = vpack.c.bf16 %v5531_v46, %v5530_v41  ;;  %v15348_v54 = vpack.c.bf16 %v5581_v16, %v5580_v4  ;;  %v5537_v41 = vld [vmem:[#allocation4 + $0x112] sm:$0xff] }
 0x648   :  { %5811 = vmatmul.mubr.bf16.gmra.mxu0 %v15280_v2  ;;  %v5586_v46 = vld [vmem:[#allocation4 + $0x138] sm:$0xff] }
 0x649   :  { %5818 = vmatprep.mubr.bf16.mxu0 %v15285_v8  ;;  %v5446_v4 = vld [vmem:[#allocation4 + $0x91] sm:$0xff]  ;;  %v5447_v16 = vld [vmem:[#allocation4 + $0x99] sm:$0xff] }
 0x64a   :  { %10568 = vmatpush3.bf16.msra.mxu1 %v11939_v1  ;;  %v11968_v1 = vld [vmem:[%s16926_s4 + $0x1d0] sm:$0xff]  }
 0x64b   :  { %10569 = vmatprep.subr.bf16.mxu1 %v11940_v31 }
 0x64e   :  { %10570 = vmatpush3.bf16.msra.mxu1 %v11941_v27  ;;  %v11969_v27 = vld [vmem:[%s16926_s4 + $0x190] sm:$0xff]  }
 0x64f   :  { %10779 = vmatprep.subr.bf16.mxu1 %v11958_v42  ;;  %v11970_v42 = vld [vmem:[%s16926_s4 + $0x1c8] sm:$0xff]  }
 0x650   :  { %5819 = vmatmul.mubr.bf16.gmra.mxu0 %v15300_v9 }
 0x651   :  { %6028 = vmatmul.mubr.bf16.vlgmr.msra.gmra.mxu1 %v5418_v25  ;;  %5826 = vmatprep.mubr.bf16.mxu0 %v15305_v3  ;;  %v5442_v25 = vld [vmem:[#allocation4 + $0x61] sm:$0xff] }
 0x652   :  { %6035 = vmatprep.mubr.bf16.mxu1 %v15311_v6  ;;  %10780 = vmatpush3.bf16.msra.mxu1 %v11959_v22  ;;  %v15370_v22 = vpack.c.bf16 %v5583_v49, %v5582_v47  ;;  %v15410_v49 = vpack.c.bf16 %v5449_v24, %v5448_v53  ;;  %v5456_v24 = vld [vmem:[#allocation4 + $0x109] sm:$0xff] }
 0x653   :  { %10781 = vmatprep.subr.bf16.mxu1 %v11960_v43  ;;  %v11972_v43 = vld [vmem:[%s16926_s4 + $0x1c0] sm:$0xff]  }
 0x656   :  { %10782 = vmatpush3.bf16.msra.mxu1 %v11961_v18 }
 0x657   :  { %10783 = vmatprep.subr.bf16.mxu1 %v11962_v29  ;;  %v5535_v29 = vld [vmem:[#allocation4 + $0xfa] sm:$0xff] }
 0x658   :  { %5827 = vmatmul.mubr.bf16.gmra.mxu0 %v15321_v39 }
 0x659   :  { %6036 = vmatmul.mubr.bf16.gmra.mxu1 %v15041_v14  ;;  %5834 = vmatprep.mubr.bf16.mxu0 %v15326_v36  ;;  %v5441_v14 = vld [vmem:[#allocation4 + $0x51] sm:$0xff] }
 0x65a   :  { %6043 = vmatprep.mubr.bf16.mxu1 %v15332_v58  ;;  %10784 = vmatpush3.bf16.msra.mxu1 %v11963_v21  ;;  %v15354_v31 = vpack.c.bf16 %v5441_v14, %v5440_v55  ;;  %v15384_v21 = vpack.c.bf16 %v5535_v29, %v5534_v23  ;;  %v5451_v23 = vld [vmem:[#allocation4 + $0xc9] sm:$0xff] }
 0x65b   :  { %10785 = vmatprep.subr.bf16.mxu1 %v11964_v10  ;;  %v15390_v10 = vpack.c.bf16 %v5445_v12, %v5444_v62  ;;  %v5543_v62 = vld [vmem:[#allocation4 + $0x15a] sm:$0xff] }
 0x65c   :  { %v5592_v12 = vld [vmem:[#allocation4 + $0x180] sm:$0xff] }
 0x65e   :  { %10786 = vmatpush3.bf16.msra.mxu1 %v11965_v33  ;;  %v5536_v33 = vld [vmem:[#allocation4 + $0x10a] sm:$0xff] }
 0x65f   :  { %10787 = vmatprep.subr.bf16.mxu1 %v11966_v38  ;;  %v5587_v38 = vld [vmem:[#allocation4 + $0x140] sm:$0xff]  ;;  %v15395_v55 = vpack.c.bf16 %v5537_v41, %v5536_v33  ;;  %v5593_v33 = vld [vmem:[#allocation4 + $0x188] sm:$0xff] }
 0x660   :  { %5835 = vmatmul.mubr.bf16.gmra.mxu0 %v15343_v17  ;;  %v15397_v14 = vpack.c.bf16 %v5587_v38, %v5586_v46  ;;  %v5452_v41 = vld [vmem:[#allocation4 + $0xd9] sm:$0xff]  ;;  %v5453_v46 = vld [vmem:[#allocation4 + $0xe1] sm:$0xff] }
 0x661   :  { %6044 = vmatmul.mubr.bf16.gmra.mxu1 %v15139_v44  ;;  %5842 = vmatprep.mubr.bf16.mxu0 %v15348_v54  ;;  %v5443_v44 = vld [vmem:[#allocation4 + $0x69] sm:$0xff] }
 0x662   :  { %6051 = vmatprep.mubr.bf16.mxu1 %v15354_v31  ;;  %10788 = vmatpush3.bf16.msra.mxu1 %v11967_v57  ;;  %v15376_v18 = vpack.c.bf16 %v5443_v44, %v5442_v25  ;;  %v5539_v57 = vld [vmem:[#allocation4 + $0x12a] sm:$0xff]  ;;  %v5540_v25 = vld [vmem:[#allocation4 + $0x13a] sm:$0xff]  ;;  %v5541_v44 = vld [vmem:[#allocation4 + $0x142] sm:$0xff] }
 0x663   :  { %10789 = vmatprep.subr.bf16.mxu1 %v11968_v1  ;;  %v5588_v1 = vld [vmem:[#allocation4 + $0x150] sm:$0xff]  ;;  %v15418_v29 = vpack.c.bf16 %v5541_v44, %v5540_v25 }
 0x664   :  { %v5457_v25 = vld [vmem:[#allocation4 + $0x111] sm:$0xff] }
 0x666   :  { %10790 = vmatpush3.bf16.msra.mxu1 %v11969_v27  ;;  %v5589_v27 = vld [vmem:[#allocation4 + $0x158] sm:$0xff] }
 0x667   :  { %10791 = vmatprep.subr.bf16.mxu1 %v11970_v42  ;;  %v15407_v47 = vpack.c.bf16 %v5589_v27, %v5588_v1  ;;  %v5455_v1 = vld [vmem:[#allocation4 + $0xf9] sm:$0xff] }
 0x668   :  { %5843 = vmatmul.mubr.bf16.gmra.mxu0 %v15365_v19 }
 0x669   :  { %6052 = vmatmul.mubr.bf16.gmra.mxu1 %v15172_v32  ;;  %5850 = vmatprep.mubr.bf16.mxu0 %v15370_v22  ;;  %v15386_v32 = vpack.c.bf16 %v5585_v48, %v5584_v34  ;;  %v5542_v48 = vld [vmem:[#allocation4 + $0x152] sm:$0xff] }
 0x66a   :  { %6059 = vmatprep.mubr.bf16.mxu1 %v15376_v18  ;;  %10792 = vmatpush3.bf16.msra.mxu1 %v11971_v37  ;;  %v5590_v37 = vld [vmem:[#allocation4 + $0x168] sm:$0xff]  ;;  %v15428_v38 = vpack.c.bf16 %v5543_v62, %v5542_v48  ;;  %v5460_v62 = vld [vmem:[#allocation4 + $0x139] sm:$0xff] }
 0x66b   :  { %10793 = vmatprep.subr.bf16.mxu1 %v11972_v43  ;;  %v5591_v43 = vld [vmem:[#allocation4 + $0x170] sm:$0xff] }
 0x66c   :  { %v15420_v34 = vpack.c.bf16 %v5591_v43, %v5590_v37  ;;  %v11975_v37 = vld [vmem:[%s16926_s4 + $0x230] sm:$0xff]   ;;  %v15447_v43 = vpack.c.bf16 %v5457_v25, %v5456_v24  ;;  %v15488_v24 = vld [vmem:[#allocation4] sm:$0xff] }
 0x66e   :  { %10794 = vmatpush3.bf16.msra.mxu1 %v11973_v50  ;;  %v5450_v50 = vld [vmem:[#allocation4 + $0xc1] sm:$0xff] }
 0x66f   :  { %11635 = vmatprep.subr.mxu1 %v14924_v26  ;;  %v15400_v26 = vpack.c.bf16 %v5447_v16, %v5446_v4  ;;  %v5609_v4 = vpack.c.bf16 %v5593_v33, %v5592_v12  ;;  %v15431_v16 = vpack.c.bf16 %v5453_v46, %v5452_v41  ;;  %v5461_v12 = vld [vmem:[#allocation4 + $0x141] sm:$0xff] }
 0x670   :  { %5851 = vmatmul.mubr.bf16.gmra.mxu0 %v15384_v21 }
 0x671   :  { %6060 = vmatmul.mubr.bf16.gmra.mxu1 %v15209_v11  ;;  %5858 = vmatprep.mubr.bf16.mxu0 %v15386_v32  ;;  %v5538_v11 = vld [vmem:[#allocation4 + $0x122] sm:$0xff] }
 0x672   :  { %6067 = vmatprep.mubr.bf16.mxu1 %v15390_v10  ;;  %v15405_v42 = vpack.c.bf16 %v5539_v57, %v5538_v11  ;;  %v5545_v11 = vld [vmem:[#allocation4 + $0x172] sm:$0xff] }
 0x673   :  { %v5454_v57 = vld [vmem:[#allocation4 + $0xf1] sm:$0xff] }
 0x674   :  { %v15438_v53 = vpack.c.bf16 %v5455_v1, %v5454_v57  ;;  %v11981_v57 = vld [vmem:[%s16926_s4 + $0x200] sm:$0xff]   ;;  %v5465_v1 = vld [vmem:[#allocation4 + $0x171] sm:$0xff] }
 0x678   :  { %5859 = vmatmul.mubr.bf16.gmra.mxu0 %v15395_v55 }
 0x679   :  { %6068 = vmatmul.mubr.bf16.gmra.mxu1 %v15240_v0  ;;  %5866 = vmatprep.mubr.bf16.mxu0 %v15397_v14  ;;  %v11974_v0 = vld [vmem:[%s16926_s4 + $0x238] sm:$0xff]  }
 0x67a   :  { %6075 = vmatprep.mubr.bf16.mxu1 %v15400_v26  ;;  %11587 = vmatprep.subr.bf16.mxu0 %v11974_v0 }
 0x680   :  { %5867 = vmatmul.mubr.bf16.gmra.mxu0 %v15405_v42 }
 0x681   :  { %6076 = vmatmul.mubr.bf16.gmra.mxu1 %v15267_v30  ;;  %5874 = vmatprep.mubr.bf16.mxu0 %v15407_v47  ;;  %v15423_v30 = vpack.c.bf16 %v5451_v23, %v5450_v50  ;;  %v5459_v50 = vld [vmem:[#allocation4 + $0x129] sm:$0xff] }
 0x682   :  { %6083 = vmatprep.mubr.bf16.mxu1 %v15410_v49 }
 0x688   :  { %5875 = vmatmul.mubr.bf16.gmra.mxu0 %v15418_v29 }
 0x689   :  { %6084 = vmatmul.mubr.bf16.gmra.mxu1 %v15285_v8  ;;  %5882 = vmatprep.mubr.bf16.mxu0 %v15420_v34  ;;  %v5544_v8 = vld [vmem:[#allocation4 + $0x16a] sm:$0xff] }
 0x68a   :  { %6091 = vmatprep.mubr.bf16.mxu1 %v15423_v30  ;;  %v15435_v27 = vpack.c.bf16 %v5545_v11, %v5544_v8  ;;  %v5462_v8 = vld [vmem:[#allocation4 + $0x151] sm:$0xff]  ;;  %v5463_v11 = vld [vmem:[#allocation4 + $0x159] sm:$0xff] }
 0x690   :  { %5883 = vmatmul.mubr.bf16.gmra.mxu0 %v15428_v38 }
 0x691   :  { %6092 = vmatmul.mubr.bf16.gmra.mxu1 %v15305_v3  ;;  %5890 = vmatprep.mubr.bf16.mxu0 %v5609_v4  ;;  %v11980_v4 = vld [vmem:[%s16926_s4 + $0x208] sm:$0xff]  }
 0x692   :  { %6099 = vmatprep.mubr.bf16.mxu1 %v15431_v16 }
 0x698   :  { %5891 = vmatmul.mubr.bf16.gmra.mxu0 %v15435_v27 }
 0x699   :  { %6100 = vmatmul.mubr.bf16.gmra.mxu1 %v15326_v36  ;;  %6412 = vmatprep.mubr.bf16.mxu0 %v15166_v40  ;;  %v11976_v40 = vld [vmem:[%s16926_s4 + $0x228] sm:$0xff]  }
 0x69a   :  { %6107 = vmatprep.mubr.bf16.mxu1 %v15438_v53  ;;  %v5458_v36 = vld [vmem:[#allocation4 + $0x121] sm:$0xff] }
 0x69c   :  { %v4510_v3 = vpop.f32.mrf.mxu1 }
 0x69e   :  { %v11453_v44 = vpop.f32.mrf.mxu1 }
 0x6a0   :  { %6413 = vmatmul.mubr.bf16.vlgmr.msra.gmra.mxu0 %v15311_v6  ;;  %v11977_v6 = vld [vmem:[%s16926_s4 + $0x220] sm:$0xff]  }
 0x6a1   :  { %6108 = vmatmul.mubr.bf16.gmra.mxu1 %v15348_v54  ;;  %6420 = vmatprep.mubr.bf16.mxu0 %v15199_v7  ;;  %v15459_v54 = vpack.c.bf16 %v5459_v50, %v5458_v36  ;;  %v11978_v7 = vld [vmem:[%s16926_s4 + $0x218] sm:$0xff]  }
 0x6a2   :  { %6115 = vmatprep.mubr.bf16.mxu1 %v15447_v43  ;;  %11588 = vmatpush3.bf16.msra.mxu0 %v11974_v0  ;;  %v6574_v36 = vld [vmem:[#allocation4 + $0x38] sm:$0xff] }
 0x6a3   :  { %11589 = vmatprep.subr.bf16.mxu0 %v11975_v37 }
 0x6a6   :  { %11590 = vmatpush3.bf16.msra.mxu0 %v11975_v37 }
 0x6a7   :  { %11591 = vmatprep.subr.bf16.mxu0 %v11976_v40 }
 0x6a8   :  { %6421 = vmatmul.mubr.bf16.gmra.mxu0 %v15332_v58 }
 0x6a9   :  { %6116 = vmatmul.mubr.bf16.gmra.mxu1 %v15370_v22  ;;  %6428 = vmatprep.mubr.bf16.mxu0 %v15232_v51  ;;  %v11979_v51 = vld [vmem:[%s16926_s4 + $0x210] sm:$0xff]   ;;  %v15471_v22 = vpack.c.bf16 %v5461_v12, %v5460_v62 }
 0x6aa   :  { %6123 = vmatprep.mubr.bf16.mxu1 %v15459_v54  ;;  %11592 = vmatpush3.bf16.msra.mxu0 %v11976_v40  ;;  %v6573_v40 = vld [vmem:[#allocation4 + $0x30] sm:$0xff] }
 0x6ab   :  { %11593 = vmatprep.subr.bf16.mxu0 %v11977_v6  ;;  %v6605_v50 = vpack.c.bf16 %v6574_v36, %v6573_v40 }
 0x6ac   :  { %v4580_v0 = vpop.f32.mrf.mxu1 }
 0x6ad   :  { %v4581_v23 = vadd.f32 %v4580_v0, %v4510_v3  ;;  %v4798_v48 = vpop.f32.mrf.mxu0  ;;  %v6576_v0 = vld [vmem:[#allocation4 + $0x50] sm:$0xff] }
 0x6ae   :  { %v11472_v33 = vpop.f32.mrf.mxu1  ;;  %11594 = vmatpush3.bf16.msra.mxu0 %v11977_v6 }
 0x6af   :  { %v4802_v41 = vadd.f32 %v4798_v48, %v4581_v23  ;;  %v11529_v46 = vpop.f32.mrf.mxu0  ;;  %11595 = vmatprep.subr.bf16.mxu0 %v11978_v7 }
 0x6b0   :  { %6429 = vmatmul.mubr.bf16.gmra.mxu0 %v15354_v31 }
 0x6b1   :  { %6124 = vmatmul.mubr.bf16.gmra.mxu1 %v15386_v32  ;;  %6436 = vmatprep.mubr.bf16.mxu0 %v15262_v45  ;;  %v15483_v32 = vpack.c.bf16 %v5463_v11, %v5462_v8  ;;  %v5464_v45 = vld [vmem:[#allocation4 + $0x169] sm:$0xff] }
 0x6b2   :  { %6131 = vmatprep.mubr.bf16.mxu1 %v15471_v22  ;;  %11596 = vmatpush3.bf16.msra.mxu0 %v11978_v7  ;;  %v15494_v44 = vpack.c.bf16 %v5465_v1, %v5464_v45  ;;  %v6575_v7 = vld [vmem:[#allocation4 + $0x48] sm:$0xff]  ;;  %v6582_v45 = vld [vmem:[#allocation4 + $0x98] sm:$0xff] }
 0x6b3   :  { %11597 = vmatprep.subr.bf16.mxu0 %v11979_v51 }
 0x6b6   :  { %11598 = vmatpush3.bf16.msra.mxu0 %v11979_v51 }
 0x6b7   :  { %11599 = vmatprep.subr.bf16.mxu0 %v11980_v4 }
 0x6b8   :  { %6437 = vmatmul.mubr.bf16.gmra.mxu0 %v15376_v18 }
 0x6b9   :  { %6132 = vmatmul.mubr.bf16.gmra.mxu1 %v15397_v14  ;;  %6444 = vmatprep.mubr.bf16.mxu0 %v15280_v2 }
 0x6ba   :  { %6139 = vmatprep.mubr.bf16.mxu1 %v15483_v32  ;;  %11600 = vmatpush3.bf16.msra.mxu0 %v11980_v4 }
 0x6bb   :  { %11601 = vmatprep.subr.bf16.mxu0 %v11981_v57 }
 0x6be   :  { %11602 = vmatpush3.bf16.msra.mxu0 %v11981_v57  ;;  %v6581_v57 = vld [vmem:[#allocation4 + $0x90] sm:$0xff] }
 0x6bf   :  { %v4948_v3 = vpop.f32.mrf.mxu0  ;;  %11711 = vmatprep.subr.mxu0 %v15488_v24 }
 0x6c0   :  { %v15491_v25 = vadd.f32 %v4948_v3, %v4802_v41  ;;  %6445 = vmatmul.mubr.bf16.gmra.mxu0 %v15390_v10  ;;  %v4658_v14 = vpop.f32.mrf.mxu1  ;;  %v6579_v41 = vld [vmem:[#allocation4 + $0x78] sm:$0xff] }
 0x6c1   :  { %6140 = vmatmul.mubr.bf16.gmra.mxu1 %v15407_v47  ;;  %6452 = vmatprep.mubr.bf16.mxu0 %v15300_v9  ;;  %v11567_v2 = vpop.f32.mrf.mxu0 }
 0x6c2   :  { %17380 = vst [vmem:[#allocation39_spill] sm:$0xff] %v15491_v25  ;;  %6147 = vmatprep.mubr.bf16.mxu1 %v15494_v44  ;;  %v11491_v37 = vpop.f32.mrf.mxu1 }
 0x6c8   :  { %6453 = vmatmul.mubr.bf16.gmra.mxu0 %v15400_v26 }
 0x6c9   :  { %6148 = vmatmul.mubr.bf16.gmra.mxu1 %v15420_v34  ;;  %6460 = vmatprep.mubr.bf16.mxu0 %v15321_v39  ;;  %v6606_v34 = vpack.c.bf16 %v6576_v0, %v6575_v7  ;;  %v6577_v39 = vld [vmem:[#allocation4 + $0x60] sm:$0xff] }
 0x6ca   :  { %6829 = vmatprep.mubr.bf16.mxu1 %v15332_v58  ;;  %v6578_v58 = vld [vmem:[#allocation4 + $0x68] sm:$0xff] }
 0x6cb   :  { %v6607_v23 = vpack.c.bf16 %v6578_v58, %v6577_v39  ;;  %v6585_v58 = vld [vmem:[#allocation4 + $0xc0] sm:$0xff] }
 0x6d0   :  { %6461 = vmatmul.mubr.bf16.gmra.mxu0 %v15410_v49  ;;  %v4728_v47 = vpop.f32.mrf.mxu1 }
 0x6d1   :  { %6830 = vmatmul.mubr.bf16.vlgmr.msra.gmra.mxu1 %v6605_v50  ;;  %6468 = vmatprep.mubr.bf16.mxu0 %v15343_v17  ;;  %v4729_v9 = vadd.f32 %v4728_v47, %v4658_v14  ;;  %v6609_v14 = vpack.c.bf16 %v6582_v45, %v6581_v57  ;;  %v6583_v47 = vld [vmem:[#allocation4 + $0xa8] sm:$0xff]  ;;  %v6590_v57 = vld [vmem:[#allocation4 + $0xf8] sm:$0xff] }
 0x6d2   :  { %6837 = vmatprep.mubr.bf16.mxu1 %v15354_v31  ;;  %v11510_v6 = vpop.f32.mrf.mxu1  ;;  %v6234_v45 = vld [vmem:[#allocation4 + $0x182] sm:$0xff] }
 0x6d8   :  { %6469 = vmatmul.mubr.bf16.gmra.mxu0 %v15423_v30 }
 0x6d9   :  { %6838 = vmatmul.mubr.bf16.gmra.mxu1 %v6606_v34  ;;  %6476 = vmatprep.mubr.bf16.mxu0 %v15365_v19 }
 0x6da   :  { %6845 = vmatprep.mubr.bf16.mxu1 %v15376_v18  ;;  %v6580_v18 = vld [vmem:[#allocation4 + $0x80] sm:$0xff] }
 0x6db   :  { %v6608_v4 = vpack.c.bf16 %v6580_v18, %v6579_v41  ;;  %v6588_v41 = vld [vmem:[#allocation4 + $0xe0] sm:$0xff] }
 0x6e0   :  { %v10459_v48 = vpop.f32.mrf.mxu0  ;;  %6477 = vmatmul.mubr.bf16.gmra.mxu0 %v15431_v16 }
 0x6e1   :  { %6846 = vmatmul.mubr.bf16.gmra.mxu1 %v6607_v23  ;;  %6484 = vmatprep.mubr.bf16.mxu0 %v15384_v21  ;;  %v4877_v17 = vpop.f32.mrf.mxu1  ;;  %v6586_v23 = vld [vmem:[#allocation4 + $0xc8] sm:$0xff] }
 0x6e2   :  { %6853 = vmatprep.mubr.bf16.mxu1 %v15390_v10  ;;  %v10460_v31 = vpop.f32.mrf.mxu0  ;;  %v4881_v62 = vadd.f32 %v4877_v17, %v4729_v9  ;;  %v6584_v9 = vld [vmem:[#allocation4 + $0xb0] sm:$0xff] }
 0x6e3   :  { %v15512_v12 = vadd.f32 %v10460_v31, %v10459_v48  ;;  %v11548_v33 = vpop.f32.mrf.mxu1  ;;  %v6610_v0 = vpack.c.bf16 %v6584_v9, %v6583_v47  ;;  %v6611_v31 = vpack.c.bf16 %v6586_v23, %v6585_v58  ;;  %v6186_v9 = vld [vmem:[#allocation4 + $0x181] sm:$0xff]  ;;  %v6990_v58 = vld [vmem:[#allocation4 + $0x32] sm:$0xff] }
 0x6e4   :  { %v10462_v19 = vpop.f32.mrf.mxu0  ;;  %v6991_v23 = vld [vmem:[#allocation4 + $0x3a] sm:$0xff] }
 0x6e6   :  { %v10463_v46 = vpop.f32.mrf.mxu0 }
 0x6e7   :  { %v15514_v51 = vadd.f32 %v10463_v46, %v10462_v19  ;;  %v6587_v19 = vld [vmem:[#allocation4 + $0xd8] sm:$0xff] }
 0x6e8   :  { %v10465_v8 = vpop.f32.mrf.mxu0  ;;  %6485 = vmatmul.mubr.bf16.gmra.mxu0 %v15438_v53 }
 0x6e9   :  { %6854 = vmatmul.mubr.bf16.gmra.mxu1 %v6608_v4  ;;  %6492 = vmatprep.mubr.bf16.mxu0 %v15395_v55  ;;  %v6612_v4 = vpack.c.bf16 %v6588_v41, %v6587_v19  ;;  %v7022_v41 = vpack.c.bf16 %v6991_v23, %v6990_v58 }
 0x6ea   :  { %6861 = vmatprep.mubr.bf16.mxu1 %v15400_v26  ;;  %v10466_v21 = vpop.f32.mrf.mxu0 }
 0x6eb   :  { %v15519_v10 = vadd.f32 %v10466_v21, %v10465_v8  ;;  %v6589_v21 = vld [vmem:[#allocation4 + $0xf0] sm:$0xff] }
 0x6ec   :  { %v10468_v11 = vpop.f32.mrf.mxu0 }
 0x6ee   :  { %v10469_v1 = vpop.f32.mrf.mxu0 }
 0x6ef   :  { %v15521_v3 = vadd.f32 %v10469_v1, %v10468_v11  ;;  %v6235_v1 = vld [vmem:[#allocation4 + $0x18a] sm:$0xff] }
 0x6f0   :  { %v10471_v2 = vpop.f32.mrf.mxu0  ;;  %6493 = vmatmul.mubr.bf16.gmra.mxu0 %v15447_v43 }
 0x6f1   :  { %v5027_v37 = vpop.f32.mrf.mxu1  ;;  %6862 = vmatmul.mubr.bf16.gmra.mxu1 %v6609_v14  ;;  %6500 = vmatprep.mubr.bf16.mxu0 %v15405_v42 }
 0x6f2   :  { %v15525_v55 = vadd.f32 %v5027_v37, %v4881_v62  ;;  %6869 = vmatprep.mubr.bf16.mxu1 %v15410_v49  ;;  %v10472_v26 = vpop.f32.mrf.mxu0  ;;  %v6613_v37 = vpack.c.bf16 %v6590_v57, %v6589_v21  ;;  %v6593_v57 = vld [vmem:[#allocation4 + $0x120] sm:$0xff] }
 0x6f3   :  { %v15528_v40 = vadd.f32 %v10472_v26, %v10471_v2  ;;  %v11586_v36 = vpop.f32.mrf.mxu1  ;;  %v15553_v26 = vpack.c.bf16 %v6235_v1, %v6234_v45  ;;  %v6992_v45 = vld [vmem:[#allocation4 + $0x4a] sm:$0xff]  ;;  %v6993_v1 = vld [vmem:[#allocation4 + $0x52] sm:$0xff] }
 0x6f4   :  { %17381 = vst [vmem:[#allocation38_spill] sm:$0xff] %v15525_v55  ;;  %v10474_v50 = vpop.f32.mrf.mxu0 }
 0x6f6   :  { %v10475_v6 = vpop.f32.mrf.mxu0 }
 0x6f7   :  { %v15530_v7 = vadd.f32 %v10475_v6, %v10474_v50  ;;  %v6187_v6 = vld [vmem:[#allocation4 + $0x189] sm:$0xff] }
 0x6f8   :  { %v10477_v34 = vpop.f32.mrf.mxu0  ;;  %6501 = vmatmul.mubr.bf16.gmra.mxu0 %v15459_v54 }
 0x6f9   :  { %6870 = vmatmul.mubr.bf16.gmra.mxu1 %v6610_v0  ;;  %6508 = vmatprep.mubr.bf16.mxu0 %v15418_v29  ;;  %v6591_v0 = vld [vmem:[#allocation4 + $0x108] sm:$0xff] }
 0x6fa   :  { %6877 = vmatprep.mubr.bf16.mxu1 %v15423_v30  ;;  %v10478_v42 = vpop.f32.mrf.mxu0 }
 0x6fb   :  { %v15535_v49 = vadd.f32 %v10478_v42, %v10477_v34 }
 0x6fc   :  { %v10480_v39 = vpop.f32.mrf.mxu0 }
 0x6fe   :  { %v10481_v48 = vpop.f32.mrf.mxu0 }
 0x6ff   :  { %v15537_v17 = vadd.f32 %v10481_v48, %v10480_v39  ;;  %v6592_v39 = vld [vmem:[#allocation4 + $0x110] sm:$0xff] }
 0x700   :  { %v10483_v62 = vpop.f32.mrf.mxu0  ;;  %6509 = vmatmul.mubr.bf16.gmra.mxu0 %v15471_v22  ;;  %v6614_v19 = vpack.c.bf16 %v6592_v39, %v6591_v0 }
 0x701   :  { %6878 = vmatmul.mubr.bf16.gmra.mxu1 %v6611_v31  ;;  %6516 = vmatprep.mubr.bf16.mxu0 %v15428_v38 }
 0x702   :  { %6885 = vmatprep.mubr.bf16.mxu1 %v15431_v16  ;;  %v10484_v29 = vpop.f32.mrf.mxu0 }
 0x703   :  { %v15542_v30 = vadd.f32 %v10484_v29, %v10483_v62  ;;  %v15563_v29 = vpack.c.bf16 %v6187_v6, %v6186_v9  ;;  %v7023_v6 = vpack.c.bf16 %v6993_v1, %v6992_v45 }
 0x704   :  { %v10486_v33 = vpop.f32.mrf.mxu0 }
 0x706   :  { %v10487_v18 = vpop.f32.mrf.mxu0 }
 0x707   :  { %v15544_v46 = vadd.f32 %v10487_v18, %v10486_v33 }
 0x708   :  { %v10489_v8 = vpop.f32.mrf.mxu0  ;;  %6517 = vmatmul.mubr.bf16.gmra.mxu0 %v15483_v32 }
 0x709   :  { %6886 = vmatmul.mubr.bf16.gmra.mxu1 %v6612_v4  ;;  %6524 = vmatprep.mubr.bf16.mxu0 %v15435_v27 }
 0x70a   :  { %6893 = vmatprep.mubr.bf16.mxu1 %v15438_v53  ;;  %v10490_v38 = vpop.f32.mrf.mxu0 }
 0x70b   :  { %v15549_v16 = vadd.f32 %v10490_v38, %v10489_v8 }
 0x70c   :  { %v10492_v11 = vpop.f32.mrf.mxu0 }
 0x70e   :  { %v10493_v14 = vpop.f32.mrf.mxu0 }
 0x70f   :  { %v15551_v2 = vadd.f32 %v10493_v14, %v10492_v11 }
 0x710   :  { %v10495_v36 = vpop.f32.mrf.mxu0  ;;  %6525 = vmatmul.mubr.bf16.gmra.mxu0 %v15494_v44 }
 0x711   :  { %v10571_v27 = vpop.f32.mrf.mxu1  ;;  %6894 = vmatmul.mubr.bf16.gmra.mxu1 %v6613_v37  ;;  %6532 = vmatprep.mubr.bf16.mxu0 %v15553_v26 }
 0x712   :  { %6901 = vmatprep.mubr.bf16.mxu1 %v15447_v43  ;;  %v10496_v53 = vpop.f32.mrf.mxu0 }
 0x713   :  { %v15558_v50 = vadd.f32 %v10496_v53, %v10495_v36  ;;  %v10572_v47 = vpop.f32.mrf.mxu1  ;;  %v6594_v36 = vld [vmem:[#allocation4 + $0x128] sm:$0xff] }
 0x714   :  { %v10573_v34 = vadd.f32 %v10572_v47, %v10571_v27  ;;  %v10498_v42 = vpop.f32.mrf.mxu0  ;;  %v6994_v27 = vld [vmem:[#allocation4 + $0x62] sm:$0xff]  ;;  %v6995_v53 = vld [vmem:[#allocation4 + $0x6a] sm:$0xff] }
 0x715   :  { %v10574_v48 = vpop.f32.mrf.mxu1 }
 0x716   :  { %v15561_v31 = vadd.f32 %v10573_v34, %v15512_v12  ;;  %v10499_v62 = vpop.f32.mrf.mxu0  ;;  %v6615_v34 = vpack.c.bf16 %v6594_v36, %v6593_v57  ;;  %v6999_v57 = vld [vmem:[#allocation4 + $0x9a] sm:$0xff] }
 0x717   :  { %v15565_v43 = vadd.f32 %v10499_v62, %v10498_v42  ;;  %v10575_v33 = vpop.f32.mrf.mxu1  ;;  %v7024_v42 = vpack.c.bf16 %v6995_v53, %v6994_v27 }
 0x718   :  { %v10576_v18 = vadd.f32 %v10575_v33, %v10574_v48  ;;  %v10501_v4 = vpop.f32.mrf.mxu0  ;;  %6533 = vmatmul.mubr.bf16.gmra.mxu0 %v15563_v29 }
 0x719   :  { %v10577_v8 = vpop.f32.mrf.mxu1  ;;  %6902 = vmatmul.mubr.bf16.gmra.mxu1 %v6614_v19  ;;  %11603 = vmatprep.mubr.bf16.mxu0 %v7022_v41  ;;  %v6595_v19 = vld [vmem:[#allocation4 + $0x138] sm:$0xff] }
 0x71a   :  { %v15569_v38 = vadd.f32 %v10576_v18, %v15514_v51  ;;  %6909 = vmatprep.mubr.bf16.mxu1 %v15459_v54  ;;  %v10502_v12 = vpop.f32.mrf.mxu0  ;;  %v6996_v41 = vld [vmem:[#allocation4 + $0x7a] sm:$0xff]  ;;  %v6997_v18 = vld [vmem:[#allocation4 + $0x82] sm:$0xff] }
 0x71b   :  { %v15572_v21 = vadd.f32 %v10502_v12, %v10501_v4  ;;  %v10578_v11 = vpop.f32.mrf.mxu1  ;;  %v6596_v12 = vld [vmem:[#allocation4 + $0x140] sm:$0xff] }
 0x71c   :  { %v10579_v14 = vadd.f32 %v10578_v11, %v10577_v8  ;;  %v10504_v37 = vpop.f32.mrf.mxu0  ;;  %v6998_v11 = vld [vmem:[#allocation4 + $0x92] sm:$0xff]  ;;  %v6616_v36 = vpack.c.bf16 %v6596_v12, %v6595_v19  ;;  %v7002_v19 = vld [vmem:[#allocation4 + $0xc2] sm:$0xff] }
 0x71d   :  { %v10580_v47 = vpop.f32.mrf.mxu1  ;;  %v7026_v27 = vpack.c.bf16 %v6999_v57, %v6998_v11 }
 0x71e   :  { %v15575_v9 = vadd.f32 %v10579_v14, %v15519_v10  ;;  %v10505_v51 = vpop.f32.mrf.mxu0  ;;  %v7025_v14 = vpack.c.bf16 %v6997_v18, %v6996_v41  ;;  %v7003_v41 = vld [vmem:[#allocation4 + $0xca] sm:$0xff] }
 0x71f   :  { %v15577_v0 = vadd.f32 %v10505_v51, %v10504_v37  ;;  %v10581_v54 = vpop.f32.mrf.mxu1  ;;  %v7028_v57 = vpack.c.bf16 %v7003_v41, %v7002_v19 }
 0x720   :  { %v10582_v39 = vadd.f32 %v10581_v54, %v10580_v47  ;;  %v10507_v58 = vpop.f32.mrf.mxu0  ;;  %11604 = vmatmul.mubr.bf16.vlgmr.msra.gmra.mxu0 %v7023_v6 }
 0x721   :  { %v10583_v23 = vpop.f32.mrf.mxu1  ;;  %6910 = vmatmul.mubr.bf16.gmra.mxu1 %v6615_v34  ;;  %11607 = vmatprep.mubr.bf16.mxu0 %v7024_v42  ;;  %v6597_v42 = vld [vmem:[#allocation4 + $0x150] sm:$0xff] }
 0x722   :  { %v15580_v48 = vadd.f32 %v10582_v39, %v15521_v3  ;;  %6917 = vmatprep.mubr.bf16.mxu1 %v15471_v22  ;;  %v10508_v10 = vpop.f32.mrf.mxu0  ;;  %v7000_v39 = vld [vmem:[#allocation4 + $0xaa] sm:$0xff] }
 0x723   :  { %v15583_v62 = vadd.f32 %v10508_v10, %v10507_v58  ;;  %v10584_v33 = vpop.f32.mrf.mxu1  ;;  %v7001_v58 = vld [vmem:[#allocation4 + $0xb2] sm:$0xff] }
 0x724   :  { %v10585_v4 = vadd.f32 %v10584_v33, %v10583_v23  ;;  %v10510_v8 = vpop.f32.mrf.mxu0  ;;  %v6598_v33 = vld [vmem:[#allocation4 + $0x158] sm:$0xff] }
 0x725   :  { %v10586_v45 = vpop.f32.mrf.mxu1  ;;  %v6617_v11 = vpack.c.bf16 %v6598_v33, %v6597_v42  ;;  %v6600_v42 = vld [vmem:[#allocation4 + $0x170] sm:$0xff] }
 0x726   :  { %v15586_v1 = vadd.f32 %v10585_v4, %v15528_v40  ;;  %v10511_v3 = vpop.f32.mrf.mxu0 }
 0x727   :  { %v15588_v37 = vadd.f32 %v10511_v3, %v10510_v8  ;;  %v10587_v22 = vpop.f32.mrf.mxu1  ;;  %v7027_v8 = vpack.c.bf16 %v7001_v58, %v7000_v39  ;;  %v7006_v39 = vld [vmem:[#allocation4 + $0xf2] sm:$0xff]  ;;  %v7007_v58 = vld [vmem:[#allocation4 + $0xfa] sm:$0xff] }
 0x728   :  { %v10588_v53 = vadd.f32 %v10587_v22, %v10586_v45  ;;  %v10513_v47 = vpop.f32.mrf.mxu0  ;;  %11608 = vmatmul.mubr.bf16.gmra.mxu0 %v7025_v14 }
 0x729   :  { %v10589_v51 = vpop.f32.mrf.mxu1  ;;  %6918 = vmatmul.mubr.bf16.gmra.mxu1 %v6616_v36  ;;  %11611 = vmatprep.mubr.bf16.mxu0 %v7026_v27 }
 0x72a   :  { %v15591_v6 = vadd.f32 %v10588_v53, %v15530_v7  ;;  %6925 = vmatprep.mubr.bf16.mxu1 %v15483_v32  ;;  %v10514_v40 = vpop.f32.mrf.mxu0  ;;  %v6599_v53 = vld [vmem:[#allocation4 + $0x168] sm:$0xff] }
 0x72b   :  { %v15594_v54 = vadd.f32 %v10514_v40, %v10513_v47  ;;  %v10590_v34 = vpop.f32.mrf.mxu1  ;;  %v7004_v47 = vld [vmem:[#allocation4 + $0xda] sm:$0xff]  ;;  %v6618_v41 = vpack.c.bf16 %v6600_v42, %v6599_v53  ;;  %v7011_v42 = vld [vmem:[#allocation4 + $0x12a] sm:$0xff] }
 0x72c   :  { %v10591_v23 = vadd.f32 %v10590_v34, %v10589_v51  ;;  %v10516_v10 = vpop.f32.mrf.mxu0  ;;  %v7005_v51 = vld [vmem:[#allocation4 + $0xe2] sm:$0xff] }
 0x72d   :  { %v10592_v18 = vpop.f32.mrf.mxu1  ;;  %v7029_v33 = vpack.c.bf16 %v7005_v51, %v7004_v47  ;;  %v6652_v53 = vld [vmem:[#allocation4 + $0x1a1] sm:$0xff] }
 0x72e   :  { %v15597_v4 = vadd.f32 %v10591_v23, %v15535_v49  ;;  %v10517_v7 = vpop.f32.mrf.mxu0 }
 0x72f   :  { %v15599_v12 = vadd.f32 %v10517_v7, %v10516_v10  ;;  %v10593_v32 = vpop.f32.mrf.mxu1 }
 0x730   :  { %v10594_v45 = vadd.f32 %v10593_v32, %v10592_v18  ;;  %v10519_v3 = vpop.f32.mrf.mxu0  ;;  %11612 = vmatmul.mubr.bf16.gmra.mxu0 %v7027_v8  ;;  %v7030_v18 = vpack.c.bf16 %v7007_v58, %v7006_v39 }
 0x731   :  { %v10595_v14 = vpop.f32.mrf.mxu1  ;;  %6926 = vmatmul.mubr.bf16.gmra.mxu1 %v6617_v11  ;;  %11615 = vmatprep.mubr.bf16.mxu0 %v7028_v57  ;;  %v6601_v57 = vld [vmem:[#allocation4 + $0x180] sm:$0xff] }
 0x732   :  { %v15602_v22 = vadd.f32 %v10594_v45, %v15537_v17  ;;  %6933 = vmatprep.mubr.bf16.mxu1 %v15494_v44  ;;  %v10520_v49 = vpop.f32.mrf.mxu0  ;;  %v7008_v45 = vld [vmem:[#allocation4 + $0x10a] sm:$0xff] }
 0x733   :  { %v15605_v36 = vadd.f32 %v10520_v49, %v10519_v3  ;;  %v10596_v27 = vpop.f32.mrf.mxu1  ;;  %v7009_v49 = vld [vmem:[#allocation4 + $0x112] sm:$0xff] }
 0x734   :  { %v10597_v40 = vadd.f32 %v10596_v27, %v10595_v14  ;;  %v10522_v34 = vpop.f32.mrf.mxu0  ;;  %v6651_v27 = vld [vmem:[#allocation4 + $0x199] sm:$0xff] }
 0x735   :  { %v10598_v23 = vpop.f32.mrf.mxu1 }
 0x736   :  { %v15608_v10 = vadd.f32 %v10597_v40, %v15542_v30  ;;  %v10523_v17 = vpop.f32.mrf.mxu0  ;;  %v6602_v40 = vld [vmem:[#allocation4 + $0x188] sm:$0xff] }
 0x737   :  { %v15610_v19 = vadd.f32 %v10523_v17, %v10522_v34  ;;  %v10599_v44 = vpop.f32.mrf.mxu1  ;;  %v7010_v34 = vld [vmem:[#allocation4 + $0x122] sm:$0xff] }
 0x738   :  { %v10600_v7 = vadd.f32 %v10599_v44, %v10598_v23  ;;  %v10525_v8 = vpop.f32.mrf.mxu0  ;;  %11616 = vmatmul.mubr.bf16.gmra.mxu0 %v7029_v33  ;;  %v6668_v23 = vpack.c.bf16 %v6652_v53, %v6651_v27  ;;  %v6619_v44 = vpack.c.bf16 %v6602_v40, %v6601_v57  ;;  %v7014_v57 = vld [vmem:[#allocation4 + $0x152] sm:$0xff]  ;;  %v7015_v53 = vld [vmem:[#allocation4 + $0x15a] sm:$0xff] }
 0x739   :  { %v10601_v32 = vpop.f32.mrf.mxu1  ;;  %6934 = vmatmul.mubr.bf16.gmra.mxu1 %v6618_v41  ;;  %11619 = vmatprep.mubr.bf16.mxu0 %v7030_v18  ;;  %v7032_v41 = vpack.c.bf16 %v7011_v42, %v7010_v34 }
 0x73a   :  { %v15613_v11 = vadd.f32 %v10600_v7, %v15544_v46  ;;  %6941 = vmatprep.mubr.bf16.mxu1 %v15563_v29  ;;  %v10526_v30 = vpop.f32.mrf.mxu0  ;;  %v7031_v29 = vpack.c.bf16 %v7009_v49, %v7008_v45  ;;  %v7012_v45 = vld [vmem:[#allocation4 + $0x13a] sm:$0xff] }
 0x73b   :  { %v15616_v3 = vadd.f32 %v10526_v30, %v10525_v8  ;;  %v10602_v14 = vpop.f32.mrf.mxu1 }
 0x73c   :  { %v10603_v47 = vadd.f32 %v10602_v14, %v10601_v32  ;;  %v10528_v51 = vpop.f32.mrf.mxu0  ;;  %v7013_v14 = vld [vmem:[#allocation4 + $0x142] sm:$0xff] }
 0x73d   :  { %v10604_v39 = vpop.f32.mrf.mxu1  ;;  %v7033_v34 = vpack.c.bf16 %v7013_v14, %v7012_v45 }
 0x73e   :  { %v15619_v46 = vadd.f32 %v10603_v47, %v15549_v16  ;;  %v10529_v58 = vpop.f32.mrf.mxu0 }
 0x73f   :  { %v15621_v17 = vadd.f32 %v10529_v58, %v10528_v51  ;;  %v10605_v33 = vpop.f32.mrf.mxu1  ;;  %v6620_v51 = vpack.c.bf16 %v15488_v24, %v15488_v24 }
 0x740   :  { %v10606_v18 = vadd.f32 %v10605_v33, %v10604_v39  ;;  %v15623_v7 = vpop.f32.mrf.mxu0  ;;  %11620 = vmatmul.mubr.bf16.gmra.mxu0 %v7031_v29  ;;  %v7034_v39 = vpack.c.bf16 %v7015_v53, %v7014_v57 }
 0x741   :  { %v10607_v8 = vpop.f32.mrf.mxu1  ;;  %6942 = vmatmul.mubr.bf16.gmra.mxu1 %v6619_v44  ;;  %11623 = vmatprep.mubr.bf16.mxu0 %v7032_v41 }
 0x742   :  { %v15626_v32 = vadd.f32 %v10606_v18, %v15551_v2  ;;  %v15628_v16 = vpop.f32.mrf.mxu0  ;;  %6949 = vmatprep.mubr.bf16.mxu1 %v6668_v23  ;;  %v7016_v18 = vld [vmem:[#allocation4 + $0x16a] sm:$0xff] }
 0x743   :  { %v10608_v30 = vpop.f32.mrf.mxu1 }
 0x744   :  { %v10609_v49 = vadd.f32 %v10608_v30, %v10607_v8  ;;  %v15630_v27 = vpop.f32.mrf.mxu0  ;;  %v7017_v8 = vld [vmem:[#allocation4 + $0x172] sm:$0xff] }
 0x745   :  { %v10610_v47 = vpop.f32.mrf.mxu1  ;;  %v7035_v53 = vpack.c.bf16 %v7017_v8, %v7016_v18 }
 0x746   :  { %v15635_v40 = vadd.f32 %v10609_v49, %v15558_v50  ;;  %v15637_v2 = vpop.f32.mrf.mxu0 }
 0x747   :  { %v10611_v42 = vpop.f32.mrf.mxu1 }
 0x748   :  { %v10612_v58 = vadd.f32 %v10611_v42, %v10610_v47  ;;  %v10537_v29 = vpop.f32.mrf.mxu0  ;;  %11624 = vmatmul.mubr.bf16.gmra.mxu0 %v7033_v34 }
 0x749   :  { %v10613_v23 = vpop.f32.mrf.mxu1  ;;  %6950 = vmatmul.mubr.bf16.gmra.mxu1 %v6620_v51  ;;  %11627 = vmatprep.mubr.bf16.mxu0 %v7034_v39  ;;  %v7020_v39 = vld [vmem:[#allocation4 + $0x19a] sm:$0xff] }
 0x74a   :  { %v15640_v33 = vadd.f32 %v10612_v58, %v15565_v43  ;;  %v10538_v44 = vpop.f32.mrf.mxu0  ;;  %11651 = vmatprep.mubr.msk.f32.mxu1 %vm11993_vm0, %v15488_v24  ;;  %v7021_v58 = vld [vmem:[#allocation4 + $0x1a2] sm:$0xff] }
 0x74b   :  { %v15644_v50 = vadd.f32 %v10538_v44, %v10537_v29  ;;  %v10614_v41 = vpop.f32.mrf.mxu1  ;;  %v7037_v8 = vpack.c.bf16 %v7021_v58, %v7020_v39 }
 0x74c   :  { %v10615_v30 = vadd.f32 %v10614_v41, %v10613_v23  ;;  %v10540_v45 = vpop.f32.mrf.mxu0 }
 0x74d   :  { %v10616_v14 = vpop.f32.mrf.mxu1 }
 0x74e   :  { %v15647_v49 = vadd.f32 %v10615_v30, %v15572_v21  ;;  %v10541_v57 = vpop.f32.mrf.mxu0 }
 0x74f   :  { %v15649_v47 = vadd.f32 %v10541_v57, %v10540_v45  ;;  %v10617_v43 = vpop.f32.mrf.mxu1 }
 0x750   :  { %v10618_v51 = vadd.f32 %v10617_v43, %v10616_v14  ;;  %v10543_v34 = vpop.f32.mrf.mxu0  ;;  %11628 = vmatmul.mubr.bf16.gmra.mxu0 %v7035_v53 }
 0x751   :  { %v10619_v42 = vpop.f32.mrf.mxu1  ;;  %11631 = vmatprep.mubr.bf16.mxu0 %v15553_v26 }
 0x752   :  { %v15653_v29 = vadd.f32 %v10618_v51, %v15577_v0  ;;  %v10544_v23 = vpop.f32.mrf.mxu0 }
 0x753   :  { %v15655_v44 = vadd.f32 %v10544_v23, %v10543_v34  ;;  %v10620_v21 = vpop.f32.mrf.mxu1 }
 0x754   :  { %v10621_v41 = vadd.f32 %v10620_v21, %v10619_v42  ;;  %v10546_v18 = vpop.f32.mrf.mxu0 }
 0x755   :  { %v10622_v30 = vpop.f32.mrf.mxu1 }
 0x756   :  { %v15658_v45 = vadd.f32 %v10621_v41, %v15583_v62  ;;  %v10547_v14 = vpop.f32.mrf.mxu0 }
 0x757   :  { %v15660_v57 = vadd.f32 %v10547_v14, %v10546_v18  ;;  %v10623_v26 = vpop.f32.mrf.mxu1 }
 0x758   :  { %v10624_v53 = vadd.f32 %v10623_v26, %v10622_v30  ;;  %v10549_v43 = vpop.f32.mrf.mxu0  ;;  %11632 = vmatmul.mubr.bf16.gmra.mxu0 %v7037_v8 }
 0x759   :  { %v10625_v0 = vpop.f32.mrf.mxu1  ;;  %11727 = vmatprep.mubr.msk.f32.mxu0 %vm11993_vm0, %v15488_v24 }
 0x75a   :  { %v15665_v51 = vadd.f32 %v10624_v53, %v15588_v37  ;;  %v10550_v34 = vpop.f32.mrf.mxu0 }
 0x75b   :  { %v15667_v42 = vadd.f32 %v10550_v34, %v10549_v43  ;;  %v10626_v39 = vpop.f32.mrf.mxu1 }
 0x75c   :  { %v10627_v62 = vadd.f32 %v10626_v39, %v10625_v0  ;;  %v10552_v58 = vpop.f32.mrf.mxu0 }
 0x75d   :  { %v10628_v23 = vpop.f32.mrf.mxu1 }
 0x75e   :  { %v15670_v21 = vadd.f32 %v10627_v62, %v15594_v54  ;;  %v10553_v41 = vpop.f32.mrf.mxu0 }
 0x75f   :  { %v15672_v18 = vadd.f32 %v10553_v41, %v10552_v58  ;;  %v10629_v8 = vpop.f32.mrf.mxu1 }
 0x760   :  { %v10630_v30 = vadd.f32 %v10629_v8, %v10628_v23  ;;  %v10683_v14 = vpop.f32.mrf.mxu0 }
 0x761   :  { %v10631_v24 = vpop.f32.mrf.mxu1 }
 0x762   :  { %v15675_v37 = vadd.f32 %v10630_v30, %v15599_v12  ;;  %v10684_v26 = vpop.f32.mrf.mxu0 }
 0x763   :  { %v10632_v53 = vpop.f32.mrf.mxu1  ;;  %v10685_v43 = vadd.f32 %v10684_v26, %v10683_v14 }
 0x764   :  { %v10633_v34 = vadd.f32 %v10632_v53, %v10631_v24  ;;  %v10686_v0 = vpop.f32.mrf.mxu0 }
 0x765   :  { %v15678_v39 = vadd.f32 %v10685_v43, %v15561_v31  ;;  %v10634_v54 = vpop.f32.mrf.mxu1 }
 0x766   :  { %v15681_v62 = vadd.f32 %v10633_v34, %v15605_v36  ;;  %v10687_v58 = vpop.f32.mrf.mxu0 }
 0x767   :  { %v10635_v41 = vpop.f32.mrf.mxu1  ;;  %v10688_v23 = vadd.f32 %v10687_v58, %v10686_v0 }
 0x768   :  { %v10636_v8 = vadd.f32 %v10635_v41, %v10634_v54  ;;  %v10689_v15 = vpop.f32.mrf.mxu0 }
 0x769   :  { %v15684_v12 = vadd.f32 %v10688_v23, %v15569_v38  ;;  %v10637_v30 = vpop.f32.mrf.mxu1 }
 0x76a   :  { %v15687_v14 = vadd.f32 %v10636_v8, %v15610_v19  ;;  %v10690_v24 = vpop.f32.mrf.mxu0 }
 0x76b   :  { %v10638_v26 = vpop.f32.mrf.mxu1  ;;  %v10691_v31 = vadd.f32 %v10690_v24, %v10689_v15 }
 0x76c   :  { %v10639_v53 = vadd.f32 %v10638_v26, %v10637_v30  ;;  %v10692_v43 = vpop.f32.mrf.mxu0  ;;  %v10533_v26 = vadd.f32 %v15628_v16, %v15623_v7 }
 0x76d   :  { %v15690_v36 = vadd.f32 %v10691_v31, %v15575_v9  ;;  %v10640_v34 = vpop.f32.mrf.mxu1 }
 0x76e   :  { %v15693_v0 = vadd.f32 %v10639_v53, %v15616_v3  ;;  %v10693_v54 = vpop.f32.mrf.mxu0 }
 0x76f   :  { %v10641_v58 = vpop.f32.mrf.mxu1  ;;  %v10694_v38 = vadd.f32 %v10693_v54, %v10692_v43 }
 0x770   :  { %v10642_v41 = vadd.f32 %v10641_v58, %v10640_v34  ;;  %v10695_v23 = vpop.f32.mrf.mxu0 }
 0x771   :  { %v15696_v19 = vadd.f32 %v10694_v38, %v15580_v48  ;;  %v10643_v8 = vpop.f32.mrf.mxu1 }
 0x772   :  { %v15699_v15 = vadd.f32 %v10642_v41, %v15621_v17  ;;  %v10696_v30 = vpop.f32.mrf.mxu0  ;;  %v10536_v17 = vadd.f32 %v15637_v2, %v15630_v27 }
 0x773   :  { %v10644_v24 = vpop.f32.mrf.mxu1  ;;  %v10697_v9 = vadd.f32 %v10696_v30, %v10695_v23 }
 0x774   :  { %v10645_v3 = vadd.f32 %v10644_v24, %v10643_v8  ;;  %v10698_v31 = vpop.f32.mrf.mxu0 }
 0x775   :  { %v15704_v53 = vadd.f32 %v10697_v9, %v15586_v1  ;;  %v10646_v43 = vpop.f32.mrf.mxu1 }
 0x776   :  { %v15706_v34 = vadd.f32 %v10645_v3, %v10533_v26  ;;  %v10699_v48 = vpop.f32.mrf.mxu0 }
 0x777   :  { %v10647_v54 = vpop.f32.mrf.mxu1  ;;  %v10700_v58 = vadd.f32 %v10699_v48, %v10698_v31 }
 0x778   :  { %v10648_v38 = vadd.f32 %v10647_v54, %v10646_v43  ;;  %v10701_v41 = vpop.f32.mrf.mxu0 }
 0x779   :  { %v15711_v23 = vadd.f32 %v10700_v58, %v15591_v6  ;;  %v10649_v7 = vpop.f32.mrf.mxu1 }
 0x77a   :  { %v15713_v16 = vadd.f32 %v10648_v38, %v10536_v17  ;;  %v10702_v8 = vpop.f32.mrf.mxu0 }
 0x77b   :  { %v10650_v1 = vpop.f32.mrf.mxu1  ;;  %v10703_v30 = vadd.f32 %v10702_v8, %v10701_v41 }
 0x77c   :  { %v10651_v24 = vadd.f32 %v10650_v1, %v10649_v7  ;;  %v10704_v9 = vpop.f32.mrf.mxu0 }
 0x77d   :  { %v15716_v26 = vadd.f32 %v10703_v30, %v15597_v4  ;;  %v10652_v3 = vpop.f32.mrf.mxu1 }
 0x77e   :  { %v15719_v31 = vadd.f32 %v10651_v24, %v15644_v50  ;;  %v10705_v27 = vpop.f32.mrf.mxu0 }
 0x77f   :  { %v10653_v2 = vpop.f32.mrf.mxu1  ;;  %v10706_v43 = vadd.f32 %v10705_v27, %v10704_v9 }
 0x780   :  { %v10654_v6 = vadd.f32 %v10653_v2, %v10652_v3  ;;  %v10707_v48 = vpop.f32.mrf.mxu0 }
 0x781   :  { %v15722_v54 = vadd.f32 %v10706_v43, %v15602_v22  ;;  %v10655_v58 = vpop.f32.mrf.mxu1 }
 0x782   :  { %v15725_v17 = vadd.f32 %v10654_v6, %v15649_v47  ;;  %v10708_v38 = vpop.f32.mrf.mxu0 }
 0x783   :  { %v10656_v41 = vpop.f32.mrf.mxu1  ;;  %v10709_v4 = vadd.f32 %v10708_v38, %v10707_v48 }
 0x784   :  { %v10657_v7 = vadd.f32 %v10656_v41, %v10655_v58  ;;  %v10710_v8 = vpop.f32.mrf.mxu0 }
 0x785   :  { %v15728_v50 = vadd.f32 %v10709_v4, %v15608_v10  ;;  %v10658_v1 = vpop.f32.mrf.mxu1 }
 0x786   :  { %v15731_v30 = vadd.f32 %v10657_v7, %v15655_v44  ;;  %v10711_v24 = vpop.f32.mrf.mxu0 }
 0x787   :  { %v10659_v9 = vpop.f32.mrf.mxu1  ;;  %v10712_v22 = vadd.f32 %v10711_v24, %v10710_v8 }
 0x788   :  { %v10660_v3 = vadd.f32 %v10659_v9, %v10658_v1  ;;  %v10713_v27 = vpop.f32.mrf.mxu0 }
 0x789   :  { %v15734_v47 = vadd.f32 %v10712_v22, %v15613_v11  ;;  %v10661_v2 = vpop.f32.mrf.mxu1 }
 0x78a   :  { %v15737_v43 = vadd.f32 %v10660_v3, %v15660_v57  ;;  %v10714_v6 = vpop.f32.mrf.mxu0 }
 0x78b   :  { %v10662_v48 = vpop.f32.mrf.mxu1  ;;  %v10715_v10 = vadd.f32 %v10714_v6, %v10713_v27 }
 0x78c   :  { %v10663_v58 = vadd.f32 %v10662_v48, %v10661_v2  ;;  %v10716_v38 = vpop.f32.mrf.mxu0 }
 0x78d   :  { %v15740_v44 = vadd.f32 %v10715_v10, %v15619_v46  ;;  %v10664_v41 = vpop.f32.mrf.mxu1 }
 0x78e   :  { %v15743_v4 = vadd.f32 %v10663_v58, %v15667_v42  ;;  %v10717_v7 = vpop.f32.mrf.mxu0 }
 0x78f   :  { %v10665_v8 = vpop.f32.mrf.mxu1  ;;  %v10718_v11 = vadd.f32 %v10717_v7, %v10716_v38 }
 0x790   :  { %v10666_v1 = vadd.f32 %v10665_v8, %v10664_v41  ;;  %v10719_v24 = vpop.f32.mrf.mxu0 }
 0x791   :  { %v15746_v57 = vadd.f32 %v10718_v11, %v15626_v32  ;;  %v10795_v9 = vpop.f32.mrf.mxu1 }
 0x792   :  { %v15749_v22 = vadd.f32 %v10666_v1, %v15672_v18  ;;  %v10720_v3 = vpop.f32.mrf.mxu0 }
 0x793   :  { %v10721_v27 = vadd.f32 %v10720_v3, %v10719_v24  ;;  %v10796_v46 = vpop.f32.mrf.mxu1 }
 0x794   :  { %17382 = vst [vmem:[#allocation34_spill] sm:$0xff] %v15749_v22  ;;  %v10797_v2 = vadd.f32 %v10796_v46, %v10795_v9  ;;  %v10722_v6 = vpop.f32.mrf.mxu0 }
 0x795   :  { %v15752_v42 = vadd.f32 %v10721_v27, %v15635_v40  ;;  %v10798_v48 = vpop.f32.mrf.mxu1 }
 0x796   :  { %v10723_v10 = vpop.f32.mrf.mxu0  ;;  %v15755_v58 = vadd.f32 %v10797_v2, %v15678_v39 }
 0x797   :  { %v10724_v38 = vadd.f32 %v10723_v10, %v10722_v6  ;;  %v10799_v32 = vpop.f32.mrf.mxu1 }
 0x798   :  { %v10800_v41 = vadd.f32 %v10799_v32, %v10798_v48  ;;  %v10725_v7 = vpop.f32.mrf.mxu0 }
 0x799   :  { %v15758_v18 = vadd.f32 %v10724_v38, %v15640_v33  ;;  %v10801_v8 = vpop.f32.mrf.mxu1 }
 0x79a   :  { %v10726_v11 = vpop.f32.mrf.mxu0  ;;  %v15761_v1 = vadd.f32 %v10800_v41, %v15684_v12 }
 0x79b   :  { %v10727_v24 = vadd.f32 %v10726_v11, %v10725_v7  ;;  %v10802_v40 = vpop.f32.mrf.mxu1 }
 0x79c   :  { %v10803_v9 = vadd.f32 %v10802_v40, %v10801_v8  ;;  %v10728_v3 = vpop.f32.mrf.mxu0 }
 0x79d   :  { %v15764_v27 = vadd.f32 %v10727_v24, %v15647_v49  ;;  %v10804_v39 = vpop.f32.mrf.mxu1 }
 0x79e   :  { %v10729_v46 = vpop.f32.mrf.mxu0  ;;  %v15767_v2 = vadd.f32 %v10803_v9, %v15690_v36 }
 0x79f   :  { %v10730_v6 = vadd.f32 %v10729_v46, %v10728_v3  ;;  %v10805_v33 = vpop.f32.mrf.mxu1 }
 0x7a0   :  { %v10806_v48 = vadd.f32 %v10805_v33, %v10804_v39  ;;  %v10731_v10 = vpop.f32.mrf.mxu0 }
 0x7a1   :  { %v15770_v38 = vadd.f32 %v10730_v6, %v15653_v29  ;;  %v10807_v12 = vpop.f32.mrf.mxu1 }
 0x7a2   :  { %v10732_v32 = vpop.f32.mrf.mxu0  ;;  %v15773_v41 = vadd.f32 %v10806_v48, %v15696_v19 }
 0x7a3   :  { %v10733_v7 = vadd.f32 %v10732_v32, %v10731_v10  ;;  %v10808_v49 = vpop.f32.mrf.mxu1 }
 0x7a4   :  { %v10809_v8 = vadd.f32 %v10808_v49, %v10807_v12  ;;  %v10734_v11 = vpop.f32.mrf.mxu0 }
 0x7a5   :  { %v15776_v24 = vadd.f32 %v10733_v7, %v15658_v45  ;;  %v10810_v36 = vpop.f32.mrf.mxu1 }
 0x7a6   :  { %v10735_v40 = vpop.f32.mrf.mxu0  ;;  %v15779_v9 = vadd.f32 %v10809_v8, %v15704_v53 }
 0x7a7   :  { %v10736_v3 = vadd.f32 %v10735_v40, %v10734_v11  ;;  %v10811_v29 = vpop.f32.mrf.mxu1 }
 0x7a8   :  { %v10812_v39 = vadd.f32 %v10811_v29, %v10810_v36  ;;  %v10737_v46 = vpop.f32.mrf.mxu0 }
 0x7a9   :  { %v15782_v6 = vadd.f32 %v10736_v3, %v15665_v51  ;;  %v10813_v19 = vpop.f32.mrf.mxu1 }
 0x7aa   :  { %v10738_v33 = vpop.f32.mrf.mxu0  ;;  %v15785_v48 = vadd.f32 %v10812_v39, %v15711_v23 }
 0x7ab   :  { %v10739_v10 = vadd.f32 %v10738_v33, %v10737_v46  ;;  %v10814_v45 = vpop.f32.mrf.mxu1 }
 0x7ac   :  { %v10815_v12 = vadd.f32 %v10814_v45, %v10813_v19  ;;  %v10740_v32 = vpop.f32.mrf.mxu0 }
 0x7ad   :  { %v15788_v7 = vadd.f32 %v10739_v10, %v15670_v21  ;;  %v10816_v53 = vpop.f32.mrf.mxu1 }
 0x7ae   :  { %v10741_v49 = vpop.f32.mrf.mxu0  ;;  %v15791_v8 = vadd.f32 %v10815_v12, %v15716_v26 }
 0x7af   :  { %v10742_v11 = vadd.f32 %v10741_v49, %v10740_v32  ;;  %v10817_v51 = vpop.f32.mrf.mxu1 }
 0x7b0   :  { %v10818_v36 = vadd.f32 %v10817_v51, %v10816_v53  ;;  %v10743_v40 = vpop.f32.mrf.mxu0 }
 0x7b1   :  { %v15794_v3 = vadd.f32 %v10742_v11, %v15675_v37  ;;  %v10819_v23 = vpop.f32.mrf.mxu1 }
 0x7b2   :  { %v10744_v29 = vpop.f32.mrf.mxu0  ;;  %v15797_v39 = vadd.f32 %v10818_v36, %v15722_v54 }
 0x7b3   :  { %v10745_v46 = vadd.f32 %v10744_v29, %v10743_v40  ;;  %v10820_v21 = vpop.f32.mrf.mxu1 }
 0x7b4   :  { %v10821_v19 = vadd.f32 %v10820_v21, %v10819_v23  ;;  %v10746_v33 = vpop.f32.mrf.mxu0 }
 0x7b5   :  { %v15800_v10 = vadd.f32 %v10745_v46, %v15681_v62  ;;  %v10822_v26 = vpop.f32.mrf.mxu1 }
 0x7b6   :  { %v10747_v45 = vpop.f32.mrf.mxu0  ;;  %v15803_v12 = vadd.f32 %v10821_v19, %v15728_v50 }
 0x7b7   :  { %v10748_v32 = vadd.f32 %v10747_v45, %v10746_v33  ;;  %v10823_v37 = vpop.f32.mrf.mxu1 }
 0x7b8   :  { %v10824_v53 = vadd.f32 %v10823_v37, %v10822_v26  ;;  %v10749_v49 = vpop.f32.mrf.mxu0 }
 0x7b9   :  { %v15806_v11 = vadd.f32 %v10748_v32, %v15687_v14  ;;  %v15808_v54 = vpop.f32.mrf.mxu1 }
 0x7ba   :  { %v10750_v51 = vpop.f32.mrf.mxu0  ;;  %v15811_v36 = vadd.f32 %v10824_v53, %v15734_v47 }
 0x7bb   :  { %v10751_v62 = vadd.f32 %v10750_v51, %v10749_v49  ;;  %v15813_v40 = vpop.f32.mrf.mxu1 }
 0x7bc   :  { %v10752_v23 = vpop.f32.mrf.mxu0 }
 0x7bd   :  { %v15816_v50 = vadd.f32 %v10751_v62, %v15693_v0  ;;  %v15818_v29 = vpop.f32.mrf.mxu1 }
 0x7be   :  { %v10753_v46 = vpop.f32.mrf.mxu0 }
 0x7bf   :  { %v10754_v21 = vadd.f32 %v10753_v46, %v10752_v23  ;;  %v15820_v19 = vpop.f32.mrf.mxu1 }
 0x7c0   :  { %v10755_v14 = vpop.f32.mrf.mxu0 }
 0x7c1   :  { %v15823_v33 = vadd.f32 %v10754_v21, %v15699_v15  ;;  %v15825_v26 = vpop.f32.mrf.mxu1 }
 0x7c2   :  { %v10756_v47 = vpop.f32.mrf.mxu0 }
 0x7c3   :  { %v10757_v45 = vadd.f32 %v10756_v47, %v10755_v14  ;;  %v15827_v32 = vpop.f32.mrf.mxu1 }
 0x7c4   :  { %v10758_v37 = vpop.f32.mrf.mxu0 }
 0x7c5   :  { %v15830_v0 = vadd.f32 %v10757_v45, %v15706_v34  ;;  %v15832_v53 = vpop.f32.mrf.mxu1 }
 0x7c6   :  { %v10759_v49 = vpop.f32.mrf.mxu0 }
 0x7c7   :  { %v10760_v51 = vadd.f32 %v10759_v49, %v10758_v37  ;;  %v15834_v62 = vpop.f32.mrf.mxu1 }
 0x7c8   :  { %v10761_v23 = vpop.f32.mrf.mxu0 }
 0x7c9   :  { %v15837_v15 = vadd.f32 %v10760_v51, %v15713_v16  ;;  %v15839_v46 = vpop.f32.mrf.mxu1 }
 0x7ca   :  { %v10762_v21 = vpop.f32.mrf.mxu0 }
 0x7cb   :  { %17383 = vst [vmem:[#allocation47_spill] sm:$0xff] %v15837_v15  ;;  %v10763_v14 = vadd.f32 %v10762_v21, %v10761_v23  ;;  %v15841_v47 = vpop.f32.mrf.mxu1 }
 0x7cc   :  { %v10764_v35 = vpop.f32.mrf.mxu0 }
 0x7cd   :  { %v15844_v34 = vadd.f32 %v10763_v14, %v15719_v31  ;;  %v15846_v45 = vpop.f32.mrf.mxu1 }
 0x7ce   :  { %v10765_v61 = vpop.f32.mrf.mxu0 }
 0x7cf   :  { %v10766_v37 = vadd.f32 %v10765_v61, %v10764_v35  ;;  %v15848_v49 = vpop.f32.mrf.mxu1 }
 0x7d0   :  { %v10767_v5 = vpop.f32.mrf.mxu0 }
 0x7d1   :  { %v15851_v16 = vadd.f32 %v10766_v37, %v15725_v17  ;;  %v15853_v51 = vpop.f32.mrf.mxu1 }
 0x7d2   :  { %v10768_v63 = vpop.f32.mrf.mxu0 }
 0x7d3   :  { %v10769_v23 = vadd.f32 %v10768_v63, %v10767_v5  ;;  %v15855_v21 = vpop.f32.mrf.mxu1 }
 0x7d4   :  { %v10770_v20 = vpop.f32.mrf.mxu0 }
 0x7d5   :  { %v15858_v31 = vadd.f32 %v10769_v23, %v15731_v30  ;;  %v15860_v14 = vpop.f32.mrf.mxu1 }
 0x7d6   :  { %v10771_v28 = vpop.f32.mrf.mxu0 }
 0x7d7   :  { %17384 = vst [vmem:[#allocation41_spill] sm:$0xff] %v15858_v31  ;;  %v10772_v61 = vadd.f32 %v10771_v28, %v10770_v20  ;;  %v15862_v35 = vpop.f32.mrf.mxu1 }
 0x7d8   :  { %v10773_v59 = vpop.f32.mrf.mxu0 }
 0x7d9   :  { %v15865_v17 = vadd.f32 %v10772_v61, %v15737_v43  ;;  %v15867_v37 = vpop.f32.mrf.mxu1 }
 0x7da   :  { %v10774_v52 = vpop.f32.mrf.mxu0 }
 0x7db   :  { %17385 = vst [vmem:[#allocation42_spill] sm:$0xff] %v15865_v17  ;;  %v10775_v63 = vadd.f32 %v10774_v52, %v10773_v59  ;;  %v15869_v5 = vpop.f32.mrf.mxu1 }
 0x7dc   :  { %v15871_v56 = vpop.f32.mrf.mxu0 }
 0x7dd   :  { %v15874_v30 = vadd.f32 %v10775_v63, %v15743_v4  ;;  %v15876_v23 = vpop.f32.mrf.mxu1 }
 0x7de   :  { %v15878_v28 = vpop.f32.mrf.mxu0 }
 0x7df   :  { %17386 = vst [vmem:[#allocation43_spill] sm:$0xff] %v15874_v30  ;;  %v15880_v20 = vpop.f32.mrf.mxu1 }
 0x7e0   :  { %v11605_v60 = vpop.f32.mrf.mxu0 }
 0x7e1   :  { %v15882_v43 = vpop.f32.mrf.mxu1  ;;  %v15887_v59 = vadd.f32 %v11605_v60, %v15767_v2 }
 0x7e2   :  { %v7136_v61 = vpop.f32.mrf.mxu0 }
 0x7e3   :  { %v15884_v55 = vpop.f32.mrf.mxu1  ;;  %17387 = vst [vmem:[#allocation19_spill] sm:$0xff] %v15887_v59  ;;  %v15895_v17 = vadd.f32 %v7136_v61, %v15755_v58 }
 0x7e4   :  { %v11606_v52 = vpop.f32.mrf.mxu0 }
 0x7e5   :  { %v15889_v25 = vpop.f32.mrf.mxu1  ;;  %v15892_v4 = vadd.f32 %v11606_v52, %v15773_v41  ;;  %17389 = vst [vmem:[#allocation45_spill] sm:$0xff] %v15895_v17 }
 0x7e6   :  { %v7139_v63 = vpop.f32.mrf.mxu0 }
 0x7e7   :  { %17388 = vst [vmem:[#allocation44_spill] sm:$0xff] %v15892_v4  ;;  %v15899_v31 = vpack.c.bf16 %v15892_v4, %v15887_v59  ;;  %v15901_v30 = vpop.f32.mrf.mxu1  ;;  %v15904_v22 = vadd.f32 %v7139_v63, %v15761_v1  ;;  %v10827_v1 = vadd.f32 %v15813_v40, %v15808_v54 }
 0x7e8   :  { %v11609_v60 = vpop.f32.mrf.mxu0 }
 0x7e9   :  { %17390 = vst [vmem:[#allocation46_spill] sm:$0xff] %v15899_v31  ;;  %17391 = vst [vmem:[#allocation48_spill] sm:$0xff] %v15904_v22  ;;  %v15908_v2 = vpack.c.bf16 %v15904_v22, %v15895_v17  ;;  %v15910_v41 = vpop.f32.mrf.mxu1  ;;  %v15915_v61 = vadd.f32 %v11609_v60, %v15791_v8 }
 0x7ea   :  { %v7152_v52 = vpop.f32.mrf.mxu0 }
 0x7eb   :  { %17392 = vst [vmem:[#allocation49_spill] sm:$0xff] %v15908_v2  ;;  %v15912_v15 = vpop.f32.mrf.mxu1  ;;  %v10830_v2 = vadd.f32 %v15820_v19, %v15818_v29  ;;  %v15927_v17 = vadd.f32 %v7152_v52, %v15779_v9  ;;  %v6968_v9 = vadd.f32 %v10827_v1, %v15740_v44 }
 0x7ec   :  { %v11610_v58 = vpop.f32.mrf.mxu0 }
 0x7ed   :  { %v15917_v31 = vpop.f32.mrf.mxu1  ;;  %v15920_v59 = vadd.f32 %v11610_v58, %v15797_v39  ;;  %17393 = vst [vmem:[#allocation50_spill] sm:$0xff] %v15927_v17  ;;  %v6969_v52 = vadd.f32 %v10830_v2, %v15746_v57 }
 0x7ee   :  { %v7155_v63 = vpop.f32.mrf.mxu0 }
 0x7ef   :  { %v15931_v22 = vpack.c.bf16 %v15920_v59, %v15915_v61  ;;  %v15933_v8 = vpop.f32.mrf.mxu1  ;;  %v15936_v60 = vadd.f32 %v7155_v63, %v15785_v48  ;;  %v10839_v63 = vadd.f32 %v15841_v47, %v15839_v46  ;;  %v10833_v46 = vadd.f32 %v15827_v32, %v15825_v26 }
 0x7f0   :  { %v11613_v39 = vpop.f32.mrf.mxu0  ;;  %v10836_v47 = vadd.f32 %v15834_v62, %v15832_v53 }
 0x7f1   :  { %17394 = vst [vmem:[#allocation51_spill] sm:$0xff] %v15931_v22  ;;  %v15940_v54 = vpack.c.bf16 %v15936_v60, %v15927_v17  ;;  %v15942_v40 = vpop.f32.mrf.mxu1  ;;  %v15948_v22 = vadd.f32 %v11613_v39, %v6968_v9  ;;  %v10842_v17 = vadd.f32 %v15848_v49, %v15846_v45  ;;  %v6970_v26 = vadd.f32 %v10833_v46, %v15752_v42 }
 0x7f2   :  { %v7168_v29 = vpop.f32.mrf.mxu0  ;;  %v6971_v62 = vadd.f32 %v10836_v47, %v15758_v18  ;;  %v16005_v18 = vld [vmem:[#allocation4] sm:$0xff] }
 0x7f3   :  { %17395 = vst [vmem:[#allocation14_spill] sm:$0xff] %v15940_v54  ;;  %v15945_v19 = vpop.f32.mrf.mxu1  ;;  %v15959_v44 = vadd.f32 %v7168_v29, %v15803_v12  ;;  %v6972_v29 = vadd.f32 %v10839_v63, %v15764_v27  ;;  %v10854_v27 = vadd.f32 %v15880_v20, %v15876_v23 }
 0x7f4   :  { %v11614_v58 = vpop.f32.mrf.mxu0 }
 0x7f5   :  { %v15950_v4 = vpop.f32.mrf.mxu1  ;;  %v15952_v48 = vadd.f32 %v11614_v58, %v6969_v52  ;;  %v10851_v58 = vadd.f32 %v15869_v5, %v15867_v37  ;;  %v10845_v37 = vadd.f32 %v15855_v21, %v15853_v51  ;;  %v10848_v5 = vadd.f32 %v15862_v35, %v15860_v14 }
 0x7f6   :  { %v7171_v54 = vpop.f32.mrf.mxu0  ;;  %v6977_v51 = vadd.f32 %v10854_v27, %v15794_v3  ;;  %v10866_v3 = vadd.f32 %v15933_v8, %v15917_v31  ;;  %v10860_v31 = vadd.f32 %v15901_v30, %v15889_v25 }
 0x7f7   :  { %v15963_v57 = vpack.c.bf16 %v15952_v48, %v15948_v22  ;;  %v15965_v2 = vpop.f32.mrf.mxu1  ;;  %v15968_v1 = vadd.f32 %v7171_v54, %v15811_v36  ;;  %v6973_v36 = vadd.f32 %v10842_v17, %v15770_v38  ;;  %v6976_v47 = vadd.f32 %v10851_v58, %v15788_v7 }
 0x7f8   :  { %v11617_v39 = vpop.f32.mrf.mxu0  ;;  %v6974_v35 = vadd.f32 %v10845_v37, %v15776_v24  ;;  %v6975_v7 = vadd.f32 %v10848_v5, %v15782_v6 }
 0x7f9   :  { %v15976_v12 = vpack.c.bf16 %v15968_v1, %v15959_v44  ;;  %v15978_v45 = vpop.f32.mrf.mxu1  ;;  %v15984_v52 = vadd.f32 %v11617_v39, %v6972_v29 }
 0x7fa   :  { %v7184_v49 = vpop.f32.mrf.mxu0 }
 0x7fb   :  { %17396 = vst [vmem:[#allocation6_spill] sm:$0xff] %v15976_v12  ;;  %v15981_v9 = vpop.f32.mrf.mxu1  ;;  %v15996_v63 = vadd.f32 %v7184_v49, %v6970_v26 }
 0x7fc   :  { %v11618_v54 = vpop.f32.mrf.mxu0 }
 0x7fd   :  { %v15987_v32 = vpop.f32.mrf.mxu1  ;;  %v15989_v53 = vadd.f32 %v11618_v54, %v6973_v36  ;;  %v10863_v36 = vadd.f32 %v15912_v15, %v15910_v41  ;;  %v10857_v15 = vadd.f32 %v15884_v55, %v15882_v43  ;;  %v6981_v55 = vadd.f32 %v10866_v3, %v15823_v33 }
 0x7fe   :  { %v7187_v12 = vpop.f32.mrf.mxu0 }
 0x7ff   :  { %v16000_v38 = vpack.c.bf16 %v15989_v53, %v15984_v52  ;;  %v10877_v42 = vpop.f32.mrf.mxu1  ;;  %v16002_v17 = vadd.f32 %v7187_v12, %v6971_v62  ;;  %11636 = vmatpush3.msra.mxu1 %v15989_v53  ;;  %v6978_v30 = vadd.f32 %v10857_v15, %v15800_v10 }
 0x800   :  { %v11621_v39 = vpop.f32.mrf.mxu0  ;;  %11637 = vmatprep.subr.mxu1 %v16005_v18 }
 0x801   :  { %v16014_v23 = vpack.c.bf16 %v16002_v17, %v15996_v63  ;;  %v16016_v20 = vpop.f32.mrf.mxu1  ;;  %11638 = vmatpush3.msra.mxu1 %v15984_v52  ;;  %v16026_v14 = vadd.f32 %v11621_v39, %v6976_v47  ;;  %v6980_v39 = vadd.f32 %v10863_v36, %v15816_v50  ;;  %v10875_v50 = vadd.f32 %v15981_v9, %v15978_v45 }
 0x802   :  { %v7200_v46 = vpop.f32.mrf.mxu0  ;;  %11639 = vmatprep.subr.mxu1 %v16005_v18  ;;  %v10878_v47 = vadd.f32 %v10877_v42, %v15987_v32  ;;  %v10872_v9 = vadd.f32 %v15965_v2, %v15950_v4  ;;  %v10778_v2 = vadd.f32 %v15878_v28, %v15871_v56 }
 0x803   :  { %v16021_v12 = vpop.f32.mrf.mxu1  ;;  %11640 = vmatpush3.msra.mxu1 %v16002_v17  ;;  %v16040_v26 = vadd.f32 %v7200_v46, %v6974_v35  ;;  %v6979_v46 = vadd.f32 %v10860_v31, %v15806_v11  ;;  %v10869_v11 = vadd.f32 %v15945_v19, %v15942_v40  ;;  %v6984_v19 = vadd.f32 %v10875_v50, %v15844_v34  ;;  %v17397_v34 = vld [vmem:[#allocation50_spill] sm:$0xff]  ;;  %v17401_v50 = vld [vmem:[#allocation19_spill] sm:$0xff] }
 0x804   :  { %v11622_v21 = vpop.f32.mrf.mxu0  ;;  %11641 = vmatprep.subr.mxu1 %v16005_v18  ;;  %v6985_v4 = vadd.f32 %v10878_v47, %v15851_v16 }
 0x805   :  { %v16029_v49 = vpop.f32.mrf.mxu1  ;;  %v16031_v29 = vadd.f32 %v11622_v21, %v6977_v51  ;;  %11642 = vmatpush3.msra.mxu1 %v15996_v63 }
 0x806   :  { %v7203_v54 = vpop.f32.mrf.mxu0  ;;  %11643 = vmatprep.subr.mxu1 %v16005_v18 }
 0x807   :  { %v16044_v24 = vpack.c.bf16 %v16031_v29, %v16026_v14  ;;  %v16046_v62 = vpop.f32.mrf.mxu1  ;;  %v16048_v58 = vadd.f32 %v7203_v54, %v6975_v7  ;;  %11644 = vmatpush3.msra.mxu1 %v15952_v48  ;;  %v6982_v7 = vadd.f32 %v10869_v11, %v15830_v0 }
 0x808   :  { %v11625_v6 = vpop.f32.mrf.mxu0  ;;  %11645 = vmatprep.subr.mxu1 %v16005_v18 }
 0x809   :  { %v16058_v41 = vpack.c.bf16 %v16048_v58, %v16040_v26  ;;  %v10885_v8 = vpop.f32.mrf.mxu1  ;;  %11646 = vmatpush3.msra.mxu1 %v15948_v22  ;;  %v16066_v25 = vadd.f32 %v11625_v6, %v6980_v39  ;;  %v17398_v6 = vld [vmem:[#allocation47_spill] sm:$0xff]  ;;  %v17399_v39 = vld [vmem:[#allocation44_spill] sm:$0xff] }
 0x80a   :  { %v7216_v27 = vpop.f32.mrf.mxu0  ;;  %11647 = vmatprep.subr.mxu1 %v16005_v18  ;;  %v6983_v16 = vadd.f32 %v10872_v9, %v17398_v6 }
 0x80b   :  { %v10886_v37 = vpop.f32.mrf.mxu1  ;;  %11648 = vmatpush3.msra.mxu1 %v15968_v1  ;;  %v16079_v33 = vadd.f32 %v7216_v27, %v6978_v30  ;;  %v10884_v30 = vadd.f32 %v16046_v62, %v16029_v49  ;;  %v17404_v62 = vld [vmem:[#allocation41_spill] sm:$0xff] }
 0x80c   :  { %v11626_v43 = vpop.f32.mrf.mxu0  ;;  %11649 = vmatprep.subr.mxu1 %v16005_v18  ;;  %v10887_v15 = vadd.f32 %v10886_v37, %v10885_v8  ;;  %v10881_v8 = vadd.f32 %v16021_v12, %v16016_v20  ;;  %v17402_v20 = vld [vmem:[#allocation43_spill] sm:$0xff] }
 0x80d   :  { %v16069_v5 = vadd.f32 %v11626_v43, %v6981_v55  ;;  %11650 = vmatpush3.msra.mxu1 %v15959_v44  ;;  %v10888_v10 = vpop.f32.mrf.mxu1  ;;  %v17400_v55 = vld [vmem:[#allocation34_spill] sm:$0xff] }
 0x80e   :  { %v7219_v51 = vpop.f32.mrf.mxu0  ;;  %11654 = vmatprep.subr.mxu1 %v16005_v18  ;;  %11652 = vmatmul.mubr.msk.f32.vlgmr.msra.gmra.mxu1 %vm388_vm1, %v17364_v13  ;;  %v6572_v43 = vadd.f32 %v10778_v2, %v17400_v55  ;;  %v6988_v12 = vadd.f32 %v10887_v15, %v17402_v20  ;;  %v7448_v15 = vmul.f32 %v16002_v17, %v16002_v17 }
 0x80f   :  { %v16083_v21 = vpack.c.bf16 %v16069_v5, %v16066_v25  ;;  %v16085_v35 = vadd.f32 %v7219_v51, %v6979_v46  ;;  %11655 = vmatpush3.msra.mxu1 %v15920_v59  ;;  %11712 = vmatpush3.msra.mxu0 %v16069_v5  ;;  %v10889_v40 = vpop.f32.mrf.mxu1  ;;  %v17403_v51 = vld [vmem:[#allocation48_spill] sm:$0xff]  ;;  %v7446_v17 = vmul.f32 %v15952_v48, %v15952_v48 }
 0x810   :  { %v11629_v45 = vpop.f32.mrf.mxu0  ;;  %11656 = vmatprep.subr.mxu1 %v16005_v18  ;;  %11713 = vmatprep.subr.mxu0 %v16005_v18  ;;  %v10890_v31 = vadd.f32 %v10889_v40, %v10888_v10  ;;  %v6986_v10 = vadd.f32 %v10881_v8, %v17404_v62  ;;  %v17406_v40 = vld [vmem:[#allocation42_spill] sm:$0xff]  ;;  %v7444_v48 = vmul.f32 %v15968_v1, %v15968_v1 }
 0x811   :  { %v16097_v32 = vpack.c.bf16 %v16085_v35, %v16079_v33  ;;  %11657 = vmatpush3.msra.mxu1 %v15915_v61  ;;  %11714 = vmatpush3.msra.mxu0 %v16066_v25  ;;  %v16112_v54 = vadd.f32 %v11629_v45, %v6984_v19  ;;  %v6987_v19 = vadd.f32 %v10884_v30, %v17406_v40 }
 0x812   :  { %v7232_v42 = vpop.f32.mrf.mxu0  ;;  %11658 = vmatprep.subr.mxu1 %v16005_v18  ;;  %11715 = vmatprep.subr.mxu0 %v16005_v18  ;;  %v6989_v49 = vadd.f32 %v10890_v31, %v6572_v43  ;;  %v7302_v1 = vmul.f32 %v15920_v59, %v15920_v59  ;;  %v7300_v59 = vmul.f32 %v15936_v60, %v15936_v60 }
 0x813   :  { %11659 = vmatpush3.msra.mxu1 %v15936_v60  ;;  %11716 = vmatpush3.msra.mxu0 %v16085_v35  ;;  %v16121_v0 = vadd.f32 %v7232_v42, %v6982_v7  ;;  %v17405_v42 = vld [vmem:[#allocation45_spill] sm:$0xff]  ;;  %v7299_v31 = vmul.f32 %v17397_v34, %v17397_v34  ;;  %v7296_v60 = vmul.f32 %v17403_v51, %v17403_v51 }
 0x814   :  { %v11630_v36 = vpop.f32.mrf.mxu0  ;;  %11660 = vmatprep.subr.mxu1 %v16005_v18  ;;  %11717 = vmatprep.subr.mxu0 %v16005_v18  ;;  %v7668_v8 = vmul.f32 %v16066_v25, %v16066_v25  ;;  %v7665_v25 = vmul.f32 %v16031_v29, %v16031_v29  ;;  %v7664_v55 = vmul.f32 %v16026_v14, %v16026_v14 }
 0x815   :  { %v16114_v3 = vadd.f32 %v11630_v36, %v6985_v4  ;;  %11661 = vmatpush3.msra.mxu1 %v17397_v34  ;;  %11718 = vmatpush3.msra.mxu0 %v16079_v33  ;;  %v7450_v4 = vmul.f32 %v15989_v53, %v15989_v53  ;;  %v7449_v53 = vmul.f32 %v15984_v52, %v15984_v52 }
 0x816   :  { %v7235_v56 = vpop.f32.mrf.mxu0  ;;  %11662 = vmatprep.subr.mxu1 %v16005_v18  ;;  %11719 = vmatprep.subr.mxu0 %v16005_v18  ;;  %v7447_v52 = vmul.f32 %v15996_v63, %v15996_v63  ;;  %v7445_v63 = vmul.f32 %v15948_v22, %v15948_v22  ;;  %v7443_v22 = vmul.f32 %v15959_v44, %v15959_v44 }
 0x817   :  { %v16125_v28 = vpack.c.bf16 %v16114_v3, %v16112_v54  ;;  %v16127_v27 = vadd.f32 %v7235_v56, %v6983_v16  ;;  %11663 = vmatpush3.msra.mxu1 %v17399_v39  ;;  %11720 = vmatpush3.msra.mxu0 %v16031_v29  ;;  %v7301_v44 = vmul.f32 %v15915_v61, %v15915_v61 }
 0x818   :  { %v11633_v37 = vpop.f32.mrf.mxu0  ;;  %11664 = vmatprep.subr.mxu1 %v16005_v18  ;;  %11721 = vmatprep.subr.mxu0 %v16005_v18  ;;  %v7298_v61 = vmul.f32 %v17399_v39, %v17399_v39  ;;  %v7297_v56 = vmul.f32 %v17401_v50, %v17401_v50  ;;  %v7295_v34 = vmul.f32 %v17405_v42, %v17405_v42 }
 0x819   :  { %v16140_v46 = vpack.c.bf16 %v16127_v27, %v16121_v0  ;;  %11665 = vmatpush3.msra.mxu1 %v17401_v50  ;;  %11722 = vmatpush3.msra.mxu0 %v16026_v14  ;;  %v16152_v45 = vadd.f32 %v11633_v37, %v6988_v12  ;;  %v7669_v39 = vmul.f32 %v16069_v5, %v16069_v5 }
 0x81a   :  { %v7248_v47 = vpop.f32.mrf.mxu0  ;;  %11666 = vmatprep.subr.mxu1 %v16005_v18  ;;  %11723 = vmatprep.subr.mxu0 %v16005_v18  ;;  %v7667_v37 = vmul.f32 %v16085_v35, %v16085_v35  ;;  %v7666_v5 = vmul.f32 %v16079_v33, %v16079_v33  ;;  %v7663_v35 = vmul.f32 %v16048_v58, %v16048_v58 }
 0x81b   :  { %11667 = vmatpush3.msra.mxu1 %v17403_v51  ;;  %11724 = vmatpush3.msra.mxu0 %v16048_v58  ;;  %v16164_v7 = vadd.f32 %v7248_v47, %v6986_v10  ;;  %v7662_v33 = vmul.f32 %v16040_v26, %v16040_v26  ;;  %v7818_v14 = vmul.f32 %v16152_v45, %v16152_v45 }
 0x81c   :  { %v11634_v11 = vpop.f32.mrf.mxu0  ;;  %11668 = vmatprep.subr.mxu1 %v16005_v18  ;;  %11725 = vmatprep.subr.mxu0 %v16005_v18  ;;  %v7815_v43 = vmul.f32 %v16114_v3, %v16114_v3  ;;  %v7814_v30 = vmul.f32 %v16112_v54, %v16112_v54  ;;  %v7813_v50 = vmul.f32 %v16127_v27, %v16127_v27 }
 0x81d   :  { %v16154_v9 = vadd.f32 %v11634_v11, %v6989_v49  ;;  %11669 = vmatpush3.msra.mxu1 %v17405_v42  ;;  %11726 = vmatpush3.msra.mxu0 %v16040_v26  ;;  %v7816_v58 = vmul.f32 %v16164_v7, %v16164_v7  ;;  %v7812_v47 = vmul.f32 %v16121_v0, %v16121_v0  ;;  %v17407_v42 = vld [vmem:[#allocation39_spill] sm:$0xff] }
 0x81e   :  { %v7251_v2 = vpop.f32.mrf.mxu0  ;;  %11670 = vmatprep.mubr.msk.f32.mxu1 %vm11993_vm0, %v16005_v18  ;;  %11673 = vmatprep.subr.mxu1 %v16005_v18 }
 0x81f   :  { %v16168_v36 = vpack.c.bf16 %v16154_v9, %v16152_v45  ;;  %v16170_v6 = vadd.f32 %v7251_v2, %v6987_v19  ;;  %11749 = vmatprep.subr.mxu0 %v16005_v18  ;;  %11671 = vmatmul.mubr.msk.f32.vlgmr.msra.gmra.mxu1 %vm388_vm1, %v17364_v13  ;;  %v7819_v29 = vmul.f32 %v16154_v9, %v16154_v9 }
 0x820   :  { %11674 = vmatpush3.msra.mxu1 %v7450_v4  ;;  %11728 = vmatmul.mubr.msk.f32.vlgmr.msra.gmra.mxu0 %vm388_vm1, %v17364_v13 }
 0x821   :  { %v16181_v16 = vpack.c.bf16 %v16170_v6, %v16164_v7  ;;  %11750 = vmatpush3.msra.mxu0 %v16154_v9  ;;  %11675 = vmatprep.subr.mxu1 %v16005_v18  ;;  %v7817_v26 = vmul.f32 %v16170_v6, %v16170_v6 }
 0x822   :  { %11751 = vmatprep.subr.mxu0 %v16005_v18  ;;  %11676 = vmatpush3.msra.mxu1 %v7449_v53 }
 0x823   :  { %11752 = vmatpush3.msra.mxu0 %v16152_v45  ;;  %11677 = vmatprep.subr.mxu1 %v16005_v18 }
 0x824   :  { %11753 = vmatprep.subr.mxu0 %v16005_v18  ;;  %11678 = vmatpush3.msra.mxu1 %v7448_v15 }
 0x825   :  { %11754 = vmatpush3.msra.mxu0 %v16170_v6  ;;  %11679 = vmatprep.subr.mxu1 %v16005_v18 }
 0x826   :  { %11755 = vmatprep.subr.mxu0 %v16005_v18  ;;  %11680 = vmatpush3.msra.mxu1 %v7447_v52 }
 0x827   :  { %11756 = vmatpush3.msra.mxu0 %v16164_v7  ;;  %11681 = vmatprep.subr.mxu1 %v16005_v18 }
 0x828   :  { %11757 = vmatprep.subr.mxu0 %v16005_v18  ;;  %11682 = vmatpush3.msra.mxu1 %v7446_v17  ;;  %v17408_v17 = vld [vmem:[#allocation38_spill] sm:$0xff] }
 0x829   :  { %11758 = vmatpush3.msra.mxu0 %v16114_v3  ;;  %11683 = vmatprep.subr.mxu1 %v16005_v18 }
 0x82a   :  { %11759 = vmatprep.subr.mxu0 %v16005_v18  ;;  %11684 = vmatpush3.msra.mxu1 %v7445_v63 }
 0x82b   :  { %11760 = vmatpush3.msra.mxu0 %v16112_v54  ;;  %11685 = vmatprep.subr.mxu1 %v16005_v18 }
 0x82c   :  { %11761 = vmatprep.subr.mxu0 %v16005_v18  ;;  %11686 = vmatpush3.msra.mxu1 %v7444_v48 }
 0x82d   :  { %11762 = vmatpush3.msra.mxu0 %v16127_v27  ;;  %11687 = vmatprep.subr.mxu1 %v16005_v18 }
 0x82e   :  { %11763 = vmatprep.subr.mxu0 %v16005_v18  ;;  %11688 = vmatpush3.msra.mxu1 %v7443_v22 }
 0x82f   :  { %11764 = vmatpush3.msra.mxu0 %v16121_v0  ;;  %11765 = vmatprep.mubr.msk.f32.mxu0 %vm11993_vm0, %v16005_v18 }
 0x830   :  { %11689 = vmatprep.mubr.msk.f32.mxu1 %vm11993_vm0, %v16005_v18  ;;  %11692 = vmatprep.subr.mxu1 %v16005_v18 }
 0x831   :  { %11766 = vmatmul.mubr.msk.f32.vlgmr.msra.gmra.mxu0 %vm388_vm1, %v17364_v13  ;;  %11690 = vmatmul.mubr.msk.f32.vlgmr.msra.gmra.mxu1 %vm388_vm1, %v17364_v13 }
 0x832   :  { %11693 = vmatpush3.msra.mxu1 %v7302_v1  ;;  %11708 = vmatprep.mubr.msk.f32.mxu1 %vm11993_vm0, %v16005_v18 }
 0x833   :  { %11694 = vmatprep.subr.mxu1 %v16005_v18 }
 0x834   :  { %11695 = vmatpush3.msra.mxu1 %v7301_v44 }
 0x835   :  { %11696 = vmatprep.subr.mxu1 %v16005_v18 }
 0x836   :  { %11697 = vmatpush3.msra.mxu1 %v7300_v59 }
 0x837   :  { %11698 = vmatprep.subr.mxu1 %v16005_v18 }
 0x838   :  { %11699 = vmatpush3.msra.mxu1 %v7299_v31  ;;  %v17409_v31 = vld [vmem:[#allocation11_spill] sm:$0xff] }
 0x839   :  { %11700 = vmatprep.subr.mxu1 %v16005_v18 }
 0x83a   :  { %11701 = vmatpush3.msra.mxu1 %v7298_v61  ;;  %v9465_v61 = vunpack.c.l.bf16 %v17409_v31 }
 0x83b   :  { %11702 = vmatprep.subr.mxu1 %v16005_v18 }
 0x83c   :  { %11703 = vmatpush3.msra.mxu1 %v7297_v56  ;;  %v9466_v56 = vunpack.c.h.bf16 %v17409_v31 }
 0x83d   :  { %11704 = vmatprep.subr.mxu1 %v16005_v18 }
 0x83e   :  { %11705 = vmatpush3.msra.mxu1 %v7296_v60  ;;  %v17410_v60 = vld [vmem:[#allocation28_spill] sm:$0xff] }
 0x83f   :  { %11706 = vmatprep.subr.mxu1 %v16005_v18 }
 0x840   :  { %11707 = vmatpush3.msra.mxu1 %v7295_v34  ;;  %v9461_v34 = vunpack.c.l.bf16 %v17410_v60 }
 0x841   :  { %11730 = vmatprep.subr.mxu1 %v16005_v18  ;;  %11709 = vmatmul.mubr.msk.f32.vlgmr.msra.gmra.mxu1 %vm388_vm1, %v17364_v13 }
 0x842   :  { %11731 = vmatpush3.msra.mxu1 %v7669_v39  ;;  %11746 = vmatprep.mubr.msk.f32.mxu1 %vm11993_vm0, %v16005_v18  ;;  %v9462_v39 = vunpack.c.h.bf16 %v17410_v60 }
 0x843   :  { %11732 = vmatprep.subr.mxu1 %v16005_v18 }
 0x844   :  { %11733 = vmatpush3.msra.mxu1 %v7668_v8  ;;  %v17411_v8 = vld [vmem:[#allocation29_spill] sm:$0xff] }
 0x845   :  { %11734 = vmatprep.subr.mxu1 %v16005_v18 }
 0x846   :  { %11735 = vmatpush3.msra.mxu1 %v7667_v37  ;;  %v9473_v37 = vunpack.c.l.bf16 %v17411_v8 }
 0x847   :  { %11736 = vmatprep.subr.mxu1 %v16005_v18 }
 0x848   :  { %11737 = vmatpush3.msra.mxu1 %v7666_v5  ;;  %v9474_v5 = vunpack.c.h.bf16 %v17411_v8 }
 0x849   :  { %11738 = vmatprep.subr.mxu1 %v16005_v18 }
 0x84a   :  { %11739 = vmatpush3.msra.mxu1 %v7665_v25  ;;  %v17412_v25 = vld [vmem:[#allocation26_spill] sm:$0xff] }
 0x84b   :  { %11740 = vmatprep.subr.mxu1 %v16005_v18 }
 0x84c   :  { %11741 = vmatpush3.msra.mxu1 %v7664_v55  ;;  %v9469_v55 = vunpack.c.l.bf16 %v17412_v25 }
 0x84d   :  { %11742 = vmatprep.subr.mxu1 %v16005_v18 }
 0x84e   :  { %11743 = vmatpush3.msra.mxu1 %v7663_v35  ;;  %v9470_v35 = vunpack.c.h.bf16 %v17412_v25 }
 0x84f   :  { %11744 = vmatprep.subr.mxu1 %v16005_v18 }
 0x850   :  { %11745 = vmatpush3.msra.mxu1 %v7662_v33  ;;  %v17413_v33 = vld [vmem:[#allocation30_spill] sm:$0xff] }
 0x851   :  { %11768 = vmatprep.subr.mxu1 %v16005_v18  ;;  %11747 = vmatmul.mubr.msk.f32.vlgmr.msra.gmra.mxu1 %vm388_vm1, %v17364_v13 }
 0x852   :  { %11769 = vmatpush3.msra.mxu1 %v7819_v29  ;;  %11784 = vmatprep.mubr.msk.f32.mxu1 %vm11993_vm0, %v16005_v18  ;;  %v9481_v29 = vunpack.c.l.bf16 %v17413_v33 }
 0x853   :  { %11770 = vmatprep.subr.mxu1 %v16005_v18 }
 0x854   :  { %11771 = vmatpush3.msra.mxu1 %v7818_v14  ;;  %v9482_v14 = vunpack.c.h.bf16 %v17413_v33 }
 0x855   :  { %11772 = vmatprep.subr.mxu1 %v16005_v18 }
 0x856   :  { %11773 = vmatpush3.msra.mxu1 %v7817_v26  ;;  %v17414_v26 = vld [vmem:[#allocation31_spill] sm:$0xff] }
 0x857   :  { %11774 = vmatprep.subr.mxu1 %v16005_v18 }
 0x858   :  { %11775 = vmatpush3.msra.mxu1 %v7816_v58  ;;  %v9477_v58 = vunpack.c.l.bf16 %v17414_v26 }
 0x859   :  { %11776 = vmatprep.subr.mxu1 %v16005_v18 }
 0x85a   :  { %11777 = vmatpush3.msra.mxu1 %v7815_v43  ;;  %v9478_v43 = vunpack.c.h.bf16 %v17414_v26 }
 0x85b   :  { %11778 = vmatprep.subr.mxu1 %v16005_v18 }
 0x85c   :  { %11779 = vmatpush3.msra.mxu1 %v7814_v30  ;;  %v17415_v30 = vld [vmem:[#allocation20_spill] sm:$0xff] }
 0x85d   :  { %11780 = vmatprep.subr.mxu1 %v16005_v18 }
 0x85e   :  { %11781 = vmatpush3.msra.mxu1 %v7813_v50  ;;  %v9489_v50 = vunpack.c.l.bf16 %v17415_v30 }
 0x85f   :  { %11782 = vmatprep.subr.mxu1 %v16005_v18 }
 0x860   :  { %11783 = vmatpush3.msra.mxu1 %v7812_v47  ;;  %v9490_v47 = vunpack.c.h.bf16 %v17415_v30 }
 0x861   :  { %11785 = vmatmul.mubr.msk.f32.vlgmr.msra.gmra.mxu1 %vm388_vm1, %v17364_v13 }
 0x8ce   :  { %v7369_v54 = vpop.f32.mrf.mxu1 }
 0x8d0   :  { %v11653_v3 = vpop.f32.mrf.mxu1 }
 0x8df   :  { %v7439_v20 = vpop.f32.mrf.mxu1 }
 0x8e0   :  { %v7440_v12 = vadd.f32 %v7439_v20, %v7369_v54  ;;  %v7657_v51 = vpop.f32.mrf.mxu0  ;;  %v17416_v54 = vld [vmem:[#allocation32_spill] sm:$0xff] }
 0x8e1   :  { %v11672_v49 = vpop.f32.mrf.mxu1  ;;  %v9485_v3 = vunpack.c.l.bf16 %v17416_v54  ;;  %v9486_v20 = vunpack.c.h.bf16 %v17416_v54 }
 0x8e2   :  { %v7661_v27 = vadd.f32 %v7657_v51, %v7440_v12  ;;  %v11729_v62 = vpop.f32.mrf.mxu0  ;;  %v17417_v12 = vld [vmem:[#allocation21_spill] sm:$0xff] }
 0x8e3   :  { %v17432_v26 = vunpack.c.h.bf16 %v17417_v12 }
 0x8f1   :  { %v7807_v10 = vpop.f32.mrf.mxu0  ;;  %v7517_v11 = vpop.f32.mrf.mxu1 }
 0x8f2   :  { %v7811_v45 = vadd.f32 %v7807_v10, %v7661_v27  ;;  %v17418_v27 = vld [vmem:[#allocation23_spill] sm:$0xff] }
 0x8f3   :  { %v11691_v9 = vpop.f32.mrf.mxu1  ;;  %v11767_v0 = vpop.f32.mrf.mxu0  ;;  %v9493_v62 = vunpack.c.l.bf16 %v17418_v27  ;;  %v9494_v10 = vunpack.c.h.bf16 %v17418_v27 }
 0x8f4   :  { %v7891_v40 = vadd.f32 %v7811_v45, %v17407_v42  ;;  %v17420_v0 = vld [vmem:[#allocation37_spill] sm:$0xff]  ;;  %v17427_v9 = vld [vmem:[#allocation51_spill] sm:$0xff]  ;;  %v17428_v45 = vld [vmem:[#allocation14_spill] sm:$0xff] }
 0x8f6   :  { %v16310_v53 = vmul.f32 0.001953125, %v7891_v40  ;;  %v17429_v40 = vld [vmem:[#allocation6_spill] sm:$0xff] }
 0x8f8   :  { %v8058_v48 = vmul.f32 %v16310_v53, %v16310_v53 }
 0x901   :  { %v7587_v18 = vpop.f32.mrf.mxu1 }
 0x902   :  { %v7588_v13 = vadd.f32 %v7587_v18, %v7517_v11  ;;  %v17419_v11 = vld [vmem:[#allocation35_spill] sm:$0xff]  ;;  %v17421_v18 = vld [vmem:[#allocation36_spill] sm:$0xff] }
 0x903   :  { %v11710_v19 = vpop.f32.mrf.mxu1  ;;  %v17435_v54 = vunpack.c.l.bf16 %v17419_v11 }
 0x911   :  { %v7736_v4 = vpop.f32.mrf.mxu1 }
 0x912   :  { %v7740_v7 = vadd.f32 %v7736_v4, %v7588_v13  ;;  %v17430_v4 = vld [vmem:[#allocation16_spill] sm:$0xff] }
 0x913   :  { %v11748_v2 = vpop.f32.mrf.mxu1 }
 0x914   :  { %v17422_v2 = vld [vmem:[#allocation27_spill] sm:$0xff] }
 0x921   :  { %v7886_v6 = vpop.f32.mrf.mxu1 }
 0x922   :  { %v7890_v15 = vadd.f32 %v7886_v6, %v7740_v7  ;;  %v17423_v6 = vld [vmem:[#allocation33_spill] sm:$0xff] }
 0x923   :  { %v11786_v52 = vpop.f32.mrf.mxu1 }
 0x924   :  { %v7892_v63 = vadd.f32 %v7890_v15, %v17408_v17  ;;  %v17424_v17 = vld [vmem:[#allocation40_spill] sm:$0xff] }
 0x926   :  { %v8057_v22 = vmul.f32 0.001953125, %v7892_v63 }
 0x928   :  { %v8059_v1 = vsub.f32 %v8057_v22, %v8058_v48  ;;  %v17425_v22 = vld [vmem:[#allocation46_spill] sm:$0xff]  ;;  %v8055_v48 = vld [vmem:[%s16930_s6] sm:$0x1] }
 0x92a   :  { %v8060_v44 = vmax.f32 %v8059_v1, 0.0 }
 0x92c   :  { %v8061_v59 = vadd.f32 1e-05, %v8060_v44  ;;  %v8054_v44 = vld [vmem:[%s16929_s5] sm:$0x1] }
 0x92e   :  { %11984 = vrsqrt.f32 %v8061_v59  ;;  %v17426_v59 = vld [vmem:[#allocation49_spill] sm:$0xff] }
 0x93b   :  { %v11985_v19 = vpop.eup %11984 }
 0x93c   :  { %v8063_v13 = vmul.f32 %v11985_v19, %v8054_v44 }
 0x93e   :  { %v8064_v49 = vmul.f32 %v8063_v13, %v16310_v53  ;;  %v16383_v19 = vrot.slane %v8063_v13, %v17430_v4 }
 0x940   :  { %v8065_v7 = vsub.f32 %v8055_v48, %v8064_v49  ;;  %v8136_v63 = vmul.f32 %v9461_v34, %v16383_v19  ;;  %v8137_v53 = vmul.f32 %v9462_v39, %v16383_v19  ;;  %v8138_v13 = vmul.f32 %v9465_v61, %v16383_v19 }
 0x941   :  { %v8139_v15 = vmul.f32 %v9466_v56, %v16383_v19  ;;  %v8140_v49 = vmul.f32 %v9469_v55, %v16383_v19  ;;  %v8141_v34 = vmul.f32 %v9470_v35, %v16383_v19  ;;  %v8142_v60 = vmul.f32 %v9473_v37, %v16383_v19 }
 0x942   :  { %v8143_v61 = vmul.f32 %v9474_v5, %v16383_v19  ;;  %v8144_v31 = vmul.f32 %v9477_v58, %v16383_v19  ;;  %v8145_v56 = vmul.f32 %v9478_v43, %v16383_v19  ;;  %v8146_v39 = vmul.f32 %v9481_v29, %v16383_v19 }
 0x943   :  { %v8147_v37 = vmul.f32 %v9482_v14, %v16383_v19  ;;  %v8148_v8 = vmul.f32 %v9485_v3, %v16383_v19  ;;  %v8149_v5 = vmul.f32 %v9486_v20, %v16383_v19  ;;  %v8150_v25 = vmul.f32 %v9489_v50, %v16383_v19 }
 0x944   :  { %v8151_v55 = vmul.f32 %v9490_v47, %v16383_v19  ;;  %v8152_v35 = vmul.f32 %v9493_v62, %v16383_v19  ;;  %v8153_v33 = vmul.f32 %v9494_v10, %v16383_v19  ;;  %v17431_v29 = vunpack.c.l.bf16 %v17417_v12 }
 0x945   :  { %v8155_v58 = vmul.f32 %v17432_v26, %v16383_v19  ;;  %v17433_v43 = vunpack.c.l.bf16 %v17420_v0  ;;  %v17434_v50 = vunpack.c.h.bf16 %v17420_v0  ;;  %v8158_v3 = vmul.f32 %v17435_v54, %v16383_v19 }
 0x946   :  { %v8154_v14 = vmul.f32 %v17431_v29, %v16383_v19  ;;  %v17436_v20 = vunpack.c.h.bf16 %v17419_v11  ;;  %v17437_v12 = vunpack.c.l.bf16 %v17422_v2  ;;  %v17438_v10 = vunpack.c.h.bf16 %v17422_v2 }
 0x947   :  { %v8156_v30 = vmul.f32 %v17433_v43, %v16383_v19  ;;  %v8157_v47 = vmul.f32 %v17434_v50, %v16383_v19  ;;  %v17439_v0 = vunpack.c.l.bf16 %v17421_v18  ;;  %v17440_v26 = vunpack.c.h.bf16 %v17421_v18 }
 0x948   :  { %v8159_v27 = vmul.f32 %v17436_v20, %v16383_v19  ;;  %v8160_v62 = vmul.f32 %v17437_v12, %v16383_v19  ;;  %v8161_v48 = vmul.f32 %v17438_v10, %v16383_v19  ;;  %v17441_v11 = vunpack.c.l.bf16 %v17424_v17 }
 0x949   :  { %v8162_v29 = vmul.f32 %v17439_v0, %v16383_v19  ;;  %v8163_v43 = vmul.f32 %v17440_v26, %v16383_v19  ;;  %v17442_v54 = vunpack.c.h.bf16 %v17424_v17  ;;  %v17443_v2 = vunpack.c.l.bf16 %v17423_v6 }
 0x94a   :  { %v8164_v50 = vmul.f32 %v17441_v11, %v16383_v19  ;;  %v17444_v10 = vunpack.c.h.bf16 %v17423_v6  ;;  %v16486_v44 = vrot.slane %v8065_v7, %v17430_v4  ;;  %v17445_v18 = vunpack.c.l.bf16 %v17426_v59 }
 0x94b   :  { %v8165_v20 = vmul.f32 %v17442_v54, %v16383_v19  ;;  %v8166_v12 = vmul.f32 %v17443_v2, %v16383_v19  ;;  %v17446_v17 = vunpack.c.h.bf16 %v17426_v59  ;;  %v17447_v54 = vunpack.c.l.bf16 %v17425_v22 }
 0x94c   :  { %v8167_v0 = vmul.f32 %v17444_v10, %v16383_v19  ;;  %v16491_v26 = vmul.f32 %v17445_v18, %v16383_v19  ;;  %v17449_v6 = vunpack.c.h.bf16 %v17425_v22  ;;  %v17451_v7 = vunpack.c.l.bf16 %v17428_v45 }
 0x94d   :  { %v16496_v11 = vmul.f32 %v17446_v17, %v16383_v19  ;;  %v16501_v2 = vmul.f32 %v17447_v54, %v16383_v19  ;;  %v17453_v59 = vunpack.c.h.bf16 %v17428_v45  ;;  %v8174_v17 = vadd.f32 %v16486_v44, %v8136_v63 }
 0x94e   :  { %v16506_v4 = vmul.f32 %v17449_v6, %v16383_v19  ;;  %v16511_v10 = vmul.f32 %v17451_v7, %v16383_v19  ;;  %v8175_v54 = vadd.f32 %v16486_v44, %v8137_v53  ;;  %v8176_v52 = vadd.f32 %v16486_v44, %v8138_v13 }
 0x94f   :  { %17448 = vst [vmem:[#allocation17_spill] sm:$0xff] %v16501_v2  ;;  %v16516_v18 = vmul.f32 %v17453_v59, %v16383_v19  ;;  %v8177_v22 = vadd.f32 %v16486_v44, %v8139_v15  ;;  %v8178_v6 = vadd.f32 %v16486_v44, %v8140_v49  ;;  %v8179_v51 = vadd.f32 %v16486_v44, %v8141_v34 }
 0x950   :  { %17450 = vst [vmem:[#allocation5_spill] sm:$0xff] %v16506_v4  ;;  %17452 = vst [vmem:[#allocation52_spill] sm:$0xff] %v16511_v10  ;;  %v8180_v7 = vadd.f32 %v16486_v44, %v8142_v60  ;;  %v8181_v42 = vadd.f32 %v16486_v44, %v8143_v61  ;;  %v8182_v45 = vadd.f32 %v16486_v44, %v8144_v31 }
 0x951   :  { %17454 = vst [vmem:[#allocation54_spill] sm:$0xff] %v16516_v18  ;;  %v8183_v59 = vadd.f32 %v16486_v44, %v8145_v56  ;;  %v8184_v63 = vadd.f32 %v16486_v44, %v8146_v39  ;;  %v8185_v53 = vadd.f32 %v16486_v44, %v8147_v37  ;;  %v8186_v13 = vadd.f32 %v16486_v44, %v8148_v8 }
 0x952   :  { %v8187_v15 = vadd.f32 %v16486_v44, %v8149_v5  ;;  %v8188_v49 = vadd.f32 %v16486_v44, %v8150_v25  ;;  %v8189_v34 = vadd.f32 %v16486_v44, %v8151_v55  ;;  %v8190_v60 = vadd.f32 %v16486_v44, %v8152_v35 }
 0x953   :  { %v8191_v61 = vadd.f32 %v16486_v44, %v8153_v33  ;;  %v8192_v31 = vadd.f32 %v16486_v44, %v8154_v14  ;;  %v8193_v56 = vadd.f32 %v16486_v44, %v8155_v58  ;;  %v16539_v39 = vadd.f32 %v16486_v44, %v8156_v30 }
 0x954   :  { %v16542_v37 = vadd.f32 %v16486_v44, %v8157_v47  ;;  %v16545_v8 = vadd.f32 %v16486_v44, %v8158_v3  ;;  %v16548_v5 = vadd.f32 %v16486_v44, %v8159_v27  ;;  %v16551_v25 = vadd.f32 %v16486_v44, %v8160_v62 }
 0x955   :  { %v16554_v55 = vadd.f32 %v16486_v44, %v8161_v48  ;;  %v16557_v35 = vadd.f32 %v16486_v44, %v8162_v29  ;;  %v16560_v33 = vadd.f32 %v16486_v44, %v8163_v43  ;;  %v16563_v14 = vadd.f32 %v16486_v44, %v8164_v50 }
 0x956   :  { %v16566_v58 = vadd.f32 %v16486_v44, %v8165_v20  ;;  %v16569_v30 = vadd.f32 %v16486_v44, %v8166_v12  ;;  %v16572_v47 = vadd.f32 %v16486_v44, %v8167_v0  ;;  %v8206_v3 = vmax.f32 %v8174_v17, 0.0 }
 0x957   :  { %v8207_v27 = vmax.f32 %v8175_v54, 0.0  ;;  %v8208_v62 = vmax.f32 %v8176_v52, 0.0  ;;  %v8209_v48 = vmax.f32 %v8177_v22, 0.0  ;;  %v8210_v29 = vmax.f32 %v8178_v6, 0.0 }
 0x958   :  { %v8211_v1 = vmax.f32 %v8179_v51, 0.0  ;;  %v8212_v43 = vmax.f32 %v8180_v7, 0.0  ;;  %v8213_v18 = vmax.f32 %v8181_v42, 0.0  ;;  %v8214_v10 = vmax.f32 %v8182_v45, 0.0  ;;  %8238 = vst [vmem:[%s16931_s7] sm:$0xff] %v8206_v3 }
 0x959   :  { %v8215_v50 = vmax.f32 %v8183_v59, 0.0  ;;  %v8216_v4 = vmax.f32 %v8184_v63, 0.0  ;;  %v8217_v2 = vmax.f32 %v8185_v53, 0.0  ;;  %8239 = vst [vmem:[%s16931_s7 + $0x8] sm:$0xff] %v8207_v27  ;;  %8240 = vst [vmem:[%s16931_s7 + $0x10] sm:$0xff] %v8208_v62  ;;  %v8218_v51 = vmax.f32 %v8186_v13, 0.0 }
 0x95a   :  { %8241 = vst [vmem:[%s16931_s7 + $0x18] sm:$0xff] %v8209_v48  ;;  %v8219_v42 = vmax.f32 %v8187_v15, 0.0  ;;  %v8220_v52 = vmax.f32 %v8188_v49, 0.0  ;;  %v8221_v20 = vmax.f32 %v8189_v34, 0.0  ;;  %8242 = vst [vmem:[%s16931_s7 + $0x20] sm:$0xff] %v8210_v29  ;;  %v8222_v12 = vmax.f32 %v8190_v60, 0.0 }
 0x95b   :  { %8243 = vst [vmem:[%s16931_s7 + $0x28] sm:$0xff] %v8211_v1  ;;  %8244 = vst [vmem:[%s16931_s7 + $0x30] sm:$0xff] %v8212_v43  ;;  %v8223_v0 = vmax.f32 %v8191_v61, 0.0  ;;  %v8224_v17 = vmax.f32 %v8192_v31, 0.0  ;;  %v8225_v54 = vmax.f32 %v8193_v56, 0.0  ;;  %v8226_v1 = vmax.f32 %v16539_v39, 0.0 }
 0x95c   :  { %8245 = vst [vmem:[%s16931_s7 + $0x38] sm:$0xff] %v8213_v18  ;;  %8246 = vst [vmem:[%s16931_s7 + $0x40] sm:$0xff] %v8214_v10  ;;  %v8227_v18 = vmax.f32 %v16542_v37, 0.0  ;;  %v8228_v22 = vmax.f32 %v16545_v8, 0.0  ;;  %v8229_v10 = vmax.f32 %v16548_v5, 0.0  ;;  %v8232_v6 = vmax.f32 %v16557_v35, 0.0 }
 0x95d   :  { %8247 = vst [vmem:[%s16931_s7 + $0x48] sm:$0xff] %v8215_v50  ;;  %8248 = vst [vmem:[%s16931_s7 + $0x50] sm:$0xff] %v8216_v4  ;;  %v8231_v4 = vmax.f32 %v16554_v55, 0.0  ;;  %v8233_v7 = vmax.f32 %v16560_v33, 0.0  ;;  %v8234_v45 = vmax.f32 %v16563_v14, 0.0  ;;  %v8235_v59 = vmax.f32 %v16566_v58, 0.0 }
 0x95e   :  { %8249 = vst [vmem:[%s16931_s7 + $0x58] sm:$0xff] %v8217_v2  ;;  %8250 = vst [vmem:[%s16931_s7 + $0x60] sm:$0xff] %v8218_v51  ;;  %v8230_v2 = vmax.f32 %v16551_v25, 0.0  ;;  %v8236_v63 = vmax.f32 %v16569_v30, 0.0  ;;  %v8237_v53 = vmax.f32 %v16572_v47, 0.0  ;;  %v17455_v13 = vunpack.c.l.bf16 %v17427_v9 }
 0x95f   :  { %8251 = vst [vmem:[%s16931_s7 + $0x68] sm:$0xff] %v8219_v42  ;;  %8252 = vst [vmem:[%s16931_s7 + $0x70] sm:$0xff] %v8220_v52  ;;  %v17456_v49 = vunpack.c.h.bf16 %v17427_v9  ;;  %v17457_v60 = vunpack.c.l.bf16 %v17429_v40  ;;  %v17458_v31 = vunpack.c.h.bf16 %v17429_v40  ;;  %v17459_v9 = vunpack.c.l.bf16 %v15963_v57 }
 0x960   :  { %8253 = vst [vmem:[%s16931_s7 + $0x78] sm:$0xff] %v8221_v20  ;;  %8254 = vst [vmem:[%s16931_s7 + $0x80] sm:$0xff] %v8222_v12  ;;  %v8340_v15 = vmul.f32 %v17455_v13, %v16383_v19  ;;  %v17460_v39 = vunpack.c.h.bf16 %v15963_v57  ;;  %v17461_v8 = vunpack.c.l.bf16 %v16014_v23  ;;  %v17462_v25 = vunpack.c.h.bf16 %v16014_v23 }
 0x961   :  { %8255 = vst [vmem:[%s16931_s7 + $0x88] sm:$0xff] %v8223_v0  ;;  %8256 = vst [vmem:[%s16931_s7 + $0x90] sm:$0xff] %v8224_v17  ;;  %v8341_v34 = vmul.f32 %v17456_v49, %v16383_v19  ;;  %v8342_v61 = vmul.f32 %v17457_v60, %v16383_v19  ;;  %v8343_v56 = vmul.f32 %v17458_v31, %v16383_v19  ;;  %v17463_v35 = vunpack.c.l.bf16 %v16000_v38  ;;  %v17484_v49 = vld [vmem:[#allocation54_spill] sm:$0xff] }
 0x962   :  { %8257 = vst [vmem:[%s16931_s7 + $0x98] sm:$0xff] %v8225_v54  ;;  %8258 = vst [vmem:[%s16931_s7 + $0xa0] sm:$0xff] %v8226_v1  ;;  %v8344_v40 = vmul.f32 %v17459_v9, %v16383_v19  ;;  %v8345_v37 = vmul.f32 %v17460_v39, %v16383_v19  ;;  %v8346_v5 = vmul.f32 %v17461_v8, %v16383_v19  ;;  %v17464_v14 = vunpack.c.h.bf16 %v16000_v38 }
 0x963   :  { %8259 = vst [vmem:[%s16931_s7 + $0xa8] sm:$0xff] %v8227_v18  ;;  %8260 = vst [vmem:[%s16931_s7 + $0xb0] sm:$0xff] %v8228_v22  ;;  %v8347_v55 = vmul.f32 %v17462_v25, %v16383_v19  ;;  %v8348_v33 = vmul.f32 %v17463_v35, %v16383_v19  ;;  %v17465_v57 = vunpack.c.l.bf16 %v16058_v41  ;;  %v17466_v47 = vunpack.c.h.bf16 %v16058_v41 }
 0x964   :  { %8261 = vst [vmem:[%s16931_s7 + $0xb8] sm:$0xff] %v8229_v10  ;;  %8262 = vst [vmem:[%s16931_s7 + $0xc0] sm:$0xff] %v8230_v2  ;;  %v8349_v58 = vmul.f32 %v17464_v14, %v16383_v19  ;;  %v17467_v23 = vunpack.c.l.bf16 %v16044_v24  ;;  %v17468_v62 = vunpack.c.h.bf16 %v16044_v24  ;;  %v17469_v38 = vunpack.c.l.bf16 %v16097_v32 }
 0x965   :  { %8263 = vst [vmem:[%s16931_s7 + $0xc8] sm:$0xff] %v8231_v4  ;;  %8264 = vst [vmem:[%s16931_s7 + $0xd0] sm:$0xff] %v8232_v6  ;;  %v8350_v30 = vmul.f32 %v17465_v57, %v16383_v19  ;;  %v8351_v3 = vmul.f32 %v17466_v47, %v16383_v19  ;;  %v17470_v43 = vunpack.c.h.bf16 %v16097_v32  ;;  %v17471_v41 = vunpack.c.l.bf16 %v16083_v21 }
 0x966   :  { %8265 = vst [vmem:[%s16931_s7 + $0xd8] sm:$0xff] %v8233_v7  ;;  %8266 = vst [vmem:[%s16931_s7 + $0xe0] sm:$0xff] %v8234_v45  ;;  %v8352_v27 = vmul.f32 %v17467_v23, %v16383_v19  ;;  %v8353_v48 = vmul.f32 %v17468_v62, %v16383_v19  ;;  %v8354_v29 = vmul.f32 %v17469_v38, %v16383_v19  ;;  %v17472_v42 = vunpack.c.h.bf16 %v16083_v21  ;;  %v17481_v45 = vld [vmem:[#allocation17_spill] sm:$0xff] }
 0x967   :  { %8267 = vst [vmem:[%s16931_s7 + $0xe8] sm:$0xff] %v8235_v59  ;;  %8268 = vst [vmem:[%s16931_s7 + $0xf0] sm:$0xff] %v8236_v63  ;;  %v8355_v50 = vmul.f32 %v17470_v43, %v16383_v19  ;;  %v8356_v51 = vmul.f32 %v17471_v41, %v16383_v19  ;;  %v17473_v24 = vunpack.c.l.bf16 %v16140_v46  ;;  %v17474_v12 = vunpack.c.h.bf16 %v16140_v46 }
 0x968   :  { %8269 = vst [vmem:[%s16931_s7 + $0xf8] sm:$0xff] %v8237_v53  ;;  %v8357_v52 = vmul.f32 %v17472_v42, %v16383_v19  ;;  %v17475_v32 = vunpack.c.l.bf16 %v16125_v28  ;;  %v17476_v54 = vunpack.c.h.bf16 %v16125_v28  ;;  %v17477_v21 = vunpack.c.l.bf16 %v16181_v16  ;;  %v17483_v53 = vld [vmem:[#allocation52_spill] sm:$0xff] }
 0x969   :  { %v8358_v20 = vmul.f32 %v17473_v24, %v16383_v19  ;;  %v8359_v0 = vmul.f32 %v17474_v12, %v16383_v19  ;;  %v17478_v22 = vunpack.c.h.bf16 %v16181_v16  ;;  %v17479_v46 = vunpack.c.l.bf16 %v16168_v36  ;;  %v17482_v16 = vld [vmem:[#allocation5_spill] sm:$0xff] }
 0x96a   :  { %v8360_v17 = vmul.f32 %v17475_v32, %v16383_v19  ;;  %v8361_v1 = vmul.f32 %v17476_v54, %v16383_v19  ;;  %v8362_v18 = vmul.f32 %v17477_v21, %v16383_v19  ;;  %v17480_v4 = vunpack.c.h.bf16 %v16168_v36 }
 0x96b   :  { %v8363_v10 = vmul.f32 %v17478_v22, %v16383_v19  ;;  %v8364_v2 = vmul.f32 %v17479_v46, %v16383_v19  ;;  %v8366_v28 = vadd.f32 %v16491_v26, %v16486_v44  ;;  %v8367_v7 = vadd.f32 %v16496_v11, %v16486_v44 }
 0x96c   :  { %v8365_v6 = vmul.f32 %v17480_v4, %v16383_v19  ;;  %v8368_v59 = vadd.f32 %v17481_v45, %v16486_v44  ;;  %v8369_v63 = vadd.f32 %v17482_v16, %v16486_v44  ;;  %v8370_v13 = vadd.f32 %v17483_v53, %v16486_v44 }
 0x96d   :  { %v8371_v60 = vadd.f32 %v17484_v49, %v16486_v44  ;;  %v8372_v36 = vadd.f32 %v8340_v15, %v16486_v44  ;;  %v8373_v19 = vadd.f32 %v8341_v34, %v16486_v44  ;;  %v8374_v26 = vadd.f32 %v8342_v61, %v16486_v44 }
 0x96e   :  { %v8375_v11 = vadd.f32 %v8343_v56, %v16486_v44  ;;  %v8376_v31 = vadd.f32 %v8344_v40, %v16486_v44  ;;  %v8377_v9 = vadd.f32 %v8345_v37, %v16486_v44  ;;  %v8378_v39 = vadd.f32 %v8346_v5, %v16486_v44 }
 0x96f   :  { %v8379_v8 = vadd.f32 %v8347_v55, %v16486_v44  ;;  %v8380_v25 = vadd.f32 %v8348_v33, %v16486_v44  ;;  %v8381_v35 = vadd.f32 %v8349_v58, %v16486_v44  ;;  %v8382_v15 = vadd.f32 %v8350_v30, %v16486_v44 }
 0x970   :  { %v8383_v34 = vadd.f32 %v8351_v3, %v16486_v44  ;;  %v8384_v61 = vadd.f32 %v8352_v27, %v16486_v44  ;;  %v8385_v56 = vadd.f32 %v8353_v48, %v16486_v44  ;;  %v8386_v40 = vadd.f32 %v8354_v29, %v16486_v44 }
 0x971   :  { %v8387_v37 = vadd.f32 %v8355_v50, %v16486_v44  ;;  %v16789_v5 = vadd.f32 %v8356_v51, %v16486_v44  ;;  %v16792_v55 = vadd.f32 %v8357_v52, %v16486_v44  ;;  %v16795_v33 = vadd.f32 %v8358_v20, %v16486_v44 }
 0x972   :  { %v16798_v14 = vadd.f32 %v8359_v0, %v16486_v44  ;;  %v16801_v58 = vadd.f32 %v8360_v17, %v16486_v44  ;;  %v16804_v57 = vadd.f32 %v8361_v1, %v16486_v44  ;;  %v16807_v30 = vadd.f32 %v8362_v18, %v16486_v44 }
 0x973   :  { %v16810_v47 = vadd.f32 %v8363_v10, %v16486_v44  ;;  %v16813_v3 = vadd.f32 %v8364_v2, %v16486_v44  ;;  %v16816_v23 = vadd.f32 %v8365_v6, %v16486_v44  ;;  %v8398_v27 = vmax.f32 %v8366_v28, 0.0 }
 0x974   :  { %v8399_v62 = vmax.f32 %v8367_v7, 0.0  ;;  %v8400_v48 = vmax.f32 %v8368_v59, 0.0  ;;  %v8401_v38 = vmax.f32 %v8369_v63, 0.0  ;;  %v8402_v29 = vmax.f32 %v8370_v13, 0.0 }
 0x975   :  { %v8403_v43 = vmax.f32 %v8371_v60, 0.0  ;;  %v8404_v50 = vmax.f32 %v8372_v36, 0.0  ;;  %v8405_v41 = vmax.f32 %v8373_v19, 0.0  ;;  %v8406_v51 = vmax.f32 %v8374_v26, 0.0  ;;  %8851 = vst [vmem:[%s16931_s7 + $0x100] sm:$0xff] %v8398_v27 }
 0x976   :  { %v8407_v42 = vmax.f32 %v8375_v11, 0.0  ;;  %8852 = vst [vmem:[%s16931_s7 + $0x108] sm:$0xff] %v8399_v62  ;;  %v8408_v44 = vmax.f32 %v8376_v31, 0.0  ;;  %v8409_v52 = vmax.f32 %v8377_v9, 0.0  ;;  %v8410_v24 = vmax.f32 %v8378_v39, 0.0  ;;  %8853 = vst [vmem:[%s16931_s7 + $0x110] sm:$0xff] %v8400_v48 }
 0x977   :  { %v8411_v20 = vmax.f32 %v8379_v8, 0.0  ;;  %8854 = vst [vmem:[%s16931_s7 + $0x118] sm:$0xff] %v8401_v38  ;;  %8855 = vst [vmem:[%s16931_s7 + $0x120] sm:$0xff] %v8402_v29  ;;  %v8412_v12 = vmax.f32 %v8380_v25, 0.0  ;;  %v8413_v0 = vmax.f32 %v8381_v35, 0.0  ;;  %v8414_v32 = vmax.f32 %v8382_v15, 0.0 }
 0x978   :  { %8856 = vst [vmem:[%s16931_s7 + $0x128] sm:$0xff] %v8403_v43  ;;  %v8415_v17 = vmax.f32 %v8383_v34, 0.0  ;;  %8857 = vst [vmem:[%s16931_s7 + $0x130] sm:$0xff] %v8404_v50  ;;  %v8416_v54 = vmax.f32 %v8384_v61, 0.0  ;;  %v8417_v1 = vmax.f32 %v8385_v56, 0.0  ;;  %v8418_v21 = vmax.f32 %v8386_v40, 0.0 }
 0x979   :  { %8858 = vst [vmem:[%s16931_s7 + $0x138] sm:$0xff] %v8405_v41  ;;  %8859 = vst [vmem:[%s16931_s7 + $0x140] sm:$0xff] %v8406_v51  ;;  %v8419_v18 = vmax.f32 %v8387_v37, 0.0  ;;  %v8420_v22 = vmax.f32 %v16789_v5, 0.0  ;;  %v8421_v10 = vmax.f32 %v16792_v55, 0.0  ;;  %v8422_v46 = vmax.f32 %v16795_v33, 0.0 }
 0x97a   :  { %8860 = vst [vmem:[%s16931_s7 + $0x148] sm:$0xff] %v8407_v42  ;;  %8861 = vst [vmem:[%s16931_s7 + $0x150] sm:$0xff] %v8408_v44  ;;  %v8423_v2 = vmax.f32 %v16798_v14, 0.0  ;;  %v8424_v4 = vmax.f32 %v16801_v58, 0.0  ;;  %v8425_v6 = vmax.f32 %v16804_v57, 0.0  ;;  %v8426_v28 = vmax.f32 %v16807_v30, 0.0 }
 0x97b   :  { %8862 = vst [vmem:[%s16931_s7 + $0x158] sm:$0xff] %v8409_v52  ;;  %8863 = vst [vmem:[%s16931_s7 + $0x160] sm:$0xff] %v8410_v24  ;;  %v8427_v7 = vmax.f32 %v16810_v47, 0.0  ;;  %v8428_v45 = vmax.f32 %v16813_v3, 0.0  ;;  %v8429_v59 = vmax.f32 %v16816_v23, 0.0 }
 0x97c   :  { %8864 = vst [vmem:[%s16931_s7 + $0x168] sm:$0xff] %v8411_v20  ;;  %8865 = vst [vmem:[%s16931_s7 + $0x170] sm:$0xff] %v8412_v12 }
 0x97d   :  { %8866 = vst [vmem:[%s16931_s7 + $0x178] sm:$0xff] %v8413_v0  ;;  %8867 = vst [vmem:[%s16931_s7 + $0x180] sm:$0xff] %v8414_v32 }
 0x97e   :  { %8868 = vst [vmem:[%s16931_s7 + $0x188] sm:$0xff] %v8415_v17  ;;  %8869 = vst [vmem:[%s16931_s7 + $0x190] sm:$0xff] %v8416_v54 }
 0x97f   :  { %8870 = vst [vmem:[%s16931_s7 + $0x198] sm:$0xff] %v8417_v1  ;;  %8871 = vst [vmem:[%s16931_s7 + $0x1a0] sm:$0xff] %v8418_v21 }
 0x980   :  { %8872 = vst [vmem:[%s16931_s7 + $0x1a8] sm:$0xff] %v8419_v18  ;;  %8873 = vst [vmem:[%s16931_s7 + $0x1b0] sm:$0xff] %v8420_v22 }
 0x981   :  { %8874 = vst [vmem:[%s16931_s7 + $0x1b8] sm:$0xff] %v8421_v10  ;;  %8875 = vst [vmem:[%s16931_s7 + $0x1c0] sm:$0xff] %v8422_v46 }
 0x982   :  { %8876 = vst [vmem:[%s16931_s7 + $0x1c8] sm:$0xff] %v8423_v2  ;;  %8877 = vst [vmem:[%s16931_s7 + $0x1d0] sm:$0xff] %v8424_v4 }
 0x983   :  { %8878 = vst [vmem:[%s16931_s7 + $0x1d8] sm:$0xff] %v8425_v6  ;;  %8879 = vst [vmem:[%s16931_s7 + $0x1e0] sm:$0xff] %v8426_v28 }
 0x984   :  { %8880 = vst [vmem:[%s16931_s7 + $0x1e8] sm:$0xff] %v8427_v7  ;;  %8881 = vst [vmem:[%s16931_s7 + $0x1f0] sm:$0xff] %v8428_v45 }
 0x985   :  { %8882 = vst [vmem:[%s16931_s7 + $0x1f8] sm:$0xff] %v8429_v59 }

</bundles_post_ra>
